<compile_context>
chip_gen: v6e
topology: v6e:2x2x1
jax: 0.10.0
libtpu: 0.0.40
codegen_flags: <defaults>
</compile_context>

<pallas_src>
import jax
import jax.numpy as jnp
from jax import lax
from jax.experimental import pallas as pl
from jax.experimental.pallas import tpu as pltpu

# Dims fixed by the PyTorch module.
C_OUT = 20
K = 3
H_IN = W_IN = 28
H_POOL = W_POOL = 13
N_POS = H_POOL * W_POOL            # 169
POS_PAD = 192                      # 169 padded so POS_PAD*C_OUT = 3840 = 30*128
N_FLAT = C_OUT * N_POS             # 3380 (PyTorch flatten width)
N_FLAT_PAD = POS_PAD * C_OUT       # 3840
HID = 128
N_CLS = 10
N_PHASE = 4                        # 2x2 pooling phases
ROWS_PER_IMG = N_PHASE * POS_PAD   # 768 patch rows per image

B_CONV_TARGET = 8                  # images per conv grid step (v5e-friendly, ~16 MB VMEM max)
TB_MLP_TARGET = 256                # rows per MLP grid step (fits v7x 64 MiB VMEM comfortably)


def _pick_batch_block(n_pad, target):
    """Largest multiple-of-8 divisor of n_pad that is <= target (n_pad % 8 == 0)."""
    b = min(target, n_pad)
    b -= b % 8
    b = max(b, 8)
    while n_pad % b:
        b -= 8
    return b


def _extract_pool_patches(x):
    """x: (N, 1, 28, 28) -> patches (N, 768, 9), rows = phase*192 + pooled_pos.

    patches[n, p*192 + i*13 + j, dy*3 + dx] = x[n, 0, 2*i + pi + dy, 2*j + pj + dx]
    with p = 2*pi + pj; rows 169..191 of each phase are zero padding.
    Pure static-slice / stack / pad glue (no arithmetic).
    """
    n = x.shape[0]
    x2 = x[:, 0]                                            # (N, 28, 28)
    phases = []
    for pi in range(2):
        for pj in range(2):
            taps = []
            for dy in range(K):
                for dx in range(K):
                    s, t = pi + dy, pj + dx
                    v = x2[:, s:s + 2 * H_POOL - 1:2, t:t + 2 * W_POOL - 1:2]  # (N,13,13)
                    taps.append(v.reshape(n, N_POS))
            ph = jnp.stack(taps, axis=-1)                   # (N, 169, 9)
            ph = jnp.pad(ph, ((0, 0), (0, POS_PAD - N_POS), (0, 0)))  # (N, 192, 9)
            phases.append(ph)
    return jnp.concatenate(phases, axis=1)                  # (N, 768, 9)


def _conv_pool_relu_kernel(p_ref, w_ref, b_ref, o_ref):
    # p_ref: (B*768, 9) | w_ref: (9, 20) | b_ref: (1, 20) | o_ref: (B, 192, 20)
    b = o_ref.shape[0]
    # Single MXU push over all images and all 4 pooling phases in the block.
    m = jnp.dot(p_ref[...], w_ref[...], preferred_element_type=jnp.float32)  # (B*768, 20)
    r = m.reshape(b, N_PHASE, POS_PAD, C_OUT)               # layout-preserving split
    mx = jnp.maximum(jnp.maximum(r[:, 0], r[:, 1]),
                     jnp.maximum(r[:, 2], r[:, 3]))         # 2x2 max-pool == phase max
    # per-channel conv bias commutes with max; add once, then ReLU
    o_ref[...] = jnp.maximum(mx + b_ref[...], 0.0)


def _mlp_softmax_kernel(x_ref, w1_ref, b1_ref, w2_ref, o_ref):
    # x_ref: (TB, 3840) | w1_ref: (3840, 128) | b1_ref: (1, 128) | w2_ref: (128, 10)
    h = jnp.dot(x_ref[...], w1_ref[...], preferred_element_type=jnp.float32) + b1_ref[...]
    h = jnp.maximum(h, 0.0)                                              # relu(fc1)
    logits = jnp.dot(h, w2_ref[...], preferred_element_type=jnp.float32)  # fc2 (no bias)
    m = jnp.max(logits, axis=-1, keepdims=True)                          # softmax(dim=1)
    e = jnp.exp(logits - m)
    o_ref[...] = e / jnp.sum(e, axis=-1, keepdims=True)


def prepare_params(conv_w, conv_b, fc1_w, fc1_b, fc2_w):
    """One-time (outside jit) weight preprocessing: reshape/transpose/permute/pad."""
    wc = conv_w.reshape(C_OUT, K * K).T.astype(jnp.float32)              # (9, 20)
    bc = conv_b.reshape(1, C_OUT).astype(jnp.float32)                    # (1, 20)
    # fc1 columns are indexed c*169 + pos in PyTorch flatten order; kernel's flat layout
    # is pos_padded*20 + c, so permute + zero-pad the weight rows to (3840, 128).
    w1 = fc1_w.T.reshape(C_OUT, N_POS, HID).astype(jnp.float32)          # [c, pos, o]
    w1 = jnp.pad(w1, ((0, 0), (0, POS_PAD - N_POS), (0, 0)))             # [c, pos_pad, o]
    w1p = jnp.transpose(w1, (1, 0, 2)).reshape(N_FLAT_PAD, HID)          # [pos*20+c, o]
    b1 = fc1_b.reshape(1, HID).astype(jnp.float32)                       # (1, 128)
    w2t = fc2_w.T.astype(jnp.float32)                                    # (128, 10)
    return wc, bc, w1p, b1, w2t


def net_forward(x, wc, bc, w1p, b1, w2t):
    n = x.shape[0]
    n_pad = pl.cdiv(n, 8) * 8

    patches = _extract_pool_patches(x)                                   # (n, 768, 9)
    if n_pad != n:
        patches = jnp.pad(patches, ((0, n_pad - n), (0, 0), (0, 0)))
    patches2d = patches.reshape(n_pad * ROWS_PER_IMG, K * K)             # (n_pad*768, 9)

    bconv = _pick_batch_block(n_pad, B_CONV_TARGET)
    pooled = pl.pallas_call(
        _conv_pool_relu_kernel,
        out_shape=jax.ShapeDtypeStruct((n_pad, POS_PAD, C_OUT), jnp.float32),
        grid=(n_pad // bconv,),
        in_specs=[
            pl.BlockSpec((bconv * ROWS_PER_IMG, K * K), lambda i: (i, 0)),
            pl.BlockSpec((K * K, C_OUT), lambda i: (0, 0)),
            pl.BlockSpec((1, C_OUT), lambda i: (0, 0)),
        ],
        out_specs=pl.BlockSpec((bconv, POS_PAD, C_OUT), lambda i: (i, 0, 0)),
        compiler_params=pltpu.CompilerParams(dimension_semantics=("parallel",)),
    )(patches2d, wc, bc)                                                 # (n_pad, 192, 20)

    # Free HBM reshape; feature order is pos*20 + c, already baked into w1p.
    flat = pooled.reshape(n_pad, N_FLAT_PAD)                             # (n_pad, 3840)

    tb = _pick_batch_block(n_pad, TB_MLP_TARGET)
    out = pl.pallas_call(
        _mlp_softmax_kernel,
        out_shape=jax.ShapeDtypeStruct((n_pad, N_CLS), jnp.float32),
        grid=(n_pad // tb,),
        in_specs=[
            pl.BlockSpec((tb, N_FLAT_PAD), lambda i: (i, 0)),
            pl.BlockSpec((N_FLAT_PAD, HID), lambda i: (0, 0)),
            pl.BlockSpec((1, HID), lambda i: (0, 0)),
            pl.BlockSpec((HID, N_CLS), lambda i: (0, 0)),
        ],
        out_specs=pl.BlockSpec((tb, N_CLS), lambda i: (i, 0)),
        compiler_params=pltpu.CompilerParams(dimension_semantics=("parallel",)),
    )(flat, w1p, b1, w2t)
    return out[:n]


def reference_forward(x, conv_w, conv_b, fc1_w, fc1_b, fc2_w):
    with jax.default_matmul_precision("highest"):
        conv = lax.conv_general_dilated(
            x, conv_w, window_strides=(1, 1), padding="VALID",
            dimension_numbers=("NCHW", "OIHW", "NCHW"))
        conv = conv + conv_b[None, :, None, None]
        pooled = lax.reduce_window(conv, -jnp.inf, lax.max,
                                   (1, 1, 2, 2), (1, 1, 2, 2), "VALID")
        a = jnp.maximum(pooled, 0.0)
        flat = a.reshape(a.shape[0], -1)
        h = jnp.maximum(flat @ fc1_w.T + fc1_b, 0.0)
        logits = h @ fc2_w.T
        return jax.nn.softmax(logits, axis=1)


if __name__ == "__main__":
    key = jax.random.PRNGKey(0)
    kx, k1, k2, k3, k4, k5 = jax.random.split(key, 6)
    batch = 2
    # input spatial size must be 28 so that conv->pool gives 13x13 (fc1 expects 20*13*13)
    x = jax.random.normal(kx, (batch, 1, H_IN, W_IN), jnp.float32)

    # deterministic synthetic parameters (shapes follow the torch module)
    conv_w = jax.random.normal(k1, (C_OUT, 1, K, K), jnp.float32) * 0.1
    conv_b = jax.random.normal(k2, (C_OUT,), jnp.float32) * 0.1
    fc1_w = jax.random.normal(k3, (HID, N_FLAT), jnp.float32) * 0.02
    fc1_b = jax.random.normal(k4, (HID,), jnp.float32) * 0.1
    fc2_w = jax.random.normal(k5, (N_CLS, HID), jnp.float32) * 0.1

    params = prepare_params(conv_w, conv_b, fc1_w, fc1_b, fc2_w)   # once, outside jit
    out = jax.jit(net_forward)(x, *params)
    out = jax.block_until_ready(out)

    ref = reference_forward(x, conv_w, conv_b, fc1_w, fc1_b, fc2_w)
    assert out.shape == (batch, N_CLS)
    assert bool(jnp.allclose(out, ref, atol=2e-3, rtol=2e-3)), \
        f"max abs diff {float(jnp.max(jnp.abs(out - ref)))}"
    print("KERNEL_OK")
</pallas_src>

<mosaic_0001>
module attributes {stable_mosaic.version = 11 : i64} {
  func.func @_conv_pool_relu_kernel(%arg0: i32, %arg1: memref<6144x9xf32, #tpu.memory_space<vmem>>, %arg2: memref<9x20xf32, #tpu.memory_space<vmem>>, %arg3: memref<1x20xf32, #tpu.memory_space<vmem>>, %arg4: memref<8x192x20xf32, #tpu.memory_space<vmem>>) attributes {dimension_semantics = [#tpu.dimension_semantics<parallel>], iteration_bounds = array<i64: 1>, scalar_prefetch = 0 : i64, scratch_operands = 0 : i64, tpu.core_type = #tpu.core_type<tc>, window_params = [{transform_indices = @transform_0, window_bounds = array<i64: 6144, 9>}, {pipeline_mode = #tpu.pipeline_mode<synchronous>, transform_indices = @transform_1, window_bounds = array<i64: 9, 20>}, {pipeline_mode = #tpu.pipeline_mode<synchronous>, transform_indices = @transform_2, window_bounds = array<i64: 1, 20>}, {transform_indices = @transform_3, window_bounds = array<i64: 8, 192, 20>}]} {
    %c0 = arith.constant 0 : index
    %c0_0 = arith.constant 0 : index
    %0 = vector.load %arg1[%c0, %c0_0] : memref<6144x9xf32, #tpu.memory_space<vmem>>, vector<6144x9xf32>
    %c0_1 = arith.constant 0 : index
    %c0_2 = arith.constant 0 : index
    %1 = vector.load %arg2[%c0_1, %c0_2] : memref<9x20xf32, #tpu.memory_space<vmem>>, vector<9x20xf32>
    %cst = arith.constant dense<0.000000e+00> : vector<6144x20xf32>
    %2 = tpu.matmul %0, %1, %cst {dimension_numbers = #tpu.dot_dimension_numbers<[1], [0], [0], [1], [0, 0, 1, 1], [], []>} : vector<6144x9xf32>, vector<9x20xf32>, vector<6144x20xf32> -> vector<6144x20xf32>
    %3 = vector.shape_cast %2 : vector<6144x20xf32> to vector<8x4x192x20xf32>
    %4 = vector.extract_strided_slice %3 {offsets = [0, 0, 0, 0], sizes = [8, 1, 192, 20], strides = [1, 1, 1, 1]} : vector<8x4x192x20xf32> to vector<8x1x192x20xf32>
    %5 = vector.shape_cast %4 : vector<8x1x192x20xf32> to vector<8x192x20xf32>
    %6 = vector.extract_strided_slice %3 {offsets = [0, 1, 0, 0], sizes = [8, 1, 192, 20], strides = [1, 1, 1, 1]} : vector<8x4x192x20xf32> to vector<8x1x192x20xf32>
    %7 = vector.shape_cast %6 : vector<8x1x192x20xf32> to vector<8x192x20xf32>
    %8 = arith.maximumf %5, %7 : vector<8x192x20xf32>
    %9 = vector.extract_strided_slice %3 {offsets = [0, 2, 0, 0], sizes = [8, 1, 192, 20], strides = [1, 1, 1, 1]} : vector<8x4x192x20xf32> to vector<8x1x192x20xf32>
    %10 = vector.shape_cast %9 : vector<8x1x192x20xf32> to vector<8x192x20xf32>
    %11 = vector.extract_strided_slice %3 {offsets = [0, 3, 0, 0], sizes = [8, 1, 192, 20], strides = [1, 1, 1, 1]} : vector<8x4x192x20xf32> to vector<8x1x192x20xf32>
    %12 = vector.shape_cast %11 : vector<8x1x192x20xf32> to vector<8x192x20xf32>
    %13 = arith.maximumf %10, %12 : vector<8x192x20xf32>
    %14 = arith.maximumf %8, %13 : vector<8x192x20xf32>
    %c0_3 = arith.constant 0 : index
    %c0_4 = arith.constant 0 : index
    %15 = vector.load %arg3[%c0_3, %c0_4] : memref<1x20xf32, #tpu.memory_space<vmem>>, vector<1x20xf32>
    %16 = vector.shape_cast %15 : vector<1x20xf32> to vector<1x1x20xf32>
    %17 = vector.broadcast %16 : vector<1x1x20xf32> to vector<8x192x20xf32>
    %18 = arith.addf %14, %17 : vector<8x192x20xf32>
    %cst_5 = arith.constant 0.000000e+00 : f32
    %19 = vector.broadcast %cst_5 : f32 to vector<8x192x20xf32>
    %20 = arith.maximumf %18, %19 : vector<8x192x20xf32>
    %c0_6 = arith.constant 0 : index
    %c0_7 = arith.constant 0 : index
    %c0_8 = arith.constant 0 : index
    %21 = vector.load %arg4[%c0_6, %c0_7, %c0_8] : memref<8x192x20xf32, #tpu.memory_space<vmem>>, vector<8x192x20xf32>
    tpu.vector_store %arg4[%c0_6, %c0_7, %c0_8], %20 {strides = array<i32>} : memref<8x192x20xf32, #tpu.memory_space<vmem>>, vector<8x192x20xf32>,
    return
  }
  func.func @transform_0(%arg0: i32) -> (i32, i32) {
    %c0_i32 = arith.constant 0 : i32
    %c0_i32_0 = arith.constant 0 : i32
    return %arg0, %c0_i32 : i32, i32
  }
  func.func @transform_1(%arg0: i32) -> (i32, i32) {
    %c0_i32 = arith.constant 0 : i32
    %c0_i32_0 = arith.constant 0 : i32
    %c0_i32_1 = arith.constant 0 : i32
    return %c0_i32, %c0_i32_0 : i32, i32
  }
  func.func @transform_2(%arg0: i32) -> (i32, i32) {
    %c0_i32 = arith.constant 0 : i32
    %c0_i32_0 = arith.constant 0 : i32
    %c0_i32_1 = arith.constant 0 : i32
    return %c0_i32, %c0_i32_0 : i32, i32
  }
  func.func @transform_3(%arg0: i32) -> (i32, i32, i32) {
    %c0_i32 = arith.constant 0 : i32
    %c0_i32_0 = arith.constant 0 : i32
    %c0_i32_1 = arith.constant 0 : i32
    return %arg0, %c0_i32, %c0_i32_0 : i32, i32, i32
  }
}

module attributes {stable_mosaic.version = 11 : i64} {
  func.func @_mlp_softmax_kernel(%arg0: i32, %arg1: memref<8x3840xf32, #tpu.memory_space<vmem>>, %arg2: memref<3840x128xf32, #tpu.memory_space<vmem>>, %arg3: memref<1x128xf32, #tpu.memory_space<vmem>>, %arg4: memref<128x10xf32, #tpu.memory_space<vmem>>, %arg5: memref<8x10xf32, #tpu.memory_space<vmem>>) attributes {dimension_semantics = [#tpu.dimension_semantics<parallel>], iteration_bounds = array<i64: 1>, scalar_prefetch = 0 : i64, scratch_operands = 0 : i64, tpu.core_type = #tpu.core_type<tc>, window_params = [{transform_indices = @transform_0, window_bounds = array<i64: 8, 3840>}, {pipeline_mode = #tpu.pipeline_mode<synchronous>, transform_indices = @transform_1, window_bounds = array<i64: 3840, 128>}, {pipeline_mode = #tpu.pipeline_mode<synchronous>, transform_indices = @transform_2, window_bounds = array<i64: 1, 128>}, {pipeline_mode = #tpu.pipeline_mode<synchronous>, transform_indices = @transform_3, window_bounds = array<i64: 128, 10>}, {transform_indices = @transform_4, window_bounds = array<i64: 8, 10>}]} {
    %c0 = arith.constant 0 : index
    %c0_0 = arith.constant 0 : index
    %0 = vector.load %arg1[%c0, %c0_0] : memref<8x3840xf32, #tpu.memory_space<vmem>>, vector<8x3840xf32>
    %c0_1 = arith.constant 0 : index
    %c0_2 = arith.constant 0 : index
    %1 = vector.load %arg2[%c0_1, %c0_2] : memref<3840x128xf32, #tpu.memory_space<vmem>>, vector<3840x128xf32>
    %cst = arith.constant dense<0.000000e+00> : vector<8x128xf32>
    %2 = tpu.matmul %0, %1, %cst {dimension_numbers = #tpu.dot_dimension_numbers<[1], [0], [0], [1], [0, 0, 1, 1], [], []>} : vector<8x3840xf32>, vector<3840x128xf32>, vector<8x128xf32> -> vector<8x128xf32>
    %c0_3 = arith.constant 0 : index
    %c0_4 = arith.constant 0 : index
    %3 = vector.load %arg3[%c0_3, %c0_4] : memref<1x128xf32, #tpu.memory_space<vmem>>, vector<1x128xf32>
    %4 = vector.broadcast %3 : vector<1x128xf32> to vector<8x128xf32>
    %5 = arith.addf %2, %4 : vector<8x128xf32>
    %cst_5 = arith.constant 0.000000e+00 : f32
    %6 = vector.broadcast %cst_5 : f32 to vector<8x128xf32>
    %7 = arith.maximumf %5, %6 : vector<8x128xf32>
    %c0_6 = arith.constant 0 : index
    %c0_7 = arith.constant 0 : index
    %8 = vector.load %arg4[%c0_6, %c0_7] : memref<128x10xf32, #tpu.memory_space<vmem>>, vector<128x10xf32>
    %cst_8 = arith.constant dense<0.000000e+00> : vector<8x10xf32>
    %9 = tpu.matmul %7, %8, %cst_8 {dimension_numbers = #tpu.dot_dimension_numbers<[1], [0], [0], [1], [0, 0, 1, 1], [], []>} : vector<8x128xf32>, vector<128x10xf32>, vector<8x10xf32> -> vector<8x10xf32>
    %cst_9 = arith.constant dense<0xFF800000> : vector<8xf32>
    %10 = vector.multi_reduction <maximumf>, %9, %cst_9 [1] : vector<8x10xf32> to vector<8xf32>
    %11 = vector.shape_cast %10 : vector<8xf32> to vector<8x1xf32>
    %12 = vector.broadcast %11 : vector<8x1xf32> to vector<8x10xf32>
    %13 = arith.subf %9, %12 : vector<8x10xf32>
    %14 = math.exp %13 : vector<8x10xf32>
    %cst_10 = arith.constant dense<0.000000e+00> : vector<8xf32>
    %15 = vector.multi_reduction <add>, %14, %cst_10 [1] : vector<8x10xf32> to vector<8xf32>
    %16 = vector.shape_cast %15 : vector<8xf32> to vector<8x1xf32>
    %17 = vector.broadcast %16 : vector<8x1xf32> to vector<8x10xf32>
    %18 = arith.divf %14, %17 : vector<8x10xf32>
    %c0_11 = arith.constant 0 : index
    %c0_12 = arith.constant 0 : index
    %19 = vector.load %arg5[%c0_11, %c0_12] : memref<8x10xf32, #tpu.memory_space<vmem>>, vector<8x10xf32>
    tpu.vector_store %arg5[%c0_11, %c0_12], %18 {strides = array<i32>} : memref<8x10xf32, #tpu.memory_space<vmem>>, vector<8x10xf32>,
    return
  }
  func.func @transform_0(%arg0: i32) -> (i32, i32) {
    %c0_i32 = arith.constant 0 : i32
    %c0_i32_0 = arith.constant 0 : i32
    return %arg0, %c0_i32 : i32, i32
  }
  func.func @transform_1(%arg0: i32) -> (i32, i32) {
    %c0_i32 = arith.constant 0 : i32
    %c0_i32_0 = arith.constant 0 : i32
    %c0_i32_1 = arith.constant 0 : i32
    return %c0_i32, %c0_i32_0 : i32, i32
  }
  func.func @transform_2(%arg0: i32) -> (i32, i32) {
    %c0_i32 = arith.constant 0 : i32
    %c0_i32_0 = arith.constant 0 : i32
    %c0_i32_1 = arith.constant 0 : i32
    return %c0_i32, %c0_i32_0 : i32, i32
  }
  func.func @transform_3(%arg0: i32) -> (i32, i32) {
    %c0_i32 = arith.constant 0 : i32
    %c0_i32_0 = arith.constant 0 : i32
    %c0_i32_1 = arith.constant 0 : i32
    return %c0_i32, %c0_i32_0 : i32, i32
  }
  func.func @transform_4(%arg0: i32) -> (i32, i32) {
    %c0_i32 = arith.constant 0 : i32
    %c0_i32_0 = arith.constant 0 : i32
    return %arg0, %c0_i32 : i32, i32
  }
}

</mosaic_0001>

<bundles_post_ra>
// kernel: net_forward.3
= control target key start
LH: loop header
LB: loop body
LE: loop exit
PB: predicated region body
PF: predicated region fallthrough
CT: control target
= control target key end

     0   :  { %vm2273_vm0 = vmmov 0   ;;  %vm1671_vm1 = vcmask 80896   ;;  %s3886_s1 = inlined_call_operand.vmem [shape: f32[3840,128], index: 1, kind: input, shape index: {}]   ;;  %s3887_s0 = inlined_call_operand.vmem [shape: f32[8,3840], index: 0, kind: input, shape index: {}]   ;;  %s3888_s3 = inlined_call_operand.vmem [shape: f32[128,10], index: 3, kind: input, shape index: {}]   ;;  %s3889_s2 = inlined_call_operand.vmem [shape: f32[1,128], index: 2, kind: input, shape index: {}]   ;;  %s3890_s4 = inlined_call_operand.vmem [shape: f32[8,10], index: 4, kind: output, shape index: {}]  }
   0x1   :  { %v78_v0 = vld [vmem:[%s3886_s1 + $0xf8] sm:$0xff]  ;;  %v77_v2 = vld [vmem:[%s3886_s1 + $0xf0] sm:$0xff]  ;;  %v76_v6 = vld [vmem:[%s3886_s1 + $0xe8] sm:$0xff] }
   0x2   :  { %v62_v1 = vld [vmem:[%s3886_s1 + $0x78] sm:$0xff]  ;;  %1689 = vmatprep.subr.mxu0 %v78_v0  ;;  %v61_v4 = vld [vmem:[%s3886_s1 + $0x70] sm:$0xff]  ;;  %v60_v8 = vld [vmem:[%s3886_s1 + $0x68] sm:$0xff] }
   0x3   :  { %v110_v3 = vld [vmem:[%s3886_s1 + $0x1f8] sm:$0xff]  ;;  %1690 = vmatpush3.msra.mxu0 %v62_v1  ;;  %v109_v7 = vld [vmem:[%s3886_s1 + $0x1f0] sm:$0xff]  ;;  %v108_v10 = vld [vmem:[%s3886_s1 + $0x1e8] sm:$0xff] }
   0x4   :  { %v94_v5 = vld [vmem:[%s3886_s1 + $0x178] sm:$0xff]  ;;  %1724 = vmatprep.subr.mxu1 %v110_v3  ;;  %1691 = vmatprep.subr.mxu0 %v77_v2  ;;  %v93_v9 = vld [vmem:[%s3886_s1 + $0x170] sm:$0xff]  ;;  %v75_v11 = vld [vmem:[%s3886_s1 + $0xe0] sm:$0xff] }
   0x5   :  { %1725 = vmatpush3.msra.mxu1 %v94_v5  ;;  %1692 = vmatpush3.msra.mxu0 %v61_v4  ;;  %v92_v12 = vld [vmem:[%s3886_s1 + $0x168] sm:$0xff]  ;;  %v59_v13 = vld [vmem:[%s3886_s1 + $0x60] sm:$0xff]  ;;  %v74_v15 = vld [vmem:[%s3886_s1 + $0xd8] sm:$0xff] }
   0x6   :  { %1726 = vmatprep.subr.mxu1 %v109_v7  ;;  %1693 = vmatprep.subr.mxu0 %v76_v6  ;;  %v107_v14 = vld [vmem:[%s3886_s1 + $0x1e0] sm:$0xff]  ;;  %v58_v17 = vld [vmem:[%s3886_s1 + $0x58] sm:$0xff]  ;;  %v73_v19 = vld [vmem:[%s3886_s1 + $0xd0] sm:$0xff] }
   0x7   :  { %1727 = vmatpush3.msra.mxu1 %v93_v9  ;;  %1694 = vmatpush3.msra.mxu0 %v60_v8  ;;  %v91_v16 = vld [vmem:[%s3886_s1 + $0x160] sm:$0xff]  ;;  %v106_v18 = vld [vmem:[%s3886_s1 + $0x1d8] sm:$0xff]  ;;  %v57_v21 = vld [vmem:[%s3886_s1 + $0x50] sm:$0xff] }
   0x8   :  { %1728 = vmatprep.subr.mxu1 %v108_v10  ;;  %1695 = vmatprep.subr.mxu0 %v75_v11  ;;  %v90_v20 = vld [vmem:[%s3886_s1 + $0x158] sm:$0xff]  ;;  %v105_v22 = vld [vmem:[%s3886_s1 + $0x1d0] sm:$0xff]  ;;  %v72_v23 = vld [vmem:[%s3886_s1 + $0xc8] sm:$0xff] }
   0x9   :  { %1729 = vmatpush3.msra.mxu1 %v92_v12  ;;  %1696 = vmatpush3.msra.mxu0 %v59_v13  ;;  %v89_v24 = vld [vmem:[%s3886_s1 + $0x150] sm:$0xff]  ;;  %v56_v25 = vld [vmem:[%s3886_s1 + $0x48] sm:$0xff]  ;;  %v71_v27 = vld [vmem:[%s3886_s1 + $0xc0] sm:$0xff] }
   0xa   :  { %1730 = vmatprep.subr.mxu1 %v107_v14  ;;  %1697 = vmatprep.subr.mxu0 %v74_v15  ;;  %v104_v26 = vld [vmem:[%s3886_s1 + $0x1c8] sm:$0xff]  ;;  %v55_v29 = vld [vmem:[%s3886_s1 + $0x40] sm:$0xff]  ;;  %v70_v31 = vld [vmem:[%s3886_s1 + $0xb8] sm:$0xff] }
   0xb   :  { %1731 = vmatpush3.msra.mxu1 %v91_v16  ;;  %1698 = vmatpush3.msra.mxu0 %v58_v17  ;;  %v88_v28 = vld [vmem:[%s3886_s1 + $0x148] sm:$0xff]  ;;  %v103_v30 = vld [vmem:[%s3886_s1 + $0x1c0] sm:$0xff]  ;;  %v54_v33 = vld [vmem:[%s3886_s1 + $0x38] sm:$0xff] }
   0xc   :  { %1732 = vmatprep.subr.mxu1 %v106_v18  ;;  %1699 = vmatprep.subr.mxu0 %v73_v19  ;;  %v87_v32 = vld [vmem:[%s3886_s1 + $0x140] sm:$0xff]  ;;  %v102_v34 = vld [vmem:[%s3886_s1 + $0x1b8] sm:$0xff]  ;;  %v69_v35 = vld [vmem:[%s3886_s1 + $0xb0] sm:$0xff] }
   0xd   :  { %1733 = vmatpush3.msra.mxu1 %v90_v20  ;;  %1700 = vmatpush3.msra.mxu0 %v57_v21  ;;  %v86_v36 = vld [vmem:[%s3886_s1 + $0x138] sm:$0xff]  ;;  %v53_v37 = vld [vmem:[%s3886_s1 + $0x30] sm:$0xff]  ;;  %v68_v39 = vld [vmem:[%s3886_s1 + $0xa8] sm:$0xff] }
   0xe   :  { %1734 = vmatprep.subr.mxu1 %v105_v22  ;;  %1701 = vmatprep.subr.mxu0 %v72_v23  ;;  %v101_v38 = vld [vmem:[%s3886_s1 + $0x1b0] sm:$0xff]  ;;  %v52_v41 = vld [vmem:[%s3886_s1 + $0x28] sm:$0xff]  ;;  %v67_v43 = vld [vmem:[%s3886_s1 + $0xa0] sm:$0xff] }
   0xf   :  { %1735 = vmatpush3.msra.mxu1 %v89_v24  ;;  %1702 = vmatpush3.msra.mxu0 %v56_v25  ;;  %v85_v40 = vld [vmem:[%s3886_s1 + $0x130] sm:$0xff]  ;;  %v100_v42 = vld [vmem:[%s3886_s1 + $0x1a8] sm:$0xff]  ;;  %v51_v45 = vld [vmem:[%s3886_s1 + $0x20] sm:$0xff] }
  0x10   :  { %1736 = vmatprep.subr.mxu1 %v104_v26  ;;  %1703 = vmatprep.subr.mxu0 %v71_v27  ;;  %v84_v44 = vld [vmem:[%s3886_s1 + $0x128] sm:$0xff]  ;;  %v99_v46 = vld [vmem:[%s3886_s1 + $0x1a0] sm:$0xff]  ;;  %v66_v47 = vld [vmem:[%s3886_s1 + $0x98] sm:$0xff] }
  0x11   :  { %1737 = vmatpush3.msra.mxu1 %v88_v28  ;;  %1704 = vmatpush3.msra.mxu0 %v55_v29  ;;  %v83_v48 = vld [vmem:[%s3886_s1 + $0x120] sm:$0xff]  ;;  %v50_v49 = vld [vmem:[%s3886_s1 + $0x18] sm:$0xff]  ;;  %v65_v51 = vld [vmem:[%s3886_s1 + $0x90] sm:$0xff] }
  0x12   :  { %1738 = vmatprep.subr.mxu1 %v103_v30  ;;  %1705 = vmatprep.subr.mxu0 %v70_v31  ;;  %v98_v50 = vld [vmem:[%s3886_s1 + $0x198] sm:$0xff]  ;;  %v49_v53 = vld [vmem:[%s3886_s1 + $0x10] sm:$0xff]  ;;  %v64_v55 = vld [vmem:[%s3886_s1 + $0x88] sm:$0xff] }
  0x13   :  { %1739 = vmatpush3.msra.mxu1 %v87_v32  ;;  %1706 = vmatpush3.msra.mxu0 %v54_v33  ;;  %v82_v52 = vld [vmem:[%s3886_s1 + $0x118] sm:$0xff]  ;;  %v97_v54 = vld [vmem:[%s3886_s1 + $0x190] sm:$0xff]  ;;  %v48_v57 = vld [vmem:[%s3886_s1 + $0x8] sm:$0xff] }
  0x14   :  { %1740 = vmatprep.subr.mxu1 %v102_v34  ;;  %1707 = vmatprep.subr.mxu0 %v69_v35  ;;  %v81_v56 = vld [vmem:[%s3886_s1 + $0x110] sm:$0xff]  ;;  %v96_v58 = vld [vmem:[%s3886_s1 + $0x188] sm:$0xff]  ;;  %v63_v59 = vld [vmem:[%s3886_s1 + $0x80] sm:$0xff] }
  0x15   :  { %1741 = vmatpush3.msra.mxu1 %v86_v36  ;;  %1708 = vmatpush3.msra.mxu0 %v53_v37  ;;  %v18_v60 = vld [vmem:[%s3887_s0 + $0x8] sm:$0xff]  ;;  %v47_v61 = vld [vmem:[%s3886_s1] sm:$0xff]  ;;  %v142_v1 = vld [vmem:[%s3886_s1 + $0x2f8] sm:$0xff] }
  0x16   :  { %1742 = vmatprep.subr.mxu1 %v101_v38  ;;  %1709 = vmatprep.subr.mxu0 %v68_v39  ;;  %v80_v62 = vld [vmem:[%s3886_s1 + $0x108] sm:$0xff]  ;;  %v17_v63 = vld [vmem:[%s3887_s0] sm:$0xff]  ;;  %v20_v3 = vld [vmem:[%s3887_s0 + $0x18] sm:$0xff] }
  0x17   :  { %1743 = vmatpush3.msra.mxu1 %v85_v40  ;;  %1710 = vmatpush3.msra.mxu0 %v52_v41  ;;  %v95_v0 = vld [vmem:[%s3886_s1 + $0x180] sm:$0xff]  ;;  %v126_v4 = vld [vmem:[%s3886_s1 + $0x278] sm:$0xff]  ;;  %v19_v5 = vld [vmem:[%s3887_s0 + $0x10] sm:$0xff] }
  0x18   :  { %1744 = vmatprep.subr.mxu1 %v100_v42  ;;  %1711 = vmatprep.subr.mxu0 %v67_v43  ;;  %v79_v2 = vld [vmem:[%s3886_s1 + $0x100] sm:$0xff]  ;;  %v141_v6 = vld [vmem:[%s3886_s1 + $0x2f0] sm:$0xff]  ;;  %v174_v7 = vld [vmem:[%s3886_s1 + $0x3f8] sm:$0xff] }
  0x19   :  { %1745 = vmatpush3.msra.mxu1 %v84_v44  ;;  %1712 = vmatpush3.msra.mxu0 %v51_v45  ;;  %v125_v8 = vld [vmem:[%s3886_s1 + $0x270] sm:$0xff]  ;;  %v158_v9 = vld [vmem:[%s3886_s1 + $0x378] sm:$0xff]  ;;  %v140_v10 = vld [vmem:[%s3886_s1 + $0x2e8] sm:$0xff] }
  0x1a   :  { %1746 = vmatprep.subr.mxu1 %v99_v46  ;;  %1713 = vmatprep.subr.mxu0 %v66_v47  ;;  %v173_v11 = vld [vmem:[%s3886_s1 + $0x3f0] sm:$0xff]  ;;  %v124_v12 = vld [vmem:[%s3886_s1 + $0x268] sm:$0xff]  ;;  %v139_v14 = vld [vmem:[%s3886_s1 + $0x2e0] sm:$0xff] }
  0x1b   :  { %1747 = vmatpush3.msra.mxu1 %v83_v48  ;;  %1714 = vmatpush3.msra.mxu0 %v50_v49  ;;  %v157_v13 = vld [vmem:[%s3886_s1 + $0x370] sm:$0xff]  ;;  %v172_v15 = vld [vmem:[%s3886_s1 + $0x3e8] sm:$0xff]  ;;  %v123_v16 = vld [vmem:[%s3886_s1 + $0x260] sm:$0xff] }
  0x1c   :  { %1748 = vmatprep.subr.mxu1 %v98_v50  ;;  %1715 = vmatprep.subr.mxu0 %v65_v51  ;;  %v156_v17 = vld [vmem:[%s3886_s1 + $0x368] sm:$0xff]  ;;  %v138_v18 = vld [vmem:[%s3886_s1 + $0x2d8] sm:$0xff]  ;;  %v171_v19 = vld [vmem:[%s3886_s1 + $0x3e0] sm:$0xff] }
  0x1d   :  { %1749 = vmatpush3.msra.mxu1 %v82_v52  ;;  %1716 = vmatpush3.msra.mxu0 %v49_v53  ;;  %v122_v20 = vld [vmem:[%s3886_s1 + $0x258] sm:$0xff]  ;;  %v155_v21 = vld [vmem:[%s3886_s1 + $0x360] sm:$0xff]  ;;  %v137_v22 = vld [vmem:[%s3886_s1 + $0x2d0] sm:$0xff] }
  0x1e   :  { %1750 = vmatprep.subr.mxu1 %v97_v54  ;;  %1717 = vmatprep.subr.mxu0 %v64_v55  ;;  %v170_v23 = vld [vmem:[%s3886_s1 + $0x3d8] sm:$0xff]  ;;  %v121_v24 = vld [vmem:[%s3886_s1 + $0x250] sm:$0xff]  ;;  %v136_v26 = vld [vmem:[%s3886_s1 + $0x2c8] sm:$0xff] }
  0x1f   :  { %1751 = vmatpush3.msra.mxu1 %v81_v56  ;;  %1718 = vmatpush3.msra.mxu0 %v48_v57  ;;  %v154_v25 = vld [vmem:[%s3886_s1 + $0x358] sm:$0xff]  ;;  %v169_v27 = vld [vmem:[%s3886_s1 + $0x3d0] sm:$0xff]  ;;  %v120_v28 = vld [vmem:[%s3886_s1 + $0x248] sm:$0xff] }
  0x20   :  { %1752 = vmatprep.subr.mxu1 %v96_v58  ;;  %1719 = vmatprep.subr.mxu0 %v63_v59  ;;  %v153_v29 = vld [vmem:[%s3886_s1 + $0x350] sm:$0xff]  ;;  %v135_v30 = vld [vmem:[%s3886_s1 + $0x2c0] sm:$0xff]  ;;  %v168_v31 = vld [vmem:[%s3886_s1 + $0x3c8] sm:$0xff] }
  0x21   :  { %598 = vmatprep.mubr.f32.mxu0 %v18_v60  ;;  %1720 = vmatpush3.msra.mxu0 %v47_v61  ;;  %v119_v32 = vld [vmem:[%s3886_s1 + $0x240] sm:$0xff]  ;;  %v152_v33 = vld [vmem:[%s3886_s1 + $0x348] sm:$0xff]  ;;  %v134_v34 = vld [vmem:[%s3886_s1 + $0x2b8] sm:$0xff] }
  0x22   :  { %1753 = vmatpush3.msra.mxu1 %v80_v62  ;;  %599 = vmatmul.mubr.f32.vlgmr.msra.gmra.mxu0 %v17_v63  ;;  %v167_v35 = vld [vmem:[%s3886_s1 + $0x3c0] sm:$0xff]  ;;  %v118_v36 = vld [vmem:[%s3886_s1 + $0x238] sm:$0xff]  ;;  %v133_v38 = vld [vmem:[%s3886_s1 + $0x2b0] sm:$0xff] }
  0x23   :  { %1754 = vmatprep.subr.mxu1 %v95_v0  ;;  %1759 = vmatprep.subr.mxu0 %v142_v1  ;;  %v151_v37 = vld [vmem:[%s3886_s1 + $0x340] sm:$0xff]  ;;  %v166_v39 = vld [vmem:[%s3886_s1 + $0x3b8] sm:$0xff]  ;;  %v117_v40 = vld [vmem:[%s3886_s1 + $0x230] sm:$0xff] }
  0x24   :  { %1755 = vmatpush3.msra.mxu1 %v79_v2  ;;  %668 = vmatprep.mubr.f32.mxu1 %v20_v3  ;;  %v150_v41 = vld [vmem:[%s3886_s1 + $0x338] sm:$0xff]  ;;  %v132_v42 = vld [vmem:[%s3886_s1 + $0x2a8] sm:$0xff]  ;;  %v165_v43 = vld [vmem:[%s3886_s1 + $0x3b0] sm:$0xff] }
  0x25   :  { %1760 = vmatpush3.msra.mxu0 %v126_v4  ;;  %669 = vmatmul.mubr.f32.vlgmr.msra.gmra.mxu1 %v19_v5  ;;  %v116_v44 = vld [vmem:[%s3886_s1 + $0x228] sm:$0xff]  ;;  %v149_v45 = vld [vmem:[%s3886_s1 + $0x330] sm:$0xff]  ;;  %v131_v46 = vld [vmem:[%s3886_s1 + $0x2a0] sm:$0xff] }
  0x26   :  { %1761 = vmatprep.subr.mxu0 %v141_v6  ;;  %1794 = vmatprep.subr.mxu1 %v174_v7  ;;  %v164_v47 = vld [vmem:[%s3886_s1 + $0x3a8] sm:$0xff]  ;;  %v115_v48 = vld [vmem:[%s3886_s1 + $0x220] sm:$0xff]  ;;  %v130_v50 = vld [vmem:[%s3886_s1 + $0x298] sm:$0xff] }
  0x27   :  { %1762 = vmatpush3.msra.mxu0 %v125_v8  ;;  %1795 = vmatpush3.msra.mxu1 %v158_v9  ;;  %v148_v49 = vld [vmem:[%s3886_s1 + $0x328] sm:$0xff]  ;;  %v163_v51 = vld [vmem:[%s3886_s1 + $0x3a0] sm:$0xff]  ;;  %v114_v52 = vld [vmem:[%s3886_s1 + $0x218] sm:$0xff] }
  0x28   :  { %1763 = vmatprep.subr.mxu0 %v140_v10  ;;  %1796 = vmatprep.subr.mxu1 %v173_v11  ;;  %v147_v53 = vld [vmem:[%s3886_s1 + $0x320] sm:$0xff]  ;;  %v129_v54 = vld [vmem:[%s3886_s1 + $0x290] sm:$0xff]  ;;  %v162_v55 = vld [vmem:[%s3886_s1 + $0x398] sm:$0xff] }
  0x29   :  { %1764 = vmatpush3.msra.mxu0 %v124_v12  ;;  %1797 = vmatpush3.msra.mxu1 %v157_v13  ;;  %v113_v56 = vld [vmem:[%s3886_s1 + $0x210] sm:$0xff]  ;;  %v146_v57 = vld [vmem:[%s3886_s1 + $0x318] sm:$0xff]  ;;  %v128_v58 = vld [vmem:[%s3886_s1 + $0x288] sm:$0xff] }
  0x2a   :  { %1765 = vmatprep.subr.mxu0 %v139_v14  ;;  %1798 = vmatprep.subr.mxu1 %v172_v15  ;;  %v161_v59 = vld [vmem:[%s3886_s1 + $0x390] sm:$0xff]  ;;  %v112_v60 = vld [vmem:[%s3886_s1 + $0x208] sm:$0xff]  ;;  %v127_v62 = vld [vmem:[%s3886_s1 + $0x280] sm:$0xff] }
  0x2b   :  { %1766 = vmatpush3.msra.mxu0 %v123_v16  ;;  %1799 = vmatpush3.msra.mxu1 %v156_v17  ;;  %v145_v61 = vld [vmem:[%s3886_s1 + $0x310] sm:$0xff]  ;;  %v160_v63 = vld [vmem:[%s3886_s1 + $0x388] sm:$0xff]  ;;  %v111_v0 = vld [vmem:[%s3886_s1 + $0x200] sm:$0xff] }
  0x2c   :  { %1767 = vmatprep.subr.mxu0 %v138_v18  ;;  %1800 = vmatprep.subr.mxu1 %v171_v19  ;;  %v22_v1 = vld [vmem:[%s3887_s0 + $0x28] sm:$0xff]  ;;  %v21_v3 = vld [vmem:[%s3887_s0 + $0x20] sm:$0xff]  ;;  %v206_v5 = vld [vmem:[%s3886_s1 + $0x4f8] sm:$0xff] }
  0x2d   :  { %1768 = vmatpush3.msra.mxu0 %v122_v20  ;;  %1801 = vmatpush3.msra.mxu1 %v155_v21  ;;  %v144_v2 = vld [vmem:[%s3886_s1 + $0x308] sm:$0xff]  ;;  %v159_v4 = vld [vmem:[%s3886_s1 + $0x380] sm:$0xff]  ;;  %v24_v7 = vld [vmem:[%s3887_s0 + $0x38] sm:$0xff] }
  0x2e   :  { %1769 = vmatprep.subr.mxu0 %v137_v22  ;;  %1802 = vmatprep.subr.mxu1 %v170_v23  ;;  %v143_v6 = vld [vmem:[%s3886_s1 + $0x300] sm:$0xff]  ;;  %v190_v8 = vld [vmem:[%s3886_s1 + $0x478] sm:$0xff]  ;;  %v23_v9 = vld [vmem:[%s3887_s0 + $0x30] sm:$0xff] }
  0x2f   :  { %1770 = vmatpush3.msra.mxu0 %v121_v24  ;;  %1803 = vmatpush3.msra.mxu1 %v154_v25  ;;  %v205_v10 = vld [vmem:[%s3886_s1 + $0x4f0] sm:$0xff]  ;;  %v238_v11 = vld [vmem:[%s3886_s1 + $0x5f8] sm:$0xff]  ;;  %v204_v14 = vld [vmem:[%s3886_s1 + $0x4e8] sm:$0xff] }
  0x30   :  { %1771 = vmatprep.subr.mxu0 %v136_v26  ;;  %1804 = vmatprep.subr.mxu1 %v169_v27  ;;  %v189_v12 = vld [vmem:[%s3886_s1 + $0x470] sm:$0xff]  ;;  %v222_v13 = vld [vmem:[%s3886_s1 + $0x578] sm:$0xff]  ;;  %v188_v16 = vld [vmem:[%s3886_s1 + $0x468] sm:$0xff] }
  0x31   :  { %1772 = vmatpush3.msra.mxu0 %v120_v28  ;;  %1805 = vmatpush3.msra.mxu1 %v153_v29  ;;  %v237_v15 = vld [vmem:[%s3886_s1 + $0x5f0] sm:$0xff]  ;;  %v203_v18 = vld [vmem:[%s3886_s1 + $0x4e0] sm:$0xff]  ;;  %v236_v19 = vld [vmem:[%s3886_s1 + $0x5e8] sm:$0xff] }
  0x32   :  { %1773 = vmatprep.subr.mxu0 %v135_v30  ;;  %1806 = vmatprep.subr.mxu1 %v168_v31  ;;  %v221_v17 = vld [vmem:[%s3886_s1 + $0x570] sm:$0xff]  ;;  %v187_v20 = vld [vmem:[%s3886_s1 + $0x460] sm:$0xff]  ;;  %v220_v21 = vld [vmem:[%s3886_s1 + $0x568] sm:$0xff] }
  0x33   :  { %1774 = vmatpush3.msra.mxu0 %v119_v32  ;;  %1807 = vmatpush3.msra.mxu1 %v152_v33  ;;  %v202_v22 = vld [vmem:[%s3886_s1 + $0x4d8] sm:$0xff]  ;;  %v235_v23 = vld [vmem:[%s3886_s1 + $0x5e0] sm:$0xff]  ;;  %v201_v26 = vld [vmem:[%s3886_s1 + $0x4d0] sm:$0xff] }
  0x34   :  { %1775 = vmatprep.subr.mxu0 %v134_v34  ;;  %1808 = vmatprep.subr.mxu1 %v167_v35  ;;  %v186_v24 = vld [vmem:[%s3886_s1 + $0x458] sm:$0xff]  ;;  %v219_v25 = vld [vmem:[%s3886_s1 + $0x560] sm:$0xff]  ;;  %v185_v28 = vld [vmem:[%s3886_s1 + $0x450] sm:$0xff] }
  0x35   :  { %1776 = vmatpush3.msra.mxu0 %v118_v36  ;;  %1809 = vmatpush3.msra.mxu1 %v151_v37  ;;  %v234_v27 = vld [vmem:[%s3886_s1 + $0x5d8] sm:$0xff]  ;;  %v200_v30 = vld [vmem:[%s3886_s1 + $0x4c8] sm:$0xff]  ;;  %v233_v31 = vld [vmem:[%s3886_s1 + $0x5d0] sm:$0xff] }
  0x36   :  { %1777 = vmatprep.subr.mxu0 %v133_v38  ;;  %1810 = vmatprep.subr.mxu1 %v166_v39  ;;  %v218_v29 = vld [vmem:[%s3886_s1 + $0x558] sm:$0xff]  ;;  %v184_v32 = vld [vmem:[%s3886_s1 + $0x448] sm:$0xff]  ;;  %v217_v33 = vld [vmem:[%s3886_s1 + $0x550] sm:$0xff] }
  0x37   :  { %1778 = vmatpush3.msra.mxu0 %v117_v40  ;;  %1811 = vmatpush3.msra.mxu1 %v150_v41  ;;  %v199_v34 = vld [vmem:[%s3886_s1 + $0x4c0] sm:$0xff]  ;;  %v232_v35 = vld [vmem:[%s3886_s1 + $0x5c8] sm:$0xff]  ;;  %v198_v38 = vld [vmem:[%s3886_s1 + $0x4b8] sm:$0xff] }
  0x38   :  { %1779 = vmatprep.subr.mxu0 %v132_v42  ;;  %1812 = vmatprep.subr.mxu1 %v165_v43  ;;  %v183_v36 = vld [vmem:[%s3886_s1 + $0x440] sm:$0xff]  ;;  %v216_v37 = vld [vmem:[%s3886_s1 + $0x548] sm:$0xff]  ;;  %v182_v40 = vld [vmem:[%s3886_s1 + $0x438] sm:$0xff] }
  0x39   :  { %1780 = vmatpush3.msra.mxu0 %v116_v44  ;;  %1813 = vmatpush3.msra.mxu1 %v149_v45  ;;  %v231_v39 = vld [vmem:[%s3886_s1 + $0x5c0] sm:$0xff]  ;;  %v197_v42 = vld [vmem:[%s3886_s1 + $0x4b0] sm:$0xff]  ;;  %v230_v43 = vld [vmem:[%s3886_s1 + $0x5b8] sm:$0xff] }
  0x3a   :  { %1781 = vmatprep.subr.mxu0 %v131_v46  ;;  %1814 = vmatprep.subr.mxu1 %v164_v47  ;;  %v215_v41 = vld [vmem:[%s3886_s1 + $0x540] sm:$0xff]  ;;  %v181_v44 = vld [vmem:[%s3886_s1 + $0x430] sm:$0xff]  ;;  %v214_v45 = vld [vmem:[%s3886_s1 + $0x538] sm:$0xff] }
  0x3b   :  { %1782 = vmatpush3.msra.mxu0 %v115_v48  ;;  %1815 = vmatpush3.msra.mxu1 %v148_v49  ;;  %v196_v46 = vld [vmem:[%s3886_s1 + $0x4a8] sm:$0xff]  ;;  %v229_v47 = vld [vmem:[%s3886_s1 + $0x5b0] sm:$0xff] }
  0x3c   :  { %1783 = vmatprep.subr.mxu0 %v130_v50  ;;  %1816 = vmatprep.subr.mxu1 %v163_v51  ;;  %v180_v48 = vld [vmem:[%s3886_s1 + $0x428] sm:$0xff]  ;;  %v213_v49 = vld [vmem:[%s3886_s1 + $0x530] sm:$0xff]  ;;  %v195_v50 = vld [vmem:[%s3886_s1 + $0x4a0] sm:$0xff] }
  0x3d   :  { %1784 = vmatpush3.msra.mxu0 %v114_v52  ;;  %1817 = vmatpush3.msra.mxu1 %v147_v53  ;;  %v228_v51 = vld [vmem:[%s3886_s1 + $0x5a8] sm:$0xff]  ;;  %v179_v52 = vld [vmem:[%s3886_s1 + $0x420] sm:$0xff] }
  0x3e   :  { %1785 = vmatprep.subr.mxu0 %v129_v54  ;;  %1818 = vmatprep.subr.mxu1 %v162_v55  ;;  %v212_v53 = vld [vmem:[%s3886_s1 + $0x528] sm:$0xff]  ;;  %v194_v54 = vld [vmem:[%s3886_s1 + $0x498] sm:$0xff]  ;;  %v227_v55 = vld [vmem:[%s3886_s1 + $0x5a0] sm:$0xff] }
  0x3f   :  { %1786 = vmatpush3.msra.mxu0 %v113_v56  ;;  %1819 = vmatpush3.msra.mxu1 %v146_v57  ;;  %v178_v56 = vld [vmem:[%s3886_s1 + $0x418] sm:$0xff]  ;;  %v211_v57 = vld [vmem:[%s3886_s1 + $0x520] sm:$0xff] }
  0x40   :  { %1787 = vmatprep.subr.mxu0 %v128_v58  ;;  %1820 = vmatprep.subr.mxu1 %v161_v59  ;;  %v193_v58 = vld [vmem:[%s3886_s1 + $0x490] sm:$0xff]  ;;  %v226_v59 = vld [vmem:[%s3886_s1 + $0x598] sm:$0xff] }
  0x41   :  { %1788 = vmatpush3.msra.mxu0 %v112_v60  ;;  %1821 = vmatpush3.msra.mxu1 %v145_v61  ;;  %v177_v60 = vld [vmem:[%s3886_s1 + $0x410] sm:$0xff]  ;;  %v210_v61 = vld [vmem:[%s3886_s1 + $0x518] sm:$0xff] }
  0x42   :  { %1789 = vmatprep.subr.mxu0 %v127_v62  ;;  %1822 = vmatprep.subr.mxu1 %v160_v63  ;;  %v192_v62 = vld [vmem:[%s3886_s1 + $0x488] sm:$0xff]  ;;  %v225_v63 = vld [vmem:[%s3886_s1 + $0x590] sm:$0xff] }
  0x43   :  { %1790 = vmatpush3.msra.mxu0 %v111_v0  ;;  %738 = vmatprep.mubr.f32.mxu0 %v22_v1  ;;  %v176_v0 = vld [vmem:[%s3886_s1 + $0x408] sm:$0xff]  ;;  %v209_v1 = vld [vmem:[%s3886_s1 + $0x510] sm:$0xff] }
  0x44   :  { %1823 = vmatpush3.msra.mxu1 %v144_v2  ;;  %739 = vmatmul.mubr.f32.vlgmr.msra.gmra.mxu0 %v21_v3  ;;  %v191_v2 = vld [vmem:[%s3886_s1 + $0x480] sm:$0xff]  ;;  %v224_v3 = vld [vmem:[%s3886_s1 + $0x588] sm:$0xff] }
  0x45   :  { %1824 = vmatprep.subr.mxu1 %v159_v4  ;;  %1829 = vmatprep.subr.mxu0 %v206_v5  ;;  %v175_v4 = vld [vmem:[%s3886_s1 + $0x400] sm:$0xff]  ;;  %v26_v5 = vld [vmem:[%s3887_s0 + $0x48] sm:$0xff] }
  0x46   :  { %1825 = vmatpush3.msra.mxu1 %v143_v6  ;;  %808 = vmatprep.mubr.f32.mxu1 %v24_v7  ;;  %v208_v6 = vld [vmem:[%s3886_s1 + $0x508] sm:$0xff]  ;;  %v25_v7 = vld [vmem:[%s3887_s0 + $0x40] sm:$0xff] }
  0x47   :  { %1830 = vmatpush3.msra.mxu0 %v190_v8  ;;  %809 = vmatmul.mubr.f32.vlgmr.msra.gmra.mxu1 %v23_v9  ;;  %v223_v8 = vld [vmem:[%s3886_s1 + $0x580] sm:$0xff]  ;;  %v270_v9 = vld [vmem:[%s3886_s1 + $0x6f8] sm:$0xff] }
  0x48   :  { %1831 = vmatprep.subr.mxu0 %v205_v10  ;;  %1864 = vmatprep.subr.mxu1 %v238_v11  ;;  %v207_v10 = vld [vmem:[%s3886_s1 + $0x500] sm:$0xff]  ;;  %v28_v11 = vld [vmem:[%s3887_s0 + $0x58] sm:$0xff] }
  0x49   :  { %1832 = vmatpush3.msra.mxu0 %v189_v12  ;;  %1865 = vmatpush3.msra.mxu1 %v222_v13  ;;  %v254_v12 = vld [vmem:[%s3886_s1 + $0x678] sm:$0xff]  ;;  %v27_v13 = vld [vmem:[%s3887_s0 + $0x50] sm:$0xff] }
  0x4a   :  { %1833 = vmatprep.subr.mxu0 %v204_v14  ;;  %1866 = vmatprep.subr.mxu1 %v237_v15  ;;  %v269_v14 = vld [vmem:[%s3886_s1 + $0x6f0] sm:$0xff]  ;;  %v302_v15 = vld [vmem:[%s3886_s1 + $0x7f8] sm:$0xff] }
  0x4b   :  { %1834 = vmatpush3.msra.mxu0 %v188_v16  ;;  %1867 = vmatpush3.msra.mxu1 %v221_v17  ;;  %v253_v16 = vld [vmem:[%s3886_s1 + $0x670] sm:$0xff]  ;;  %v286_v17 = vld [vmem:[%s3886_s1 + $0x778] sm:$0xff] }
  0x4c   :  { %1835 = vmatprep.subr.mxu0 %v203_v18  ;;  %1868 = vmatprep.subr.mxu1 %v236_v19  ;;  %v268_v18 = vld [vmem:[%s3886_s1 + $0x6e8] sm:$0xff]  ;;  %v301_v19 = vld [vmem:[%s3886_s1 + $0x7f0] sm:$0xff] }
  0x4d   :  { %1836 = vmatpush3.msra.mxu0 %v187_v20  ;;  %1869 = vmatpush3.msra.mxu1 %v220_v21  ;;  %v252_v20 = vld [vmem:[%s3886_s1 + $0x668] sm:$0xff]  ;;  %v285_v21 = vld [vmem:[%s3886_s1 + $0x770] sm:$0xff] }
  0x4e   :  { %1837 = vmatprep.subr.mxu0 %v202_v22  ;;  %1870 = vmatprep.subr.mxu1 %v235_v23  ;;  %v267_v22 = vld [vmem:[%s3886_s1 + $0x6e0] sm:$0xff]  ;;  %v300_v23 = vld [vmem:[%s3886_s1 + $0x7e8] sm:$0xff] }
  0x4f   :  { %1838 = vmatpush3.msra.mxu0 %v186_v24  ;;  %1871 = vmatpush3.msra.mxu1 %v219_v25  ;;  %v251_v24 = vld [vmem:[%s3886_s1 + $0x660] sm:$0xff]  ;;  %v284_v25 = vld [vmem:[%s3886_s1 + $0x768] sm:$0xff] }
  0x50   :  { %1839 = vmatprep.subr.mxu0 %v201_v26  ;;  %1872 = vmatprep.subr.mxu1 %v234_v27  ;;  %v266_v26 = vld [vmem:[%s3886_s1 + $0x6d8] sm:$0xff]  ;;  %v299_v27 = vld [vmem:[%s3886_s1 + $0x7e0] sm:$0xff] }
  0x51   :  { %1840 = vmatpush3.msra.mxu0 %v185_v28  ;;  %1873 = vmatpush3.msra.mxu1 %v218_v29  ;;  %v250_v28 = vld [vmem:[%s3886_s1 + $0x658] sm:$0xff]  ;;  %v283_v29 = vld [vmem:[%s3886_s1 + $0x760] sm:$0xff] }
  0x52   :  { %1841 = vmatprep.subr.mxu0 %v200_v30  ;;  %1874 = vmatprep.subr.mxu1 %v233_v31  ;;  %v265_v30 = vld [vmem:[%s3886_s1 + $0x6d0] sm:$0xff]  ;;  %v298_v31 = vld [vmem:[%s3886_s1 + $0x7d8] sm:$0xff] }
  0x53   :  { %1842 = vmatpush3.msra.mxu0 %v184_v32  ;;  %1875 = vmatpush3.msra.mxu1 %v217_v33  ;;  %v249_v32 = vld [vmem:[%s3886_s1 + $0x650] sm:$0xff]  ;;  %v282_v33 = vld [vmem:[%s3886_s1 + $0x758] sm:$0xff] }
  0x54   :  { %1843 = vmatprep.subr.mxu0 %v199_v34  ;;  %1876 = vmatprep.subr.mxu1 %v232_v35  ;;  %v264_v34 = vld [vmem:[%s3886_s1 + $0x6c8] sm:$0xff]  ;;  %v297_v35 = vld [vmem:[%s3886_s1 + $0x7d0] sm:$0xff] }
  0x55   :  { %1844 = vmatpush3.msra.mxu0 %v183_v36  ;;  %1877 = vmatpush3.msra.mxu1 %v216_v37  ;;  %v248_v36 = vld [vmem:[%s3886_s1 + $0x648] sm:$0xff]  ;;  %v281_v37 = vld [vmem:[%s3886_s1 + $0x750] sm:$0xff] }
  0x56   :  { %1845 = vmatprep.subr.mxu0 %v198_v38  ;;  %1878 = vmatprep.subr.mxu1 %v231_v39  ;;  %v263_v38 = vld [vmem:[%s3886_s1 + $0x6c0] sm:$0xff]  ;;  %v296_v39 = vld [vmem:[%s3886_s1 + $0x7c8] sm:$0xff] }
  0x57   :  { %1846 = vmatpush3.msra.mxu0 %v182_v40  ;;  %1879 = vmatpush3.msra.mxu1 %v215_v41  ;;  %v247_v40 = vld [vmem:[%s3886_s1 + $0x640] sm:$0xff]  ;;  %v280_v41 = vld [vmem:[%s3886_s1 + $0x748] sm:$0xff] }
  0x58   :  { %1847 = vmatprep.subr.mxu0 %v197_v42  ;;  %1880 = vmatprep.subr.mxu1 %v230_v43  ;;  %v262_v42 = vld [vmem:[%s3886_s1 + $0x6b8] sm:$0xff]  ;;  %v295_v43 = vld [vmem:[%s3886_s1 + $0x7c0] sm:$0xff] }
  0x59   :  { %1848 = vmatpush3.msra.mxu0 %v181_v44  ;;  %1881 = vmatpush3.msra.mxu1 %v214_v45  ;;  %v246_v44 = vld [vmem:[%s3886_s1 + $0x638] sm:$0xff]  ;;  %v279_v45 = vld [vmem:[%s3886_s1 + $0x740] sm:$0xff] }
  0x5a   :  { %1849 = vmatprep.subr.mxu0 %v196_v46  ;;  %1882 = vmatprep.subr.mxu1 %v229_v47  ;;  %v261_v46 = vld [vmem:[%s3886_s1 + $0x6b0] sm:$0xff]  ;;  %v294_v47 = vld [vmem:[%s3886_s1 + $0x7b8] sm:$0xff] }
  0x5b   :  { %1850 = vmatpush3.msra.mxu0 %v180_v48  ;;  %1883 = vmatpush3.msra.mxu1 %v213_v49  ;;  %v245_v48 = vld [vmem:[%s3886_s1 + $0x630] sm:$0xff]  ;;  %v278_v49 = vld [vmem:[%s3886_s1 + $0x738] sm:$0xff] }
  0x5c   :  { %1851 = vmatprep.subr.mxu0 %v195_v50  ;;  %1884 = vmatprep.subr.mxu1 %v228_v51  ;;  %v260_v50 = vld [vmem:[%s3886_s1 + $0x6a8] sm:$0xff]  ;;  %v293_v51 = vld [vmem:[%s3886_s1 + $0x7b0] sm:$0xff] }
  0x5d   :  { %1852 = vmatpush3.msra.mxu0 %v179_v52  ;;  %1885 = vmatpush3.msra.mxu1 %v212_v53  ;;  %v244_v52 = vld [vmem:[%s3886_s1 + $0x628] sm:$0xff]  ;;  %v277_v53 = vld [vmem:[%s3886_s1 + $0x730] sm:$0xff] }
  0x5e   :  { %1853 = vmatprep.subr.mxu0 %v194_v54  ;;  %1886 = vmatprep.subr.mxu1 %v227_v55  ;;  %v259_v54 = vld [vmem:[%s3886_s1 + $0x6a0] sm:$0xff]  ;;  %v292_v55 = vld [vmem:[%s3886_s1 + $0x7a8] sm:$0xff] }
  0x5f   :  { %1854 = vmatpush3.msra.mxu0 %v178_v56  ;;  %1887 = vmatpush3.msra.mxu1 %v211_v57  ;;  %v243_v56 = vld [vmem:[%s3886_s1 + $0x620] sm:$0xff]  ;;  %v276_v57 = vld [vmem:[%s3886_s1 + $0x728] sm:$0xff] }
  0x60   :  { %1855 = vmatprep.subr.mxu0 %v193_v58  ;;  %1888 = vmatprep.subr.mxu1 %v226_v59  ;;  %v258_v58 = vld [vmem:[%s3886_s1 + $0x698] sm:$0xff]  ;;  %v291_v59 = vld [vmem:[%s3886_s1 + $0x7a0] sm:$0xff] }
  0x61   :  { %1856 = vmatpush3.msra.mxu0 %v177_v60  ;;  %1889 = vmatpush3.msra.mxu1 %v210_v61  ;;  %v242_v60 = vld [vmem:[%s3886_s1 + $0x618] sm:$0xff]  ;;  %v275_v61 = vld [vmem:[%s3886_s1 + $0x720] sm:$0xff] }
  0x62   :  { %1857 = vmatprep.subr.mxu0 %v192_v62  ;;  %1890 = vmatprep.subr.mxu1 %v225_v63  ;;  %v257_v62 = vld [vmem:[%s3886_s1 + $0x690] sm:$0xff]  ;;  %v290_v63 = vld [vmem:[%s3886_s1 + $0x798] sm:$0xff] }
  0x63   :  { %1858 = vmatpush3.msra.mxu0 %v176_v0  ;;  %1891 = vmatpush3.msra.mxu1 %v209_v1  ;;  %v241_v0 = vld [vmem:[%s3886_s1 + $0x610] sm:$0xff]  ;;  %v274_v1 = vld [vmem:[%s3886_s1 + $0x718] sm:$0xff] }
  0x64   :  { %1859 = vmatprep.subr.mxu0 %v191_v2  ;;  %1892 = vmatprep.subr.mxu1 %v224_v3  ;;  %v256_v2 = vld [vmem:[%s3886_s1 + $0x688] sm:$0xff]  ;;  %v289_v3 = vld [vmem:[%s3886_s1 + $0x790] sm:$0xff] }
  0x65   :  { %1860 = vmatpush3.msra.mxu0 %v175_v4  ;;  %878 = vmatprep.mubr.f32.mxu0 %v26_v5  ;;  %v240_v4 = vld [vmem:[%s3886_s1 + $0x608] sm:$0xff]  ;;  %v273_v5 = vld [vmem:[%s3886_s1 + $0x710] sm:$0xff] }
  0x66   :  { %1893 = vmatpush3.msra.mxu1 %v208_v6  ;;  %879 = vmatmul.mubr.f32.vlgmr.msra.gmra.mxu0 %v25_v7  ;;  %v255_v6 = vld [vmem:[%s3886_s1 + $0x680] sm:$0xff]  ;;  %v288_v7 = vld [vmem:[%s3886_s1 + $0x788] sm:$0xff] }
  0x67   :  { %1894 = vmatprep.subr.mxu1 %v223_v8  ;;  %1899 = vmatprep.subr.mxu0 %v270_v9  ;;  %v239_v8 = vld [vmem:[%s3886_s1 + $0x600] sm:$0xff]  ;;  %v30_v9 = vld [vmem:[%s3887_s0 + $0x68] sm:$0xff] }
  0x68   :  { %1895 = vmatpush3.msra.mxu1 %v207_v10  ;;  %948 = vmatprep.mubr.f32.mxu1 %v28_v11  ;;  %v272_v10 = vld [vmem:[%s3886_s1 + $0x708] sm:$0xff]  ;;  %v29_v11 = vld [vmem:[%s3887_s0 + $0x60] sm:$0xff] }
  0x69   :  { %1900 = vmatpush3.msra.mxu0 %v254_v12  ;;  %949 = vmatmul.mubr.f32.vlgmr.msra.gmra.mxu1 %v27_v13  ;;  %v287_v12 = vld [vmem:[%s3886_s1 + $0x780] sm:$0xff]  ;;  %v334_v13 = vld [vmem:[%s3886_s1 + $0x8f8] sm:$0xff] }
  0x6a   :  { %1901 = vmatprep.subr.mxu0 %v269_v14  ;;  %1934 = vmatprep.subr.mxu1 %v302_v15  ;;  %v271_v14 = vld [vmem:[%s3886_s1 + $0x700] sm:$0xff]  ;;  %v32_v15 = vld [vmem:[%s3887_s0 + $0x78] sm:$0xff] }
  0x6b   :  { %1902 = vmatpush3.msra.mxu0 %v253_v16  ;;  %1935 = vmatpush3.msra.mxu1 %v286_v17  ;;  %v318_v16 = vld [vmem:[%s3886_s1 + $0x878] sm:$0xff]  ;;  %v31_v17 = vld [vmem:[%s3887_s0 + $0x70] sm:$0xff] }
  0x6c   :  { %1903 = vmatprep.subr.mxu0 %v268_v18  ;;  %1936 = vmatprep.subr.mxu1 %v301_v19  ;;  %v333_v18 = vld [vmem:[%s3886_s1 + $0x8f0] sm:$0xff]  ;;  %v366_v19 = vld [vmem:[%s3886_s1 + $0x9f8] sm:$0xff] }
  0x6d   :  { %1904 = vmatpush3.msra.mxu0 %v252_v20  ;;  %1937 = vmatpush3.msra.mxu1 %v285_v21  ;;  %v317_v20 = vld [vmem:[%s3886_s1 + $0x870] sm:$0xff]  ;;  %v350_v21 = vld [vmem:[%s3886_s1 + $0x978] sm:$0xff] }
  0x6e   :  { %1905 = vmatprep.subr.mxu0 %v267_v22  ;;  %1938 = vmatprep.subr.mxu1 %v300_v23  ;;  %v332_v22 = vld [vmem:[%s3886_s1 + $0x8e8] sm:$0xff]  ;;  %v365_v23 = vld [vmem:[%s3886_s1 + $0x9f0] sm:$0xff] }
  0x6f   :  { %1906 = vmatpush3.msra.mxu0 %v251_v24  ;;  %1939 = vmatpush3.msra.mxu1 %v284_v25  ;;  %v316_v24 = vld [vmem:[%s3886_s1 + $0x868] sm:$0xff]  ;;  %v349_v25 = vld [vmem:[%s3886_s1 + $0x970] sm:$0xff] }
  0x70   :  { %1907 = vmatprep.subr.mxu0 %v266_v26  ;;  %1940 = vmatprep.subr.mxu1 %v299_v27  ;;  %v331_v26 = vld [vmem:[%s3886_s1 + $0x8e0] sm:$0xff]  ;;  %v364_v27 = vld [vmem:[%s3886_s1 + $0x9e8] sm:$0xff] }
  0x71   :  { %1908 = vmatpush3.msra.mxu0 %v250_v28  ;;  %1941 = vmatpush3.msra.mxu1 %v283_v29  ;;  %v315_v28 = vld [vmem:[%s3886_s1 + $0x860] sm:$0xff]  ;;  %v348_v29 = vld [vmem:[%s3886_s1 + $0x968] sm:$0xff] }
  0x72   :  { %1909 = vmatprep.subr.mxu0 %v265_v30  ;;  %1942 = vmatprep.subr.mxu1 %v298_v31  ;;  %v330_v30 = vld [vmem:[%s3886_s1 + $0x8d8] sm:$0xff]  ;;  %v363_v31 = vld [vmem:[%s3886_s1 + $0x9e0] sm:$0xff] }
  0x73   :  { %1910 = vmatpush3.msra.mxu0 %v249_v32  ;;  %1943 = vmatpush3.msra.mxu1 %v282_v33  ;;  %v314_v32 = vld [vmem:[%s3886_s1 + $0x858] sm:$0xff]  ;;  %v347_v33 = vld [vmem:[%s3886_s1 + $0x960] sm:$0xff] }
  0x74   :  { %1911 = vmatprep.subr.mxu0 %v264_v34  ;;  %1944 = vmatprep.subr.mxu1 %v297_v35  ;;  %v329_v34 = vld [vmem:[%s3886_s1 + $0x8d0] sm:$0xff]  ;;  %v362_v35 = vld [vmem:[%s3886_s1 + $0x9d8] sm:$0xff] }
  0x75   :  { %1912 = vmatpush3.msra.mxu0 %v248_v36  ;;  %1945 = vmatpush3.msra.mxu1 %v281_v37  ;;  %v313_v36 = vld [vmem:[%s3886_s1 + $0x850] sm:$0xff]  ;;  %v346_v37 = vld [vmem:[%s3886_s1 + $0x958] sm:$0xff] }
  0x76   :  { %1913 = vmatprep.subr.mxu0 %v263_v38  ;;  %1946 = vmatprep.subr.mxu1 %v296_v39  ;;  %v328_v38 = vld [vmem:[%s3886_s1 + $0x8c8] sm:$0xff]  ;;  %v361_v39 = vld [vmem:[%s3886_s1 + $0x9d0] sm:$0xff] }
  0x77   :  { %1914 = vmatpush3.msra.mxu0 %v247_v40  ;;  %1947 = vmatpush3.msra.mxu1 %v280_v41  ;;  %v312_v40 = vld [vmem:[%s3886_s1 + $0x848] sm:$0xff]  ;;  %v345_v41 = vld [vmem:[%s3886_s1 + $0x950] sm:$0xff] }
  0x78   :  { %1915 = vmatprep.subr.mxu0 %v262_v42  ;;  %1948 = vmatprep.subr.mxu1 %v295_v43  ;;  %v327_v42 = vld [vmem:[%s3886_s1 + $0x8c0] sm:$0xff]  ;;  %v360_v43 = vld [vmem:[%s3886_s1 + $0x9c8] sm:$0xff] }
  0x79   :  { %1916 = vmatpush3.msra.mxu0 %v246_v44  ;;  %1949 = vmatpush3.msra.mxu1 %v279_v45  ;;  %v311_v44 = vld [vmem:[%s3886_s1 + $0x840] sm:$0xff]  ;;  %v344_v45 = vld [vmem:[%s3886_s1 + $0x948] sm:$0xff] }
  0x7a   :  { %1917 = vmatprep.subr.mxu0 %v261_v46  ;;  %1950 = vmatprep.subr.mxu1 %v294_v47  ;;  %v326_v46 = vld [vmem:[%s3886_s1 + $0x8b8] sm:$0xff]  ;;  %v359_v47 = vld [vmem:[%s3886_s1 + $0x9c0] sm:$0xff] }
  0x7b   :  { %1918 = vmatpush3.msra.mxu0 %v245_v48  ;;  %1951 = vmatpush3.msra.mxu1 %v278_v49  ;;  %v310_v48 = vld [vmem:[%s3886_s1 + $0x838] sm:$0xff]  ;;  %v343_v49 = vld [vmem:[%s3886_s1 + $0x940] sm:$0xff] }
  0x7c   :  { %1919 = vmatprep.subr.mxu0 %v260_v50  ;;  %1952 = vmatprep.subr.mxu1 %v293_v51  ;;  %v325_v50 = vld [vmem:[%s3886_s1 + $0x8b0] sm:$0xff]  ;;  %v358_v51 = vld [vmem:[%s3886_s1 + $0x9b8] sm:$0xff] }
  0x7d   :  { %1920 = vmatpush3.msra.mxu0 %v244_v52  ;;  %1953 = vmatpush3.msra.mxu1 %v277_v53  ;;  %v309_v52 = vld [vmem:[%s3886_s1 + $0x830] sm:$0xff]  ;;  %v342_v53 = vld [vmem:[%s3886_s1 + $0x938] sm:$0xff] }
  0x7e   :  { %1921 = vmatprep.subr.mxu0 %v259_v54  ;;  %1954 = vmatprep.subr.mxu1 %v292_v55  ;;  %v324_v54 = vld [vmem:[%s3886_s1 + $0x8a8] sm:$0xff]  ;;  %v357_v55 = vld [vmem:[%s3886_s1 + $0x9b0] sm:$0xff] }
  0x7f   :  { %1922 = vmatpush3.msra.mxu0 %v243_v56  ;;  %1955 = vmatpush3.msra.mxu1 %v276_v57  ;;  %v308_v56 = vld [vmem:[%s3886_s1 + $0x828] sm:$0xff]  ;;  %v341_v57 = vld [vmem:[%s3886_s1 + $0x930] sm:$0xff] }
  0x80   :  { %1923 = vmatprep.subr.mxu0 %v258_v58  ;;  %1956 = vmatprep.subr.mxu1 %v291_v59  ;;  %v323_v58 = vld [vmem:[%s3886_s1 + $0x8a0] sm:$0xff]  ;;  %v356_v59 = vld [vmem:[%s3886_s1 + $0x9a8] sm:$0xff] }
  0x81   :  { %1924 = vmatpush3.msra.mxu0 %v242_v60  ;;  %1957 = vmatpush3.msra.mxu1 %v275_v61  ;;  %v307_v60 = vld [vmem:[%s3886_s1 + $0x820] sm:$0xff]  ;;  %v340_v61 = vld [vmem:[%s3886_s1 + $0x928] sm:$0xff] }
  0x82   :  { %1925 = vmatprep.subr.mxu0 %v257_v62  ;;  %1958 = vmatprep.subr.mxu1 %v290_v63  ;;  %v322_v62 = vld [vmem:[%s3886_s1 + $0x898] sm:$0xff]  ;;  %v355_v63 = vld [vmem:[%s3886_s1 + $0x9a0] sm:$0xff] }
  0x83   :  { %1926 = vmatpush3.msra.mxu0 %v241_v0  ;;  %1959 = vmatpush3.msra.mxu1 %v274_v1  ;;  %v306_v0 = vld [vmem:[%s3886_s1 + $0x818] sm:$0xff]  ;;  %v339_v1 = vld [vmem:[%s3886_s1 + $0x920] sm:$0xff] }
  0x84   :  { %1927 = vmatprep.subr.mxu0 %v256_v2  ;;  %1960 = vmatprep.subr.mxu1 %v289_v3  ;;  %v321_v2 = vld [vmem:[%s3886_s1 + $0x890] sm:$0xff]  ;;  %v354_v3 = vld [vmem:[%s3886_s1 + $0x998] sm:$0xff] }
  0x85   :  { %1928 = vmatpush3.msra.mxu0 %v240_v4  ;;  %1961 = vmatpush3.msra.mxu1 %v273_v5  ;;  %v305_v4 = vld [vmem:[%s3886_s1 + $0x810] sm:$0xff]  ;;  %v338_v5 = vld [vmem:[%s3886_s1 + $0x918] sm:$0xff] }
  0x86   :  { %1929 = vmatprep.subr.mxu0 %v255_v6  ;;  %1962 = vmatprep.subr.mxu1 %v288_v7  ;;  %v320_v6 = vld [vmem:[%s3886_s1 + $0x888] sm:$0xff]  ;;  %v353_v7 = vld [vmem:[%s3886_s1 + $0x990] sm:$0xff] }
  0x87   :  { %1930 = vmatpush3.msra.mxu0 %v239_v8  ;;  %1018 = vmatprep.mubr.f32.mxu0 %v30_v9  ;;  %v304_v8 = vld [vmem:[%s3886_s1 + $0x808] sm:$0xff]  ;;  %v337_v9 = vld [vmem:[%s3886_s1 + $0x910] sm:$0xff] }
  0x88   :  { %1963 = vmatpush3.msra.mxu1 %v272_v10  ;;  %1019 = vmatmul.mubr.f32.vlgmr.msra.gmra.mxu0 %v29_v11  ;;  %v319_v10 = vld [vmem:[%s3886_s1 + $0x880] sm:$0xff]  ;;  %v352_v11 = vld [vmem:[%s3886_s1 + $0x988] sm:$0xff] }
  0x89   :  { %1964 = vmatprep.subr.mxu1 %v287_v12  ;;  %1969 = vmatprep.subr.mxu0 %v334_v13  ;;  %v303_v12 = vld [vmem:[%s3886_s1 + $0x800] sm:$0xff]  ;;  %v34_v13 = vld [vmem:[%s3887_s0 + $0x88] sm:$0xff] }
  0x8a   :  { %1965 = vmatpush3.msra.mxu1 %v271_v14  ;;  %1088 = vmatprep.mubr.f32.mxu1 %v32_v15  ;;  %v336_v14 = vld [vmem:[%s3886_s1 + $0x908] sm:$0xff]  ;;  %v33_v15 = vld [vmem:[%s3887_s0 + $0x80] sm:$0xff] }
  0x8b   :  { %1970 = vmatpush3.msra.mxu0 %v318_v16  ;;  %1089 = vmatmul.mubr.f32.vlgmr.msra.gmra.mxu1 %v31_v17  ;;  %v351_v16 = vld [vmem:[%s3886_s1 + $0x980] sm:$0xff]  ;;  %v398_v17 = vld [vmem:[%s3886_s1 + $0xaf8] sm:$0xff] }
  0x8c   :  { %1971 = vmatprep.subr.mxu0 %v333_v18  ;;  %2004 = vmatprep.subr.mxu1 %v366_v19  ;;  %v335_v18 = vld [vmem:[%s3886_s1 + $0x900] sm:$0xff]  ;;  %v36_v19 = vld [vmem:[%s3887_s0 + $0x98] sm:$0xff] }
  0x8d   :  { %1972 = vmatpush3.msra.mxu0 %v317_v20  ;;  %2005 = vmatpush3.msra.mxu1 %v350_v21  ;;  %v382_v20 = vld [vmem:[%s3886_s1 + $0xa78] sm:$0xff]  ;;  %v35_v21 = vld [vmem:[%s3887_s0 + $0x90] sm:$0xff] }
  0x8e   :  { %1973 = vmatprep.subr.mxu0 %v332_v22  ;;  %2006 = vmatprep.subr.mxu1 %v365_v23  ;;  %v397_v22 = vld [vmem:[%s3886_s1 + $0xaf0] sm:$0xff]  ;;  %v430_v23 = vld [vmem:[%s3886_s1 + $0xbf8] sm:$0xff] }
  0x8f   :  { %1974 = vmatpush3.msra.mxu0 %v316_v24  ;;  %2007 = vmatpush3.msra.mxu1 %v349_v25  ;;  %v381_v24 = vld [vmem:[%s3886_s1 + $0xa70] sm:$0xff]  ;;  %v414_v25 = vld [vmem:[%s3886_s1 + $0xb78] sm:$0xff] }
  0x90   :  { %1975 = vmatprep.subr.mxu0 %v331_v26  ;;  %2008 = vmatprep.subr.mxu1 %v364_v27  ;;  %v396_v26 = vld [vmem:[%s3886_s1 + $0xae8] sm:$0xff]  ;;  %v429_v27 = vld [vmem:[%s3886_s1 + $0xbf0] sm:$0xff] }
  0x91   :  { %1976 = vmatpush3.msra.mxu0 %v315_v28  ;;  %2009 = vmatpush3.msra.mxu1 %v348_v29  ;;  %v380_v28 = vld [vmem:[%s3886_s1 + $0xa68] sm:$0xff]  ;;  %v413_v29 = vld [vmem:[%s3886_s1 + $0xb70] sm:$0xff] }
  0x92   :  { %1977 = vmatprep.subr.mxu0 %v330_v30  ;;  %2010 = vmatprep.subr.mxu1 %v363_v31  ;;  %v395_v30 = vld [vmem:[%s3886_s1 + $0xae0] sm:$0xff]  ;;  %v428_v31 = vld [vmem:[%s3886_s1 + $0xbe8] sm:$0xff] }
  0x93   :  { %1978 = vmatpush3.msra.mxu0 %v314_v32  ;;  %2011 = vmatpush3.msra.mxu1 %v347_v33  ;;  %v379_v32 = vld [vmem:[%s3886_s1 + $0xa60] sm:$0xff]  ;;  %v412_v33 = vld [vmem:[%s3886_s1 + $0xb68] sm:$0xff] }
  0x94   :  { %1979 = vmatprep.subr.mxu0 %v329_v34  ;;  %2012 = vmatprep.subr.mxu1 %v362_v35  ;;  %v394_v34 = vld [vmem:[%s3886_s1 + $0xad8] sm:$0xff]  ;;  %v427_v35 = vld [vmem:[%s3886_s1 + $0xbe0] sm:$0xff] }
  0x95   :  { %1980 = vmatpush3.msra.mxu0 %v313_v36  ;;  %2013 = vmatpush3.msra.mxu1 %v346_v37  ;;  %v378_v36 = vld [vmem:[%s3886_s1 + $0xa58] sm:$0xff]  ;;  %v411_v37 = vld [vmem:[%s3886_s1 + $0xb60] sm:$0xff] }
  0x96   :  { %1981 = vmatprep.subr.mxu0 %v328_v38  ;;  %2014 = vmatprep.subr.mxu1 %v361_v39  ;;  %v393_v38 = vld [vmem:[%s3886_s1 + $0xad0] sm:$0xff]  ;;  %v426_v39 = vld [vmem:[%s3886_s1 + $0xbd8] sm:$0xff] }
  0x97   :  { %1982 = vmatpush3.msra.mxu0 %v312_v40  ;;  %2015 = vmatpush3.msra.mxu1 %v345_v41  ;;  %v377_v40 = vld [vmem:[%s3886_s1 + $0xa50] sm:$0xff]  ;;  %v410_v41 = vld [vmem:[%s3886_s1 + $0xb58] sm:$0xff] }
  0x98   :  { %1983 = vmatprep.subr.mxu0 %v327_v42  ;;  %2016 = vmatprep.subr.mxu1 %v360_v43  ;;  %v392_v42 = vld [vmem:[%s3886_s1 + $0xac8] sm:$0xff]  ;;  %v425_v43 = vld [vmem:[%s3886_s1 + $0xbd0] sm:$0xff] }
  0x99   :  { %1984 = vmatpush3.msra.mxu0 %v311_v44  ;;  %2017 = vmatpush3.msra.mxu1 %v344_v45  ;;  %v376_v44 = vld [vmem:[%s3886_s1 + $0xa48] sm:$0xff]  ;;  %v409_v45 = vld [vmem:[%s3886_s1 + $0xb50] sm:$0xff] }
  0x9a   :  { %1985 = vmatprep.subr.mxu0 %v326_v46  ;;  %2018 = vmatprep.subr.mxu1 %v359_v47  ;;  %v391_v46 = vld [vmem:[%s3886_s1 + $0xac0] sm:$0xff]  ;;  %v424_v47 = vld [vmem:[%s3886_s1 + $0xbc8] sm:$0xff] }
  0x9b   :  { %1986 = vmatpush3.msra.mxu0 %v310_v48  ;;  %2019 = vmatpush3.msra.mxu1 %v343_v49  ;;  %v375_v48 = vld [vmem:[%s3886_s1 + $0xa40] sm:$0xff]  ;;  %v408_v49 = vld [vmem:[%s3886_s1 + $0xb48] sm:$0xff] }
  0x9c   :  { %1987 = vmatprep.subr.mxu0 %v325_v50  ;;  %2020 = vmatprep.subr.mxu1 %v358_v51  ;;  %v390_v50 = vld [vmem:[%s3886_s1 + $0xab8] sm:$0xff]  ;;  %v423_v51 = vld [vmem:[%s3886_s1 + $0xbc0] sm:$0xff] }
  0x9d   :  { %1988 = vmatpush3.msra.mxu0 %v309_v52  ;;  %2021 = vmatpush3.msra.mxu1 %v342_v53  ;;  %v374_v52 = vld [vmem:[%s3886_s1 + $0xa38] sm:$0xff]  ;;  %v407_v53 = vld [vmem:[%s3886_s1 + $0xb40] sm:$0xff] }
  0x9e   :  { %1989 = vmatprep.subr.mxu0 %v324_v54  ;;  %2022 = vmatprep.subr.mxu1 %v357_v55  ;;  %v389_v54 = vld [vmem:[%s3886_s1 + $0xab0] sm:$0xff]  ;;  %v422_v55 = vld [vmem:[%s3886_s1 + $0xbb8] sm:$0xff] }
  0x9f   :  { %1990 = vmatpush3.msra.mxu0 %v308_v56  ;;  %2023 = vmatpush3.msra.mxu1 %v341_v57  ;;  %v373_v56 = vld [vmem:[%s3886_s1 + $0xa30] sm:$0xff]  ;;  %v406_v57 = vld [vmem:[%s3886_s1 + $0xb38] sm:$0xff] }
  0xa0   :  { %1991 = vmatprep.subr.mxu0 %v323_v58  ;;  %2024 = vmatprep.subr.mxu1 %v356_v59  ;;  %v388_v58 = vld [vmem:[%s3886_s1 + $0xaa8] sm:$0xff]  ;;  %v421_v59 = vld [vmem:[%s3886_s1 + $0xbb0] sm:$0xff] }
  0xa1   :  { %1992 = vmatpush3.msra.mxu0 %v307_v60  ;;  %2025 = vmatpush3.msra.mxu1 %v340_v61  ;;  %v372_v60 = vld [vmem:[%s3886_s1 + $0xa28] sm:$0xff]  ;;  %v405_v61 = vld [vmem:[%s3886_s1 + $0xb30] sm:$0xff] }
  0xa2   :  { %1993 = vmatprep.subr.mxu0 %v322_v62  ;;  %2026 = vmatprep.subr.mxu1 %v355_v63  ;;  %v387_v62 = vld [vmem:[%s3886_s1 + $0xaa0] sm:$0xff]  ;;  %v420_v63 = vld [vmem:[%s3886_s1 + $0xba8] sm:$0xff] }
  0xa3   :  { %1994 = vmatpush3.msra.mxu0 %v306_v0  ;;  %2027 = vmatpush3.msra.mxu1 %v339_v1  ;;  %v371_v0 = vld [vmem:[%s3886_s1 + $0xa20] sm:$0xff]  ;;  %v404_v1 = vld [vmem:[%s3886_s1 + $0xb28] sm:$0xff] }
  0xa4   :  { %1995 = vmatprep.subr.mxu0 %v321_v2  ;;  %2028 = vmatprep.subr.mxu1 %v354_v3  ;;  %v386_v2 = vld [vmem:[%s3886_s1 + $0xa98] sm:$0xff]  ;;  %v419_v3 = vld [vmem:[%s3886_s1 + $0xba0] sm:$0xff] }
  0xa5   :  { %1996 = vmatpush3.msra.mxu0 %v305_v4  ;;  %2029 = vmatpush3.msra.mxu1 %v338_v5  ;;  %v370_v4 = vld [vmem:[%s3886_s1 + $0xa18] sm:$0xff]  ;;  %v403_v5 = vld [vmem:[%s3886_s1 + $0xb20] sm:$0xff] }
  0xa6   :  { %1997 = vmatprep.subr.mxu0 %v320_v6  ;;  %2030 = vmatprep.subr.mxu1 %v353_v7  ;;  %v385_v6 = vld [vmem:[%s3886_s1 + $0xa90] sm:$0xff]  ;;  %v418_v7 = vld [vmem:[%s3886_s1 + $0xb98] sm:$0xff] }
  0xa7   :  { %1998 = vmatpush3.msra.mxu0 %v304_v8  ;;  %2031 = vmatpush3.msra.mxu1 %v337_v9  ;;  %v369_v8 = vld [vmem:[%s3886_s1 + $0xa10] sm:$0xff]  ;;  %v402_v9 = vld [vmem:[%s3886_s1 + $0xb18] sm:$0xff] }
  0xa8   :  { %1999 = vmatprep.subr.mxu0 %v319_v10  ;;  %2032 = vmatprep.subr.mxu1 %v352_v11  ;;  %v384_v10 = vld [vmem:[%s3886_s1 + $0xa88] sm:$0xff]  ;;  %v417_v11 = vld [vmem:[%s3886_s1 + $0xb90] sm:$0xff] }
  0xa9   :  { %2000 = vmatpush3.msra.mxu0 %v303_v12  ;;  %1158 = vmatprep.mubr.f32.mxu0 %v34_v13  ;;  %v368_v12 = vld [vmem:[%s3886_s1 + $0xa08] sm:$0xff]  ;;  %v401_v13 = vld [vmem:[%s3886_s1 + $0xb10] sm:$0xff] }
  0xaa   :  { %2033 = vmatpush3.msra.mxu1 %v336_v14  ;;  %1159 = vmatmul.mubr.f32.vlgmr.msra.gmra.mxu0 %v33_v15  ;;  %v383_v14 = vld [vmem:[%s3886_s1 + $0xa80] sm:$0xff]  ;;  %v416_v15 = vld [vmem:[%s3886_s1 + $0xb88] sm:$0xff] }
  0xab   :  { %2034 = vmatprep.subr.mxu1 %v351_v16  ;;  %2039 = vmatprep.subr.mxu0 %v398_v17  ;;  %v367_v16 = vld [vmem:[%s3886_s1 + $0xa00] sm:$0xff]  ;;  %v38_v17 = vld [vmem:[%s3887_s0 + $0xa8] sm:$0xff] }
  0xac   :  { %2035 = vmatpush3.msra.mxu1 %v335_v18  ;;  %1228 = vmatprep.mubr.f32.mxu1 %v36_v19  ;;  %v400_v18 = vld [vmem:[%s3886_s1 + $0xb08] sm:$0xff]  ;;  %v37_v19 = vld [vmem:[%s3887_s0 + $0xa0] sm:$0xff] }
  0xad   :  { %2040 = vmatpush3.msra.mxu0 %v382_v20  ;;  %1229 = vmatmul.mubr.f32.vlgmr.msra.gmra.mxu1 %v35_v21  ;;  %v415_v20 = vld [vmem:[%s3886_s1 + $0xb80] sm:$0xff]  ;;  %v462_v21 = vld [vmem:[%s3886_s1 + $0xcf8] sm:$0xff] }
  0xae   :  { %2041 = vmatprep.subr.mxu0 %v397_v22  ;;  %2074 = vmatprep.subr.mxu1 %v430_v23  ;;  %v399_v22 = vld [vmem:[%s3886_s1 + $0xb00] sm:$0xff]  ;;  %v40_v23 = vld [vmem:[%s3887_s0 + $0xb8] sm:$0xff] }
  0xaf   :  { %2042 = vmatpush3.msra.mxu0 %v381_v24  ;;  %2075 = vmatpush3.msra.mxu1 %v414_v25  ;;  %v446_v24 = vld [vmem:[%s3886_s1 + $0xc78] sm:$0xff]  ;;  %v39_v25 = vld [vmem:[%s3887_s0 + $0xb0] sm:$0xff] }
  0xb0   :  { %2043 = vmatprep.subr.mxu0 %v396_v26  ;;  %2076 = vmatprep.subr.mxu1 %v429_v27  ;;  %v461_v26 = vld [vmem:[%s3886_s1 + $0xcf0] sm:$0xff]  ;;  %v494_v27 = vld [vmem:[%s3886_s1 + $0xdf8] sm:$0xff] }
  0xb1   :  { %2044 = vmatpush3.msra.mxu0 %v380_v28  ;;  %2077 = vmatpush3.msra.mxu1 %v413_v29  ;;  %v445_v28 = vld [vmem:[%s3886_s1 + $0xc70] sm:$0xff]  ;;  %v478_v29 = vld [vmem:[%s3886_s1 + $0xd78] sm:$0xff] }
  0xb2   :  { %2045 = vmatprep.subr.mxu0 %v395_v30  ;;  %2078 = vmatprep.subr.mxu1 %v428_v31  ;;  %v460_v30 = vld [vmem:[%s3886_s1 + $0xce8] sm:$0xff]  ;;  %v493_v31 = vld [vmem:[%s3886_s1 + $0xdf0] sm:$0xff] }
  0xb3   :  { %2046 = vmatpush3.msra.mxu0 %v379_v32  ;;  %2079 = vmatpush3.msra.mxu1 %v412_v33  ;;  %v444_v32 = vld [vmem:[%s3886_s1 + $0xc68] sm:$0xff]  ;;  %v477_v33 = vld [vmem:[%s3886_s1 + $0xd70] sm:$0xff] }
  0xb4   :  { %2047 = vmatprep.subr.mxu0 %v394_v34  ;;  %2080 = vmatprep.subr.mxu1 %v427_v35  ;;  %v459_v34 = vld [vmem:[%s3886_s1 + $0xce0] sm:$0xff]  ;;  %v492_v35 = vld [vmem:[%s3886_s1 + $0xde8] sm:$0xff] }
  0xb5   :  { %2048 = vmatpush3.msra.mxu0 %v378_v36  ;;  %2081 = vmatpush3.msra.mxu1 %v411_v37  ;;  %v443_v36 = vld [vmem:[%s3886_s1 + $0xc60] sm:$0xff]  ;;  %v476_v37 = vld [vmem:[%s3886_s1 + $0xd68] sm:$0xff] }
  0xb6   :  { %2049 = vmatprep.subr.mxu0 %v393_v38  ;;  %2082 = vmatprep.subr.mxu1 %v426_v39  ;;  %v458_v38 = vld [vmem:[%s3886_s1 + $0xcd8] sm:$0xff]  ;;  %v491_v39 = vld [vmem:[%s3886_s1 + $0xde0] sm:$0xff] }
  0xb7   :  { %2050 = vmatpush3.msra.mxu0 %v377_v40  ;;  %2083 = vmatpush3.msra.mxu1 %v410_v41  ;;  %v442_v40 = vld [vmem:[%s3886_s1 + $0xc58] sm:$0xff]  ;;  %v475_v41 = vld [vmem:[%s3886_s1 + $0xd60] sm:$0xff] }
  0xb8   :  { %2051 = vmatprep.subr.mxu0 %v392_v42  ;;  %2084 = vmatprep.subr.mxu1 %v425_v43  ;;  %v457_v42 = vld [vmem:[%s3886_s1 + $0xcd0] sm:$0xff]  ;;  %v490_v43 = vld [vmem:[%s3886_s1 + $0xdd8] sm:$0xff] }
  0xb9   :  { %2052 = vmatpush3.msra.mxu0 %v376_v44  ;;  %2085 = vmatpush3.msra.mxu1 %v409_v45  ;;  %v441_v44 = vld [vmem:[%s3886_s1 + $0xc50] sm:$0xff]  ;;  %v474_v45 = vld [vmem:[%s3886_s1 + $0xd58] sm:$0xff] }
  0xba   :  { %2053 = vmatprep.subr.mxu0 %v391_v46  ;;  %2086 = vmatprep.subr.mxu1 %v424_v47  ;;  %v456_v46 = vld [vmem:[%s3886_s1 + $0xcc8] sm:$0xff]  ;;  %v489_v47 = vld [vmem:[%s3886_s1 + $0xdd0] sm:$0xff] }
  0xbb   :  { %2054 = vmatpush3.msra.mxu0 %v375_v48  ;;  %2087 = vmatpush3.msra.mxu1 %v408_v49  ;;  %v440_v48 = vld [vmem:[%s3886_s1 + $0xc48] sm:$0xff]  ;;  %v473_v49 = vld [vmem:[%s3886_s1 + $0xd50] sm:$0xff] }
  0xbc   :  { %2055 = vmatprep.subr.mxu0 %v390_v50  ;;  %2088 = vmatprep.subr.mxu1 %v423_v51  ;;  %v455_v50 = vld [vmem:[%s3886_s1 + $0xcc0] sm:$0xff]  ;;  %v488_v51 = vld [vmem:[%s3886_s1 + $0xdc8] sm:$0xff] }
  0xbd   :  { %2056 = vmatpush3.msra.mxu0 %v374_v52  ;;  %2089 = vmatpush3.msra.mxu1 %v407_v53  ;;  %v439_v52 = vld [vmem:[%s3886_s1 + $0xc40] sm:$0xff]  ;;  %v472_v53 = vld [vmem:[%s3886_s1 + $0xd48] sm:$0xff] }
  0xbe   :  { %2057 = vmatprep.subr.mxu0 %v389_v54  ;;  %2090 = vmatprep.subr.mxu1 %v422_v55  ;;  %v454_v54 = vld [vmem:[%s3886_s1 + $0xcb8] sm:$0xff]  ;;  %v487_v55 = vld [vmem:[%s3886_s1 + $0xdc0] sm:$0xff] }
  0xbf   :  { %2058 = vmatpush3.msra.mxu0 %v373_v56  ;;  %2091 = vmatpush3.msra.mxu1 %v406_v57  ;;  %v438_v56 = vld [vmem:[%s3886_s1 + $0xc38] sm:$0xff]  ;;  %v471_v57 = vld [vmem:[%s3886_s1 + $0xd40] sm:$0xff] }
  0xc0   :  { %2059 = vmatprep.subr.mxu0 %v388_v58  ;;  %2092 = vmatprep.subr.mxu1 %v421_v59  ;;  %v453_v58 = vld [vmem:[%s3886_s1 + $0xcb0] sm:$0xff]  ;;  %v486_v59 = vld [vmem:[%s3886_s1 + $0xdb8] sm:$0xff] }
  0xc1   :  { %2060 = vmatpush3.msra.mxu0 %v372_v60  ;;  %2093 = vmatpush3.msra.mxu1 %v405_v61  ;;  %v437_v60 = vld [vmem:[%s3886_s1 + $0xc30] sm:$0xff]  ;;  %v470_v61 = vld [vmem:[%s3886_s1 + $0xd38] sm:$0xff] }
  0xc2   :  { %2061 = vmatprep.subr.mxu0 %v387_v62  ;;  %2094 = vmatprep.subr.mxu1 %v420_v63  ;;  %v452_v62 = vld [vmem:[%s3886_s1 + $0xca8] sm:$0xff]  ;;  %v485_v63 = vld [vmem:[%s3886_s1 + $0xdb0] sm:$0xff] }
  0xc3   :  { %2062 = vmatpush3.msra.mxu0 %v371_v0  ;;  %2095 = vmatpush3.msra.mxu1 %v404_v1  ;;  %v436_v0 = vld [vmem:[%s3886_s1 + $0xc28] sm:$0xff]  ;;  %v469_v1 = vld [vmem:[%s3886_s1 + $0xd30] sm:$0xff] }
  0xc4   :  { %2063 = vmatprep.subr.mxu0 %v386_v2  ;;  %2096 = vmatprep.subr.mxu1 %v419_v3  ;;  %v451_v2 = vld [vmem:[%s3886_s1 + $0xca0] sm:$0xff]  ;;  %v484_v3 = vld [vmem:[%s3886_s1 + $0xda8] sm:$0xff] }
  0xc5   :  { %2064 = vmatpush3.msra.mxu0 %v370_v4  ;;  %2097 = vmatpush3.msra.mxu1 %v403_v5  ;;  %v435_v4 = vld [vmem:[%s3886_s1 + $0xc20] sm:$0xff]  ;;  %v468_v5 = vld [vmem:[%s3886_s1 + $0xd28] sm:$0xff] }
  0xc6   :  { %2065 = vmatprep.subr.mxu0 %v385_v6  ;;  %2098 = vmatprep.subr.mxu1 %v418_v7  ;;  %v450_v6 = vld [vmem:[%s3886_s1 + $0xc98] sm:$0xff]  ;;  %v483_v7 = vld [vmem:[%s3886_s1 + $0xda0] sm:$0xff] }
  0xc7   :  { %2066 = vmatpush3.msra.mxu0 %v369_v8  ;;  %2099 = vmatpush3.msra.mxu1 %v402_v9  ;;  %v434_v8 = vld [vmem:[%s3886_s1 + $0xc18] sm:$0xff]  ;;  %v467_v9 = vld [vmem:[%s3886_s1 + $0xd20] sm:$0xff] }
  0xc8   :  { %2067 = vmatprep.subr.mxu0 %v384_v10  ;;  %2100 = vmatprep.subr.mxu1 %v417_v11  ;;  %v449_v10 = vld [vmem:[%s3886_s1 + $0xc90] sm:$0xff]  ;;  %v482_v11 = vld [vmem:[%s3886_s1 + $0xd98] sm:$0xff] }
  0xc9   :  { %2068 = vmatpush3.msra.mxu0 %v368_v12  ;;  %2101 = vmatpush3.msra.mxu1 %v401_v13  ;;  %v433_v12 = vld [vmem:[%s3886_s1 + $0xc10] sm:$0xff]  ;;  %v466_v13 = vld [vmem:[%s3886_s1 + $0xd18] sm:$0xff] }
  0xca   :  { %2069 = vmatprep.subr.mxu0 %v383_v14  ;;  %2102 = vmatprep.subr.mxu1 %v416_v15  ;;  %v448_v14 = vld [vmem:[%s3886_s1 + $0xc88] sm:$0xff]  ;;  %v481_v15 = vld [vmem:[%s3886_s1 + $0xd90] sm:$0xff] }
  0xcb   :  { %2070 = vmatpush3.msra.mxu0 %v367_v16  ;;  %1298 = vmatprep.mubr.f32.mxu0 %v38_v17  ;;  %v432_v16 = vld [vmem:[%s3886_s1 + $0xc08] sm:$0xff]  ;;  %v465_v17 = vld [vmem:[%s3886_s1 + $0xd10] sm:$0xff] }
  0xcc   :  { %2103 = vmatpush3.msra.mxu1 %v400_v18  ;;  %1299 = vmatmul.mubr.f32.vlgmr.msra.gmra.mxu0 %v37_v19  ;;  %v447_v18 = vld [vmem:[%s3886_s1 + $0xc80] sm:$0xff]  ;;  %v480_v19 = vld [vmem:[%s3886_s1 + $0xd88] sm:$0xff] }
  0xcd   :  { %2104 = vmatprep.subr.mxu1 %v415_v20  ;;  %2109 = vmatprep.subr.mxu0 %v462_v21  ;;  %v431_v20 = vld [vmem:[%s3886_s1 + $0xc00] sm:$0xff]  ;;  %v42_v21 = vld [vmem:[%s3887_s0 + $0xc8] sm:$0xff] }
  0xce   :  { %2105 = vmatpush3.msra.mxu1 %v399_v22  ;;  %1368 = vmatprep.mubr.f32.mxu1 %v40_v23  ;;  %v464_v22 = vld [vmem:[%s3886_s1 + $0xd08] sm:$0xff]  ;;  %v41_v23 = vld [vmem:[%s3887_s0 + $0xc0] sm:$0xff] }
  0xcf   :  { %2110 = vmatpush3.msra.mxu0 %v446_v24  ;;  %1369 = vmatmul.mubr.f32.vlgmr.msra.gmra.mxu1 %v39_v25  ;;  %v479_v24 = vld [vmem:[%s3886_s1 + $0xd80] sm:$0xff]  ;;  %v526_v25 = vld [vmem:[%s3886_s1 + $0xef8] sm:$0xff] }
  0xd0   :  { %2111 = vmatprep.subr.mxu0 %v461_v26  ;;  %2144 = vmatprep.subr.mxu1 %v494_v27  ;;  %v463_v26 = vld [vmem:[%s3886_s1 + $0xd00] sm:$0xff]  ;;  %v44_v27 = vld [vmem:[%s3887_s0 + $0xd8] sm:$0xff] }
  0xd1   :  { %2112 = vmatpush3.msra.mxu0 %v445_v28  ;;  %2145 = vmatpush3.msra.mxu1 %v478_v29  ;;  %v510_v28 = vld [vmem:[%s3886_s1 + $0xe78] sm:$0xff]  ;;  %v43_v29 = vld [vmem:[%s3887_s0 + $0xd0] sm:$0xff] }
  0xd2   :  { %2113 = vmatprep.subr.mxu0 %v460_v30  ;;  %2146 = vmatprep.subr.mxu1 %v493_v31  ;;  %v525_v30 = vld [vmem:[%s3886_s1 + $0xef0] sm:$0xff] }
  0xd3   :  { %2114 = vmatpush3.msra.mxu0 %v444_v32  ;;  %2147 = vmatpush3.msra.mxu1 %v477_v33  ;;  %v509_v31 = vld [vmem:[%s3886_s1 + $0xe70] sm:$0xff]  ;;  %v46_v32 = vld [vmem:[%s3887_s0 + $0xe8] sm:$0xff] }
  0xd4   :  { %2115 = vmatprep.subr.mxu0 %v459_v34  ;;  %2148 = vmatprep.subr.mxu1 %v492_v35  ;;  %v524_v33 = vld [vmem:[%s3886_s1 + $0xee8] sm:$0xff]  ;;  %v523_v35 = vld [vmem:[%s3886_s1 + $0xee0] sm:$0xff] }
  0xd5   :  { %2116 = vmatpush3.msra.mxu0 %v443_v36  ;;  %2149 = vmatpush3.msra.mxu1 %v476_v37  ;;  %v508_v34 = vld [vmem:[%s3886_s1 + $0xe68] sm:$0xff]  ;;  %v507_v36 = vld [vmem:[%s3886_s1 + $0xe60] sm:$0xff]  ;;  %v522_v37 = vld [vmem:[%s3886_s1 + $0xed8] sm:$0xff] }
  0xd6   :  { %2117 = vmatprep.subr.mxu0 %v458_v38  ;;  %2150 = vmatprep.subr.mxu1 %v491_v39  ;;  %v506_v38 = vld [vmem:[%s3886_s1 + $0xe58] sm:$0xff]  ;;  %v521_v39 = vld [vmem:[%s3886_s1 + $0xed0] sm:$0xff] }
  0xd7   :  { %2118 = vmatpush3.msra.mxu0 %v442_v40  ;;  %2151 = vmatpush3.msra.mxu1 %v475_v41  ;;  %v505_v40 = vld [vmem:[%s3886_s1 + $0xe50] sm:$0xff]  ;;  %v520_v41 = vld [vmem:[%s3886_s1 + $0xec8] sm:$0xff] }
  0xd8   :  { %2119 = vmatprep.subr.mxu0 %v457_v42  ;;  %2152 = vmatprep.subr.mxu1 %v490_v43  ;;  %v504_v42 = vld [vmem:[%s3886_s1 + $0xe48] sm:$0xff]  ;;  %v519_v43 = vld [vmem:[%s3886_s1 + $0xec0] sm:$0xff] }
  0xd9   :  { %2120 = vmatpush3.msra.mxu0 %v441_v44  ;;  %2153 = vmatpush3.msra.mxu1 %v474_v45  ;;  %v503_v44 = vld [vmem:[%s3886_s1 + $0xe40] sm:$0xff]  ;;  %v518_v45 = vld [vmem:[%s3886_s1 + $0xeb8] sm:$0xff] }
  0xda   :  { %2121 = vmatprep.subr.mxu0 %v456_v46  ;;  %2154 = vmatprep.subr.mxu1 %v489_v47  ;;  %v502_v46 = vld [vmem:[%s3886_s1 + $0xe38] sm:$0xff]  ;;  %v517_v47 = vld [vmem:[%s3886_s1 + $0xeb0] sm:$0xff] }
  0xdb   :  { %2122 = vmatpush3.msra.mxu0 %v440_v48  ;;  %2155 = vmatpush3.msra.mxu1 %v473_v49  ;;  %v501_v48 = vld [vmem:[%s3886_s1 + $0xe30] sm:$0xff]  ;;  %v516_v49 = vld [vmem:[%s3886_s1 + $0xea8] sm:$0xff] }
  0xdc   :  { %2123 = vmatprep.subr.mxu0 %v455_v50  ;;  %2156 = vmatprep.subr.mxu1 %v488_v51  ;;  %v500_v50 = vld [vmem:[%s3886_s1 + $0xe28] sm:$0xff]  ;;  %v515_v51 = vld [vmem:[%s3886_s1 + $0xea0] sm:$0xff] }
  0xdd   :  { %2124 = vmatpush3.msra.mxu0 %v439_v52  ;;  %2157 = vmatpush3.msra.mxu1 %v472_v53  ;;  %v499_v52 = vld [vmem:[%s3886_s1 + $0xe20] sm:$0xff]  ;;  %v514_v53 = vld [vmem:[%s3886_s1 + $0xe98] sm:$0xff] }
  0xde   :  { %2125 = vmatprep.subr.mxu0 %v454_v54  ;;  %2158 = vmatprep.subr.mxu1 %v487_v55  ;;  %v498_v54 = vld [vmem:[%s3886_s1 + $0xe18] sm:$0xff]  ;;  %v513_v55 = vld [vmem:[%s3886_s1 + $0xe90] sm:$0xff] }
  0xdf   :  { %2126 = vmatpush3.msra.mxu0 %v438_v56  ;;  %2159 = vmatpush3.msra.mxu1 %v471_v57  ;;  %v497_v56 = vld [vmem:[%s3886_s1 + $0xe10] sm:$0xff]  ;;  %v512_v57 = vld [vmem:[%s3886_s1 + $0xe88] sm:$0xff] }
  0xe0   :  { %2127 = vmatprep.subr.mxu0 %v453_v58  ;;  %2160 = vmatprep.subr.mxu1 %v486_v59  ;;  %v496_v58 = vld [vmem:[%s3886_s1 + $0xe08] sm:$0xff]  ;;  %v511_v59 = vld [vmem:[%s3886_s1 + $0xe80] sm:$0xff] }
  0xe1   :  { %2128 = vmatpush3.msra.mxu0 %v437_v60  ;;  %2161 = vmatpush3.msra.mxu1 %v470_v61  ;;  %v495_v60 = vld [vmem:[%s3886_s1 + $0xe00] sm:$0xff] }
  0xe2   :  { %2129 = vmatprep.subr.mxu0 %v452_v62  ;;  %2162 = vmatprep.subr.mxu1 %v485_v63  ;;  %v45_v61 = vld [vmem:[%s3887_s0 + $0xe0] sm:$0xff]  ;;  %v2272_v62 = vmov 0.0   ;;  %v1600_v63 = vld [vmem:[%s3888_s3 + $0x78] sm:$0xff] }
  0xe3   :  { %2130 = vmatpush3.msra.mxu0 %v436_v0  ;;  %2163 = vmatpush3.msra.mxu1 %v469_v1  ;;  %v1599_v0 = vld [vmem:[%s3888_s3 + $0x70] sm:$0xff]  ;;  %v1598_v1 = vld [vmem:[%s3888_s3 + $0x68] sm:$0xff] }
  0xe4   :  { %2131 = vmatprep.subr.mxu0 %v451_v2  ;;  %2164 = vmatprep.subr.mxu1 %v484_v3  ;;  %v1597_v2 = vld [vmem:[%s3888_s3 + $0x60] sm:$0xff]  ;;  %v1596_v3 = vld [vmem:[%s3888_s3 + $0x58] sm:$0xff] }
  0xe5   :  { %2132 = vmatpush3.msra.mxu0 %v435_v4  ;;  %2165 = vmatpush3.msra.mxu1 %v468_v5  ;;  %v1595_v4 = vld [vmem:[%s3888_s3 + $0x50] sm:$0xff]  ;;  %v1594_v5 = vld [vmem:[%s3888_s3 + $0x48] sm:$0xff] }
  0xe6   :  { %2133 = vmatprep.subr.mxu0 %v450_v6  ;;  %2166 = vmatprep.subr.mxu1 %v483_v7  ;;  %v1593_v6 = vld [vmem:[%s3888_s3 + $0x40] sm:$0xff]  ;;  %v1592_v7 = vld [vmem:[%s3888_s3 + $0x38] sm:$0xff] }
  0xe7   :  { %2134 = vmatpush3.msra.mxu0 %v434_v8  ;;  %2167 = vmatpush3.msra.mxu1 %v467_v9  ;;  %v1591_v8 = vld [vmem:[%s3888_s3 + $0x30] sm:$0xff]  ;;  %v1590_v9 = vld [vmem:[%s3888_s3 + $0x28] sm:$0xff] }
  0xe8   :  { %2135 = vmatprep.subr.mxu0 %v449_v10  ;;  %2168 = vmatprep.subr.mxu1 %v482_v11  ;;  %v1589_v10 = vld [vmem:[%s3888_s3 + $0x20] sm:$0xff]  ;;  %v1588_v11 = vld [vmem:[%s3888_s3 + $0x18] sm:$0xff] }
  0xe9   :  { %2136 = vmatpush3.msra.mxu0 %v433_v12  ;;  %2169 = vmatpush3.msra.mxu1 %v466_v13  ;;  %v1587_v12 = vld [vmem:[%s3888_s3 + $0x10] sm:$0xff]  ;;  %v1586_v13 = vld [vmem:[%s3888_s3 + $0x8] sm:$0xff] }
  0xea   :  { %2137 = vmatprep.subr.mxu0 %v448_v14  ;;  %2170 = vmatprep.subr.mxu1 %v481_v15  ;;  %v1585_v14 = vld [vmem:[%s3888_s3] sm:$0xff]  ;;  %v1721_v15 = vpop.f32.mrf.mxu0 }
  0xeb   :  { %2138 = vmatpush3.msra.mxu0 %v432_v16  ;;  %2171 = vmatpush3.msra.mxu1 %v465_v17  ;;  %v1756_v17 = vpop.f32.mrf.mxu1 }
  0xec   :  { %2139 = vmatprep.subr.mxu0 %v447_v18  ;;  %2172 = vmatprep.subr.mxu1 %v480_v19  ;;  %v1722_v16 = vpop.f32.mrf.mxu0 }
  0xed   :  { %2140 = vmatpush3.msra.mxu0 %v431_v20  ;;  %1438 = vmatprep.mubr.f32.mxu0 %v42_v21  ;;  %v1723_v19 = vadd.f32 %v1722_v16, %v1721_v15  ;;  %v1688_v20 = vld [vmem:[%s3889_s2] ss:$0 sm:$0xff]  ;;  %v1757_v21 = vpop.f32.mrf.mxu1 }
  0xee   :  { %2173 = vmatpush3.msra.mxu1 %v464_v22  ;;  %1439 = vmatmul.mubr.f32.vlgmr.msra.gmra.mxu0 %v41_v23 }
  0xef   :  { %2174 = vmatprep.subr.mxu1 %v479_v24  ;;  %2179 = vmatprep.subr.mxu0 %v526_v25  ;;  %v601_v24 = vadd.f32 %v1723_v19, %v1688_v20  ;;  %v1758_v25 = vadd.f32 %v1757_v21, %v1756_v17 }
  0xf0   :  { %2175 = vmatpush3.msra.mxu1 %v463_v26  ;;  %1508 = vmatprep.mubr.f32.mxu1 %v44_v27 }
  0xf1   :  { %2180 = vmatpush3.msra.mxu0 %v510_v28  ;;  %1509 = vmatmul.mubr.f32.vlgmr.msra.gmra.mxu1 %v43_v29  ;;  %v671_v29 = vadd.f32 %v1758_v25, %v601_v24 }
  0xf2   :  { %2181 = vmatprep.subr.mxu0 %v525_v30  ;;  %1578 = vmatprep.mubr.f32.mxu0 %v46_v32 }
  0xf3   :  { %2182 = vmatpush3.msra.mxu0 %v509_v31  ;;  %2231 = vmatprep.subr.mxu1 %v2272_v62 }
  0xf4   :  { %2183 = vmatprep.subr.mxu0 %v524_v33  ;;  %2232 = vmatpush3.msra.mxu1 %v1600_v63 }
  0xf5   :  { %2184 = vmatpush3.msra.mxu0 %v508_v34  ;;  %2233 = vmatprep.subr.mxu1 %v2272_v62 }
  0xf6   :  { %2185 = vmatprep.subr.mxu0 %v523_v35  ;;  %2234 = vmatpush3.msra.mxu1 %v1599_v0 }
  0xf7   :  { %2186 = vmatpush3.msra.mxu0 %v507_v36  ;;  %2235 = vmatprep.subr.mxu1 %v2272_v62 }
  0xf8   :  { %2187 = vmatprep.subr.mxu0 %v522_v37  ;;  %2236 = vmatpush3.msra.mxu1 %v1598_v1 }
  0xf9   :  { %2188 = vmatpush3.msra.mxu0 %v506_v38  ;;  %2237 = vmatprep.subr.mxu1 %v2272_v62 }
  0xfa   :  { %2189 = vmatprep.subr.mxu0 %v521_v39  ;;  %2238 = vmatpush3.msra.mxu1 %v1597_v2 }
  0xfb   :  { %2190 = vmatpush3.msra.mxu0 %v505_v40  ;;  %2239 = vmatprep.subr.mxu1 %v2272_v62 }
  0xfc   :  { %2191 = vmatprep.subr.mxu0 %v520_v41  ;;  %2240 = vmatpush3.msra.mxu1 %v1596_v3 }
  0xfd   :  { %2192 = vmatpush3.msra.mxu0 %v504_v42  ;;  %2241 = vmatprep.subr.mxu1 %v2272_v62 }
  0xfe   :  { %2193 = vmatprep.subr.mxu0 %v519_v43  ;;  %2242 = vmatpush3.msra.mxu1 %v1595_v4 }
  0xff   :  { %2194 = vmatpush3.msra.mxu0 %v503_v44  ;;  %2243 = vmatprep.subr.mxu1 %v2272_v62 }
 0x100   :  { %2195 = vmatprep.subr.mxu0 %v518_v45  ;;  %2244 = vmatpush3.msra.mxu1 %v1594_v5 }
 0x101   :  { %2196 = vmatpush3.msra.mxu0 %v502_v46  ;;  %2245 = vmatprep.subr.mxu1 %v2272_v62 }
 0x102   :  { %2197 = vmatprep.subr.mxu0 %v517_v47  ;;  %2246 = vmatpush3.msra.mxu1 %v1593_v6 }
 0x103   :  { %2198 = vmatpush3.msra.mxu0 %v501_v48  ;;  %2247 = vmatprep.subr.mxu1 %v2272_v62 }
 0x104   :  { %2199 = vmatprep.subr.mxu0 %v516_v49  ;;  %2248 = vmatpush3.msra.mxu1 %v1592_v7  ;;  %v1791_v18 = vpop.f32.mrf.mxu0 }
 0x105   :  { %2200 = vmatpush3.msra.mxu0 %v500_v50  ;;  %2249 = vmatprep.subr.mxu1 %v2272_v62 }
 0x106   :  { %2201 = vmatprep.subr.mxu0 %v515_v51  ;;  %2250 = vmatpush3.msra.mxu1 %v1591_v8  ;;  %v1792_v22 = vpop.f32.mrf.mxu0 }
 0x107   :  { %2202 = vmatpush3.msra.mxu0 %v499_v52  ;;  %2251 = vmatprep.subr.mxu1 %v2272_v62  ;;  %v1826_v23 = vpop.f32.mrf.mxu1  ;;  %v1793_v27 = vadd.f32 %v1792_v22, %v1791_v18 }
 0x108   :  { %2203 = vmatprep.subr.mxu0 %v514_v53  ;;  %2252 = vmatpush3.msra.mxu1 %v1590_v9 }
 0x109   :  { %2204 = vmatpush3.msra.mxu0 %v498_v54  ;;  %2253 = vmatprep.subr.mxu1 %v2272_v62  ;;  %v1827_v28 = vpop.f32.mrf.mxu1  ;;  %v741_v32 = vadd.f32 %v1793_v27, %v671_v29 }
 0x10a   :  { %2205 = vmatprep.subr.mxu0 %v513_v55  ;;  %2254 = vmatpush3.msra.mxu1 %v1589_v10  ;;  %v1828_v33 = vadd.f32 %v1827_v28, %v1826_v23 }
 0x10b   :  { %2206 = vmatpush3.msra.mxu0 %v497_v56  ;;  %2255 = vmatprep.subr.mxu1 %v2272_v62 }
 0x10c   :  { %2207 = vmatprep.subr.mxu0 %v512_v57  ;;  %2256 = vmatpush3.msra.mxu1 %v1588_v11  ;;  %v811_v37 = vadd.f32 %v1828_v33, %v741_v32 }
 0x10d   :  { %2208 = vmatpush3.msra.mxu0 %v496_v58  ;;  %2257 = vmatprep.subr.mxu1 %v2272_v62 }
 0x10e   :  { %2209 = vmatprep.subr.mxu0 %v511_v59  ;;  %2258 = vmatpush3.msra.mxu1 %v1587_v12 }
 0x10f   :  { %2210 = vmatpush3.msra.mxu0 %v495_v60  ;;  %2259 = vmatprep.subr.mxu1 %v2272_v62 }
 0x110   :  { %1579 = vmatmul.mubr.f32.vlgmr.msra.gmra.mxu0 %v45_v61  ;;  %2260 = vmatpush3.msra.mxu1 %v1586_v13 }
 0x111   :  { %2261 = vmatprep.subr.mxu1 %v2272_v62  ;;  %2263 = vmatprep.mubr.msk.f32.mxu1 %vm2273_vm0, %v2272_v62 }
 0x112   :  { %2262 = vmatpush3.msra.mxu1 %v1585_v14 }
 0x126   :  { %v1861_v26 = vpop.f32.mrf.mxu0 }
 0x128   :  { %v1862_v30 = vpop.f32.mrf.mxu0 }
 0x129   :  { %v1896_v31 = vpop.f32.mrf.mxu1  ;;  %v1863_v35 = vadd.f32 %v1862_v30, %v1861_v26 }
 0x12b   :  { %v1897_v36 = vpop.f32.mrf.mxu1  ;;  %v881_v40 = vadd.f32 %v1863_v35, %v811_v37 }
 0x12c   :  { %v1898_v41 = vadd.f32 %v1897_v36, %v1896_v31 }
 0x12e   :  { %v951_v45 = vadd.f32 %v1898_v41, %v881_v40 }
 0x148   :  { %v1931_v34 = vpop.f32.mrf.mxu0 }
 0x14a   :  { %v1932_v38 = vpop.f32.mrf.mxu0 }
 0x14b   :  { %v1966_v39 = vpop.f32.mrf.mxu1  ;;  %v1933_v43 = vadd.f32 %v1932_v38, %v1931_v34 }
 0x14d   :  { %v1967_v44 = vpop.f32.mrf.mxu1  ;;  %v1021_v48 = vadd.f32 %v1933_v43, %v951_v45 }
 0x14e   :  { %v1968_v49 = vadd.f32 %v1967_v44, %v1966_v39 }
 0x150   :  { %v1091_v53 = vadd.f32 %v1968_v49, %v1021_v48 }
 0x16a   :  { %v2001_v42 = vpop.f32.mrf.mxu0 }
 0x16c   :  { %v2002_v46 = vpop.f32.mrf.mxu0 }
 0x16d   :  { %v2036_v47 = vpop.f32.mrf.mxu1  ;;  %v2003_v51 = vadd.f32 %v2002_v46, %v2001_v42 }
 0x16f   :  { %v2037_v52 = vpop.f32.mrf.mxu1  ;;  %v1161_v56 = vadd.f32 %v2003_v51, %v1091_v53 }
 0x170   :  { %v2038_v57 = vadd.f32 %v2037_v52, %v2036_v47 }
 0x172   :  { %v1231_v61 = vadd.f32 %v2038_v57, %v1161_v56 }
 0x18c   :  { %v2071_v50 = vpop.f32.mrf.mxu0 }
 0x18e   :  { %v2072_v54 = vpop.f32.mrf.mxu0 }
 0x18f   :  { %v2106_v55 = vpop.f32.mrf.mxu1  ;;  %v2073_v59 = vadd.f32 %v2072_v54, %v2071_v50 }
 0x191   :  { %v2107_v60 = vpop.f32.mrf.mxu1  ;;  %v1301_v0 = vadd.f32 %v2073_v59, %v1231_v61 }
 0x192   :  { %v2108_v1 = vadd.f32 %v2107_v60, %v2106_v55 }
 0x194   :  { %v1371_v4 = vadd.f32 %v2108_v1, %v1301_v0 }
 0x1ae   :  { %v2141_v58 = vpop.f32.mrf.mxu0 }
 0x1b0   :  { %v2142_v62 = vpop.f32.mrf.mxu0 }
 0x1b1   :  { %v2176_v63 = vpop.f32.mrf.mxu1  ;;  %v2143_v2 = vadd.f32 %v2142_v62, %v2141_v58 }
 0x1b3   :  { %v2177_v3 = vpop.f32.mrf.mxu1  ;;  %v1441_v5 = vadd.f32 %v2143_v2, %v1371_v4 }
 0x1b4   :  { %v2178_v6 = vadd.f32 %v2177_v3, %v2176_v63 }
 0x1b6   :  { %v1511_v9 = vadd.f32 %v2178_v6, %v1441_v5 }
 0x1d0   :  { %v2211_v7 = vpop.f32.mrf.mxu0 }
 0x1d2   :  { %v2212_v8 = vpop.f32.mrf.mxu0 }
 0x1d3   :  { %v2213_v10 = vadd.f32 %v2212_v8, %v2211_v7 }
 0x1d5   :  { %v1581_v11 = vadd.f32 %v2213_v10, %v1511_v9 }
 0x1d7   :  { %v1584_v12 = vmax.f32 %v1581_v11, 0.0 }
 0x1d9   :  { %2264 = vmatmul.mubr.f32.vlgmr.msra.gmra.mxu1 %v1584_v12 }
 0x299   :  { %v1667_v13 = vpop.f32.mrf.mxu1 }
 0x29a   :  { %v1672_v14 = vsel %vm1671_vm1, %v1667_v13, -inf }
 0x29b   :  { %1673 = vmax.xlane.f32.xlu0 %v1672_v14  ;;  %v2265_v15 = vpop.f32.mrf.mxu1 }
 0x324   :  { %v1674_v16 = vpop.xlane.xlu0 %1673 }
 0x325   :  { %v1675_v17 = vsub.f32 %v1667_v13, %v1674_v16 }
 0x327   :  { %v1676_v18 = vmul.f32 1.442695, %v1675_v17 }
 0x329   :  { %2268 = vpow2.f32 %v1676_v18 }
 0x336   :  { %v2269_v19 = vpop.eup %2268 }
 0x337   :  { %v1678_v20 = vsel %vm1671_vm1, %v2269_v19, 0.0 }
 0x338   :  { %1679 = vadd.xlane.f32.xlu0 %v1678_v20 }
 0x3c1   :  { %v1680_v21 = vpop.xlane.xlu0 %1679 }
 0x3c2   :  { %2270 = vrcp.f32 %v1680_v21 }
 0x3cf   :  { %v2271_v22 = vpop.eup %2270 }
 0x3d0   :  { %v1682_v23 = vmul.f32 %v2271_v22, %v2269_v19 }
 0x3d2   :  { %1683 = vst.msk [vmem:[%s3890_s4] sm:$0xff] %vm1671_vm1, %v1682_v23 }

// kernel: net_forward.2
= control target key start
LH: loop header
LB: loop body
LE: loop exit
PB: predicated region body
PF: predicated region fallthrough
CT: control target
= control target key end

     0   :  { %vm3089_vm0 = vcmask 1040384   ;;  %vm784_vm1 = vcmask 72704   ;;  %vm7965_vm2 = vcmask 162816   ;;  %s17238_s1 = inlined_call_operand.vmem [shape: f32[9,20], index: 1, kind: input, shape index: {}]   ;;  %s17239_s0 = inlined_call_operand.vmem [shape: f32[6144,9], index: 0, kind: input, shape index: {}]   ;;  %s17240_s2 = inlined_call_operand.vmem [shape: f32[1,20], index: 2, kind: input, shape index: {}]   ;;  %s17241_s3 = inlined_call_operand.vmem [shape: f32[8,192,20], index: 3, kind: output, shape index: {}]  }
   0x1   :  { %v783_v0 = vld [vmem:[%s17238_s1 + $0x8] sm:$0x1]  ;;  %v782_v1 = vld [vmem:[%s17238_s1] sm:$0xff]  ;;  %v16_v6 = vld [vmem:[%s17239_s0 + $0x10] sm:$0xff] }
   0x2   :  { %9702 = vmatprep.subr.msk.mxu0 %vm3089_vm0, %v783_v0  ;;  %10858 = vmatprep.subr.msk.mxu1 %vm3089_vm0, %v783_v0  ;;  %v14_v2 = vld [vmem:[%s17239_s0] sm:$0xff]  ;;  %v15_v4 = vld [vmem:[%s17239_s0 + $0x8] sm:$0xff]  ;;  %v400_v7 = vld [vmem:[%s17239_s0 + $0xc10] sm:$0xff] }
   0x3   :  { %9703 = vmatpush3.msk.msra.mxu0 %vm3089_vm0, %v783_v0  ;;  %10860 = vmatpush3.msk.msra.mxu1 %vm3089_vm0, %v783_v0  ;;  %v398_v3 = vld [vmem:[%s17239_s0 + $0xc00] sm:$0xff]  ;;  %v399_v5 = vld [vmem:[%s17239_s0 + $0xc08] sm:$0xff]  ;;  %v17_v8 = vld [vmem:[%s17239_s0 + $0x18] sm:$0xff] }
   0x4   :  { %9704 = vmatprep.subr.mxu0 %v782_v1  ;;  %10859 = vmatprep.subr.mxu1 %v782_v1  ;;  %v401_v9 = vld [vmem:[%s17239_s0 + $0xc18] sm:$0xff]  ;;  %v18_v10 = vld [vmem:[%s17239_s0 + $0x20] sm:$0xff]  ;;  %v19_v12 = vld [vmem:[%s17239_s0 + $0x28] sm:$0xff] }
   0x5   :  { %9705 = vmatpush3.msra.mxu0 %v782_v1  ;;  %10861 = vmatpush3.msra.mxu1 %v782_v1  ;;  %v402_v11 = vld [vmem:[%s17239_s0 + $0xc20] sm:$0xff]  ;;  %v403_v13 = vld [vmem:[%s17239_s0 + $0xc28] sm:$0xff]  ;;  %v20_v14 = vld [vmem:[%s17239_s0 + $0x30] sm:$0xff] }
   0x6   :  { %9706 = vmatprep.mubr.msk.f32.mxu0 %vm784_vm1, %v14_v2  ;;  %10282 = vmatprep.mubr.msk.f32.mxu1 %vm784_vm1, %v398_v3  ;;  %v404_v15 = vld [vmem:[%s17239_s0 + $0xc30] sm:$0xff]  ;;  %v21_v16 = vld [vmem:[%s17239_s0 + $0x38] sm:$0xff]  ;;  %v22_v18 = vld [vmem:[%s17239_s0 + $0x40] sm:$0xff] }
   0x7   :  { %9707 = vmatmul.mubr.msk.f32.vlgmr.msra.gmra.mxu0 %vm784_vm1, %v15_v4  ;;  %10283 = vmatmul.mubr.msk.f32.vlgmr.msra.gmra.mxu1 %vm784_vm1, %v399_v5  ;;  %v405_v17 = vld [vmem:[%s17239_s0 + $0xc38] sm:$0xff]  ;;  %v406_v19 = vld [vmem:[%s17239_s0 + $0xc40] sm:$0xff]  ;;  %v23_v20 = vld [vmem:[%s17239_s0 + $0x48] sm:$0xff] }
   0x8   :  { %9709 = vmatprep.mubr.msk.f32.mxu0 %vm784_vm1, %v16_v6  ;;  %10285 = vmatprep.mubr.msk.f32.mxu1 %vm784_vm1, %v400_v7  ;;  %v407_v21 = vld [vmem:[%s17239_s0 + $0xc48] sm:$0xff]  ;;  %v24_v22 = vld [vmem:[%s17239_s0 + $0x50] sm:$0xff]  ;;  %v25_v24 = vld [vmem:[%s17239_s0 + $0x58] sm:$0xff] }
   0x9   :  { %v408_v23 = vld [vmem:[%s17239_s0 + $0xc50] sm:$0xff]  ;;  %v409_v25 = vld [vmem:[%s17239_s0 + $0xc58] sm:$0xff]  ;;  %v26_v26 = vld [vmem:[%s17239_s0 + $0x60] sm:$0xff] }
   0xa   :  { %v410_v27 = vld [vmem:[%s17239_s0 + $0xc60] sm:$0xff]  ;;  %v27_v28 = vld [vmem:[%s17239_s0 + $0x68] sm:$0xff]  ;;  %v28_v30 = vld [vmem:[%s17239_s0 + $0x70] sm:$0xff] }
   0xb   :  { %9710 = vmatmul.mubr.msk.f32.gmra.mxu0 %vm784_vm1, %v17_v8  ;;  %10286 = vmatmul.mubr.msk.f32.gmra.mxu1 %vm784_vm1, %v401_v9  ;;  %v411_v29 = vld [vmem:[%s17239_s0 + $0xc68] sm:$0xff]  ;;  %v412_v31 = vld [vmem:[%s17239_s0 + $0xc70] sm:$0xff]  ;;  %v29_v32 = vld [vmem:[%s17239_s0 + $0x78] sm:$0xff] }
   0xc   :  { %9712 = vmatprep.mubr.msk.f32.mxu0 %vm784_vm1, %v18_v10  ;;  %10288 = vmatprep.mubr.msk.f32.mxu1 %vm784_vm1, %v402_v11  ;;  %v413_v33 = vld [vmem:[%s17239_s0 + $0xc78] sm:$0xff]  ;;  %v30_v34 = vld [vmem:[%s17239_s0 + $0x80] sm:$0xff]  ;;  %v31_v36 = vld [vmem:[%s17239_s0 + $0x88] sm:$0xff] }
   0xd   :  { %v414_v35 = vld [vmem:[%s17239_s0 + $0xc80] sm:$0xff]  ;;  %v415_v37 = vld [vmem:[%s17239_s0 + $0xc88] sm:$0xff]  ;;  %v32_v38 = vld [vmem:[%s17239_s0 + $0x90] sm:$0xff] }
   0xe   :  { %v416_v39 = vld [vmem:[%s17239_s0 + $0xc90] sm:$0xff]  ;;  %v33_v40 = vld [vmem:[%s17239_s0 + $0x98] sm:$0xff]  ;;  %v34_v42 = vld [vmem:[%s17239_s0 + $0xa0] sm:$0xff] }
   0xf   :  { %9713 = vmatmul.mubr.msk.f32.gmra.mxu0 %vm784_vm1, %v19_v12  ;;  %10289 = vmatmul.mubr.msk.f32.gmra.mxu1 %vm784_vm1, %v403_v13  ;;  %v417_v41 = vld [vmem:[%s17239_s0 + $0xc98] sm:$0xff]  ;;  %v418_v43 = vld [vmem:[%s17239_s0 + $0xca0] sm:$0xff]  ;;  %v35_v44 = vld [vmem:[%s17239_s0 + $0xa8] sm:$0xff] }
  0x10   :  { %9715 = vmatprep.mubr.msk.f32.mxu0 %vm784_vm1, %v20_v14  ;;  %10291 = vmatprep.mubr.msk.f32.mxu1 %vm784_vm1, %v404_v15  ;;  %v419_v45 = vld [vmem:[%s17239_s0 + $0xca8] sm:$0xff]  ;;  %v36_v46 = vld [vmem:[%s17239_s0 + $0xb0] sm:$0xff]  ;;  %v37_v48 = vld [vmem:[%s17239_s0 + $0xb8] sm:$0xff] }
  0x11   :  { %v420_v47 = vld [vmem:[%s17239_s0 + $0xcb0] sm:$0xff]  ;;  %v421_v49 = vld [vmem:[%s17239_s0 + $0xcb8] sm:$0xff]  ;;  %v38_v50 = vld [vmem:[%s17239_s0 + $0xc0] sm:$0xff] }
  0x12   :  { %v422_v51 = vld [vmem:[%s17239_s0 + $0xcc0] sm:$0xff]  ;;  %v39_v52 = vld [vmem:[%s17239_s0 + $0xc8] sm:$0xff]  ;;  %v40_v54 = vld [vmem:[%s17239_s0 + $0xd0] sm:$0xff] }
  0x13   :  { %9716 = vmatmul.mubr.msk.f32.gmra.mxu0 %vm784_vm1, %v21_v16  ;;  %10292 = vmatmul.mubr.msk.f32.gmra.mxu1 %vm784_vm1, %v405_v17  ;;  %v423_v53 = vld [vmem:[%s17239_s0 + $0xcc8] sm:$0xff]  ;;  %v424_v55 = vld [vmem:[%s17239_s0 + $0xcd0] sm:$0xff]  ;;  %v41_v56 = vld [vmem:[%s17239_s0 + $0xd8] sm:$0xff] }
  0x14   :  { %9718 = vmatprep.mubr.msk.f32.mxu0 %vm784_vm1, %v22_v18  ;;  %10294 = vmatprep.mubr.msk.f32.mxu1 %vm784_vm1, %v406_v19  ;;  %v425_v57 = vld [vmem:[%s17239_s0 + $0xcd8] sm:$0xff]  ;;  %v42_v58 = vld [vmem:[%s17239_s0 + $0xe0] sm:$0xff]  ;;  %v43_v60 = vld [vmem:[%s17239_s0 + $0xe8] sm:$0xff] }
  0x15   :  { %v426_v59 = vld [vmem:[%s17239_s0 + $0xce0] sm:$0xff]  ;;  %v427_v61 = vld [vmem:[%s17239_s0 + $0xce8] sm:$0xff]  ;;  %v44_v62 = vld [vmem:[%s17239_s0 + $0xf0] sm:$0xff] }
  0x16   :  { %v428_v63 = vld [vmem:[%s17239_s0 + $0xcf0] sm:$0xff]  ;;  %v45_v0 = vld [vmem:[%s17239_s0 + $0xf8] sm:$0xff]  ;;  %v46_v2 = vld [vmem:[%s17239_s0 + $0x100] sm:$0xff] }
  0x17   :  { %9719 = vmatmul.mubr.msk.f32.gmra.mxu0 %vm784_vm1, %v23_v20  ;;  %10295 = vmatmul.mubr.msk.f32.gmra.mxu1 %vm784_vm1, %v407_v21  ;;  %v429_v1 = vld [vmem:[%s17239_s0 + $0xcf8] sm:$0xff]  ;;  %v430_v3 = vld [vmem:[%s17239_s0 + $0xd00] sm:$0xff]  ;;  %v47_v4 = vld [vmem:[%s17239_s0 + $0x108] sm:$0xff] }
  0x18   :  { %9721 = vmatprep.mubr.msk.f32.mxu0 %vm784_vm1, %v24_v22  ;;  %10297 = vmatprep.mubr.msk.f32.mxu1 %vm784_vm1, %v408_v23  ;;  %v431_v5 = vld [vmem:[%s17239_s0 + $0xd08] sm:$0xff]  ;;  %v48_v6 = vld [vmem:[%s17239_s0 + $0x110] sm:$0xff]  ;;  %v49_v8 = vld [vmem:[%s17239_s0 + $0x118] sm:$0xff] }
  0x19   :  { %v432_v7 = vld [vmem:[%s17239_s0 + $0xd10] sm:$0xff]  ;;  %v433_v9 = vld [vmem:[%s17239_s0 + $0xd18] sm:$0xff]  ;;  %v50_v10 = vld [vmem:[%s17239_s0 + $0x120] sm:$0xff] }
  0x1a   :  { %v434_v11 = vld [vmem:[%s17239_s0 + $0xd20] sm:$0xff]  ;;  %v51_v12 = vld [vmem:[%s17239_s0 + $0x128] sm:$0xff]  ;;  %v52_v14 = vld [vmem:[%s17239_s0 + $0x130] sm:$0xff] }
  0x1b   :  { %9722 = vmatmul.mubr.msk.f32.gmra.mxu0 %vm784_vm1, %v25_v24  ;;  %10298 = vmatmul.mubr.msk.f32.gmra.mxu1 %vm784_vm1, %v409_v25  ;;  %v435_v13 = vld [vmem:[%s17239_s0 + $0xd28] sm:$0xff]  ;;  %v436_v15 = vld [vmem:[%s17239_s0 + $0xd30] sm:$0xff]  ;;  %v53_v16 = vld [vmem:[%s17239_s0 + $0x138] sm:$0xff] }
  0x1c   :  { %9724 = vmatprep.mubr.msk.f32.mxu0 %vm784_vm1, %v26_v26  ;;  %10300 = vmatprep.mubr.msk.f32.mxu1 %vm784_vm1, %v410_v27  ;;  %v437_v17 = vld [vmem:[%s17239_s0 + $0xd38] sm:$0xff]  ;;  %v54_v18 = vld [vmem:[%s17239_s0 + $0x140] sm:$0xff]  ;;  %v55_v20 = vld [vmem:[%s17239_s0 + $0x148] sm:$0xff] }
  0x1d   :  { %v438_v19 = vld [vmem:[%s17239_s0 + $0xd40] sm:$0xff]  ;;  %v439_v21 = vld [vmem:[%s17239_s0 + $0xd48] sm:$0xff]  ;;  %v56_v22 = vld [vmem:[%s17239_s0 + $0x150] sm:$0xff] }
  0x1e   :  { %v440_v23 = vld [vmem:[%s17239_s0 + $0xd50] sm:$0xff]  ;;  %v57_v24 = vld [vmem:[%s17239_s0 + $0x158] sm:$0xff]  ;;  %v58_v26 = vld [vmem:[%s17239_s0 + $0x160] sm:$0xff] }
  0x1f   :  { %9725 = vmatmul.mubr.msk.f32.gmra.mxu0 %vm784_vm1, %v27_v28  ;;  %10301 = vmatmul.mubr.msk.f32.gmra.mxu1 %vm784_vm1, %v411_v29  ;;  %v441_v25 = vld [vmem:[%s17239_s0 + $0xd58] sm:$0xff]  ;;  %v442_v27 = vld [vmem:[%s17239_s0 + $0xd60] sm:$0xff]  ;;  %v59_v28 = vld [vmem:[%s17239_s0 + $0x168] sm:$0xff] }
  0x20   :  { %9727 = vmatprep.mubr.msk.f32.mxu0 %vm784_vm1, %v28_v30  ;;  %10303 = vmatprep.mubr.msk.f32.mxu1 %vm784_vm1, %v412_v31  ;;  %v443_v29 = vld [vmem:[%s17239_s0 + $0xd68] sm:$0xff]  ;;  %v60_v30 = vld [vmem:[%s17239_s0 + $0x170] sm:$0xff] }
  0x21   :  { %v444_v31 = vld [vmem:[%s17239_s0 + $0xd70] sm:$0xff] }
  0x23   :  { %9728 = vmatmul.mubr.msk.f32.gmra.mxu0 %vm784_vm1, %v29_v32  ;;  %10304 = vmatmul.mubr.msk.f32.gmra.mxu1 %vm784_vm1, %v413_v33  ;;  %v61_v32 = vld [vmem:[%s17239_s0 + $0x178] sm:$0xff] }
  0x24   :  { %9730 = vmatprep.mubr.msk.f32.mxu0 %vm784_vm1, %v30_v34  ;;  %10306 = vmatprep.mubr.msk.f32.mxu1 %vm784_vm1, %v414_v35  ;;  %v445_v33 = vld [vmem:[%s17239_s0 + $0xd78] sm:$0xff]  ;;  %v62_v34 = vld [vmem:[%s17239_s0 + $0x180] sm:$0xff] }
  0x25   :  { %v446_v35 = vld [vmem:[%s17239_s0 + $0xd80] sm:$0xff] }
  0x27   :  { %9731 = vmatmul.mubr.msk.f32.gmra.mxu0 %vm784_vm1, %v31_v36  ;;  %10307 = vmatmul.mubr.msk.f32.gmra.mxu1 %vm784_vm1, %v415_v37  ;;  %v63_v36 = vld [vmem:[%s17239_s0 + $0x188] sm:$0xff] }
  0x28   :  { %9733 = vmatprep.mubr.msk.f32.mxu0 %vm784_vm1, %v32_v38  ;;  %10309 = vmatprep.mubr.msk.f32.mxu1 %vm784_vm1, %v416_v39  ;;  %v447_v37 = vld [vmem:[%s17239_s0 + $0xd88] sm:$0xff]  ;;  %v64_v38 = vld [vmem:[%s17239_s0 + $0x190] sm:$0xff] }
  0x29   :  { %v448_v39 = vld [vmem:[%s17239_s0 + $0xd90] sm:$0xff] }
  0x2b   :  { %9734 = vmatmul.mubr.msk.f32.gmra.mxu0 %vm784_vm1, %v33_v40  ;;  %10310 = vmatmul.mubr.msk.f32.gmra.mxu1 %vm784_vm1, %v417_v41  ;;  %v65_v40 = vld [vmem:[%s17239_s0 + $0x198] sm:$0xff] }
  0x2c   :  { %9736 = vmatprep.mubr.msk.f32.mxu0 %vm784_vm1, %v34_v42  ;;  %10312 = vmatprep.mubr.msk.f32.mxu1 %vm784_vm1, %v418_v43  ;;  %v449_v41 = vld [vmem:[%s17239_s0 + $0xd98] sm:$0xff]  ;;  %v66_v42 = vld [vmem:[%s17239_s0 + $0x1a0] sm:$0xff] }
  0x2d   :  { %v450_v43 = vld [vmem:[%s17239_s0 + $0xda0] sm:$0xff] }
  0x2f   :  { %9737 = vmatmul.mubr.msk.f32.gmra.mxu0 %vm784_vm1, %v35_v44  ;;  %10313 = vmatmul.mubr.msk.f32.gmra.mxu1 %vm784_vm1, %v419_v45  ;;  %v67_v44 = vld [vmem:[%s17239_s0 + $0x1a8] sm:$0xff] }
  0x30   :  { %9739 = vmatprep.mubr.msk.f32.mxu0 %vm784_vm1, %v36_v46  ;;  %10315 = vmatprep.mubr.msk.f32.mxu1 %vm784_vm1, %v420_v47  ;;  %v451_v45 = vld [vmem:[%s17239_s0 + $0xda8] sm:$0xff]  ;;  %v68_v46 = vld [vmem:[%s17239_s0 + $0x1b0] sm:$0xff] }
  0x31   :  { %v452_v47 = vld [vmem:[%s17239_s0 + $0xdb0] sm:$0xff] }
  0x33   :  { %9740 = vmatmul.mubr.msk.f32.gmra.mxu0 %vm784_vm1, %v37_v48  ;;  %10316 = vmatmul.mubr.msk.f32.gmra.mxu1 %vm784_vm1, %v421_v49  ;;  %v69_v48 = vld [vmem:[%s17239_s0 + $0x1b8] sm:$0xff] }
  0x34   :  { %9742 = vmatprep.mubr.msk.f32.mxu0 %vm784_vm1, %v38_v50  ;;  %10318 = vmatprep.mubr.msk.f32.mxu1 %vm784_vm1, %v422_v51  ;;  %v453_v49 = vld [vmem:[%s17239_s0 + $0xdb8] sm:$0xff]  ;;  %v70_v50 = vld [vmem:[%s17239_s0 + $0x1c0] sm:$0xff] }
  0x35   :  { %v454_v51 = vld [vmem:[%s17239_s0 + $0xdc0] sm:$0xff] }
  0x37   :  { %9743 = vmatmul.mubr.msk.f32.gmra.mxu0 %vm784_vm1, %v39_v52  ;;  %10319 = vmatmul.mubr.msk.f32.gmra.mxu1 %vm784_vm1, %v423_v53  ;;  %v71_v52 = vld [vmem:[%s17239_s0 + $0x1c8] sm:$0xff] }
  0x38   :  { %9745 = vmatprep.mubr.msk.f32.mxu0 %vm784_vm1, %v40_v54  ;;  %10321 = vmatprep.mubr.msk.f32.mxu1 %vm784_vm1, %v424_v55  ;;  %v455_v53 = vld [vmem:[%s17239_s0 + $0xdc8] sm:$0xff]  ;;  %v72_v54 = vld [vmem:[%s17239_s0 + $0x1d0] sm:$0xff] }
  0x39   :  { %v456_v55 = vld [vmem:[%s17239_s0 + $0xdd0] sm:$0xff] }
  0x3b   :  { %9746 = vmatmul.mubr.msk.f32.gmra.mxu0 %vm784_vm1, %v41_v56  ;;  %10322 = vmatmul.mubr.msk.f32.gmra.mxu1 %vm784_vm1, %v425_v57  ;;  %v73_v56 = vld [vmem:[%s17239_s0 + $0x1d8] sm:$0xff] }
  0x3c   :  { %9748 = vmatprep.mubr.msk.f32.mxu0 %vm784_vm1, %v42_v58  ;;  %10324 = vmatprep.mubr.msk.f32.mxu1 %vm784_vm1, %v426_v59  ;;  %v457_v57 = vld [vmem:[%s17239_s0 + $0xdd8] sm:$0xff]  ;;  %v74_v58 = vld [vmem:[%s17239_s0 + $0x1e0] sm:$0xff] }
  0x3d   :  { %v458_v59 = vld [vmem:[%s17239_s0 + $0xde0] sm:$0xff] }
  0x3f   :  { %9749 = vmatmul.mubr.msk.f32.gmra.mxu0 %vm784_vm1, %v43_v60  ;;  %10325 = vmatmul.mubr.msk.f32.gmra.mxu1 %vm784_vm1, %v427_v61  ;;  %v75_v60 = vld [vmem:[%s17239_s0 + $0x1e8] sm:$0xff] }
  0x40   :  { %9751 = vmatprep.mubr.msk.f32.mxu0 %vm784_vm1, %v44_v62  ;;  %10327 = vmatprep.mubr.msk.f32.mxu1 %vm784_vm1, %v428_v63  ;;  %v459_v61 = vld [vmem:[%s17239_s0 + $0xde8] sm:$0xff]  ;;  %v76_v62 = vld [vmem:[%s17239_s0 + $0x1f0] sm:$0xff] }
  0x41   :  { %v460_v63 = vld [vmem:[%s17239_s0 + $0xdf0] sm:$0xff] }
  0x43   :  { %9752 = vmatmul.mubr.msk.f32.gmra.mxu0 %vm784_vm1, %v45_v0  ;;  %10328 = vmatmul.mubr.msk.f32.gmra.mxu1 %vm784_vm1, %v429_v1  ;;  %v77_v0 = vld [vmem:[%s17239_s0 + $0x1f8] sm:$0xff] }
  0x44   :  { %9754 = vmatprep.mubr.msk.f32.mxu0 %vm784_vm1, %v46_v2  ;;  %10330 = vmatprep.mubr.msk.f32.mxu1 %vm784_vm1, %v430_v3  ;;  %v461_v1 = vld [vmem:[%s17239_s0 + $0xdf8] sm:$0xff]  ;;  %v78_v2 = vld [vmem:[%s17239_s0 + $0x200] sm:$0xff] }
  0x45   :  { %v462_v3 = vld [vmem:[%s17239_s0 + $0xe00] sm:$0xff] }
  0x47   :  { %9755 = vmatmul.mubr.msk.f32.gmra.mxu0 %vm784_vm1, %v47_v4  ;;  %10331 = vmatmul.mubr.msk.f32.gmra.mxu1 %vm784_vm1, %v431_v5  ;;  %v79_v4 = vld [vmem:[%s17239_s0 + $0x208] sm:$0xff] }
  0x48   :  { %9757 = vmatprep.mubr.msk.f32.mxu0 %vm784_vm1, %v48_v6  ;;  %10333 = vmatprep.mubr.msk.f32.mxu1 %vm784_vm1, %v432_v7  ;;  %v463_v5 = vld [vmem:[%s17239_s0 + $0xe08] sm:$0xff]  ;;  %v80_v6 = vld [vmem:[%s17239_s0 + $0x210] sm:$0xff] }
  0x49   :  { %v464_v7 = vld [vmem:[%s17239_s0 + $0xe10] sm:$0xff] }
  0x4b   :  { %9758 = vmatmul.mubr.msk.f32.gmra.mxu0 %vm784_vm1, %v49_v8  ;;  %10334 = vmatmul.mubr.msk.f32.gmra.mxu1 %vm784_vm1, %v433_v9  ;;  %v81_v8 = vld [vmem:[%s17239_s0 + $0x218] sm:$0xff] }
  0x4c   :  { %9760 = vmatprep.mubr.msk.f32.mxu0 %vm784_vm1, %v50_v10  ;;  %10336 = vmatprep.mubr.msk.f32.mxu1 %vm784_vm1, %v434_v11  ;;  %v465_v9 = vld [vmem:[%s17239_s0 + $0xe18] sm:$0xff]  ;;  %v82_v10 = vld [vmem:[%s17239_s0 + $0x220] sm:$0xff] }
  0x4d   :  { %v466_v11 = vld [vmem:[%s17239_s0 + $0xe20] sm:$0xff] }
  0x4f   :  { %9761 = vmatmul.mubr.msk.f32.gmra.mxu0 %vm784_vm1, %v51_v12  ;;  %10337 = vmatmul.mubr.msk.f32.gmra.mxu1 %vm784_vm1, %v435_v13  ;;  %v83_v12 = vld [vmem:[%s17239_s0 + $0x228] sm:$0xff] }
  0x50   :  { %9763 = vmatprep.mubr.msk.f32.mxu0 %vm784_vm1, %v52_v14  ;;  %10339 = vmatprep.mubr.msk.f32.mxu1 %vm784_vm1, %v436_v15  ;;  %v467_v13 = vld [vmem:[%s17239_s0 + $0xe28] sm:$0xff]  ;;  %v84_v14 = vld [vmem:[%s17239_s0 + $0x230] sm:$0xff] }
  0x51   :  { %v468_v15 = vld [vmem:[%s17239_s0 + $0xe30] sm:$0xff] }
  0x53   :  { %9764 = vmatmul.mubr.msk.f32.gmra.mxu0 %vm784_vm1, %v53_v16  ;;  %10340 = vmatmul.mubr.msk.f32.gmra.mxu1 %vm784_vm1, %v437_v17  ;;  %v85_v16 = vld [vmem:[%s17239_s0 + $0x238] sm:$0xff] }
  0x54   :  { %9766 = vmatprep.mubr.msk.f32.mxu0 %vm784_vm1, %v54_v18  ;;  %10342 = vmatprep.mubr.msk.f32.mxu1 %vm784_vm1, %v438_v19  ;;  %v469_v17 = vld [vmem:[%s17239_s0 + $0xe38] sm:$0xff]  ;;  %v86_v18 = vld [vmem:[%s17239_s0 + $0x240] sm:$0xff] }
  0x55   :  { %v470_v19 = vld [vmem:[%s17239_s0 + $0xe40] sm:$0xff] }
  0x57   :  { %9767 = vmatmul.mubr.msk.f32.gmra.mxu0 %vm784_vm1, %v55_v20  ;;  %10343 = vmatmul.mubr.msk.f32.gmra.mxu1 %vm784_vm1, %v439_v21  ;;  %v87_v20 = vld [vmem:[%s17239_s0 + $0x248] sm:$0xff] }
  0x58   :  { %9769 = vmatprep.mubr.msk.f32.mxu0 %vm784_vm1, %v56_v22  ;;  %10345 = vmatprep.mubr.msk.f32.mxu1 %vm784_vm1, %v440_v23  ;;  %v471_v21 = vld [vmem:[%s17239_s0 + $0xe48] sm:$0xff]  ;;  %v88_v22 = vld [vmem:[%s17239_s0 + $0x250] sm:$0xff] }
  0x59   :  { %v472_v23 = vld [vmem:[%s17239_s0 + $0xe50] sm:$0xff] }
  0x5b   :  { %9770 = vmatmul.mubr.msk.f32.gmra.mxu0 %vm784_vm1, %v57_v24  ;;  %10346 = vmatmul.mubr.msk.f32.gmra.mxu1 %vm784_vm1, %v441_v25  ;;  %v89_v24 = vld [vmem:[%s17239_s0 + $0x258] sm:$0xff] }
  0x5c   :  { %9772 = vmatprep.mubr.msk.f32.mxu0 %vm784_vm1, %v58_v26  ;;  %10348 = vmatprep.mubr.msk.f32.mxu1 %vm784_vm1, %v442_v27  ;;  %v473_v25 = vld [vmem:[%s17239_s0 + $0xe58] sm:$0xff]  ;;  %v90_v26 = vld [vmem:[%s17239_s0 + $0x260] sm:$0xff] }
  0x5d   :  { %v474_v27 = vld [vmem:[%s17239_s0 + $0xe60] sm:$0xff] }
  0x5f   :  { %9773 = vmatmul.mubr.msk.f32.gmra.mxu0 %vm784_vm1, %v59_v28  ;;  %10349 = vmatmul.mubr.msk.f32.gmra.mxu1 %vm784_vm1, %v443_v29  ;;  %v91_v28 = vld [vmem:[%s17239_s0 + $0x268] sm:$0xff] }
  0x60   :  { %9775 = vmatprep.mubr.msk.f32.mxu0 %vm784_vm1, %v60_v30  ;;  %10351 = vmatprep.mubr.msk.f32.mxu1 %vm784_vm1, %v444_v31  ;;  %v475_v29 = vld [vmem:[%s17239_s0 + $0xe68] sm:$0xff]  ;;  %v92_v30 = vld [vmem:[%s17239_s0 + $0x270] sm:$0xff] }
  0x61   :  { %v476_v31 = vld [vmem:[%s17239_s0 + $0xe70] sm:$0xff] }
  0x63   :  { %9776 = vmatmul.mubr.msk.f32.gmra.mxu0 %vm784_vm1, %v61_v32  ;;  %10352 = vmatmul.mubr.msk.f32.gmra.mxu1 %vm784_vm1, %v445_v33  ;;  %v93_v32 = vld [vmem:[%s17239_s0 + $0x278] sm:$0xff] }
  0x64   :  { %9778 = vmatprep.mubr.msk.f32.mxu0 %vm784_vm1, %v62_v34  ;;  %10354 = vmatprep.mubr.msk.f32.mxu1 %vm784_vm1, %v446_v35  ;;  %v477_v33 = vld [vmem:[%s17239_s0 + $0xe78] sm:$0xff]  ;;  %v94_v34 = vld [vmem:[%s17239_s0 + $0x280] sm:$0xff] }
  0x65   :  { %v478_v35 = vld [vmem:[%s17239_s0 + $0xe80] sm:$0xff] }
  0x67   :  { %9779 = vmatmul.mubr.msk.f32.gmra.mxu0 %vm784_vm1, %v63_v36  ;;  %10355 = vmatmul.mubr.msk.f32.gmra.mxu1 %vm784_vm1, %v447_v37  ;;  %v95_v36 = vld [vmem:[%s17239_s0 + $0x288] sm:$0xff] }
  0x68   :  { %9781 = vmatprep.mubr.msk.f32.mxu0 %vm784_vm1, %v64_v38  ;;  %10357 = vmatprep.mubr.msk.f32.mxu1 %vm784_vm1, %v448_v39  ;;  %v479_v37 = vld [vmem:[%s17239_s0 + $0xe88] sm:$0xff]  ;;  %v96_v38 = vld [vmem:[%s17239_s0 + $0x290] sm:$0xff] }
  0x69   :  { %v480_v39 = vld [vmem:[%s17239_s0 + $0xe90] sm:$0xff] }
  0x6b   :  { %9782 = vmatmul.mubr.msk.f32.gmra.mxu0 %vm784_vm1, %v65_v40  ;;  %10358 = vmatmul.mubr.msk.f32.gmra.mxu1 %vm784_vm1, %v449_v41  ;;  %v97_v40 = vld [vmem:[%s17239_s0 + $0x298] sm:$0xff] }
  0x6c   :  { %9784 = vmatprep.mubr.msk.f32.mxu0 %vm784_vm1, %v66_v42  ;;  %10360 = vmatprep.mubr.msk.f32.mxu1 %vm784_vm1, %v450_v43  ;;  %v481_v41 = vld [vmem:[%s17239_s0 + $0xe98] sm:$0xff]  ;;  %v98_v42 = vld [vmem:[%s17239_s0 + $0x2a0] sm:$0xff] }
  0x6d   :  { %v482_v43 = vld [vmem:[%s17239_s0 + $0xea0] sm:$0xff] }
  0x6f   :  { %9785 = vmatmul.mubr.msk.f32.gmra.mxu0 %vm784_vm1, %v67_v44  ;;  %10361 = vmatmul.mubr.msk.f32.gmra.mxu1 %vm784_vm1, %v451_v45  ;;  %v99_v44 = vld [vmem:[%s17239_s0 + $0x2a8] sm:$0xff] }
  0x70   :  { %9787 = vmatprep.mubr.msk.f32.mxu0 %vm784_vm1, %v68_v46  ;;  %10363 = vmatprep.mubr.msk.f32.mxu1 %vm784_vm1, %v452_v47  ;;  %v483_v45 = vld [vmem:[%s17239_s0 + $0xea8] sm:$0xff]  ;;  %v100_v46 = vld [vmem:[%s17239_s0 + $0x2b0] sm:$0xff] }
  0x71   :  { %v484_v47 = vld [vmem:[%s17239_s0 + $0xeb0] sm:$0xff] }
  0x73   :  { %9788 = vmatmul.mubr.msk.f32.gmra.mxu0 %vm784_vm1, %v69_v48  ;;  %10364 = vmatmul.mubr.msk.f32.gmra.mxu1 %vm784_vm1, %v453_v49  ;;  %v101_v48 = vld [vmem:[%s17239_s0 + $0x2b8] sm:$0xff] }
  0x74   :  { %9790 = vmatprep.mubr.msk.f32.mxu0 %vm784_vm1, %v70_v50  ;;  %10366 = vmatprep.mubr.msk.f32.mxu1 %vm784_vm1, %v454_v51  ;;  %v485_v49 = vld [vmem:[%s17239_s0 + $0xeb8] sm:$0xff]  ;;  %v102_v50 = vld [vmem:[%s17239_s0 + $0x2c0] sm:$0xff] }
  0x75   :  { %v486_v51 = vld [vmem:[%s17239_s0 + $0xec0] sm:$0xff] }
  0x77   :  { %9791 = vmatmul.mubr.msk.f32.gmra.mxu0 %vm784_vm1, %v71_v52  ;;  %10367 = vmatmul.mubr.msk.f32.gmra.mxu1 %vm784_vm1, %v455_v53  ;;  %v103_v52 = vld [vmem:[%s17239_s0 + $0x2c8] sm:$0xff] }
  0x78   :  { %9793 = vmatprep.mubr.msk.f32.mxu0 %vm784_vm1, %v72_v54  ;;  %10369 = vmatprep.mubr.msk.f32.mxu1 %vm784_vm1, %v456_v55  ;;  %v487_v53 = vld [vmem:[%s17239_s0 + $0xec8] sm:$0xff]  ;;  %v104_v54 = vld [vmem:[%s17239_s0 + $0x2d0] sm:$0xff] }
  0x79   :  { %v488_v55 = vld [vmem:[%s17239_s0 + $0xed0] sm:$0xff] }
  0x7b   :  { %9794 = vmatmul.mubr.msk.f32.gmra.mxu0 %vm784_vm1, %v73_v56  ;;  %10370 = vmatmul.mubr.msk.f32.gmra.mxu1 %vm784_vm1, %v457_v57  ;;  %v105_v56 = vld [vmem:[%s17239_s0 + $0x2d8] sm:$0xff] }
  0x7c   :  { %9796 = vmatprep.mubr.msk.f32.mxu0 %vm784_vm1, %v74_v58  ;;  %10372 = vmatprep.mubr.msk.f32.mxu1 %vm784_vm1, %v458_v59  ;;  %v489_v57 = vld [vmem:[%s17239_s0 + $0xed8] sm:$0xff]  ;;  %v106_v58 = vld [vmem:[%s17239_s0 + $0x2e0] sm:$0xff] }
  0x7d   :  { %v490_v59 = vld [vmem:[%s17239_s0 + $0xee0] sm:$0xff] }
  0x7f   :  { %9797 = vmatmul.mubr.msk.f32.gmra.mxu0 %vm784_vm1, %v75_v60  ;;  %10373 = vmatmul.mubr.msk.f32.gmra.mxu1 %vm784_vm1, %v459_v61  ;;  %v107_v60 = vld [vmem:[%s17239_s0 + $0x2e8] sm:$0xff] }
  0x80   :  { %9799 = vmatprep.mubr.msk.f32.mxu0 %vm784_vm1, %v76_v62  ;;  %10375 = vmatprep.mubr.msk.f32.mxu1 %vm784_vm1, %v460_v63  ;;  %v491_v61 = vld [vmem:[%s17239_s0 + $0xee8] sm:$0xff]  ;;  %v108_v62 = vld [vmem:[%s17239_s0 + $0x2f0] sm:$0xff] }
  0x81   :  { %v492_v63 = vld [vmem:[%s17239_s0 + $0xef0] sm:$0xff] }
  0x83   :  { %9800 = vmatmul.mubr.msk.f32.gmra.mxu0 %vm784_vm1, %v77_v0  ;;  %10376 = vmatmul.mubr.msk.f32.gmra.mxu1 %vm784_vm1, %v461_v1  ;;  %v109_v0 = vld [vmem:[%s17239_s0 + $0x2f8] sm:$0xff] }
  0x84   :  { %9802 = vmatprep.mubr.msk.f32.mxu0 %vm784_vm1, %v78_v2  ;;  %10378 = vmatprep.mubr.msk.f32.mxu1 %vm784_vm1, %v462_v3  ;;  %v493_v1 = vld [vmem:[%s17239_s0 + $0xef8] sm:$0xff]  ;;  %v110_v2 = vld [vmem:[%s17239_s0 + $0x300] sm:$0xff] }
  0x85   :  { %v494_v3 = vld [vmem:[%s17239_s0 + $0xf00] sm:$0xff] }
  0x87   :  { %9803 = vmatmul.mubr.msk.f32.gmra.mxu0 %vm784_vm1, %v79_v4  ;;  %10379 = vmatmul.mubr.msk.f32.gmra.mxu1 %vm784_vm1, %v463_v5  ;;  %v111_v4 = vld [vmem:[%s17239_s0 + $0x308] sm:$0xff] }
  0x88   :  { %9805 = vmatprep.mubr.msk.f32.mxu0 %vm784_vm1, %v80_v6  ;;  %10381 = vmatprep.mubr.msk.f32.mxu1 %vm784_vm1, %v464_v7  ;;  %v495_v5 = vld [vmem:[%s17239_s0 + $0xf08] sm:$0xff]  ;;  %v112_v6 = vld [vmem:[%s17239_s0 + $0x310] sm:$0xff] }
  0x89   :  { %v496_v7 = vld [vmem:[%s17239_s0 + $0xf10] sm:$0xff] }
  0x8b   :  { %9806 = vmatmul.mubr.msk.f32.gmra.mxu0 %vm784_vm1, %v81_v8  ;;  %10382 = vmatmul.mubr.msk.f32.gmra.mxu1 %vm784_vm1, %v465_v9 }
  0x8c   :  { %9808 = vmatprep.mubr.msk.f32.mxu0 %vm784_vm1, %v82_v10  ;;  %10384 = vmatprep.mubr.msk.f32.mxu1 %vm784_vm1, %v466_v11  ;;  %v113_v10 = vld [vmem:[%s17239_s0 + $0x318] sm:$0xff] }
  0x8d   :  { %v497_v11 = vld [vmem:[%s17239_s0 + $0xf18] sm:$0xff] }
  0x8f   :  { %9809 = vmatmul.mubr.msk.f32.gmra.mxu0 %vm784_vm1, %v83_v12  ;;  %10385 = vmatmul.mubr.msk.f32.gmra.mxu1 %vm784_vm1, %v467_v13 }
  0x90   :  { %9811 = vmatprep.mubr.msk.f32.mxu0 %vm784_vm1, %v84_v14  ;;  %10387 = vmatprep.mubr.msk.f32.mxu1 %vm784_vm1, %v468_v15  ;;  %v114_v14 = vld [vmem:[%s17239_s0 + $0x320] sm:$0xff] }
  0x91   :  { %v498_v15 = vld [vmem:[%s17239_s0 + $0xf20] sm:$0xff] }
  0x93   :  { %9812 = vmatmul.mubr.msk.f32.gmra.mxu0 %vm784_vm1, %v85_v16  ;;  %10388 = vmatmul.mubr.msk.f32.gmra.mxu1 %vm784_vm1, %v469_v17 }
  0x94   :  { %9814 = vmatprep.mubr.msk.f32.mxu0 %vm784_vm1, %v86_v18  ;;  %10390 = vmatprep.mubr.msk.f32.mxu1 %vm784_vm1, %v470_v19  ;;  %v115_v18 = vld [vmem:[%s17239_s0 + $0x328] sm:$0xff] }
  0x95   :  { %v499_v19 = vld [vmem:[%s17239_s0 + $0xf28] sm:$0xff] }
  0x97   :  { %9815 = vmatmul.mubr.msk.f32.gmra.mxu0 %vm784_vm1, %v87_v20  ;;  %10391 = vmatmul.mubr.msk.f32.gmra.mxu1 %vm784_vm1, %v471_v21 }
  0x98   :  { %9817 = vmatprep.mubr.msk.f32.mxu0 %vm784_vm1, %v88_v22  ;;  %10393 = vmatprep.mubr.msk.f32.mxu1 %vm784_vm1, %v472_v23  ;;  %v116_v22 = vld [vmem:[%s17239_s0 + $0x330] sm:$0xff] }
  0x99   :  { %v500_v23 = vld [vmem:[%s17239_s0 + $0xf30] sm:$0xff] }
  0x9b   :  { %9818 = vmatmul.mubr.msk.f32.gmra.mxu0 %vm784_vm1, %v89_v24  ;;  %10394 = vmatmul.mubr.msk.f32.gmra.mxu1 %vm784_vm1, %v473_v25 }
  0x9c   :  { %9820 = vmatprep.mubr.msk.f32.mxu0 %vm784_vm1, %v90_v26  ;;  %10396 = vmatprep.mubr.msk.f32.mxu1 %vm784_vm1, %v474_v27  ;;  %v117_v26 = vld [vmem:[%s17239_s0 + $0x338] sm:$0xff] }
  0x9d   :  { %v501_v27 = vld [vmem:[%s17239_s0 + $0xf38] sm:$0xff] }
  0x9f   :  { %9821 = vmatmul.mubr.msk.f32.gmra.mxu0 %vm784_vm1, %v91_v28  ;;  %10397 = vmatmul.mubr.msk.f32.gmra.mxu1 %vm784_vm1, %v475_v29 }
  0xa0   :  { %9823 = vmatprep.mubr.msk.f32.mxu0 %vm784_vm1, %v92_v30  ;;  %10399 = vmatprep.mubr.msk.f32.mxu1 %vm784_vm1, %v476_v31  ;;  %v118_v30 = vld [vmem:[%s17239_s0 + $0x340] sm:$0xff] }
  0xa1   :  { %v502_v31 = vld [vmem:[%s17239_s0 + $0xf40] sm:$0xff] }
  0xa3   :  { %9824 = vmatmul.mubr.msk.f32.gmra.mxu0 %vm784_vm1, %v93_v32  ;;  %10400 = vmatmul.mubr.msk.f32.gmra.mxu1 %vm784_vm1, %v477_v33 }
  0xa4   :  { %9826 = vmatprep.mubr.msk.f32.mxu0 %vm784_vm1, %v94_v34  ;;  %10402 = vmatprep.mubr.msk.f32.mxu1 %vm784_vm1, %v478_v35  ;;  %v119_v34 = vld [vmem:[%s17239_s0 + $0x348] sm:$0xff] }
  0xa5   :  { %v503_v35 = vld [vmem:[%s17239_s0 + $0xf48] sm:$0xff] }
  0xa7   :  { %9827 = vmatmul.mubr.msk.f32.gmra.mxu0 %vm784_vm1, %v95_v36  ;;  %10403 = vmatmul.mubr.msk.f32.gmra.mxu1 %vm784_vm1, %v479_v37 }
  0xa8   :  { %9829 = vmatprep.mubr.msk.f32.mxu0 %vm784_vm1, %v96_v38  ;;  %10405 = vmatprep.mubr.msk.f32.mxu1 %vm784_vm1, %v480_v39  ;;  %v120_v38 = vld [vmem:[%s17239_s0 + $0x350] sm:$0xff] }
  0xa9   :  { %v504_v39 = vld [vmem:[%s17239_s0 + $0xf50] sm:$0xff] }
  0xab   :  { %9830 = vmatmul.mubr.msk.f32.gmra.mxu0 %vm784_vm1, %v97_v40  ;;  %10406 = vmatmul.mubr.msk.f32.gmra.mxu1 %vm784_vm1, %v481_v41 }
  0xac   :  { %9832 = vmatprep.mubr.msk.f32.mxu0 %vm784_vm1, %v98_v42  ;;  %10408 = vmatprep.mubr.msk.f32.mxu1 %vm784_vm1, %v482_v43  ;;  %v121_v42 = vld [vmem:[%s17239_s0 + $0x358] sm:$0xff] }
  0xad   :  { %v505_v43 = vld [vmem:[%s17239_s0 + $0xf58] sm:$0xff] }
  0xaf   :  { %9833 = vmatmul.mubr.msk.f32.gmra.mxu0 %vm784_vm1, %v99_v44  ;;  %10409 = vmatmul.mubr.msk.f32.gmra.mxu1 %vm784_vm1, %v483_v45 }
  0xb0   :  { %9835 = vmatprep.mubr.msk.f32.mxu0 %vm784_vm1, %v100_v46  ;;  %10411 = vmatprep.mubr.msk.f32.mxu1 %vm784_vm1, %v484_v47  ;;  %v122_v46 = vld [vmem:[%s17239_s0 + $0x360] sm:$0xff] }
  0xb1   :  { %v506_v47 = vld [vmem:[%s17239_s0 + $0xf60] sm:$0xff] }
  0xb3   :  { %9836 = vmatmul.mubr.msk.f32.gmra.mxu0 %vm784_vm1, %v101_v48  ;;  %10412 = vmatmul.mubr.msk.f32.gmra.mxu1 %vm784_vm1, %v485_v49 }
  0xb4   :  { %9838 = vmatprep.mubr.msk.f32.mxu0 %vm784_vm1, %v102_v50  ;;  %10414 = vmatprep.mubr.msk.f32.mxu1 %vm784_vm1, %v486_v51  ;;  %v123_v50 = vld [vmem:[%s17239_s0 + $0x368] sm:$0xff] }
  0xb5   :  { %v507_v51 = vld [vmem:[%s17239_s0 + $0xf68] sm:$0xff] }
  0xb7   :  { %9839 = vmatmul.mubr.msk.f32.gmra.mxu0 %vm784_vm1, %v103_v52  ;;  %10415 = vmatmul.mubr.msk.f32.gmra.mxu1 %vm784_vm1, %v487_v53 }
  0xb8   :  { %9841 = vmatprep.mubr.msk.f32.mxu0 %vm784_vm1, %v104_v54  ;;  %10417 = vmatprep.mubr.msk.f32.mxu1 %vm784_vm1, %v488_v55  ;;  %v124_v54 = vld [vmem:[%s17239_s0 + $0x370] sm:$0xff] }
  0xb9   :  { %v508_v55 = vld [vmem:[%s17239_s0 + $0xf70] sm:$0xff] }
  0xbb   :  { %9842 = vmatmul.mubr.msk.f32.gmra.mxu0 %vm784_vm1, %v105_v56  ;;  %10418 = vmatmul.mubr.msk.f32.gmra.mxu1 %vm784_vm1, %v489_v57 }
  0xbc   :  { %9844 = vmatprep.mubr.msk.f32.mxu0 %vm784_vm1, %v106_v58  ;;  %10420 = vmatprep.mubr.msk.f32.mxu1 %vm784_vm1, %v490_v59  ;;  %v125_v58 = vld [vmem:[%s17239_s0 + $0x378] sm:$0xff] }
  0xbd   :  { %v509_v59 = vld [vmem:[%s17239_s0 + $0xf78] sm:$0xff] }
  0xbf   :  { %9845 = vmatmul.mubr.msk.f32.gmra.mxu0 %vm784_vm1, %v107_v60  ;;  %10421 = vmatmul.mubr.msk.f32.gmra.mxu1 %vm784_vm1, %v491_v61 }
  0xc0   :  { %9847 = vmatprep.mubr.msk.f32.mxu0 %vm784_vm1, %v108_v62  ;;  %10423 = vmatprep.mubr.msk.f32.mxu1 %vm784_vm1, %v492_v63  ;;  %v126_v62 = vld [vmem:[%s17239_s0 + $0x380] sm:$0xff] }
  0xc1   :  { %v510_v63 = vld [vmem:[%s17239_s0 + $0xf80] sm:$0xff] }
  0xc3   :  { %9848 = vmatmul.mubr.msk.f32.gmra.mxu0 %vm784_vm1, %v109_v0  ;;  %10424 = vmatmul.mubr.msk.f32.gmra.mxu1 %vm784_vm1, %v493_v1 }
  0xc4   :  { %9850 = vmatprep.mubr.msk.f32.mxu0 %vm784_vm1, %v110_v2  ;;  %10426 = vmatprep.mubr.msk.f32.mxu1 %vm784_vm1, %v494_v3  ;;  %v127_v2 = vld [vmem:[%s17239_s0 + $0x388] sm:$0xff] }
  0xc5   :  { %v511_v3 = vld [vmem:[%s17239_s0 + $0xf88] sm:$0xff] }
  0xc7   :  { %v11679_v8 = vpop.f32.mrf.mxu0  ;;  %9851 = vmatmul.mubr.msk.f32.gmra.mxu0 %vm784_vm1, %v111_v4  ;;  %v11682_v9 = vpop.f32.mrf.mxu1  ;;  %10427 = vmatmul.mubr.msk.f32.gmra.mxu1 %vm784_vm1, %v495_v5 }
  0xc8   :  { %9853 = vmatprep.mubr.msk.f32.mxu0 %vm784_vm1, %v112_v6  ;;  %10429 = vmatprep.mubr.msk.f32.mxu1 %vm784_vm1, %v496_v7  ;;  %v128_v6 = vld [vmem:[%s17239_s0 + $0x390] sm:$0xff] }
  0xc9   :  { %v11693_v12 = vpop.f32.mrf.mxu0  ;;  %v11695_v13 = vpop.f32.mrf.mxu1  ;;  %v512_v7 = vld [vmem:[%s17239_s0 + $0xf90] sm:$0xff] }
  0xcb   :  { %v11703_v16 = vpop.f32.mrf.mxu0  ;;  %9854 = vmatmul.mubr.msk.f32.gmra.mxu0 %vm784_vm1, %v113_v10  ;;  %v11706_v17 = vpop.f32.mrf.mxu1  ;;  %10430 = vmatmul.mubr.msk.f32.gmra.mxu1 %vm784_vm1, %v497_v11 }
  0xcc   :  { %17519 = vst [vmem:[#allocation2_spill] sm:$0xff] %v11706_v17  ;;  %9856 = vmatprep.mubr.msk.f32.mxu0 %vm784_vm1, %v114_v14  ;;  %10432 = vmatprep.mubr.msk.f32.mxu1 %vm784_vm1, %v498_v15  ;;  %v129_v14 = vld [vmem:[%s17239_s0 + $0x398] sm:$0xff]  ;;  %v142_v17 = vld [vmem:[%s17239_s0 + $0x400] sm:$0xff] }
  0xcd   :  { %v11717_v20 = vpop.f32.mrf.mxu0  ;;  %v11719_v21 = vpop.f32.mrf.mxu1  ;;  %v513_v15 = vld [vmem:[%s17239_s0 + $0xf98] sm:$0xff] }
  0xcf   :  { %v11727_v24 = vpop.f32.mrf.mxu0  ;;  %9857 = vmatmul.mubr.msk.f32.gmra.mxu0 %vm784_vm1, %v115_v18  ;;  %v11730_v25 = vpop.f32.mrf.mxu1  ;;  %10433 = vmatmul.mubr.msk.f32.gmra.mxu1 %vm784_vm1, %v499_v19 }
  0xd0   :  { %17520 = vst [vmem:[#allocation3_spill] sm:$0xff] %v11727_v24  ;;  %17521 = vst [vmem:[#allocation4_spill] sm:$0xff] %v11730_v25  ;;  %9859 = vmatprep.mubr.msk.f32.mxu0 %vm784_vm1, %v116_v22  ;;  %10435 = vmatprep.mubr.msk.f32.mxu1 %vm784_vm1, %v500_v23  ;;  %v130_v22 = vld [vmem:[%s17239_s0 + $0x3a0] sm:$0xff]  ;;  %v144_v24 = vld [vmem:[%s17239_s0 + $0x410] sm:$0xff] }
  0xd1   :  { %v11741_v28 = vpop.f32.mrf.mxu0  ;;  %v11743_v29 = vpop.f32.mrf.mxu1  ;;  %v514_v23 = vld [vmem:[%s17239_s0 + $0xfa0] sm:$0xff] }
  0xd3   :  { %v11751_v32 = vpop.f32.mrf.mxu0  ;;  %9860 = vmatmul.mubr.msk.f32.gmra.mxu0 %vm784_vm1, %v117_v26  ;;  %v11754_v33 = vpop.f32.mrf.mxu1  ;;  %10436 = vmatmul.mubr.msk.f32.gmra.mxu1 %vm784_vm1, %v501_v27 }
  0xd4   :  { %17522 = vst [vmem:[#allocation5_spill] sm:$0xff] %v11751_v32  ;;  %17523 = vst [vmem:[#allocation6_spill] sm:$0xff] %v11754_v33  ;;  %9862 = vmatprep.mubr.msk.f32.mxu0 %vm784_vm1, %v118_v30  ;;  %10438 = vmatprep.mubr.msk.f32.mxu1 %vm784_vm1, %v502_v31  ;;  %v131_v30 = vld [vmem:[%s17239_s0 + $0x3a8] sm:$0xff]  ;;  %v146_v32 = vld [vmem:[%s17239_s0 + $0x420] sm:$0xff] }
  0xd5   :  { %v11765_v36 = vpop.f32.mrf.mxu0  ;;  %v11767_v37 = vpop.f32.mrf.mxu1  ;;  %v515_v31 = vld [vmem:[%s17239_s0 + $0xfa8] sm:$0xff] }
  0xd7   :  { %v11775_v40 = vpop.f32.mrf.mxu0  ;;  %9863 = vmatmul.mubr.msk.f32.gmra.mxu0 %vm784_vm1, %v119_v34  ;;  %v11778_v41 = vpop.f32.mrf.mxu1  ;;  %10439 = vmatmul.mubr.msk.f32.gmra.mxu1 %vm784_vm1, %v503_v35 }
  0xd8   :  { %17524 = vst [vmem:[#allocation7_spill] sm:$0xff] %v11775_v40  ;;  %17525 = vst [vmem:[#allocation8_spill] sm:$0xff] %v11778_v41  ;;  %9865 = vmatprep.mubr.msk.f32.mxu0 %vm784_vm1, %v120_v38  ;;  %10441 = vmatprep.mubr.msk.f32.mxu1 %vm784_vm1, %v504_v39  ;;  %v132_v38 = vld [vmem:[%s17239_s0 + $0x3b0] sm:$0xff] }
  0xd9   :  { %v11789_v44 = vpop.f32.mrf.mxu0  ;;  %v11791_v45 = vpop.f32.mrf.mxu1  ;;  %v516_v39 = vld [vmem:[%s17239_s0 + $0xfb0] sm:$0xff] }
  0xda   :  { %v148_v40 = vld [vmem:[%s17239_s0 + $0x430] sm:$0xff] }
  0xdb   :  { %v11799_v48 = vpop.f32.mrf.mxu0  ;;  %9866 = vmatmul.mubr.msk.f32.gmra.mxu0 %vm784_vm1, %v121_v42  ;;  %v11802_v49 = vpop.f32.mrf.mxu1  ;;  %10442 = vmatmul.mubr.msk.f32.gmra.mxu1 %vm784_vm1, %v505_v43 }
  0xdc   :  { %17526 = vst [vmem:[#allocation9_spill] sm:$0xff] %v11799_v48  ;;  %17527 = vst [vmem:[#allocation10_spill] sm:$0xff] %v11802_v49  ;;  %9868 = vmatprep.mubr.msk.f32.mxu0 %vm784_vm1, %v122_v46  ;;  %10444 = vmatprep.mubr.msk.f32.mxu1 %vm784_vm1, %v506_v47  ;;  %v133_v46 = vld [vmem:[%s17239_s0 + $0x3b8] sm:$0xff]  ;;  %v150_v48 = vld [vmem:[%s17239_s0 + $0x440] sm:$0xff] }
  0xdd   :  { %v11813_v52 = vpop.f32.mrf.mxu0  ;;  %v11815_v53 = vpop.f32.mrf.mxu1  ;;  %v517_v47 = vld [vmem:[%s17239_s0 + $0xfb8] sm:$0xff] }
  0xde   :  { %17528 = vst [vmem:[#allocation11_spill] sm:$0xff] %v11813_v52  ;;  %17529 = vst [vmem:[#allocation12_spill] sm:$0xff] %v11815_v53  ;;  %v569_v53 = vld [vmem:[%s17239_s0 + $0x1158] sm:$0xff] }
  0xdf   :  { %v11823_v56 = vpop.f32.mrf.mxu0  ;;  %9869 = vmatmul.mubr.msk.f32.gmra.mxu0 %vm784_vm1, %v123_v50  ;;  %v11826_v57 = vpop.f32.mrf.mxu1  ;;  %10445 = vmatmul.mubr.msk.f32.gmra.mxu1 %vm784_vm1, %v507_v51 }
  0xe0   :  { %17530 = vst [vmem:[#allocation13_spill] sm:$0xff] %v11823_v56  ;;  %17531 = vst [vmem:[#allocation14_spill] sm:$0xff] %v11826_v57  ;;  %9871 = vmatprep.mubr.msk.f32.mxu0 %vm784_vm1, %v124_v54  ;;  %10447 = vmatprep.mubr.msk.f32.mxu1 %vm784_vm1, %v508_v55  ;;  %v134_v54 = vld [vmem:[%s17239_s0 + $0x3c0] sm:$0xff]  ;;  %v152_v56 = vld [vmem:[%s17239_s0 + $0x450] sm:$0xff] }
  0xe1   :  { %v11837_v60 = vpop.f32.mrf.mxu0  ;;  %v11839_v61 = vpop.f32.mrf.mxu1  ;;  %v518_v55 = vld [vmem:[%s17239_s0 + $0xfc0] sm:$0xff] }
  0xe2   :  { %17532 = vst [vmem:[#allocation15_spill] sm:$0xff] %v11837_v60  ;;  %17533 = vst [vmem:[#allocation16_spill] sm:$0xff] %v11839_v61  ;;  %v557_v61 = vld [vmem:[%s17239_s0 + $0x10f8] sm:$0xff] }
  0xe3   :  { %v11847_v0 = vpop.f32.mrf.mxu0  ;;  %9872 = vmatmul.mubr.msk.f32.gmra.mxu0 %vm784_vm1, %v125_v58  ;;  %v11850_v1 = vpop.f32.mrf.mxu1  ;;  %10448 = vmatmul.mubr.msk.f32.gmra.mxu1 %vm784_vm1, %v509_v59 }
  0xe4   :  { %17534 = vst [vmem:[#allocation17_spill] sm:$0xff] %v11847_v0  ;;  %17535 = vst [vmem:[#allocation18_spill] sm:$0xff] %v11850_v1  ;;  %9874 = vmatprep.mubr.msk.f32.mxu0 %vm784_vm1, %v126_v62  ;;  %10450 = vmatprep.mubr.msk.f32.mxu1 %vm784_vm1, %v510_v63  ;;  %v135_v62 = vld [vmem:[%s17239_s0 + $0x3c8] sm:$0xff]  ;;  %v154_v0 = vld [vmem:[%s17239_s0 + $0x460] sm:$0xff] }
  0xe5   :  { %v11861_v4 = vpop.f32.mrf.mxu0  ;;  %v11863_v5 = vpop.f32.mrf.mxu1  ;;  %v519_v63 = vld [vmem:[%s17239_s0 + $0xfc8] sm:$0xff] }
  0xe6   :  { %17536 = vst [vmem:[#allocation19_spill] sm:$0xff] %v11861_v4  ;;  %17537 = vst [vmem:[#allocation20_spill] sm:$0xff] %v11863_v5  ;;  %v555_v5 = vld [vmem:[%s17239_s0 + $0x10e8] sm:$0xff] }
  0xe7   :  { %v11871_v10 = vpop.f32.mrf.mxu0  ;;  %9875 = vmatmul.mubr.msk.f32.gmra.mxu0 %vm784_vm1, %v127_v2  ;;  %v11874_v11 = vpop.f32.mrf.mxu1  ;;  %10451 = vmatmul.mubr.msk.f32.gmra.mxu1 %vm784_vm1, %v511_v3 }
  0xe8   :  { %17538 = vst [vmem:[#allocation21_spill] sm:$0xff] %v11871_v10  ;;  %17539 = vst [vmem:[#allocation22_spill] sm:$0xff] %v11874_v11  ;;  %9877 = vmatprep.mubr.msk.f32.mxu0 %vm784_vm1, %v128_v6  ;;  %10453 = vmatprep.mubr.msk.f32.mxu1 %vm784_vm1, %v512_v7  ;;  %v136_v6 = vld [vmem:[%s17239_s0 + $0x3d0] sm:$0xff] }
  0xe9   :  { %v11885_v18 = vpop.f32.mrf.mxu0  ;;  %v11887_v19 = vpop.f32.mrf.mxu1  ;;  %v520_v7 = vld [vmem:[%s17239_s0 + $0xfd0] sm:$0xff] }
  0xea   :  { %17540 = vst [vmem:[#allocation23_spill] sm:$0xff] %v11885_v18  ;;  %17541 = vst [vmem:[#allocation24_spill] sm:$0xff] %v11887_v19  ;;  %v156_v10 = vld [vmem:[%s17239_s0 + $0x470] sm:$0xff]  ;;  %v553_v19 = vld [vmem:[%s17239_s0 + $0x10d8] sm:$0xff] }
  0xeb   :  { %v11895_v26 = vpop.f32.mrf.mxu0  ;;  %9878 = vmatmul.mubr.msk.f32.gmra.mxu0 %vm784_vm1, %v129_v14  ;;  %v11898_v27 = vpop.f32.mrf.mxu1  ;;  %10454 = vmatmul.mubr.msk.f32.gmra.mxu1 %vm784_vm1, %v513_v15 }
  0xec   :  { %17542 = vst [vmem:[#allocation25_spill] sm:$0xff] %v11895_v26  ;;  %17543 = vst [vmem:[#allocation26_spill] sm:$0xff] %v11898_v27  ;;  %9880 = vmatprep.mubr.msk.f32.mxu0 %vm784_vm1, %v130_v22  ;;  %10456 = vmatprep.mubr.msk.f32.mxu1 %vm784_vm1, %v514_v23  ;;  %v158_v26 = vld [vmem:[%s17239_s0 + $0x480] sm:$0xff] }
  0xed   :  { %v11909_v34 = vpop.f32.mrf.mxu0  ;;  %v11911_v35 = vpop.f32.mrf.mxu1 }
  0xee   :  { %17544 = vst [vmem:[#allocation27_spill] sm:$0xff] %v11909_v34  ;;  %17545 = vst [vmem:[#allocation28_spill] sm:$0xff] %v11911_v35  ;;  %v551_v35 = vld [vmem:[%s17239_s0 + $0x10c8] sm:$0xff] }
  0xef   :  { %v11919_v42 = vpop.f32.mrf.mxu0  ;;  %9881 = vmatmul.mubr.msk.f32.gmra.mxu0 %vm784_vm1, %v131_v30  ;;  %v11922_v43 = vpop.f32.mrf.mxu1  ;;  %10457 = vmatmul.mubr.msk.f32.gmra.mxu1 %vm784_vm1, %v515_v31  ;;  %v137_v30 = vld [vmem:[%s17239_s0 + $0x3d8] sm:$0xff] }
  0xf0   :  { %17546 = vst [vmem:[#allocation29_spill] sm:$0xff] %v11919_v42  ;;  %17547 = vst [vmem:[#allocation30_spill] sm:$0xff] %v11922_v43  ;;  %9883 = vmatprep.mubr.msk.f32.mxu0 %vm784_vm1, %v132_v38  ;;  %10459 = vmatprep.mubr.msk.f32.mxu1 %vm784_vm1, %v516_v39  ;;  %v521_v31 = vld [vmem:[%s17239_s0 + $0xfd8] sm:$0xff]  ;;  %v160_v42 = vld [vmem:[%s17239_s0 + $0x490] sm:$0xff] }
  0xf1   :  { %v11933_v50 = vpop.f32.mrf.mxu0  ;;  %v11935_v51 = vpop.f32.mrf.mxu1 }
  0xf2   :  { %17548 = vst [vmem:[#allocation31_spill] sm:$0xff] %v11933_v50  ;;  %17549 = vst [vmem:[#allocation32_spill] sm:$0xff] %v11935_v51  ;;  %v549_v51 = vld [vmem:[%s17239_s0 + $0x10b8] sm:$0xff] }
  0xf3   :  { %v11943_v58 = vpop.f32.mrf.mxu0  ;;  %9884 = vmatmul.mubr.msk.f32.gmra.mxu0 %vm784_vm1, %v133_v46  ;;  %v11946_v59 = vpop.f32.mrf.mxu1  ;;  %10460 = vmatmul.mubr.msk.f32.gmra.mxu1 %vm784_vm1, %v517_v47  ;;  %v138_v46 = vld [vmem:[%s17239_s0 + $0x3e0] sm:$0xff] }
  0xf4   :  { %17550 = vst [vmem:[#allocation33_spill] sm:$0xff] %v11943_v58  ;;  %17551 = vst [vmem:[#allocation34_spill] sm:$0xff] %v11946_v59  ;;  %9886 = vmatprep.mubr.msk.f32.mxu0 %vm784_vm1, %v134_v54  ;;  %10462 = vmatprep.mubr.msk.f32.mxu1 %vm784_vm1, %v518_v55  ;;  %v522_v47 = vld [vmem:[%s17239_s0 + $0xfe0] sm:$0xff]  ;;  %v139_v55 = vld [vmem:[%s17239_s0 + $0x3e8] sm:$0xff] }
  0xf5   :  { %v11957_v2 = vpop.f32.mrf.mxu0  ;;  %v11959_v3 = vpop.f32.mrf.mxu1 }
  0xf6   :  { %17552 = vst [vmem:[#allocation35_spill] sm:$0xff] %v11957_v2  ;;  %17553 = vst [vmem:[#allocation36_spill] sm:$0xff] %v11959_v3  ;;  %v163_v3 = vld [vmem:[%s17239_s0 + $0x4a8] sm:$0xff] }
  0xf7   :  { %v11967_v14 = vpop.f32.mrf.mxu0  ;;  %9887 = vmatmul.mubr.msk.f32.gmra.mxu0 %vm784_vm1, %v135_v62  ;;  %v11970_v15 = vpop.f32.mrf.mxu1  ;;  %10463 = vmatmul.mubr.msk.f32.gmra.mxu1 %vm784_vm1, %v519_v63 }
  0xf8   :  { %9889 = vmatprep.mubr.msk.f32.mxu0 %vm784_vm1, %v136_v6  ;;  %10465 = vmatprep.mubr.msk.f32.mxu1 %vm784_vm1, %v520_v7  ;;  %v140_v7 = vld [vmem:[%s17239_s0 + $0x3f0] sm:$0xff]  ;;  %v141_v6 = vld [vmem:[%s17239_s0 + $0x3f8] sm:$0xff] }
  0xf9   :  { %v11985_v38 = vpop.f32.mrf.mxu0  ;;  %v11987_v39 = vpop.f32.mrf.mxu1 }
  0xfb   :  { %v11999_v62 = vpop.f32.mrf.mxu0  ;;  %9890 = vmatmul.mubr.msk.f32.gmra.mxu0 %vm784_vm1, %v137_v30  ;;  %v12002_v63 = vpop.f32.mrf.mxu1  ;;  %10466 = vmatmul.mubr.msk.f32.gmra.mxu1 %vm784_vm1, %v521_v31  ;;  %v523_v30 = vld [vmem:[%s17239_s0 + $0xfe8] sm:$0xff] }
  0xfc   :  { %17554 = vst [vmem:[#allocation37_spill] sm:$0xff] %v12002_v63  ;;  %9892 = vmatprep.mubr.msk.f32.mxu0 %vm784_vm1, %v138_v46  ;;  %10468 = vmatprep.mubr.msk.f32.mxu1 %vm784_vm1, %v522_v47  ;;  %v524_v46 = vld [vmem:[%s17239_s0 + $0xff0] sm:$0xff]  ;;  %v143_v63 = vld [vmem:[%s17239_s0 + $0x408] sm:$0xff] }
  0xfd   :  { %v12017_v54 = vpop.f32.mrf.mxu0  ;;  %v12019_v31 = vpop.f32.mrf.mxu1 }
  0xff   :  { %v12031_v23 = vpop.f32.mrf.mxu0  ;;  %9893 = vmatmul.mubr.msk.f32.gmra.mxu0 %vm784_vm1, %v139_v55  ;;  %v12034_v22 = vpop.f32.mrf.mxu1  ;;  %10469 = vmatmul.mubr.msk.f32.gmra.mxu1 %vm784_vm1, %v523_v30  ;;  %v525_v55 = vld [vmem:[%s17239_s0 + $0xff8] sm:$0xff] }
 0x100   :  { %17555 = vst [vmem:[#allocation38_spill] sm:$0xff] %v12031_v23  ;;  %17556 = vst [vmem:[#allocation39_spill] sm:$0xff] %v12034_v22  ;;  %9895 = vmatprep.mubr.msk.f32.mxu0 %vm784_vm1, %v140_v7  ;;  %10471 = vmatprep.mubr.msk.f32.mxu1 %vm784_vm1, %v524_v46  ;;  %v526_v7 = vld [vmem:[%s17239_s0 + $0x1000] sm:$0xff]  ;;  %v145_v23 = vld [vmem:[%s17239_s0 + $0x418] sm:$0xff] }
 0x101   :  { %v12049_v47 = vpop.f32.mrf.mxu0  ;;  %v12051_v30 = vpop.f32.mrf.mxu1 }
 0x103   :  { %v12063_v22 = vpop.f32.mrf.mxu0  ;;  %9896 = vmatmul.mubr.msk.f32.gmra.mxu0 %vm784_vm1, %v141_v6  ;;  %v12066_v25 = vpop.f32.mrf.mxu1  ;;  %10472 = vmatmul.mubr.msk.f32.gmra.mxu1 %vm784_vm1, %v525_v55  ;;  %v527_v6 = vld [vmem:[%s17239_s0 + $0x1008] sm:$0xff] }
 0x104   :  { %17557 = vst [vmem:[#allocation40_spill] sm:$0xff] %v12063_v22  ;;  %17558 = vst [vmem:[#allocation41_spill] sm:$0xff] %v12066_v25  ;;  %9898 = vmatprep.mubr.msk.f32.mxu0 %vm784_vm1, %v142_v17  ;;  %10474 = vmatprep.mubr.msk.f32.mxu1 %vm784_vm1, %v526_v7  ;;  %v528_v17 = vld [vmem:[%s17239_s0 + $0x1010] sm:$0xff]  ;;  %v147_v22 = vld [vmem:[%s17239_s0 + $0x428] sm:$0xff] }
 0x105   :  { %v12081_v46 = vpop.f32.mrf.mxu0  ;;  %v12083_v55 = vpop.f32.mrf.mxu1 }
 0x107   :  { %v12095_v25 = vpop.f32.mrf.mxu0  ;;  %9899 = vmatmul.mubr.msk.f32.gmra.mxu0 %vm784_vm1, %v143_v63  ;;  %v12098_v33 = vpop.f32.mrf.mxu1  ;;  %10475 = vmatmul.mubr.msk.f32.gmra.mxu1 %vm784_vm1, %v527_v6  ;;  %v529_v63 = vld [vmem:[%s17239_s0 + $0x1018] sm:$0xff] }
 0x108   :  { %17559 = vst [vmem:[#allocation42_spill] sm:$0xff] %v12095_v25  ;;  %17560 = vst [vmem:[#allocation43_spill] sm:$0xff] %v12098_v33  ;;  %9901 = vmatprep.mubr.msk.f32.mxu0 %vm784_vm1, %v144_v24  ;;  %10477 = vmatprep.mubr.msk.f32.mxu1 %vm784_vm1, %v528_v17  ;;  %v530_v24 = vld [vmem:[%s17239_s0 + $0x1020] sm:$0xff]  ;;  %v149_v25 = vld [vmem:[%s17239_s0 + $0x438] sm:$0xff] }
 0x109   :  { %v12113_v7 = vpop.f32.mrf.mxu0  ;;  %v12115_v6 = vpop.f32.mrf.mxu1 }
 0x10b   :  { %v12127_v33 = vpop.f32.mrf.mxu0  ;;  %9902 = vmatmul.mubr.msk.f32.gmra.mxu0 %vm784_vm1, %v145_v23  ;;  %v12130_v41 = vpop.f32.mrf.mxu1  ;;  %10478 = vmatmul.mubr.msk.f32.gmra.mxu1 %vm784_vm1, %v529_v63  ;;  %v531_v23 = vld [vmem:[%s17239_s0 + $0x1028] sm:$0xff] }
 0x10c   :  { %17561 = vst [vmem:[#allocation44_spill] sm:$0xff] %v12127_v33  ;;  %17562 = vst [vmem:[#allocation45_spill] sm:$0xff] %v12130_v41  ;;  %9904 = vmatprep.mubr.msk.f32.mxu0 %vm784_vm1, %v146_v32  ;;  %10480 = vmatprep.mubr.msk.f32.mxu1 %vm784_vm1, %v530_v24  ;;  %v532_v32 = vld [vmem:[%s17239_s0 + $0x1030] sm:$0xff]  ;;  %v151_v33 = vld [vmem:[%s17239_s0 + $0x448] sm:$0xff] }
 0x10d   :  { %v12145_v17 = vpop.f32.mrf.mxu0  ;;  %v12147_v63 = vpop.f32.mrf.mxu1 }
 0x10e   :  { %17563 = vst [vmem:[#allocation46_spill] sm:$0xff] %v12145_v17  ;;  %17564 = vst [vmem:[#allocation47_spill] sm:$0xff] %v12147_v63 }
 0x10f   :  { %v12159_v41 = vpop.f32.mrf.mxu0  ;;  %9905 = vmatmul.mubr.msk.f32.gmra.mxu0 %vm784_vm1, %v147_v22  ;;  %v12162_v49 = vpop.f32.mrf.mxu1  ;;  %10481 = vmatmul.mubr.msk.f32.gmra.mxu1 %vm784_vm1, %v531_v23  ;;  %v533_v22 = vld [vmem:[%s17239_s0 + $0x1038] sm:$0xff] }
 0x110   :  { %17565 = vst [vmem:[#allocation48_spill] sm:$0xff] %v12159_v41  ;;  %17566 = vst [vmem:[#allocation49_spill] sm:$0xff] %v12162_v49  ;;  %9907 = vmatprep.mubr.msk.f32.mxu0 %vm784_vm1, %v148_v40  ;;  %10483 = vmatprep.mubr.msk.f32.mxu1 %vm784_vm1, %v532_v32  ;;  %v534_v40 = vld [vmem:[%s17239_s0 + $0x1040] sm:$0xff]  ;;  %v153_v41 = vld [vmem:[%s17239_s0 + $0x458] sm:$0xff] }
 0x111   :  { %v12177_v24 = vpop.f32.mrf.mxu0  ;;  %v12179_v23 = vpop.f32.mrf.mxu1 }
 0x112   :  { %17567 = vst [vmem:[#allocation50_spill] sm:$0xff] %v12177_v24  ;;  %17568 = vst [vmem:[#allocation51_spill] sm:$0xff] %v12179_v23  ;;  %v173_v23 = vld [vmem:[%s17239_s0 + $0x4f8] sm:$0xff] }
 0x113   :  { %v12191_v49 = vpop.f32.mrf.mxu0  ;;  %9908 = vmatmul.mubr.msk.f32.gmra.mxu0 %vm784_vm1, %v149_v25  ;;  %v12194_v57 = vpop.f32.mrf.mxu1  ;;  %10484 = vmatmul.mubr.msk.f32.gmra.mxu1 %vm784_vm1, %v533_v22  ;;  %v535_v25 = vld [vmem:[%s17239_s0 + $0x1048] sm:$0xff] }
 0x114   :  { %17569 = vst [vmem:[#allocation52_spill] sm:$0xff] %v12191_v49  ;;  %17570 = vst [vmem:[#allocation53_spill] sm:$0xff] %v12194_v57  ;;  %9910 = vmatprep.mubr.msk.f32.mxu0 %vm784_vm1, %v150_v48  ;;  %10486 = vmatprep.mubr.msk.f32.mxu1 %vm784_vm1, %v534_v40  ;;  %v536_v48 = vld [vmem:[%s17239_s0 + $0x1050] sm:$0xff]  ;;  %v155_v49 = vld [vmem:[%s17239_s0 + $0x468] sm:$0xff] }
 0x115   :  { %v12209_v32 = vpop.f32.mrf.mxu0  ;;  %v12211_v22 = vpop.f32.mrf.mxu1 }
 0x116   :  { %17571 = vst [vmem:[#allocation54_spill] sm:$0xff] %v12209_v32  ;;  %17572 = vst [vmem:[#allocation55_spill] sm:$0xff] %v12211_v22  ;;  %v171_v22 = vld [vmem:[%s17239_s0 + $0x4e8] sm:$0xff] }
 0x117   :  { %v12223_v57 = vpop.f32.mrf.mxu0  ;;  %9911 = vmatmul.mubr.msk.f32.gmra.mxu0 %vm784_vm1, %v151_v33  ;;  %v12226_v1 = vpop.f32.mrf.mxu1  ;;  %10487 = vmatmul.mubr.msk.f32.gmra.mxu1 %vm784_vm1, %v535_v25  ;;  %v537_v33 = vld [vmem:[%s17239_s0 + $0x1058] sm:$0xff] }
 0x118   :  { %17573 = vst [vmem:[#allocation56_spill] sm:$0xff] %v12223_v57  ;;  %17574 = vst [vmem:[#allocation57_spill] sm:$0xff] %v12226_v1  ;;  %9913 = vmatprep.mubr.msk.f32.mxu0 %vm784_vm1, %v152_v56  ;;  %10489 = vmatprep.mubr.msk.f32.mxu1 %vm784_vm1, %v536_v48  ;;  %v538_v56 = vld [vmem:[%s17239_s0 + $0x1060] sm:$0xff]  ;;  %v157_v57 = vld [vmem:[%s17239_s0 + $0x478] sm:$0xff] }
 0x119   :  { %v12241_v40 = vpop.f32.mrf.mxu0  ;;  %v12243_v25 = vpop.f32.mrf.mxu1 }
 0x11a   :  { %17575 = vst [vmem:[#allocation58_spill] sm:$0xff] %v12241_v40  ;;  %17576 = vst [vmem:[#allocation59_spill] sm:$0xff] %v12243_v25  ;;  %v169_v25 = vld [vmem:[%s17239_s0 + $0x4d8] sm:$0xff] }
 0x11b   :  { %v12255_v1 = vpop.f32.mrf.mxu0  ;;  %9914 = vmatmul.mubr.msk.f32.gmra.mxu0 %vm784_vm1, %v153_v41  ;;  %v12258_v11 = vpop.f32.mrf.mxu1  ;;  %10490 = vmatmul.mubr.msk.f32.gmra.mxu1 %vm784_vm1, %v537_v33  ;;  %v539_v41 = vld [vmem:[%s17239_s0 + $0x1068] sm:$0xff] }
 0x11c   :  { %17577 = vst [vmem:[#allocation60_spill] sm:$0xff] %v12255_v1  ;;  %17578 = vst [vmem:[#allocation61_spill] sm:$0xff] %v12258_v11  ;;  %9916 = vmatprep.mubr.msk.f32.mxu0 %vm784_vm1, %v154_v0  ;;  %10492 = vmatprep.mubr.msk.f32.mxu1 %vm784_vm1, %v538_v56  ;;  %v540_v0 = vld [vmem:[%s17239_s0 + $0x1070] sm:$0xff]  ;;  %v159_v1 = vld [vmem:[%s17239_s0 + $0x488] sm:$0xff] }
 0x11d   :  { %v12273_v48 = vpop.f32.mrf.mxu0  ;;  %v12275_v33 = vpop.f32.mrf.mxu1 }
 0x11e   :  { %17579 = vst [vmem:[#allocation62_spill] sm:$0xff] %v12273_v48  ;;  %17580 = vst [vmem:[#allocation63_spill] sm:$0xff] %v12275_v33  ;;  %v167_v33 = vld [vmem:[%s17239_s0 + $0x4c8] sm:$0xff] }
 0x11f   :  { %v12287_v11 = vpop.f32.mrf.mxu0  ;;  %9917 = vmatmul.mubr.msk.f32.gmra.mxu0 %vm784_vm1, %v155_v49  ;;  %v12290_v27 = vpop.f32.mrf.mxu1  ;;  %10493 = vmatmul.mubr.msk.f32.gmra.mxu1 %vm784_vm1, %v539_v41  ;;  %v541_v49 = vld [vmem:[%s17239_s0 + $0x1078] sm:$0xff] }
 0x120   :  { %17581 = vst [vmem:[#allocation64_spill] sm:$0xff] %v12287_v11  ;;  %17582 = vst [vmem:[#allocation65_spill] sm:$0xff] %v12290_v27  ;;  %9919 = vmatprep.mubr.msk.f32.mxu0 %vm784_vm1, %v156_v10  ;;  %10495 = vmatprep.mubr.msk.f32.mxu1 %vm784_vm1, %v540_v0  ;;  %v542_v10 = vld [vmem:[%s17239_s0 + $0x1080] sm:$0xff]  ;;  %v545_v11 = vld [vmem:[%s17239_s0 + $0x1098] sm:$0xff] }
 0x121   :  { %v12305_v56 = vpop.f32.mrf.mxu0  ;;  %v12307_v41 = vpop.f32.mrf.mxu1 }
 0x122   :  { %17583 = vst [vmem:[#allocation66_spill] sm:$0xff] %v12305_v56  ;;  %17584 = vst [vmem:[#allocation67_spill] sm:$0xff] %v12307_v41  ;;  %v165_v41 = vld [vmem:[%s17239_s0 + $0x4b8] sm:$0xff] }
 0x123   :  { %v12319_v27 = vpop.f32.mrf.mxu0  ;;  %9920 = vmatmul.mubr.msk.f32.gmra.mxu0 %vm784_vm1, %v157_v57  ;;  %v12322_v43 = vpop.f32.mrf.mxu1  ;;  %10496 = vmatmul.mubr.msk.f32.gmra.mxu1 %vm784_vm1, %v541_v49  ;;  %v543_v57 = vld [vmem:[%s17239_s0 + $0x1088] sm:$0xff] }
 0x124   :  { %17585 = vst [vmem:[#allocation68_spill] sm:$0xff] %v12319_v27  ;;  %17586 = vst [vmem:[#allocation69_spill] sm:$0xff] %v12322_v43  ;;  %9922 = vmatprep.mubr.msk.f32.mxu0 %vm784_vm1, %v158_v26  ;;  %10498 = vmatprep.mubr.msk.f32.mxu1 %vm784_vm1, %v542_v10  ;;  %v544_v26 = vld [vmem:[%s17239_s0 + $0x1090] sm:$0xff]  ;;  %v161_v27 = vld [vmem:[%s17239_s0 + $0x498] sm:$0xff] }
 0x125   :  { %v12337_v0 = vpop.f32.mrf.mxu0  ;;  %v12339_v49 = vpop.f32.mrf.mxu1 }
 0x126   :  { %17587 = vst [vmem:[#allocation70_spill] sm:$0xff] %v12337_v0  ;;  %17588 = vst [vmem:[#allocation71_spill] sm:$0xff] %v12339_v49  ;;  %v547_v0 = vld [vmem:[%s17239_s0 + $0x10a8] sm:$0xff] }
 0x127   :  { %v12351_v43 = vpop.f32.mrf.mxu0  ;;  %9923 = vmatmul.mubr.msk.f32.gmra.mxu0 %vm784_vm1, %v159_v1  ;;  %v12354_v59 = vpop.f32.mrf.mxu1  ;;  %10499 = vmatmul.mubr.msk.f32.gmra.mxu1 %vm784_vm1, %v543_v57  ;;  %v162_v1 = vld [vmem:[%s17239_s0 + $0x4a0] sm:$0xff] }
 0x128   :  { %9925 = vmatprep.mubr.msk.f32.mxu0 %vm784_vm1, %v160_v42  ;;  %10501 = vmatprep.mubr.msk.f32.mxu1 %vm784_vm1, %v544_v26  ;;  %v546_v42 = vld [vmem:[%s17239_s0 + $0x10a0] sm:$0xff] }
 0x129   :  { %v12365_v10 = vpop.f32.mrf.mxu0  ;;  %v12367_v49 = vpop.f32.mrf.mxu1 }
 0x12b   :  { %v12375_v57 = vpop.f32.mrf.mxu0  ;;  %9926 = vmatmul.mubr.msk.f32.gmra.mxu0 %vm784_vm1, %v161_v27  ;;  %v12378_v26 = vpop.f32.mrf.mxu1  ;;  %10502 = vmatmul.mubr.msk.f32.gmra.mxu1 %vm784_vm1, %v545_v11  ;;  %v164_v11 = vld [vmem:[%s17239_s0 + $0x4b0] sm:$0xff] }
 0x12c   :  { %9928 = vmatprep.mubr.msk.f32.mxu0 %vm784_vm1, %v162_v1  ;;  %10504 = vmatprep.mubr.msk.f32.mxu1 %vm784_vm1, %v546_v42  ;;  %v548_v27 = vld [vmem:[%s17239_s0 + $0x10b0] sm:$0xff] }
 0x12d   :  { %v12389_v2 = vpop.f32.mrf.mxu0  ;;  %v12391_v58 = vpop.f32.mrf.mxu1 }
 0x12f   :  { %v12399_v1 = vpop.f32.mrf.mxu0  ;;  %9929 = vmatmul.mubr.msk.f32.gmra.mxu0 %vm784_vm1, %v163_v3  ;;  %v12402_v42 = vpop.f32.mrf.mxu1  ;;  %10505 = vmatmul.mubr.msk.f32.gmra.mxu1 %vm784_vm1, %v547_v0  ;;  %v166_v3 = vld [vmem:[%s17239_s0 + $0x4c0] sm:$0xff] }
 0x130   :  { %9931 = vmatprep.mubr.msk.f32.mxu0 %vm784_vm1, %v164_v11  ;;  %10507 = vmatprep.mubr.msk.f32.mxu1 %vm784_vm1, %v548_v27  ;;  %v550_v0 = vld [vmem:[%s17239_s0 + $0x10c0] sm:$0xff] }
 0x131   :  { %v12413_v56 = vpop.f32.mrf.mxu0  ;;  %v12415_v50 = vpop.f32.mrf.mxu1 }
 0x133   :  { %v12423_v11 = vpop.f32.mrf.mxu0  ;;  %9932 = vmatmul.mubr.msk.f32.gmra.mxu0 %vm784_vm1, %v165_v41  ;;  %v12426_v27 = vpop.f32.mrf.mxu1  ;;  %10508 = vmatmul.mubr.msk.f32.gmra.mxu1 %vm784_vm1, %v549_v51  ;;  %v168_v51 = vld [vmem:[%s17239_s0 + $0x4d0] sm:$0xff] }
 0x134   :  { %9934 = vmatprep.mubr.msk.f32.mxu0 %vm784_vm1, %v166_v3  ;;  %10510 = vmatprep.mubr.msk.f32.mxu1 %vm784_vm1, %v550_v0  ;;  %v552_v41 = vld [vmem:[%s17239_s0 + $0x10d0] sm:$0xff] }
 0x135   :  { %v12437_v48 = vpop.f32.mrf.mxu0  ;;  %v12439_v34 = vpop.f32.mrf.mxu1 }
 0x137   :  { %v12447_v3 = vpop.f32.mrf.mxu0  ;;  %9935 = vmatmul.mubr.msk.f32.gmra.mxu0 %vm784_vm1, %v167_v33  ;;  %v12450_v0 = vpop.f32.mrf.mxu1  ;;  %10511 = vmatmul.mubr.msk.f32.gmra.mxu1 %vm784_vm1, %v551_v35  ;;  %v170_v35 = vld [vmem:[%s17239_s0 + $0x4e0] sm:$0xff] }
 0x138   :  { %9937 = vmatprep.mubr.msk.f32.mxu0 %vm784_vm1, %v168_v51  ;;  %10513 = vmatprep.mubr.msk.f32.mxu1 %vm784_vm1, %v552_v41  ;;  %v554_v33 = vld [vmem:[%s17239_s0 + $0x10e0] sm:$0xff] }
 0x139   :  { %v12461_v40 = vpop.f32.mrf.mxu0  ;;  %v12463_v18 = vpop.f32.mrf.mxu1 }
 0x13b   :  { %v12471_v51 = vpop.f32.mrf.mxu0  ;;  %9938 = vmatmul.mubr.msk.f32.gmra.mxu0 %vm784_vm1, %v169_v25  ;;  %v12474_v41 = vpop.f32.mrf.mxu1  ;;  %10514 = vmatmul.mubr.msk.f32.gmra.mxu1 %vm784_vm1, %v553_v19  ;;  %v172_v19 = vld [vmem:[%s17239_s0 + $0x4f0] sm:$0xff] }
 0x13c   :  { %9940 = vmatprep.mubr.msk.f32.mxu0 %vm784_vm1, %v170_v35  ;;  %10516 = vmatprep.mubr.msk.f32.mxu1 %vm784_vm1, %v554_v33  ;;  %v556_v25 = vld [vmem:[%s17239_s0 + $0x10f0] sm:$0xff] }
 0x13d   :  { %v12485_v32 = vpop.f32.mrf.mxu0  ;;  %v12487_v4 = vpop.f32.mrf.mxu1 }
 0x13e   :  { %17589 = vst [vmem:[#allocation72_spill] sm:$0xff] %v12487_v4 }
 0x13f   :  { %v12495_v35 = vpop.f32.mrf.mxu0  ;;  %9941 = vmatmul.mubr.msk.f32.gmra.mxu0 %vm784_vm1, %v171_v22  ;;  %v12498_v33 = vpop.f32.mrf.mxu1  ;;  %10517 = vmatmul.mubr.msk.f32.gmra.mxu1 %vm784_vm1, %v555_v5  ;;  %v174_v5 = vld [vmem:[%s17239_s0 + $0x500] sm:$0xff] }
 0x140   :  { %17590 = vst [vmem:[#allocation73_spill] sm:$0xff] %v12495_v35  ;;  %17591 = vst [vmem:[#allocation74_spill] sm:$0xff] %v12498_v33  ;;  %9943 = vmatprep.mubr.msk.f32.mxu0 %vm784_vm1, %v172_v19  ;;  %10519 = vmatprep.mubr.msk.f32.mxu1 %vm784_vm1, %v556_v25  ;;  %v558_v22 = vld [vmem:[%s17239_s0 + $0x1100] sm:$0xff] }
 0x141   :  { %v12509_v24 = vpop.f32.mrf.mxu0  ;;  %v12511_v60 = vpop.f32.mrf.mxu1  ;;  %v570_v33 = vld [vmem:[%s17239_s0 + $0x1160] sm:$0xff] }
 0x142   :  { %17592 = vst [vmem:[#allocation75_spill] sm:$0xff] %v12509_v24  ;;  %17593 = vst [vmem:[#allocation76_spill] sm:$0xff] %v12511_v60  ;;  %v175_v60 = vld [vmem:[%s17239_s0 + $0x508] sm:$0xff] }
 0x143   :  { %v12519_v19 = vpop.f32.mrf.mxu0  ;;  %9944 = vmatmul.mubr.msk.f32.gmra.mxu0 %vm784_vm1, %v173_v23  ;;  %v12522_v25 = vpop.f32.mrf.mxu1  ;;  %10520 = vmatmul.mubr.msk.f32.gmra.mxu1 %vm784_vm1, %v557_v61  ;;  %v559_v24 = vld [vmem:[%s17239_s0 + $0x1108] sm:$0xff]  ;;  %v176_v61 = vld [vmem:[%s17239_s0 + $0x510] sm:$0xff] }
 0x144   :  { %17594 = vst [vmem:[#allocation77_spill] sm:$0xff] %v12519_v19  ;;  %17595 = vst [vmem:[#allocation78_spill] sm:$0xff] %v12522_v25  ;;  %9946 = vmatprep.mubr.msk.f32.mxu0 %vm784_vm1, %v174_v5  ;;  %10522 = vmatprep.mubr.msk.f32.mxu1 %vm784_vm1, %v558_v22  ;;  %v560_v23 = vld [vmem:[%s17239_s0 + $0x1110] sm:$0xff] }
 0x145   :  { %v12533_v63 = vpop.f32.mrf.mxu0  ;;  %v12535_v19 = vpop.f32.mrf.mxu1 }
 0x146   :  { %17596 = vst [vmem:[#allocation79_spill] sm:$0xff] %v12533_v63  ;;  %17597 = vst [vmem:[#allocation80_spill] sm:$0xff] %v12535_v19  ;;  %v177_v19 = vld [vmem:[%s17239_s0 + $0x518] sm:$0xff] }
 0x147   :  { %v12543_v5 = vpop.f32.mrf.mxu0  ;;  %9947 = vmatmul.mubr.msk.f32.gmra.mxu0 %vm784_vm1, %v175_v60  ;;  %v12546_v22 = vpop.f32.mrf.mxu1  ;;  %10523 = vmatmul.mubr.msk.f32.gmra.mxu1 %vm784_vm1, %v559_v24  ;;  %v561_v63 = vld [vmem:[%s17239_s0 + $0x1118] sm:$0xff]  ;;  %v178_v60 = vld [vmem:[%s17239_s0 + $0x520] sm:$0xff] }
 0x148   :  { %17598 = vst [vmem:[#allocation81_spill] sm:$0xff] %v12543_v5  ;;  %17599 = vst [vmem:[#allocation82_spill] sm:$0xff] %v12546_v22  ;;  %9949 = vmatprep.mubr.msk.f32.mxu0 %vm784_vm1, %v176_v61  ;;  %10525 = vmatprep.mubr.msk.f32.mxu1 %vm784_vm1, %v560_v23  ;;  %v562_v24 = vld [vmem:[%s17239_s0 + $0x1120] sm:$0xff] }
 0x149   :  { %v12557_v25 = vpop.f32.mrf.mxu0  ;;  %v12559_v5 = vpop.f32.mrf.mxu1 }
 0x14a   :  { %17600 = vst [vmem:[#allocation83_spill] sm:$0xff] %v12557_v25  ;;  %17601 = vst [vmem:[#allocation84_spill] sm:$0xff] %v12559_v5  ;;  %v179_v5 = vld [vmem:[%s17239_s0 + $0x528] sm:$0xff] }
 0x14b   :  { %v12567_v61 = vpop.f32.mrf.mxu0  ;;  %9950 = vmatmul.mubr.msk.f32.gmra.mxu0 %vm784_vm1, %v177_v19  ;;  %v12570_v23 = vpop.f32.mrf.mxu1  ;;  %10526 = vmatmul.mubr.msk.f32.gmra.mxu1 %vm784_vm1, %v561_v63  ;;  %v563_v25 = vld [vmem:[%s17239_s0 + $0x1128] sm:$0xff]  ;;  %v180_v63 = vld [vmem:[%s17239_s0 + $0x530] sm:$0xff] }
 0x14c   :  { %17602 = vst [vmem:[#allocation85_spill] sm:$0xff] %v12567_v61  ;;  %17603 = vst [vmem:[#allocation86_spill] sm:$0xff] %v12570_v23  ;;  %9952 = vmatprep.mubr.msk.f32.mxu0 %vm784_vm1, %v178_v60  ;;  %10528 = vmatprep.mubr.msk.f32.mxu1 %vm784_vm1, %v562_v24  ;;  %v564_v19 = vld [vmem:[%s17239_s0 + $0x1130] sm:$0xff] }
 0x14d   :  { %v12581_v22 = vpop.f32.mrf.mxu0  ;;  %v12583_v61 = vpop.f32.mrf.mxu1 }
 0x14e   :  { %17604 = vst [vmem:[#allocation87_spill] sm:$0xff] %v12581_v22  ;;  %17605 = vst [vmem:[#allocation88_spill] sm:$0xff] %v12583_v61  ;;  %v181_v61 = vld [vmem:[%s17239_s0 + $0x538] sm:$0xff] }
 0x14f   :  { %v12591_v60 = vpop.f32.mrf.mxu0  ;;  %9953 = vmatmul.mubr.msk.f32.gmra.mxu0 %vm784_vm1, %v179_v5  ;;  %v12594_v24 = vpop.f32.mrf.mxu1  ;;  %10529 = vmatmul.mubr.msk.f32.gmra.mxu1 %vm784_vm1, %v563_v25  ;;  %v565_v22 = vld [vmem:[%s17239_s0 + $0x1138] sm:$0xff]  ;;  %v182_v25 = vld [vmem:[%s17239_s0 + $0x540] sm:$0xff] }
 0x150   :  { %17606 = vst [vmem:[#allocation89_spill] sm:$0xff] %v12591_v60  ;;  %17607 = vst [vmem:[#allocation90_spill] sm:$0xff] %v12594_v24  ;;  %9955 = vmatprep.mubr.msk.f32.mxu0 %vm784_vm1, %v180_v63  ;;  %10531 = vmatprep.mubr.msk.f32.mxu1 %vm784_vm1, %v564_v19  ;;  %v566_v5 = vld [vmem:[%s17239_s0 + $0x1140] sm:$0xff] }
 0x151   :  { %v12605_v23 = vpop.f32.mrf.mxu0  ;;  %v12607_v60 = vpop.f32.mrf.mxu1 }
 0x152   :  { %17608 = vst [vmem:[#allocation91_spill] sm:$0xff] %v12605_v23  ;;  %17609 = vst [vmem:[#allocation92_spill] sm:$0xff] %v12607_v60  ;;  %v183_v60 = vld [vmem:[%s17239_s0 + $0x548] sm:$0xff] }
 0x153   :  { %v12615_v63 = vpop.f32.mrf.mxu0  ;;  %9956 = vmatmul.mubr.msk.f32.gmra.mxu0 %vm784_vm1, %v181_v61  ;;  %v12618_v19 = vpop.f32.mrf.mxu1  ;;  %10532 = vmatmul.mubr.msk.f32.gmra.mxu1 %vm784_vm1, %v565_v22  ;;  %v567_v23 = vld [vmem:[%s17239_s0 + $0x1148] sm:$0xff]  ;;  %v184_v22 = vld [vmem:[%s17239_s0 + $0x550] sm:$0xff] }
 0x154   :  { %17610 = vst [vmem:[#allocation93_spill] sm:$0xff] %v12615_v63  ;;  %17611 = vst [vmem:[#allocation94_spill] sm:$0xff] %v12618_v19  ;;  %9958 = vmatprep.mubr.msk.f32.mxu0 %vm784_vm1, %v182_v25  ;;  %10534 = vmatprep.mubr.msk.f32.mxu1 %vm784_vm1, %v566_v5  ;;  %v568_v61 = vld [vmem:[%s17239_s0 + $0x1150] sm:$0xff] }
 0x155   :  { %v12629_v24 = vpop.f32.mrf.mxu0  ;;  %v12631_v63 = vpop.f32.mrf.mxu1 }
 0x156   :  { %17612 = vst [vmem:[#allocation95_spill] sm:$0xff] %v12629_v24  ;;  %17613 = vst [vmem:[#allocation96_spill] sm:$0xff] %v12631_v63  ;;  %v185_v63 = vld [vmem:[%s17239_s0 + $0x558] sm:$0xff] }
 0x157   :  { %v9816_v25 = vpop.f32.mrf.mxu0  ;;  %9959 = vmatmul.mubr.msk.f32.gmra.mxu0 %vm784_vm1, %v183_v60  ;;  %v10392_v5 = vpop.f32.mrf.mxu1  ;;  %10535 = vmatmul.mubr.msk.f32.gmra.mxu1 %vm784_vm1, %v567_v23  ;;  %v12654_v23 = vld [vmem:[%s17240_s2] ss:$0 sm:$0xff] }
 0x158   :  { %v7191_v19 = vmax.f32 %v12351_v43, %v9816_v25  ;;  %v7287_v24 = vmax.f32 %v12354_v59, %v10392_v5  ;;  %9961 = vmatprep.mubr.msk.f32.mxu0 %vm784_vm1, %v184_v22  ;;  %10537 = vmatprep.mubr.msk.f32.mxu1 %vm784_vm1, %v568_v61  ;;  %v186_v59 = vld [vmem:[%s17239_s0 + $0x560] sm:$0xff]  ;;  %v17614_v22 = vmax.f32 %v11679_v8, %v11967_v14 }
 0x159   :  { %v3519_v43 = vpop.f32.mrf.mxu0  ;;  %v5439_v60 = vpop.f32.mrf.mxu1  ;;  %v17615_v25 = vmax.f32 %v11682_v9, %v11970_v15  ;;  %v17616_v9 = vmax.f32 %v11693_v12, %v11985_v38  ;;  %v571_v12 = vld [vmem:[%s17239_s0 + $0x1168] sm:$0xff] }
 0x15a   :  { %v7383_v61 = vmax.f32 %v17614_v22, %v7191_v19  ;;  %v7190_v17 = vmax.f32 %v12365_v10, %v3519_v43  ;;  %v7286_v52 = vmax.f32 %v12367_v49, %v5439_v60  ;;  %v17617_v49 = vmax.f32 %v11695_v13, %v11987_v39  ;;  %v188_v13 = vld [vmem:[%s17239_s0 + $0x570] sm:$0xff] }
 0x15b   :  { %v7479_v5 = vmax.f32 %v17615_v25, %v7287_v24  ;;  %v9819_v35 = vpop.f32.mrf.mxu0  ;;  %9962 = vmatmul.mubr.msk.f32.gmra.mxu0 %vm784_vm1, %v185_v63  ;;  %v10395_v4 = vpop.f32.mrf.mxu1  ;;  %10538 = vmatmul.mubr.msk.f32.gmra.mxu1 %vm784_vm1, %v569_v53  ;;  %v187_v24 = vld [vmem:[%s17239_s0 + $0x568] sm:$0xff] }
 0x15c   :  { %v7582_v8 = vadd.f32 %v12654_v23, %v7383_v61  ;;  %v7382_v15 = vmax.f32 %v17616_v9, %v7190_v17  ;;  %v7478_v10 = vmax.f32 %v17617_v49, %v7286_v52  ;;  %9964 = vmatprep.mubr.msk.f32.mxu0 %vm784_vm1, %v186_v59  ;;  %v7193_v53 = vmax.f32 %v12375_v57, %v9819_v35  ;;  %v17619_v35 = vld [vmem:[#allocation2_spill] sm:$0xff] }
 0x15d   :  { %v7678_v14 = vadd.f32 %v12654_v23, %v7479_v5  ;;  %v7289_v63 = vmax.f32 %v12378_v26, %v10395_v4  ;;  %v3529_v19 = vpop.f32.mrf.mxu0  ;;  %v5449_v43 = vpop.f32.mrf.mxu1  ;;  %10540 = vmatprep.mubr.msk.f32.mxu1 %vm784_vm1, %v570_v33  ;;  %v572_v4 = vld [vmem:[%s17239_s0 + $0x1170] sm:$0xff]  ;;  %v17618_v57 = vmax.f32 %v11703_v16, %v11999_v62  ;;  %v17620_v33 = vld [vmem:[#allocation37_spill] sm:$0xff] }
 0x15e   :  { %v7774_v52 = vmax.f32 %v7582_v8, 0.0  ;;  %v7581_v39 = vadd.f32 %v12654_v23, %v7382_v15  ;;  %v7677_v17 = vadd.f32 %v12654_v23, %v7478_v10  ;;  %v17621_v60 = vmax.f32 %v17619_v35, %v17620_v33  ;;  %v189_v8 = vld [vmem:[%s17239_s0 + $0x578] sm:$0xff] }
 0x15f   :  { %v7870_v38 = vmax.f32 %v7678_v14, 0.0  ;;  %v7385_v26 = vmax.f32 %v17618_v57, %v7193_v53  ;;  %v7192_v22 = vmax.f32 %v12389_v2, %v3529_v19  ;;  %v7288_v61 = vmax.f32 %v12391_v58, %v5449_v43  ;;  %v9822_v25 = vpop.f32.mrf.mxu0  ;;  %9965 = vmatmul.mubr.msk.f32.gmra.mxu0 %vm784_vm1, %v187_v24  ;;  %v10398_v5 = vpop.f32.mrf.mxu1  ;;  %10541 = vmatmul.mubr.msk.f32.gmra.mxu1 %vm784_vm1, %v571_v12  ;;  %v573_v53 = vld [vmem:[%s17239_s0 + $0x1178] sm:$0xff]  ;;  %v17628_v19 = vld [vmem:[#allocation39_spill] sm:$0xff] }
 0x160   :  { %v7481_v59 = vmax.f32 %v17621_v60, %v7289_v63  ;;  %7967 = vst.msk [vmem:[%s17241_s3 + $0x8] sm:$0xff] %vm7965_vm2, %v7774_v52  ;;  %v7773_v16 = vmax.f32 %v7581_v39, 0.0  ;;  %v7869_v62 = vmax.f32 %v7677_v17, 0.0  ;;  %v7195_v2 = vmax.f32 %v12399_v1, %v9822_v25  ;;  %9967 = vmatprep.mubr.msk.f32.mxu0 %vm784_vm1, %v188_v13  ;;  %10543 = vmatprep.mubr.msk.f32.mxu1 %vm784_vm1, %v572_v4  ;;  %v17627_v63 = vld [vmem:[#allocation4_spill] sm:$0xff]  ;;  %v574_v39 = vld [vmem:[%s17239_s0 + $0x1180] sm:$0xff]  ;;  %v191_v25 = vld [vmem:[%s17239_s0 + $0x588] sm:$0xff] }
 0x161   :  { %8063 = vst.msk [vmem:[%s17241_s3 + $0x308] sm:$0xff] %vm7965_vm2, %v7870_v38  ;;  %v7291_v58 = vmax.f32 %v12402_v42, %v10398_v5  ;;  %v7584_v14 = vadd.f32 %v12654_v23, %v7385_v26  ;;  %v17622_v15 = vmax.f32 %v11717_v20, %v12017_v54  ;;  %v17623_v1 = vmax.f32 %v11719_v21, %v12019_v31  ;;  %v3539_v10 = vpop.f32.mrf.mxu0  ;;  %v5459_v24 = vpop.f32.mrf.mxu1  ;;  %v17624_v20 = vld [vmem:[#allocation3_spill] sm:$0xff]  ;;  %v17625_v21 = vld [vmem:[#allocation38_spill] sm:$0xff] }
 0x162   :  { %v7680_v9 = vadd.f32 %v12654_v23, %v7481_v59  ;;  %7966 = vst.msk [vmem:[%s17241_s3] sm:$0xff] %vm7965_vm2, %v7773_v16  ;;  %8062 = vst.msk [vmem:[%s17241_s3 + $0x300] sm:$0xff] %vm7965_vm2, %v7869_v62  ;;  %v17626_v54 = vmax.f32 %v17624_v20, %v17625_v21  ;;  %v17629_v43 = vmax.f32 %v17627_v63, %v17628_v19  ;;  %v190_v38 = vld [vmem:[%s17239_s0 + $0x580] sm:$0xff]  ;;  %v575_v62 = vld [vmem:[%s17239_s0 + $0x1188] sm:$0xff] }
 0x163   :  { %v7384_v49 = vmax.f32 %v17622_v15, %v7192_v22  ;;  %v7480_v42 = vmax.f32 %v17623_v1, %v7288_v61  ;;  %v7194_v13 = vmax.f32 %v12413_v56, %v3539_v10  ;;  %v7290_v52 = vmax.f32 %v12415_v50, %v5459_v24  ;;  %v9825_v35 = vpop.f32.mrf.mxu0  ;;  %9968 = vmatmul.mubr.msk.f32.gmra.mxu0 %vm784_vm1, %v189_v8  ;;  %v10401_v56 = vpop.f32.mrf.mxu1  ;;  %v17633_v15 = vld [vmem:[#allocation40_spill] sm:$0xff]  ;;  %v17636_v10 = vld [vmem:[#allocation41_spill] sm:$0xff] }
 0x164   :  { %v7387_v31 = vmax.f32 %v17626_v54, %v7195_v2  ;;  %v7483_v12 = vmax.f32 %v17629_v43, %v7291_v58  ;;  %v7776_v17 = vmax.f32 %v7584_v14, 0.0  ;;  %v7872_v4 = vmax.f32 %v7680_v9, 0.0  ;;  %10544 = vmatmul.mubr.msk.f32.gmra.mxu1 %vm784_vm1, %v573_v53  ;;  %9970 = vmatprep.mubr.msk.f32.mxu0 %vm784_vm1, %v190_v38  ;;  %v192_v2 = vld [vmem:[%s17239_s0 + $0x590] sm:$0xff]  ;;  %v17632_v9 = vld [vmem:[#allocation5_spill] sm:$0xff] }
 0x165   :  { %v7583_v57 = vadd.f32 %v12654_v23, %v7384_v49  ;;  %v7679_v26 = vadd.f32 %v12654_v23, %v7480_v42  ;;  %v17630_v60 = vmax.f32 %v11741_v28, %v12049_v47  ;;  %v17631_v22 = vmax.f32 %v11743_v29, %v12051_v30  ;;  %v3549_v5 = vpop.f32.mrf.mxu0  ;;  %v5469_v16 = vpop.f32.mrf.mxu1  ;;  %10546 = vmatprep.mubr.msk.f32.mxu1 %vm784_vm1, %v574_v39  ;;  %v576_v14 = vld [vmem:[%s17239_s0 + $0x1190] sm:$0xff]  ;;  %v17635_v42 = vld [vmem:[#allocation6_spill] sm:$0xff]  ;;  %v193_v43 = vld [vmem:[%s17239_s0 + $0x598] sm:$0xff] }
 0x166   :  { %v7586_v50 = vadd.f32 %v12654_v23, %v7387_v31  ;;  %v7682_v33 = vadd.f32 %v12654_v23, %v7483_v12  ;;  %7969 = vst.msk [vmem:[%s17241_s3 + $0x18] sm:$0xff] %vm7965_vm2, %v7776_v17  ;;  %8065 = vst.msk [vmem:[%s17241_s3 + $0x318] sm:$0xff] %vm7965_vm2, %v7872_v4  ;;  %v7197_v29 = vmax.f32 %v12423_v11, %v9825_v35  ;;  %v577_v4 = vld [vmem:[%s17239_s0 + $0x1198] sm:$0xff] }
 0x167   :  { %v7386_v59 = vmax.f32 %v17630_v60, %v7194_v13  ;;  %v7482_v61 = vmax.f32 %v17631_v22, %v7290_v52  ;;  %v7775_v28 = vmax.f32 %v7583_v57, 0.0  ;;  %v7871_v47 = vmax.f32 %v7679_v26, 0.0  ;;  %v9828_v54 = vpop.f32.mrf.mxu0  ;;  %9971 = vmatmul.mubr.msk.f32.gmra.mxu0 %vm784_vm1, %v191_v25  ;;  %v10404_v31 = vpop.f32.mrf.mxu1  ;;  %v17643_v57 = vld [vmem:[#allocation8_spill] sm:$0xff]  ;;  %v17644_v26 = vld [vmem:[#allocation43_spill] sm:$0xff]  ;;  %v194_v60 = vld [vmem:[%s17239_s0 + $0x5a0] sm:$0xff] }
 0x168   :  { %v7293_v30 = vmax.f32 %v12426_v27, %v10401_v56  ;;  %v7778_v58 = vmax.f32 %v7586_v50, 0.0  ;;  %v7874_v8 = vmax.f32 %v7682_v33, 0.0  ;;  %v17634_v49 = vmax.f32 %v17632_v9, %v17633_v15  ;;  %10547 = vmatmul.mubr.msk.f32.gmra.mxu1 %vm784_vm1, %v575_v62  ;;  %9973 = vmatprep.mubr.msk.f32.mxu0 %vm784_vm1, %v192_v2  ;;  %v195_v2 = vld [vmem:[%s17239_s0 + $0x5a8] sm:$0xff]  ;;  %v580_v15 = vld [vmem:[%s17239_s0 + $0x11b0] sm:$0xff] }
 0x169   :  { %v7585_v11 = vadd.f32 %v12654_v23, %v7386_v59  ;;  %v7681_v27 = vadd.f32 %v12654_v23, %v7482_v61  ;;  %7968 = vst.msk [vmem:[%s17241_s3 + $0x10] sm:$0xff] %vm7965_vm2, %v7775_v28  ;;  %8064 = vst.msk [vmem:[%s17241_s3 + $0x310] sm:$0xff] %vm7965_vm2, %v7871_v47  ;;  %v17637_v24 = vmax.f32 %v17635_v42, %v17636_v10  ;;  %v3559_v39 = vpop.f32.mrf.mxu0  ;;  %v5479_v17 = vpop.f32.mrf.mxu1  ;;  %10549 = vmatprep.mubr.msk.f32.mxu1 %vm784_vm1, %v576_v14  ;;  %v578_v59 = vld [vmem:[%s17239_s0 + $0x11a0] sm:$0xff] }
 0x16a   :  { %v7389_v1 = vmax.f32 %v17634_v49, %v7197_v29  ;;  %v7196_v20 = vmax.f32 %v12437_v48, %v3549_v5  ;;  %v7292_v21 = vmax.f32 %v12439_v34, %v5469_v16  ;;  %7971 = vst.msk [vmem:[%s17241_s3 + $0x28] sm:$0xff] %vm7965_vm2, %v7778_v58  ;;  %8067 = vst.msk [vmem:[%s17241_s3 + $0x328] sm:$0xff] %vm7965_vm2, %v7874_v8  ;;  %v17648_v49 = vld [vmem:[#allocation9_spill] sm:$0xff] }
 0x16b   :  { %v7485_v53 = vmax.f32 %v17637_v24, %v7293_v30  ;;  %v7777_v63 = vmax.f32 %v7585_v11, 0.0  ;;  %v7873_v19 = vmax.f32 %v7681_v27, 0.0  ;;  %v7199_v48 = vmax.f32 %v12447_v3, %v9828_v54  ;;  %v9831_v47 = vpop.f32.mrf.mxu0  ;;  %9974 = vmatmul.mubr.msk.f32.gmra.mxu0 %vm784_vm1, %v193_v43  ;;  %v579_v11 = vld [vmem:[%s17239_s0 + $0x11a8] sm:$0xff]  ;;  %v196_v27 = vld [vmem:[%s17239_s0 + $0x5b0] sm:$0xff]  ;;  %v17651_v24 = vld [vmem:[#allocation10_spill] sm:$0xff] }
 0x16c   :  { %v7295_v34 = vmax.f32 %v12450_v0, %v10404_v31  ;;  %v7588_v12 = vadd.f32 %v12654_v23, %v7389_v1  ;;  %v17638_v52 = vmax.f32 %v11765_v36, %v12081_v46  ;;  %v17639_v3 = vmax.f32 %v11767_v37, %v12083_v55  ;;  %v17640_v36 = vld [vmem:[#allocation7_spill] sm:$0xff]  ;;  %v17641_v37 = vld [vmem:[#allocation42_spill] sm:$0xff]  ;;  %10550 = vmatmul.mubr.msk.f32.gmra.mxu1 %vm784_vm1, %v577_v4  ;;  %v17649_v1 = vld [vmem:[#allocation44_spill] sm:$0xff] }
 0x16d   :  { %v7684_v13 = vadd.f32 %v12654_v23, %v7485_v53  ;;  %7970 = vst.msk [vmem:[%s17241_s3 + $0x20] sm:$0xff] %vm7965_vm2, %v7777_v63  ;;  %8066 = vst.msk [vmem:[%s17241_s3 + $0x320] sm:$0xff] %vm7965_vm2, %v7873_v19  ;;  %v17642_v46 = vmax.f32 %v17640_v36, %v17641_v37  ;;  %v17645_v35 = vmax.f32 %v17643_v57, %v17644_v26  ;;  %v3569_v58 = vpop.f32.mrf.mxu0  ;;  %9976 = vmatprep.mubr.msk.f32.mxu0 %vm784_vm1, %v194_v60  ;;  %v17652_v53 = vld [vmem:[#allocation45_spill] sm:$0xff]  ;;  %v17654_v31 = vld [vmem:[#allocation72_spill] sm:$0xff] }
 0x16e   :  { %v7388_v38 = vmax.f32 %v17638_v52, %v7196_v20  ;;  %v7484_v0 = vmax.f32 %v17639_v3, %v7292_v21  ;;  %v7198_v50 = vmax.f32 %v12461_v40, %v3559_v39  ;;  %v7294_v33 = vmax.f32 %v12463_v18, %v5479_v17  ;;  %v10407_v40 = vpop.f32.mrf.mxu1  ;;  %10552 = vmatprep.mubr.msk.f32.mxu1 %vm784_vm1, %v578_v59  ;;  %v17657_v39 = vld [vmem:[#allocation11_spill] sm:$0xff]  ;;  %v17658_v17 = vld [vmem:[#allocation46_spill] sm:$0xff]  ;;  %v17660_v37 = vld [vmem:[#allocation12_spill] sm:$0xff] }
 0x16f   :  { %v7391_v55 = vmax.f32 %v17642_v46, %v7199_v48  ;;  %v7487_v56 = vmax.f32 %v17645_v35, %v7295_v34  ;;  %v7780_v22 = vmax.f32 %v7588_v12, 0.0  ;;  %v7876_v61 = vmax.f32 %v7684_v13, 0.0  ;;  %v9834_v19 = vpop.f32.mrf.mxu0  ;;  %9977 = vmatmul.mubr.msk.f32.gmra.mxu0 %vm784_vm1, %v195_v2  ;;  %v17655_v12 = vld [vmem:[#allocation73_spill] sm:$0xff]  ;;  %v17656_v13 = vld [vmem:[#allocation74_spill] sm:$0xff]  ;;  %v17661_v46 = vld [vmem:[#allocation47_spill] sm:$0xff] }
 0x170   :  { %v7587_v25 = vadd.f32 %v12654_v23, %v7388_v38  ;;  %v7683_v28 = vadd.f32 %v12654_v23, %v7484_v0  ;;  %v17646_v30 = vmax.f32 %v11789_v44, %v12113_v7  ;;  %v17647_v16 = vmax.f32 %v11791_v45, %v12115_v6  ;;  %v5489_v8 = vpop.f32.mrf.mxu1  ;;  %10553 = vmatmul.mubr.msk.f32.gmra.mxu1 %vm784_vm1, %v579_v11  ;;  %v197_v38 = vld [vmem:[%s17239_s0 + $0x5b8] sm:$0xff]  ;;  %v17672_v11 = vld [vmem:[#allocation50_spill] sm:$0xff] }
 0x171   :  { %v7590_v18 = vadd.f32 %v12654_v23, %v7391_v55  ;;  %v7686_v29 = vadd.f32 %v12654_v23, %v7487_v56  ;;  %7973 = vst.msk [vmem:[%s17241_s3 + $0x38] sm:$0xff] %vm7965_vm2, %v7780_v22  ;;  %8069 = vst.msk [vmem:[%s17241_s3 + $0x338] sm:$0xff] %vm7965_vm2, %v7876_v61  ;;  %v7201_v45 = vmax.f32 %v12471_v51, %v9831_v47  ;;  %9979 = vmatprep.mubr.msk.f32.mxu0 %vm784_vm1, %v196_v27  ;;  %v3579_v26 = vpop.f32.mrf.mxu0  ;;  %v581_v56 = vld [vmem:[%s17239_s0 + $0x11b8] sm:$0xff]  ;;  %v17666_v22 = vld [vmem:[#allocation14_spill] sm:$0xff] }
 0x172   :  { %v7390_v5 = vmax.f32 %v17646_v30, %v7198_v50  ;;  %v7486_v62 = vmax.f32 %v17647_v16, %v7294_v33  ;;  %v7779_v44 = vmax.f32 %v7587_v25, 0.0  ;;  %v7875_v7 = vmax.f32 %v7683_v28, 0.0  ;;  %v10410_v48 = vpop.f32.mrf.mxu1  ;;  %10555 = vmatprep.mubr.msk.f32.mxu1 %vm784_vm1, %v580_v15  ;;  %v17663_v50 = vld [vmem:[#allocation13_spill] sm:$0xff]  ;;  %v17664_v33 = vld [vmem:[#allocation48_spill] sm:$0xff]  ;;  %v17669_v47 = vld [vmem:[#allocation75_spill] sm:$0xff] }
 0x173   :  { %v7297_v6 = vmax.f32 %v12474_v41, %v10407_v40  ;;  %v7782_v14 = vmax.f32 %v7590_v18, 0.0  ;;  %v7878_v9 = vmax.f32 %v7686_v29, 0.0  ;;  %v17650_v42 = vmax.f32 %v17648_v49, %v17649_v1  ;;  %v17667_v61 = vld [vmem:[#allocation49_spill] sm:$0xff]  ;;  %v17670_v18 = vld [vmem:[#allocation76_spill] sm:$0xff]  ;;  %v198_v30 = vld [vmem:[%s17239_s0 + $0x5c0] sm:$0xff]  ;;  %9980 = vmatmul.mubr.msk.f32.gmra.mxu0 %vm784_vm1, %v197_v38 }
 0x174   :  { %v7589_v51 = vadd.f32 %v12654_v23, %v7390_v5  ;;  %v7685_v41 = vadd.f32 %v12654_v23, %v7486_v62  ;;  %7972 = vst.msk [vmem:[%s17241_s3 + $0x30] sm:$0xff] %vm7965_vm2, %v7779_v44  ;;  %8068 = vst.msk [vmem:[%s17241_s3 + $0x330] sm:$0xff] %vm7965_vm2, %v7875_v7  ;;  %v17653_v20 = vmax.f32 %v17651_v24, %v17652_v53  ;;  %v5499_v35 = vpop.f32.mrf.mxu1  ;;  %v582_v5 = vld [vmem:[%s17239_s0 + $0x11c0] sm:$0xff]  ;;  %v9837_v7 = vpop.f32.mrf.mxu0  ;;  %10556 = vmatmul.mubr.msk.f32.gmra.mxu1 %vm784_vm1, %v581_v56  ;;  %v199_v49 = vld [vmem:[%s17239_s0 + $0x5c8] sm:$0xff] }
 0x175   :  { %v7393_v10 = vmax.f32 %v17650_v42, %v7201_v45  ;;  %v7200_v54 = vmax.f32 %v12485_v32, %v3569_v58  ;;  %v7296_v63 = vmax.f32 %v17654_v31, %v5489_v8  ;;  %7975 = vst.msk [vmem:[%s17241_s3 + $0x48] sm:$0xff] %vm7965_vm2, %v7782_v14  ;;  %8071 = vst.msk [vmem:[%s17241_s3 + $0x348] sm:$0xff] %vm7965_vm2, %v7878_v9  ;;  %v17671_v8 = vld [vmem:[#allocation15_spill] sm:$0xff]  ;;  %v17674_v9 = vld [vmem:[#allocation16_spill] sm:$0xff]  ;;  %9982 = vmatprep.mubr.msk.f32.mxu0 %vm784_vm1, %v198_v30 }
 0x176   :  { %v7489_v21 = vmax.f32 %v17653_v20, %v7297_v6  ;;  %v7781_v34 = vmax.f32 %v7589_v51, 0.0  ;;  %v7877_v43 = vmax.f32 %v7685_v41, 0.0  ;;  %v7203_v32 = vmax.f32 %v17655_v12, %v9834_v19  ;;  %v10413_v45 = vpop.f32.mrf.mxu1  ;;  %v17675_v51 = vld [vmem:[#allocation51_spill] sm:$0xff]  ;;  %v17678_v53 = vld [vmem:[#allocation78_spill] sm:$0xff]  ;;  %10558 = vmatprep.mubr.msk.f32.mxu1 %vm784_vm1, %v582_v5  ;;  %v584_v12 = vld [vmem:[%s17239_s0 + $0x11d0] sm:$0xff] }
 0x177   :  { %v7299_v52 = vmax.f32 %v17656_v13, %v10410_v48  ;;  %v7592_v3 = vadd.f32 %v12654_v23, %v7393_v10  ;;  %v17659_v4 = vmax.f32 %v17657_v39, %v17658_v17  ;;  %v17662_v55 = vmax.f32 %v17660_v37, %v17661_v46  ;;  %v17677_v10 = vld [vmem:[#allocation77_spill] sm:$0xff]  ;;  %v583_v31 = vld [vmem:[%s17239_s0 + $0x11c8] sm:$0xff]  ;;  %v17680_v13 = vld [vmem:[#allocation52_spill] sm:$0xff]  ;;  %9983 = vmatmul.mubr.msk.f32.gmra.mxu0 %vm784_vm1, %v199_v49 }
 0x178   :  { %v7688_v0 = vadd.f32 %v12654_v23, %v7489_v21  ;;  %7974 = vst.msk [vmem:[%s17241_s3 + $0x40] sm:$0xff] %vm7965_vm2, %v7781_v34  ;;  %8070 = vst.msk [vmem:[%s17241_s3 + $0x340] sm:$0xff] %vm7965_vm2, %v7877_v43  ;;  %v17665_v60 = vmax.f32 %v17663_v50, %v17664_v33  ;;  %v17668_v25 = vmax.f32 %v17666_v22, %v17667_v61  ;;  %v3589_v21 = vpop.f32.mrf.mxu0  ;;  %v17686_v37 = vld [vmem:[#allocation80_spill] sm:$0xff]  ;;  %v17687_v56 = vld [vmem:[#allocation81_spill] sm:$0xff]  ;;  %10559 = vmatmul.mubr.msk.f32.gmra.mxu1 %vm784_vm1, %v583_v31 }
 0x179   :  { %v7392_v36 = vmax.f32 %v17659_v4, %v7200_v54  ;;  %v7488_v57 = vmax.f32 %v17662_v55, %v7296_v63  ;;  %v7202_v40 = vmax.f32 %v17669_v47, %v3579_v26  ;;  %v7298_v29 = vmax.f32 %v17670_v18, %v5499_v35  ;;  %v5509_v54 = vpop.f32.mrf.mxu1  ;;  %v200_v63 = vld [vmem:[%s17239_s0 + $0x5d0] sm:$0xff]  ;;  %v17685_v4 = vld [vmem:[#allocation79_spill] sm:$0xff]  ;;  %v17688_v33 = vld [vmem:[#allocation82_spill] sm:$0xff]  ;;  %10561 = vmatprep.mubr.msk.f32.mxu1 %vm784_vm1, %v584_v12 }
 0x17a   :  { %v7395_v59 = vmax.f32 %v17665_v60, %v7203_v32  ;;  %v7491_v28 = vmax.f32 %v17668_v25, %v7299_v52  ;;  %v7784_v16 = vmax.f32 %v7592_v3, 0.0  ;;  %v7880_v62 = vmax.f32 %v7688_v0, 0.0  ;;  %v17679_v32 = vld [vmem:[#allocation17_spill] sm:$0xff]  ;;  %v17682_v3 = vld [vmem:[#allocation18_spill] sm:$0xff]  ;;  %v9840_v55 = vpop.f32.mrf.mxu0  ;;  %9985 = vmatprep.mubr.msk.f32.mxu0 %vm784_vm1, %v200_v63  ;;  %v17689_v25 = vld [vmem:[#allocation19_spill] sm:$0xff] }
 0x17b   :  { %v7591_v2 = vadd.f32 %v12654_v23, %v7392_v36  ;;  %v7687_v44 = vadd.f32 %v12654_v23, %v7488_v57  ;;  %v17673_v27 = vmax.f32 %v17671_v8, %v17672_v11  ;;  %v17676_v41 = vmax.f32 %v17674_v9, %v17675_v51  ;;  %v17683_v0 = vld [vmem:[#allocation53_spill] sm:$0xff]  ;;  %v10416_v57 = vpop.f32.mrf.mxu1  ;;  %v17692_v18 = vld [vmem:[#allocation20_spill] sm:$0xff]  ;;  %v586_v49 = vld [vmem:[%s17239_s0 + $0x11e0] sm:$0xff] }
 0x17c   :  { %v7594_v6 = vadd.f32 %v12654_v23, %v7395_v59  ;;  %v7690_v58 = vadd.f32 %v12654_v23, %v7491_v28  ;;  %7977 = vst.msk [vmem:[%s17241_s3 + $0x58] sm:$0xff] %vm7965_vm2, %v7784_v16  ;;  %8073 = vst.msk [vmem:[%s17241_s3 + $0x358] sm:$0xff] %vm7965_vm2, %v7880_v62  ;;  %v7205_v24 = vmax.f32 %v17677_v10, %v9837_v7  ;;  %v201_v59 = vld [vmem:[%s17239_s0 + $0x5d8] sm:$0xff]  ;;  %v17690_v28 = vld [vmem:[#allocation54_spill] sm:$0xff]  ;;  %v3599_v16 = vpop.f32.mrf.mxu0 }
 0x17d   :  { %v7394_v14 = vmax.f32 %v17673_v27, %v7202_v40  ;;  %v7490_v15 = vmax.f32 %v17676_v41, %v7298_v29  ;;  %v7783_v1 = vmax.f32 %v7591_v2, 0.0  ;;  %v7879_v42 = vmax.f32 %v7687_v44, 0.0  ;;  %v17693_v29 = vld [vmem:[#allocation55_spill] sm:$0xff]  ;;  %v5519_v62 = vpop.f32.mrf.mxu1  ;;  %v585_v2 = vld [vmem:[%s17239_s0 + $0x11d8] sm:$0xff]  ;;  %v17696_v7 = vld [vmem:[#allocation56_spill] sm:$0xff]  ;;  %9986 = vmatmul.mubr.msk.f32.gmra.mxu0 %vm784_vm1, %v201_v59 }
 0x17e   :  { %v7301_v20 = vmax.f32 %v17678_v53, %v10413_v45  ;;  %v7786_v19 = vmax.f32 %v7594_v6, 0.0  ;;  %v7882_v48 = vmax.f32 %v7690_v58, 0.0  ;;  %v17681_v52 = vmax.f32 %v17679_v32, %v17680_v13  ;;  %v17695_v44 = vld [vmem:[#allocation21_spill] sm:$0xff]  ;;  %v17698_v58 = vld [vmem:[#allocation22_spill] sm:$0xff]  ;;  %v17702_v51 = vld [vmem:[#allocation84_spill] sm:$0xff]  ;;  %v9843_v53 = vpop.f32.mrf.mxu0  ;;  %10562 = vmatmul.mubr.msk.f32.gmra.mxu1 %vm784_vm1, %v585_v2 }
 0x17f   :  { %v7593_v34 = vadd.f32 %v12654_v23, %v7394_v14  ;;  %v7689_v43 = vadd.f32 %v12654_v23, %v7490_v15  ;;  %7976 = vst.msk [vmem:[%s17241_s3 + $0x50] sm:$0xff] %vm7965_vm2, %v7783_v1  ;;  %8072 = vst.msk [vmem:[%s17241_s3 + $0x350] sm:$0xff] %vm7965_vm2, %v7879_v42  ;;  %v17684_v39 = vmax.f32 %v17682_v3, %v17683_v0  ;;  %v17699_v8 = vld [vmem:[#allocation57_spill] sm:$0xff]  ;;  %v17701_v14 = vld [vmem:[#allocation83_spill] sm:$0xff]  ;;  %10564 = vmatprep.mubr.msk.f32.mxu1 %vm784_vm1, %v586_v49 }
 0x180   :  { %v7397_v38 = vmax.f32 %v17681_v52, %v7205_v24  ;;  %v7204_v36 = vmax.f32 %v17685_v4, %v3589_v21  ;;  %v7300_v46 = vmax.f32 %v17686_v37, %v5509_v54  ;;  %7979 = vst.msk [vmem:[%s17241_s3 + $0x68] sm:$0xff] %vm7965_vm2, %v7786_v19  ;;  %8075 = vst.msk [vmem:[%s17241_s3 + $0x368] sm:$0xff] %vm7965_vm2, %v7882_v48  ;;  %v202_v15 = vld [vmem:[%s17239_s0 + $0x5e0] sm:$0xff]  ;;  %v17703_v31 = vld [vmem:[#allocation23_spill] sm:$0xff]  ;;  %v3609_v4 = vpop.f32.mrf.mxu0 }
 0x181   :  { %v7493_v17 = vmax.f32 %v17684_v39, %v7301_v20  ;;  %v7785_v26 = vmax.f32 %v7593_v34, 0.0  ;;  %v7881_v35 = vmax.f32 %v7689_v43, 0.0  ;;  %v7207_v50 = vmax.f32 %v17687_v56, %v9840_v55  ;;  %v10419_v20 = vpop.f32.mrf.mxu1  ;;  %v17704_v63 = vld [vmem:[#allocation58_spill] sm:$0xff]  ;;  %v17706_v34 = vld [vmem:[#allocation24_spill] sm:$0xff]  ;;  %v17707_v43 = vld [vmem:[#allocation59_spill] sm:$0xff]  ;;  %9988 = vmatprep.mubr.msk.f32.mxu0 %vm784_vm1, %v202_v15 }
 0x182   :  { %v7303_v60 = vmax.f32 %v17688_v33, %v10416_v57  ;;  %v7596_v22 = vadd.f32 %v12654_v23, %v7397_v38  ;;  %v17691_v47 = vmax.f32 %v17689_v25, %v17690_v28  ;;  %v17694_v30 = vmax.f32 %v17692_v18, %v17693_v29  ;;  %v203_v13 = vld [vmem:[%s17239_s0 + $0x5e8] sm:$0xff]  ;;  %v17709_v3 = vld [vmem:[#allocation85_spill] sm:$0xff]  ;;  %v17710_v39 = vld [vmem:[#allocation86_spill] sm:$0xff] }
 0x183   :  { %v7692_v61 = vadd.f32 %v12654_v23, %v7493_v17  ;;  %7978 = vst.msk [vmem:[%s17241_s3 + $0x60] sm:$0xff] %vm7965_vm2, %v7785_v26  ;;  %8074 = vst.msk [vmem:[%s17241_s3 + $0x360] sm:$0xff] %vm7965_vm2, %v7881_v35  ;;  %v17697_v45 = vmax.f32 %v17695_v44, %v17696_v7  ;;  %v17700_v11 = vmax.f32 %v17698_v58, %v17699_v8  ;;  %v587_v37 = vld [vmem:[%s17239_s0 + $0x11e8] sm:$0xff]  ;;  %v588_v56 = vld [vmem:[%s17239_s0 + $0x11f0] sm:$0xff]  ;;  %9989 = vmatmul.mubr.msk.f32.gmra.mxu0 %vm784_vm1, %v203_v13 }
 0x184   :  { %v7396_v40 = vmax.f32 %v17691_v47, %v7204_v36  ;;  %v7492_v5 = vmax.f32 %v17694_v30, %v7300_v46  ;;  %v7206_v9 = vmax.f32 %v17701_v14, %v3599_v16  ;;  %v7302_v41 = vmax.f32 %v17702_v51, %v5519_v62  ;;  %v5529_v36 = vpop.f32.mrf.mxu1  ;;  %v204_v46 = vld [vmem:[%s17239_s0 + $0x5f0] sm:$0xff]  ;;  %v17717_v47 = vld [vmem:[#allocation87_spill] sm:$0xff]  ;;  %v9846_v30 = vpop.f32.mrf.mxu0  ;;  %v17719_v2 = vld [vmem:[#allocation89_spill] sm:$0xff]  ;;  %10565 = vmatmul.mubr.msk.f32.gmra.mxu1 %vm784_vm1, %v587_v37 }
 0x185   :  { %v7399_v6 = vmax.f32 %v17697_v45, %v7207_v50  ;;  %v7495_v27 = vmax.f32 %v17700_v11, %v7303_v60  ;;  %v7788_v1 = vmax.f32 %v7596_v22, 0.0  ;;  %v7884_v42 = vmax.f32 %v7692_v61, 0.0  ;;  %v17711_v50 = vld [vmem:[#allocation25_spill] sm:$0xff]  ;;  %v17712_v33 = vld [vmem:[#allocation60_spill] sm:$0xff]  ;;  %v17714_v22 = vld [vmem:[#allocation26_spill] sm:$0xff]  ;;  %9991 = vmatprep.mubr.msk.f32.mxu0 %vm784_vm1, %v204_v46  ;;  %10567 = vmatprep.mubr.msk.f32.mxu1 %vm784_vm1, %v588_v56 }
 0x186   :  { %v7595_v10 = vadd.f32 %v12654_v23, %v7396_v40  ;;  %v7691_v24 = vadd.f32 %v12654_v23, %v7492_v5  ;;  %v17705_v19 = vmax.f32 %v17703_v31, %v17704_v63  ;;  %v17708_v12 = vmax.f32 %v17706_v34, %v17707_v43  ;;  %v17715_v61 = vld [vmem:[#allocation61_spill] sm:$0xff]  ;;  %v17718_v18 = vld [vmem:[#allocation88_spill] sm:$0xff]  ;;  %v10422_v5 = vpop.f32.mrf.mxu1  ;;  %v17720_v7 = vld [vmem:[#allocation90_spill] sm:$0xff] }
 0x187   :  { %v7598_v21 = vadd.f32 %v12654_v23, %v7399_v6  ;;  %v7694_v54 = vadd.f32 %v12654_v23, %v7495_v27  ;;  %7981 = vst.msk [vmem:[%s17241_s3 + $0x78] sm:$0xff] %vm7965_vm2, %v7788_v1  ;;  %8077 = vst.msk [vmem:[%s17241_s3 + $0x378] sm:$0xff] %vm7965_vm2, %v7884_v42  ;;  %v7209_v0 = vmax.f32 %v17709_v3, %v9843_v53  ;;  %v205_v6 = vld [vmem:[%s17239_s0 + $0x5f8] sm:$0xff]  ;;  %v17721_v11 = vld [vmem:[#allocation27_spill] sm:$0xff]  ;;  %v3619_v1 = vpop.f32.mrf.mxu0 }
 0x188   :  { %v7398_v48 = vmax.f32 %v17705_v19, %v7206_v9  ;;  %v7494_v32 = vmax.f32 %v17708_v12, %v7302_v41  ;;  %v7787_v52 = vmax.f32 %v7595_v10, 0.0  ;;  %v7883_v38 = vmax.f32 %v7691_v24, 0.0  ;;  %v17722_v27 = vld [vmem:[#allocation62_spill] sm:$0xff]  ;;  %v17724_v51 = vld [vmem:[#allocation28_spill] sm:$0xff]  ;;  %v17725_v41 = vld [vmem:[#allocation63_spill] sm:$0xff]  ;;  %v5539_v42 = vpop.f32.mrf.mxu1  ;;  %9992 = vmatmul.mubr.msk.f32.gmra.mxu0 %vm784_vm1, %v205_v6 }
 0x189   :  { %v7305_v17 = vmax.f32 %v17710_v39, %v10419_v20  ;;  %v7790_v55 = vmax.f32 %v7598_v21, 0.0  ;;  %v7886_v57 = vmax.f32 %v7694_v54, 0.0  ;;  %v17713_v60 = vmax.f32 %v17711_v50, %v17712_v33  ;;  %v589_v10 = vld [vmem:[%s17239_s0 + $0x11f8] sm:$0xff]  ;;  %v17728_v53 = vld [vmem:[#allocation64_spill] sm:$0xff]  ;;  %v17730_v54 = vld [vmem:[#allocation30_spill] sm:$0xff]  ;;  %v9849_v39 = vpop.f32.mrf.mxu0 }
 0x18a   :  { %v7597_v26 = vadd.f32 %v12654_v23, %v7398_v48  ;;  %v7693_v35 = vadd.f32 %v12654_v23, %v7494_v32  ;;  %7980 = vst.msk [vmem:[%s17241_s3 + $0x70] sm:$0xff] %vm7965_vm2, %v7787_v52  ;;  %8076 = vst.msk [vmem:[%s17241_s3 + $0x370] sm:$0xff] %vm7965_vm2, %v7883_v38  ;;  %v17716_v25 = vmax.f32 %v17714_v22, %v17715_v61  ;;  %v17727_v24 = vld [vmem:[#allocation29_spill] sm:$0xff]  ;;  %v17733_v48 = vld [vmem:[#allocation91_spill] sm:$0xff]  ;;  %10568 = vmatmul.mubr.msk.f32.gmra.mxu1 %vm784_vm1, %v589_v10 }
 0x18b   :  { %v7401_v59 = vmax.f32 %v17713_v60, %v7209_v0  ;;  %v7208_v40 = vmax.f32 %v17717_v47, %v3609_v4  ;;  %v7304_v29 = vmax.f32 %v17718_v18, %v5529_v36  ;;  %7983 = vst.msk [vmem:[%s17241_s3 + $0x88] sm:$0xff] %vm7965_vm2, %v7790_v55  ;;  %8079 = vst.msk [vmem:[%s17241_s3 + $0x388] sm:$0xff] %vm7965_vm2, %v7886_v57  ;;  %v17731_v31 = vld [vmem:[#allocation65_spill] sm:$0xff]  ;;  %v17734_v43 = vld [vmem:[#allocation92_spill] sm:$0xff]  ;;  %v3629_v47 = vpop.f32.mrf.mxu0 }
 0x18c   :  { %v7497_v28 = vmax.f32 %v17716_v25, %v7305_v17  ;;  %v7789_v16 = vmax.f32 %v7597_v26, 0.0  ;;  %v7885_v62 = vmax.f32 %v7693_v35, 0.0  ;;  %v7211_v44 = vmax.f32 %v17719_v2, %v9846_v30  ;;  %v206_v32 = vld [vmem:[%s17239_s0 + $0x600] sm:$0xff]  ;;  %v10425_v17 = vpop.f32.mrf.mxu1  ;;  %v17735_v37 = vld [vmem:[#allocation31_spill] sm:$0xff]  ;;  %v17738_v26 = vld [vmem:[#allocation32_spill] sm:$0xff] }
 0x18d   :  { %v7307_v45 = vmax.f32 %v17720_v7, %v10422_v5  ;;  %v7600_v58 = vadd.f32 %v12654_v23, %v7401_v59  ;;  %v17723_v14 = vmax.f32 %v17721_v11, %v17722_v27  ;;  %v17726_v15 = vmax.f32 %v17724_v51, %v17725_v41  ;;  %v590_v13 = vld [vmem:[%s17239_s0 + $0x1200] sm:$0xff]  ;;  %v17739_v35 = vld [vmem:[#allocation67_spill] sm:$0xff]  ;;  %v17741_v22 = vld [vmem:[#allocation93_spill] sm:$0xff]  ;;  %9994 = vmatprep.mubr.msk.f32.mxu0 %vm784_vm1, %v206_v32 }
 0x18e   :  { %v7696_v8 = vadd.f32 %v12654_v23, %v7497_v28  ;;  %7982 = vst.msk [vmem:[%s17241_s3 + $0x80] sm:$0xff] %vm7965_vm2, %v7789_v16  ;;  %8078 = vst.msk [vmem:[%s17241_s3 + $0x380] sm:$0xff] %vm7965_vm2, %v7885_v62  ;;  %v17729_v20 = vmax.f32 %v17727_v24, %v17728_v53  ;;  %v17732_v63 = vmax.f32 %v17730_v54, %v17731_v31  ;;  %v17736_v46 = vld [vmem:[#allocation66_spill] sm:$0xff]  ;;  %v207_v33 = vld [vmem:[%s17239_s0 + $0x608] sm:$0xff]  ;;  %10570 = vmatprep.mubr.msk.f32.mxu1 %vm784_vm1, %v590_v13 }
 0x18f   :  { %v7400_v9 = vmax.f32 %v17723_v14, %v7208_v40  ;;  %v7496_v49 = vmax.f32 %v17726_v15, %v7304_v29  ;;  %v7210_v34 = vmax.f32 %v17733_v48, %v3619_v1  ;;  %v7306_v12 = vmax.f32 %v17734_v43, %v5539_v42  ;;  %v17742_v25 = vld [vmem:[#allocation94_spill] sm:$0xff]  ;;  %v5549_v40 = vpop.f32.mrf.mxu1  ;;  %v591_v18 = vld [vmem:[%s17239_s0 + $0x1208] sm:$0xff]  ;;  %v208_v29 = vld [vmem:[%s17239_s0 + $0x610] sm:$0xff]  ;;  %v13226_v15 = vpop.f32.mrf.mxu0  ;;  %9995 = vmatmul.mubr.msk.f32.gmra.mxu0 %vm784_vm1, %v207_v33 }
 0x190   :  { %v7403_v21 = vmax.f32 %v17729_v20, %v7211_v44  ;;  %v7499_v19 = vmax.f32 %v17732_v63, %v7307_v45  ;;  %v7792_v52 = vmax.f32 %v7600_v58, 0.0  ;;  %v7888_v38 = vmax.f32 %v7696_v8, 0.0  ;;  %v592_v2 = vld [vmem:[%s17239_s0 + $0x1210] sm:$0xff]  ;;  %v17743_v44 = vld [vmem:[#allocation33_spill] sm:$0xff]  ;;  %v17746_v58 = vld [vmem:[#allocation34_spill] sm:$0xff]  ;;  %10571 = vmatmul.mubr.msk.f32.gmra.mxu1 %vm784_vm1, %v591_v18  ;;  %9997 = vmatprep.mubr.msk.f32.mxu0 %vm784_vm1, %v208_v29 }
 0x191   :  { %v7599_v3 = vadd.f32 %v12654_v23, %v7400_v9  ;;  %v7695_v0 = vadd.f32 %v12654_v23, %v7496_v49  ;;  %v17737_v55 = vmax.f32 %v17735_v37, %v17736_v46  ;;  %v17740_v56 = vmax.f32 %v17738_v26, %v17739_v35  ;;  %v17744_v7 = vld [vmem:[#allocation68_spill] sm:$0xff]  ;;  %v17747_v8 = vld [vmem:[#allocation69_spill] sm:$0xff]  ;;  %v17749_v14 = vld [vmem:[#allocation95_spill] sm:$0xff]  ;;  %v13229_v49 = vpop.f32.mrf.mxu1  ;;  %v13252_v43 = vpop.f32.mrf.mxu0  ;;  %10573 = vmatprep.mubr.msk.f32.mxu1 %vm784_vm1, %v592_v2 }
 0x192   :  { %v7602_v4 = vadd.f32 %v12654_v23, %v7403_v21  ;;  %v7698_v36 = vadd.f32 %v12654_v23, %v7499_v19  ;;  %7985 = vst.msk [vmem:[%s17241_s3 + $0x98] sm:$0xff] %vm7965_vm2, %v7792_v52  ;;  %8081 = vst.msk [vmem:[%s17241_s3 + $0x398] sm:$0xff] %vm7965_vm2, %v7888_v38  ;;  %v7213_v61 = vmax.f32 %v17741_v22, %v9849_v39  ;;  %v17750_v51 = vld [vmem:[#allocation96_spill] sm:$0xff]  ;;  %v209_v10 = vld [vmem:[%s17239_s0 + $0x618] sm:$0xff] }
 0x193   :  { %v7402_v57 = vmax.f32 %v17737_v55, %v7210_v34  ;;  %v7498_v50 = vmax.f32 %v17740_v56, %v7306_v12  ;;  %v7791_v60 = vmax.f32 %v7599_v3, 0.0  ;;  %v7887_v59 = vmax.f32 %v7695_v0, 0.0  ;;  %v17751_v20 = vld [vmem:[#allocation35_spill] sm:$0xff]  ;;  %v17752_v21 = vld [vmem:[#allocation70_spill] sm:$0xff]  ;;  %v17754_v63 = vld [vmem:[#allocation36_spill] sm:$0xff]  ;;  %v13254_v12 = vpop.f32.mrf.mxu1  ;;  %9998 = vmatmul.mubr.msk.f32.gmra.mxu0 %vm784_vm1, %v209_v10 }
 0x194   :  { %v7309_v28 = vmax.f32 %v17742_v25, %v10425_v17  ;;  %v7794_v30 = vmax.f32 %v7602_v4, 0.0  ;;  %v7890_v5 = vmax.f32 %v7698_v36, 0.0  ;;  %v17745_v45 = vmax.f32 %v17743_v44, %v17744_v7  ;;  %v17755_v19 = vld [vmem:[#allocation71_spill] sm:$0xff]  ;;  %v593_v32 = vld [vmem:[%s17239_s0 + $0x1218] sm:$0xff]  ;;  %v210_v13 = vld [vmem:[%s17239_s0 + $0x620] sm:$0xff]  ;;  %v13276_v17 = vpop.f32.mrf.mxu0 }
 0x195   :  { %v7601_v16 = vadd.f32 %v12654_v23, %v7402_v57  ;;  %v7697_v62 = vadd.f32 %v12654_v23, %v7498_v50  ;;  %7984 = vst.msk [vmem:[%s17241_s3 + $0x90] sm:$0xff] %vm7965_vm2, %v7791_v60  ;;  %8080 = vst.msk [vmem:[%s17241_s3 + $0x390] sm:$0xff] %vm7965_vm2, %v7887_v59  ;;  %v17748_v11 = vmax.f32 %v17746_v58, %v17747_v8  ;;  %v594_v52 = vld [vmem:[%s17239_s0 + $0x1220] sm:$0xff]  ;;  %v13279_v4 = vpop.f32.mrf.mxu1  ;;  %10574 = vmatmul.mubr.msk.f32.gmra.mxu1 %vm784_vm1, %v593_v32  ;;  %v211_v36 = vld [vmem:[%s17239_s0 + $0x628] sm:$0xff] }
 0x196   :  { %v7405_v6 = vmax.f32 %v17745_v45, %v7213_v61  ;;  %v7212_v9 = vmax.f32 %v17749_v14, %v3629_v47  ;;  %v7308_v41 = vmax.f32 %v17750_v51, %v5549_v40  ;;  %7987 = vst.msk [vmem:[%s17241_s3 + $0xa8] sm:$0xff] %vm7965_vm2, %v7794_v30  ;;  %8083 = vst.msk [vmem:[%s17241_s3 + $0x3a8] sm:$0xff] %vm7965_vm2, %v7890_v5  ;;  %10000 = vmatprep.mubr.msk.f32.mxu0 %vm784_vm1, %v210_v13  ;;  %v13294_v46 = vpop.f32.mrf.mxu0  ;;  %v595_v57 = vld [vmem:[%s17239_s0 + $0x1228] sm:$0xff]  ;;  %v212_v26 = vld [vmem:[%s17239_s0 + $0x630] sm:$0xff] }
 0x197   :  { %v7501_v27 = vmax.f32 %v17748_v11, %v7309_v28  ;;  %v7793_v1 = vmax.f32 %v7601_v16, 0.0  ;;  %v7889_v42 = vmax.f32 %v7697_v62, 0.0  ;;  %v17753_v54 = vmax.f32 %v17751_v20, %v17752_v21  ;;  %17757 = vst [vmem:[#allocation2_spill] sm:$0xff] %v13279_v4  ;;  %v13296_v55 = vpop.f32.mrf.mxu1  ;;  %10576 = vmatprep.mubr.msk.f32.mxu1 %vm784_vm1, %v594_v52  ;;  %v596_v35 = vld [vmem:[%s17239_s0 + $0x1230] sm:$0xff]  ;;  %10001 = vmatmul.mubr.msk.f32.gmra.mxu0 %vm784_vm1, %v211_v36  ;;  %v213_v33 = vld [vmem:[%s17239_s0 + $0x638] sm:$0xff]  ;;  %v214_v61 = vld [vmem:[%s17239_s0 + $0x640] sm:$0xff] }
 0x198   :  { %v7604_v24 = vadd.f32 %v12654_v23, %v7405_v6  ;;  %v17756_v48 = vmax.f32 %v17754_v63, %v17755_v19  ;;  %v13316_v56 = vpop.f32.mrf.mxu0  ;;  %10003 = vmatprep.mubr.msk.f32.mxu0 %vm784_vm1, %v212_v26  ;;  %v597_v22 = vld [vmem:[%s17239_s0 + $0x1238] sm:$0xff]  ;;  %v598_v25 = vld [vmem:[%s17239_s0 + $0x1240] sm:$0xff]  ;;  %v215_v40 = vld [vmem:[%s17239_s0 + $0x648] sm:$0xff] }
 0x199   :  { %v7700_v53 = vadd.f32 %v12654_v23, %v7501_v27  ;;  %v7404_v31 = vmax.f32 %v17753_v54, %v7212_v9  ;;  %7986 = vst.msk [vmem:[%s17241_s3 + $0xa0] sm:$0xff] %vm7965_vm2, %v7793_v1  ;;  %8082 = vst.msk [vmem:[%s17241_s3 + $0x3a0] sm:$0xff] %vm7965_vm2, %v7889_v42  ;;  %v13319_v50 = vpop.f32.mrf.mxu1  ;;  %10577 = vmatmul.mubr.msk.f32.gmra.mxu1 %vm784_vm1, %v595_v57  ;;  %v599_v30 = vld [vmem:[%s17239_s0 + $0x1248] sm:$0xff]  ;;  %v216_v5 = vld [vmem:[%s17239_s0 + $0x650] sm:$0xff] }
 0x19a   :  { %v7500_v34 = vmax.f32 %v17756_v48, %v7308_v41  ;;  %v7796_v38 = vmax.f32 %v7604_v24, 0.0  ;;  %17758 = vst [vmem:[#allocation37_spill] sm:$0xff] %v13319_v50  ;;  %v13326_v60 = vpop.f32.mrf.mxu0  ;;  %10579 = vmatprep.mubr.msk.f32.mxu1 %vm784_vm1, %v596_v35  ;;  %v600_v16 = vld [vmem:[%s17239_s0 + $0x1250] sm:$0xff]  ;;  %v217_v44 = vld [vmem:[%s17239_s0 + $0x658] sm:$0xff]  ;;  %v218_v58 = vld [vmem:[%s17239_s0 + $0x660] sm:$0xff] }
 0x19b   :  { %v7892_v3 = vmax.f32 %v7700_v53, 0.0  ;;  %v7603_v0 = vadd.f32 %v12654_v23, %v7404_v31  ;;  %v13328_v59 = vpop.f32.mrf.mxu1  ;;  %10004 = vmatmul.mubr.msk.f32.gmra.mxu0 %vm784_vm1, %v213_v33  ;;  %v601_v6 = vld [vmem:[%s17239_s0 + $0x1258] sm:$0xff]  ;;  %v602_v8 = vld [vmem:[%s17239_s0 + $0x1260] sm:$0xff]  ;;  %v219_v14 = vld [vmem:[%s17239_s0 + $0x668] sm:$0xff] }
 0x19c   :  { %v7699_v39 = vadd.f32 %v12654_v23, %v7500_v34  ;;  %7989 = vst.msk [vmem:[%s17241_s3 + $0xb8] sm:$0xff] %vm7965_vm2, %v7796_v38  ;;  %v13340_v28 = vpop.f32.mrf.mxu0  ;;  %10006 = vmatprep.mubr.msk.f32.mxu0 %vm784_vm1, %v214_v61  ;;  %v603_v41 = vld [vmem:[%s17239_s0 + $0x1268] sm:$0xff]  ;;  %v220_v1 = vld [vmem:[%s17239_s0 + $0x670] sm:$0xff]  ;;  %v221_v53 = vld [vmem:[%s17239_s0 + $0x678] sm:$0xff] }
 0x19d   :  { %8085 = vst.msk [vmem:[%s17241_s3 + $0x3b8] sm:$0xff] %vm7965_vm2, %v7892_v3  ;;  %v7795_v23 = vmax.f32 %v7603_v0, 0.0  ;;  %v13343_v47 = vpop.f32.mrf.mxu1  ;;  %10580 = vmatmul.mubr.msk.f32.gmra.mxu1 %vm784_vm1, %v597_v22  ;;  %v604_v42 = vld [vmem:[%s17239_s0 + $0x1270] sm:$0xff]  ;;  %v605_v54 = vld [vmem:[%s17239_s0 + $0x1278] sm:$0xff]  ;;  %v222_v31 = vld [vmem:[%s17239_s0 + $0x680] sm:$0xff] }
 0x19e   :  { %v7891_v37 = vmax.f32 %v7699_v39, 0.0  ;;  %17759 = vst [vmem:[#allocation3_spill] sm:$0xff] %v13343_v47  ;;  %v13350_v18 = vpop.f32.mrf.mxu0  ;;  %10582 = vmatprep.mubr.msk.f32.mxu1 %vm784_vm1, %v598_v25  ;;  %v606_v63 = vld [vmem:[%s17239_s0 + $0x1280] sm:$0xff]  ;;  %v223_v34 = vld [vmem:[%s17239_s0 + $0x688] sm:$0xff]  ;;  %v224_v38 = vld [vmem:[%s17239_s0 + $0x690] sm:$0xff] }
 0x19f   :  { %7988 = vst.msk [vmem:[%s17241_s3 + $0xb0] sm:$0xff] %vm7965_vm2, %v7795_v23  ;;  %v13352_v29 = vpop.f32.mrf.mxu1  ;;  %10007 = vmatmul.mubr.msk.f32.gmra.mxu0 %vm784_vm1, %v215_v40  ;;  %v607_v52 = vld [vmem:[%s17239_s0 + $0x1288] sm:$0xff]  ;;  %v608_v3 = vld [vmem:[%s17239_s0 + $0x1290] sm:$0xff]  ;;  %v225_v36 = vld [vmem:[%s17239_s0 + $0x698] sm:$0xff] }
 0x1a0   :  { %8084 = vst.msk [vmem:[%s17241_s3 + $0x3b0] sm:$0xff] %vm7965_vm2, %v7891_v37  ;;  %v13364_v62 = vpop.f32.mrf.mxu0  ;;  %10009 = vmatprep.mubr.msk.f32.mxu0 %vm784_vm1, %v216_v5  ;;  %v609_v57 = vld [vmem:[%s17239_s0 + $0x1298] sm:$0xff]  ;;  %v226_v26 = vld [vmem:[%s17239_s0 + $0x6a0] sm:$0xff]  ;;  %v227_v61 = vld [vmem:[%s17239_s0 + $0x6a8] sm:$0xff] }
 0x1a1   :  { %v13367_v2 = vpop.f32.mrf.mxu1  ;;  %10583 = vmatmul.mubr.msk.f32.gmra.mxu1 %vm784_vm1, %v599_v30  ;;  %v610_v35 = vld [vmem:[%s17239_s0 + $0x12a0] sm:$0xff]  ;;  %v611_v30 = vld [vmem:[%s17239_s0 + $0x12a8] sm:$0xff]  ;;  %v228_v5 = vld [vmem:[%s17239_s0 + $0x6b0] sm:$0xff] }
 0x1a2   :  { %17760 = vst [vmem:[#allocation38_spill] sm:$0xff] %v13367_v2  ;;  %v13374_v7 = vpop.f32.mrf.mxu0  ;;  %10585 = vmatprep.mubr.msk.f32.mxu1 %vm784_vm1, %v600_v16  ;;  %v612_v16 = vld [vmem:[%s17239_s0 + $0x12b0] sm:$0xff]  ;;  %v239_v4 = vld [vmem:[%s17239_s0 + $0x708] sm:$0xff]  ;;  %v626_v47 = vld [vmem:[%s17239_s0 + $0x1320] sm:$0xff] }
 0x1a3   :  { %v13376_v45 = vpop.f32.mrf.mxu1  ;;  %10010 = vmatmul.mubr.msk.f32.gmra.mxu0 %vm784_vm1, %v217_v44  ;;  %v624_v50 = vld [vmem:[%s17239_s0 + $0x1310] sm:$0xff] }
 0x1a4   :  { %v13388_v11 = vpop.f32.mrf.mxu0  ;;  %10012 = vmatprep.mubr.msk.f32.mxu0 %vm784_vm1, %v218_v58  ;;  %v229_v58 = vld [vmem:[%s17239_s0 + $0x6b8] sm:$0xff]  ;;  %v628_v2 = vld [vmem:[%s17239_s0 + $0x1330] sm:$0xff] }
 0x1a5   :  { %v13391_v27 = vpop.f32.mrf.mxu1  ;;  %10586 = vmatmul.mubr.msk.f32.gmra.mxu1 %vm784_vm1, %v601_v6 }
 0x1a6   :  { %17761 = vst [vmem:[#allocation4_spill] sm:$0xff] %v13391_v27  ;;  %v13398_v9 = vpop.f32.mrf.mxu0  ;;  %10588 = vmatprep.mubr.msk.f32.mxu1 %vm784_vm1, %v602_v8  ;;  %v630_v27 = vld [vmem:[%s17239_s0 + $0x1340] sm:$0xff] }
 0x1a7   :  { %17762 = vst [vmem:[#allocation39_spill] sm:$0xff] %v13398_v9  ;;  %v13400_v51 = vpop.f32.mrf.mxu1  ;;  %10013 = vmatmul.mubr.msk.f32.gmra.mxu0 %vm784_vm1, %v219_v14 }
 0x1a8   :  { %17763 = vst [vmem:[#allocation5_spill] sm:$0xff] %v13400_v51  ;;  %v13412_v10 = vpop.f32.mrf.mxu0  ;;  %10015 = vmatprep.mubr.msk.f32.mxu0 %vm784_vm1, %v220_v1  ;;  %v230_v1 = vld [vmem:[%s17239_s0 + $0x6c0] sm:$0xff] }
 0x1a9   :  { %17764 = vst [vmem:[#allocation40_spill] sm:$0xff] %v13412_v10  ;;  %v13415_v24 = vpop.f32.mrf.mxu1  ;;  %10589 = vmatmul.mubr.msk.f32.gmra.mxu1 %vm784_vm1, %v603_v41  ;;  %v613_v41 = vld [vmem:[%s17239_s0 + $0x12b8] sm:$0xff] }
 0x1aa   :  { %17765 = vst [vmem:[#allocation6_spill] sm:$0xff] %v13415_v24  ;;  %v13422_v20 = vpop.f32.mrf.mxu0  ;;  %10591 = vmatprep.mubr.msk.f32.mxu1 %vm784_vm1, %v604_v42  ;;  %v614_v42 = vld [vmem:[%s17239_s0 + $0x12c0] sm:$0xff]  ;;  %v632_v24 = vld [vmem:[%s17239_s0 + $0x1350] sm:$0xff] }
 0x1ab   :  { %17766 = vst [vmem:[#allocation41_spill] sm:$0xff] %v13422_v20  ;;  %v13424_v21 = vpop.f32.mrf.mxu1  ;;  %10016 = vmatmul.mubr.msk.f32.gmra.mxu0 %vm784_vm1, %v221_v53 }
 0x1ac   :  { %17767 = vst [vmem:[#allocation7_spill] sm:$0xff] %v13424_v21  ;;  %v13436_v19 = vpop.f32.mrf.mxu0  ;;  %10018 = vmatprep.mubr.msk.f32.mxu0 %vm784_vm1, %v222_v31  ;;  %v231_v31 = vld [vmem:[%s17239_s0 + $0x6c8] sm:$0xff] }
 0x1ad   :  { %17768 = vst [vmem:[#allocation42_spill] sm:$0xff] %v13436_v19  ;;  %v13439_v48 = vpop.f32.mrf.mxu1  ;;  %10592 = vmatmul.mubr.msk.f32.gmra.mxu1 %vm784_vm1, %v605_v54 }
 0x1ae   :  { %17769 = vst [vmem:[#allocation8_spill] sm:$0xff] %v13439_v48  ;;  %v13446_v32 = vpop.f32.mrf.mxu0  ;;  %10594 = vmatprep.mubr.msk.f32.mxu1 %vm784_vm1, %v606_v63  ;;  %v634_v48 = vld [vmem:[%s17239_s0 + $0x1360] sm:$0xff] }
 0x1af   :  { %17770 = vst [vmem:[#allocation43_spill] sm:$0xff] %v13446_v32  ;;  %v13448_v13 = vpop.f32.mrf.mxu1  ;;  %10019 = vmatmul.mubr.msk.f32.gmra.mxu0 %vm784_vm1, %v223_v34 }
 0x1b0   :  { %17771 = vst [vmem:[#allocation9_spill] sm:$0xff] %v13448_v13  ;;  %v13460_v0 = vpop.f32.mrf.mxu0  ;;  %10021 = vmatprep.mubr.msk.f32.mxu0 %vm784_vm1, %v224_v38  ;;  %v232_v38 = vld [vmem:[%s17239_s0 + $0x6d0] sm:$0xff] }
 0x1b1   :  { %17772 = vst [vmem:[#allocation44_spill] sm:$0xff] %v13460_v0  ;;  %v13463_v39 = vpop.f32.mrf.mxu1  ;;  %10595 = vmatmul.mubr.msk.f32.gmra.mxu1 %vm784_vm1, %v607_v52  ;;  %v615_v52 = vld [vmem:[%s17239_s0 + $0x12c8] sm:$0xff] }
 0x1b2   :  { %17773 = vst [vmem:[#allocation10_spill] sm:$0xff] %v13463_v39  ;;  %v13470_v23 = vpop.f32.mrf.mxu0  ;;  %10597 = vmatprep.mubr.msk.f32.mxu1 %vm784_vm1, %v608_v3  ;;  %v616_v3 = vld [vmem:[%s17239_s0 + $0x12d0] sm:$0xff] }
 0x1b3   :  { %17774 = vst [vmem:[#allocation45_spill] sm:$0xff] %v13470_v23  ;;  %v13472_v37 = vpop.f32.mrf.mxu1  ;;  %10022 = vmatmul.mubr.msk.f32.gmra.mxu0 %vm784_vm1, %v225_v36  ;;  %v636_v39 = vld [vmem:[%s17239_s0 + $0x1370] sm:$0xff] }
 0x1b4   :  { %17775 = vst [vmem:[#allocation72_spill] sm:$0xff] %v13472_v37  ;;  %v13484_v33 = vpop.f32.mrf.mxu0  ;;  %10024 = vmatprep.mubr.msk.f32.mxu0 %vm784_vm1, %v226_v26 }
 0x1b5   :  { %17776 = vst [vmem:[#allocation73_spill] sm:$0xff] %v13484_v33  ;;  %v13487_v22 = vpop.f32.mrf.mxu1  ;;  %10598 = vmatmul.mubr.msk.f32.gmra.mxu1 %vm784_vm1, %v609_v57 }
 0x1b6   :  { %17777 = vst [vmem:[#allocation74_spill] sm:$0xff] %v13487_v22  ;;  %v13494_v25 = vpop.f32.mrf.mxu0  ;;  %10600 = vmatprep.mubr.msk.f32.mxu1 %vm784_vm1, %v610_v35  ;;  %v638_v22 = vld [vmem:[%s17239_s0 + $0x1380] sm:$0xff] }
 0x1b7   :  { %17778 = vst [vmem:[#allocation11_spill] sm:$0xff] %v13494_v25  ;;  %v13496_v40 = vpop.f32.mrf.mxu1  ;;  %10025 = vmatmul.mubr.msk.f32.gmra.mxu0 %vm784_vm1, %v227_v61  ;;  %v233_v61 = vld [vmem:[%s17239_s0 + $0x6d8] sm:$0xff] }
 0x1b8   :  { %17779 = vst [vmem:[#allocation46_spill] sm:$0xff] %v13496_v40  ;;  %v13508_v44 = vpop.f32.mrf.mxu0  ;;  %10027 = vmatprep.mubr.msk.f32.mxu0 %vm784_vm1, %v228_v5 }
 0x1b9   :  { %17780 = vst [vmem:[#allocation12_spill] sm:$0xff] %v13508_v44  ;;  %v13511_v6 = vpop.f32.mrf.mxu1  ;;  %10601 = vmatmul.mubr.msk.f32.gmra.mxu1 %vm784_vm1, %v611_v30 }
 0x1ba   :  { %17781 = vst [vmem:[#allocation47_spill] sm:$0xff] %v13511_v6  ;;  %v13518_v8 = vpop.f32.mrf.mxu0  ;;  %10603 = vmatprep.mubr.msk.f32.mxu1 %vm784_vm1, %v612_v16  ;;  %v617_v16 = vld [vmem:[%s17239_s0 + $0x12d8] sm:$0xff]  ;;  %v640_v6 = vld [vmem:[%s17239_s0 + $0x1390] sm:$0xff] }
 0x1bb   :  { %17782 = vst [vmem:[#allocation13_spill] sm:$0xff] %v13518_v8  ;;  %v13520_v14 = vpop.f32.mrf.mxu1  ;;  %10028 = vmatmul.mubr.msk.f32.gmra.mxu0 %vm784_vm1, %v229_v58  ;;  %v234_v58 = vld [vmem:[%s17239_s0 + $0x6e0] sm:$0xff] }
 0x1bc   :  { %17783 = vst [vmem:[#allocation48_spill] sm:$0xff] %v13520_v14  ;;  %v13532_v53 = vpop.f32.mrf.mxu0  ;;  %10030 = vmatprep.mubr.msk.f32.mxu0 %vm784_vm1, %v230_v1  ;;  %v235_v1 = vld [vmem:[%s17239_s0 + $0x6e8] sm:$0xff] }
 0x1bd   :  { %17784 = vst [vmem:[#allocation14_spill] sm:$0xff] %v13532_v53  ;;  %v13535_v54 = vpop.f32.mrf.mxu1  ;;  %10604 = vmatmul.mubr.msk.f32.gmra.mxu1 %vm784_vm1, %v613_v41 }
 0x1be   :  { %17785 = vst [vmem:[#allocation49_spill] sm:$0xff] %v13535_v54  ;;  %v13542_v63 = vpop.f32.mrf.mxu0  ;;  %10606 = vmatprep.mubr.msk.f32.mxu1 %vm784_vm1, %v614_v42  ;;  %v618_v42 = vld [vmem:[%s17239_s0 + $0x12e0] sm:$0xff] }
 0x1bf   :  { %17786 = vst [vmem:[#allocation75_spill] sm:$0xff] %v13542_v63  ;;  %v13544_v34 = vpop.f32.mrf.mxu1  ;;  %10031 = vmatmul.mubr.msk.f32.gmra.mxu0 %vm784_vm1, %v231_v31 }
 0x1c0   :  { %17787 = vst [vmem:[#allocation76_spill] sm:$0xff] %v13544_v34  ;;  %v13556_v36 = vpop.f32.mrf.mxu0  ;;  %10033 = vmatprep.mubr.msk.f32.mxu0 %vm784_vm1, %v232_v38  ;;  %v620_v38 = vld [vmem:[%s17239_s0 + $0x12f0] sm:$0xff] }
 0x1c1   :  { %v13559_v57 = vpop.f32.mrf.mxu1  ;;  %10607 = vmatmul.mubr.msk.f32.gmra.mxu1 %vm784_vm1, %v615_v52 }
 0x1c2   :  { %v13570_v30 = vpop.f32.mrf.mxu0  ;;  %10609 = vmatprep.mubr.msk.f32.mxu1 %vm784_vm1, %v616_v3  ;;  %v237_v3 = vld [vmem:[%s17239_s0 + $0x6f8] sm:$0xff] }
 0x1c3   :  { %v13572_v5 = vpop.f32.mrf.mxu1  ;;  %10034 = vmatmul.mubr.msk.f32.gmra.mxu0 %vm784_vm1, %v233_v61  ;;  %v619_v61 = vld [vmem:[%s17239_s0 + $0x12e8] sm:$0xff] }
 0x1c4   :  { %v13588_v31 = vpop.f32.mrf.mxu0  ;;  %10036 = vmatprep.mubr.msk.f32.mxu0 %vm784_vm1, %v234_v58 }
 0x1c5   :  { %v13591_v52 = vpop.f32.mrf.mxu1  ;;  %10610 = vmatmul.mubr.msk.f32.gmra.mxu1 %vm784_vm1, %v617_v16  ;;  %v236_v16 = vld [vmem:[%s17239_s0 + $0x6f0] sm:$0xff] }
 0x1c6   :  { %17788 = vst [vmem:[#allocation15_spill] sm:$0xff] %v13591_v52  ;;  %v13602_v41 = vpop.f32.mrf.mxu0  ;;  %10612 = vmatprep.mubr.msk.f32.mxu1 %vm784_vm1, %v618_v42  ;;  %v622_v52 = vld [vmem:[%s17239_s0 + $0x1300] sm:$0xff] }
 0x1c7   :  { %v13604_v35 = vpop.f32.mrf.mxu1  ;;  %10037 = vmatmul.mubr.msk.f32.gmra.mxu0 %vm784_vm1, %v235_v1  ;;  %v621_v1 = vld [vmem:[%s17239_s0 + $0x12f8] sm:$0xff] }
 0x1c8   :  { %17789 = vst [vmem:[#allocation50_spill] sm:$0xff] %v13604_v35  ;;  %v13620_v26 = vpop.f32.mrf.mxu0  ;;  %10039 = vmatprep.mubr.msk.f32.mxu0 %vm784_vm1, %v236_v16 }
 0x1c9   :  { %17790 = vst [vmem:[#allocation16_spill] sm:$0xff] %v13620_v26  ;;  %v13623_v42 = vpop.f32.mrf.mxu1  ;;  %10613 = vmatmul.mubr.msk.f32.gmra.mxu1 %vm784_vm1, %v619_v61  ;;  %v238_v61 = vld [vmem:[%s17239_s0 + $0x700] sm:$0xff]  ;;  %v241_v26 = vld [vmem:[%s17239_s0 + $0x718] sm:$0xff] }
 0x1ca   :  { %17791 = vst [vmem:[#allocation51_spill] sm:$0xff] %v13623_v42  ;;  %v13634_v58 = vpop.f32.mrf.mxu0  ;;  %10615 = vmatprep.mubr.msk.f32.mxu1 %vm784_vm1, %v620_v38 }
 0x1cb   :  { %v13636_v35 = vpop.f32.mrf.mxu1  ;;  %10040 = vmatmul.mubr.msk.f32.gmra.mxu0 %vm784_vm1, %v237_v3  ;;  %v623_v3 = vld [vmem:[%s17239_s0 + $0x1308] sm:$0xff] }
 0x1cc   :  { %17792 = vst [vmem:[#allocation77_spill] sm:$0xff] %v13636_v35  ;;  %v13652_v42 = vpop.f32.mrf.mxu0  ;;  %10042 = vmatprep.mubr.msk.f32.mxu0 %vm784_vm1, %v238_v61 }
 0x1cd   :  { %17793 = vst [vmem:[#allocation78_spill] sm:$0xff] %v13652_v42  ;;  %v13655_v38 = vpop.f32.mrf.mxu1  ;;  %10616 = vmatmul.mubr.msk.f32.gmra.mxu1 %vm784_vm1, %v621_v1  ;;  %v240_v1 = vld [vmem:[%s17239_s0 + $0x710] sm:$0xff]  ;;  %v243_v42 = vld [vmem:[%s17239_s0 + $0x728] sm:$0xff] }
 0x1ce   :  { %17794 = vst [vmem:[#allocation17_spill] sm:$0xff] %v13655_v38  ;;  %v13666_v16 = vpop.f32.mrf.mxu0  ;;  %10618 = vmatprep.mubr.msk.f32.mxu1 %vm784_vm1, %v622_v52 }
 0x1cf   :  { %v13668_v35 = vpop.f32.mrf.mxu1  ;;  %10043 = vmatmul.mubr.msk.f32.gmra.mxu0 %vm784_vm1, %v239_v4  ;;  %v625_v4 = vld [vmem:[%s17239_s0 + $0x1318] sm:$0xff] }
 0x1d0   :  { %17795 = vst [vmem:[#allocation52_spill] sm:$0xff] %v13668_v35  ;;  %v13684_v38 = vpop.f32.mrf.mxu0  ;;  %10045 = vmatprep.mubr.msk.f32.mxu0 %vm784_vm1, %v240_v1 }
 0x1d1   :  { %17796 = vst [vmem:[#allocation18_spill] sm:$0xff] %v13684_v38  ;;  %v13687_v52 = vpop.f32.mrf.mxu1  ;;  %10619 = vmatmul.mubr.msk.f32.gmra.mxu1 %vm784_vm1, %v623_v3  ;;  %v242_v3 = vld [vmem:[%s17239_s0 + $0x720] sm:$0xff]  ;;  %v245_v38 = vld [vmem:[%s17239_s0 + $0x738] sm:$0xff] }
 0x1d2   :  { %17797 = vst [vmem:[#allocation53_spill] sm:$0xff] %v13687_v52  ;;  %v13698_v61 = vpop.f32.mrf.mxu0  ;;  %10621 = vmatprep.mubr.msk.f32.mxu1 %vm784_vm1, %v624_v50 }
 0x1d3   :  { %v13700_v35 = vpop.f32.mrf.mxu1  ;;  %10046 = vmatmul.mubr.msk.f32.gmra.mxu0 %vm784_vm1, %v241_v26  ;;  %v627_v26 = vld [vmem:[%s17239_s0 + $0x1328] sm:$0xff] }
 0x1d4   :  { %17798 = vst [vmem:[#allocation79_spill] sm:$0xff] %v13700_v35  ;;  %v13716_v52 = vpop.f32.mrf.mxu0  ;;  %10048 = vmatprep.mubr.msk.f32.mxu0 %vm784_vm1, %v242_v3 }
 0x1d5   :  { %17799 = vst [vmem:[#allocation80_spill] sm:$0xff] %v13716_v52  ;;  %v13719_v50 = vpop.f32.mrf.mxu1  ;;  %10622 = vmatmul.mubr.msk.f32.gmra.mxu1 %vm784_vm1, %v625_v4  ;;  %v244_v4 = vld [vmem:[%s17239_s0 + $0x730] sm:$0xff]  ;;  %v247_v52 = vld [vmem:[%s17239_s0 + $0x748] sm:$0xff] }
 0x1d6   :  { %17800 = vst [vmem:[#allocation81_spill] sm:$0xff] %v13719_v50  ;;  %v13730_v1 = vpop.f32.mrf.mxu0  ;;  %10624 = vmatprep.mubr.msk.f32.mxu1 %vm784_vm1, %v626_v47 }
 0x1d7   :  { %17801 = vst [vmem:[#allocation82_spill] sm:$0xff] %v13730_v1  ;;  %v13732_v35 = vpop.f32.mrf.mxu1  ;;  %10049 = vmatmul.mubr.msk.f32.gmra.mxu0 %vm784_vm1, %v243_v42  ;;  %v629_v42 = vld [vmem:[%s17239_s0 + $0x1338] sm:$0xff]  ;;  %v666_v1 = vld [vmem:[%s17239_s0 + $0x1460] sm:$0xff] }
 0x1d8   :  { %17802 = vst [vmem:[#allocation19_spill] sm:$0xff] %v13732_v35  ;;  %v13748_v50 = vpop.f32.mrf.mxu0  ;;  %10051 = vmatprep.mubr.msk.f32.mxu0 %vm784_vm1, %v244_v4 }
 0x1d9   :  { %17803 = vst [vmem:[#allocation54_spill] sm:$0xff] %v13748_v50  ;;  %v13751_v47 = vpop.f32.mrf.mxu1  ;;  %10625 = vmatmul.mubr.msk.f32.gmra.mxu1 %vm784_vm1, %v627_v26  ;;  %v246_v26 = vld [vmem:[%s17239_s0 + $0x740] sm:$0xff]  ;;  %v249_v50 = vld [vmem:[%s17239_s0 + $0x758] sm:$0xff] }
 0x1da   :  { %17804 = vst [vmem:[#allocation20_spill] sm:$0xff] %v13751_v47  ;;  %v13762_v3 = vpop.f32.mrf.mxu0  ;;  %10627 = vmatprep.mubr.msk.f32.mxu1 %vm784_vm1, %v628_v2 }
 0x1db   :  { %17805 = vst [vmem:[#allocation55_spill] sm:$0xff] %v13762_v3  ;;  %v13764_v35 = vpop.f32.mrf.mxu1  ;;  %10052 = vmatmul.mubr.msk.f32.gmra.mxu0 %vm784_vm1, %v245_v38  ;;  %v631_v38 = vld [vmem:[%s17239_s0 + $0x1348] sm:$0xff] }
 0x1dc   :  { %17806 = vst [vmem:[#allocation21_spill] sm:$0xff] %v13764_v35  ;;  %v13780_v47 = vpop.f32.mrf.mxu0  ;;  %10054 = vmatprep.mubr.msk.f32.mxu0 %vm784_vm1, %v246_v26 }
 0x1dd   :  { %17807 = vst [vmem:[#allocation56_spill] sm:$0xff] %v13780_v47  ;;  %v13783_v2 = vpop.f32.mrf.mxu1  ;;  %10628 = vmatmul.mubr.msk.f32.gmra.mxu1 %vm784_vm1, %v629_v42  ;;  %v248_v42 = vld [vmem:[%s17239_s0 + $0x750] sm:$0xff]  ;;  %v251_v47 = vld [vmem:[%s17239_s0 + $0x768] sm:$0xff] }
 0x1de   :  { %17808 = vst [vmem:[#allocation22_spill] sm:$0xff] %v13783_v2  ;;  %v13794_v4 = vpop.f32.mrf.mxu0  ;;  %10630 = vmatprep.mubr.msk.f32.mxu1 %vm784_vm1, %v630_v27 }
 0x1df   :  { %17809 = vst [vmem:[#allocation57_spill] sm:$0xff] %v13794_v4  ;;  %v13796_v35 = vpop.f32.mrf.mxu1  ;;  %10055 = vmatmul.mubr.msk.f32.gmra.mxu0 %vm784_vm1, %v247_v52  ;;  %v633_v52 = vld [vmem:[%s17239_s0 + $0x1358] sm:$0xff] }
 0x1e0   :  { %17810 = vst [vmem:[#allocation83_spill] sm:$0xff] %v13796_v35  ;;  %v13812_v2 = vpop.f32.mrf.mxu0  ;;  %10057 = vmatprep.mubr.msk.f32.mxu0 %vm784_vm1, %v248_v42 }
 0x1e1   :  { %17811 = vst [vmem:[#allocation84_spill] sm:$0xff] %v13812_v2  ;;  %v13815_v27 = vpop.f32.mrf.mxu1  ;;  %10631 = vmatmul.mubr.msk.f32.gmra.mxu1 %vm784_vm1, %v631_v38  ;;  %v250_v38 = vld [vmem:[%s17239_s0 + $0x760] sm:$0xff]  ;;  %v253_v2 = vld [vmem:[%s17239_s0 + $0x778] sm:$0xff] }
 0x1e2   :  { %17812 = vst [vmem:[#allocation23_spill] sm:$0xff] %v13815_v27  ;;  %v13826_v26 = vpop.f32.mrf.mxu0  ;;  %10633 = vmatprep.mubr.msk.f32.mxu1 %vm784_vm1, %v632_v24 }
 0x1e3   :  { %17813 = vst [vmem:[#allocation58_spill] sm:$0xff] %v13826_v26  ;;  %v13828_v35 = vpop.f32.mrf.mxu1  ;;  %10058 = vmatmul.mubr.msk.f32.gmra.mxu0 %vm784_vm1, %v249_v50  ;;  %v635_v50 = vld [vmem:[%s17239_s0 + $0x1368] sm:$0xff] }
 0x1e4   :  { %17814 = vst [vmem:[#allocation24_spill] sm:$0xff] %v13828_v35  ;;  %v13844_v27 = vpop.f32.mrf.mxu0  ;;  %10060 = vmatprep.mubr.msk.f32.mxu0 %vm784_vm1, %v250_v38 }
 0x1e5   :  { %17815 = vst [vmem:[#allocation59_spill] sm:$0xff] %v13844_v27  ;;  %v13847_v24 = vpop.f32.mrf.mxu1  ;;  %10634 = vmatmul.mubr.msk.f32.gmra.mxu1 %vm784_vm1, %v633_v52  ;;  %v252_v52 = vld [vmem:[%s17239_s0 + $0x770] sm:$0xff]  ;;  %v255_v27 = vld [vmem:[%s17239_s0 + $0x788] sm:$0xff] }
 0x1e6   :  { %17816 = vst [vmem:[#allocation85_spill] sm:$0xff] %v13847_v24  ;;  %v13858_v42 = vpop.f32.mrf.mxu0  ;;  %10636 = vmatprep.mubr.msk.f32.mxu1 %vm784_vm1, %v634_v48 }
 0x1e7   :  { %17817 = vst [vmem:[#allocation86_spill] sm:$0xff] %v13858_v42  ;;  %v13860_v35 = vpop.f32.mrf.mxu1  ;;  %10061 = vmatmul.mubr.msk.f32.gmra.mxu0 %vm784_vm1, %v251_v47  ;;  %v637_v47 = vld [vmem:[%s17239_s0 + $0x1378] sm:$0xff] }
 0x1e8   :  { %17818 = vst [vmem:[#allocation25_spill] sm:$0xff] %v13860_v35  ;;  %v13876_v24 = vpop.f32.mrf.mxu0  ;;  %10063 = vmatprep.mubr.msk.f32.mxu0 %vm784_vm1, %v252_v52 }
 0x1e9   :  { %17819 = vst [vmem:[#allocation60_spill] sm:$0xff] %v13876_v24  ;;  %v13879_v48 = vpop.f32.mrf.mxu1  ;;  %10637 = vmatmul.mubr.msk.f32.gmra.mxu1 %vm784_vm1, %v635_v50  ;;  %v254_v50 = vld [vmem:[%s17239_s0 + $0x780] sm:$0xff] }
 0x1ea   :  { %17820 = vst [vmem:[#allocation26_spill] sm:$0xff] %v13879_v48  ;;  %v13890_v38 = vpop.f32.mrf.mxu0  ;;  %10639 = vmatprep.mubr.msk.f32.mxu1 %vm784_vm1, %v636_v39 }
 0x1eb   :  { %17821 = vst [vmem:[#allocation61_spill] sm:$0xff] %v13890_v38  ;;  %v13892_v35 = vpop.f32.mrf.mxu1  ;;  %10064 = vmatmul.mubr.msk.f32.gmra.mxu0 %vm784_vm1, %v253_v2  ;;  %v639_v2 = vld [vmem:[%s17239_s0 + $0x1388] sm:$0xff] }
 0x1ec   :  { %17822 = vst [vmem:[#allocation87_spill] sm:$0xff] %v13892_v35  ;;  %v13908_v48 = vpop.f32.mrf.mxu0  ;;  %10066 = vmatprep.mubr.msk.f32.mxu0 %vm784_vm1, %v254_v50  ;;  %v257_v50 = vld [vmem:[%s17239_s0 + $0x798] sm:$0xff] }
 0x1ed   :  { %17823 = vst [vmem:[#allocation88_spill] sm:$0xff] %v13908_v48  ;;  %v13911_v39 = vpop.f32.mrf.mxu1  ;;  %10640 = vmatmul.mubr.msk.f32.gmra.mxu1 %vm784_vm1, %v637_v47  ;;  %v256_v47 = vld [vmem:[%s17239_s0 + $0x790] sm:$0xff] }
 0x1ee   :  { %17824 = vst [vmem:[#allocation89_spill] sm:$0xff] %v13911_v39  ;;  %v13922_v52 = vpop.f32.mrf.mxu0  ;;  %10642 = vmatprep.mubr.msk.f32.mxu1 %vm784_vm1, %v638_v22 }
 0x1ef   :  { %17825 = vst [vmem:[#allocation90_spill] sm:$0xff] %v13922_v52  ;;  %v13924_v35 = vpop.f32.mrf.mxu1  ;;  %10067 = vmatmul.mubr.msk.f32.gmra.mxu0 %vm784_vm1, %v255_v27  ;;  %v641_v27 = vld [vmem:[%s17239_s0 + $0x1398] sm:$0xff] }
 0x1f0   :  { %17826 = vst [vmem:[#allocation27_spill] sm:$0xff] %v13924_v35  ;;  %v13940_v39 = vpop.f32.mrf.mxu0  ;;  %10069 = vmatprep.mubr.msk.f32.mxu0 %vm784_vm1, %v256_v47  ;;  %v642_v47 = vld [vmem:[%s17239_s0 + $0x13a0] sm:$0xff] }
 0x1f1   :  { %v13943_v22 = vpop.f32.mrf.mxu1  ;;  %10643 = vmatmul.mubr.msk.f32.gmra.mxu1 %vm784_vm1, %v639_v2  ;;  %v258_v2 = vld [vmem:[%s17239_s0 + $0x7a0] sm:$0xff] }
 0x1f2   :  { %v13950_v52 = vpop.f32.mrf.mxu0  ;;  %10645 = vmatprep.mubr.msk.f32.mxu1 %vm784_vm1, %v640_v6  ;;  %v259_v6 = vld [vmem:[%s17239_s0 + $0x7a8] sm:$0xff] }
 0x1f3   :  { %v13952_v24 = vpop.f32.mrf.mxu1  ;;  %10070 = vmatmul.mubr.msk.f32.gmra.mxu0 %vm784_vm1, %v257_v50  ;;  %v643_v50 = vld [vmem:[%s17239_s0 + $0x13a8] sm:$0xff] }
 0x1f4   :  { %v13964_v35 = vpop.f32.mrf.mxu0  ;;  %10072 = vmatprep.mubr.msk.f32.mxu0 %vm784_vm1, %v258_v2  ;;  %v644_v2 = vld [vmem:[%s17239_s0 + $0x13b0] sm:$0xff] }
 0x1f5   :  { %v13967_v34 = vpop.f32.mrf.mxu1  ;;  %10646 = vmatmul.mubr.msk.f32.gmra.mxu1 %vm784_vm1, %v641_v27  ;;  %v260_v27 = vld [vmem:[%s17239_s0 + $0x7b0] sm:$0xff] }
 0x1f6   :  { %v13974_v63 = vpop.f32.mrf.mxu0  ;;  %10648 = vmatprep.mubr.msk.f32.mxu1 %vm784_vm1, %v642_v47  ;;  %v261_v47 = vld [vmem:[%s17239_s0 + $0x7b8] sm:$0xff] }
 0x1f7   :  { %v13976_v54 = vpop.f32.mrf.mxu1  ;;  %10073 = vmatmul.mubr.msk.f32.gmra.mxu0 %vm784_vm1, %v259_v6  ;;  %v645_v6 = vld [vmem:[%s17239_s0 + $0x13b8] sm:$0xff] }
 0x1f8   :  { %v13988_v48 = vpop.f32.mrf.mxu0  ;;  %10075 = vmatprep.mubr.msk.f32.mxu0 %vm784_vm1, %v260_v27  ;;  %v646_v27 = vld [vmem:[%s17239_s0 + $0x13c0] sm:$0xff] }
 0x1f9   :  { %v13991_v53 = vpop.f32.mrf.mxu1  ;;  %10649 = vmatmul.mubr.msk.f32.gmra.mxu1 %vm784_vm1, %v643_v50  ;;  %v262_v50 = vld [vmem:[%s17239_s0 + $0x7c0] sm:$0xff] }
 0x1fa   :  { %v13998_v14 = vpop.f32.mrf.mxu0  ;;  %10651 = vmatprep.mubr.msk.f32.mxu1 %vm784_vm1, %v644_v2  ;;  %v263_v2 = vld [vmem:[%s17239_s0 + $0x7c8] sm:$0xff] }
 0x1fb   :  { %v14000_v38 = vpop.f32.mrf.mxu1  ;;  %10076 = vmatmul.mubr.msk.f32.gmra.mxu0 %vm784_vm1, %v261_v47  ;;  %v647_v47 = vld [vmem:[%s17239_s0 + $0x13c8] sm:$0xff] }
 0x1fc   :  { %v14012_v8 = vpop.f32.mrf.mxu0  ;;  %10078 = vmatprep.mubr.msk.f32.mxu0 %vm784_vm1, %v262_v50  ;;  %v648_v50 = vld [vmem:[%s17239_s0 + $0x13d0] sm:$0xff] }
 0x1fd   :  { %v14015_v44 = vpop.f32.mrf.mxu1  ;;  %10652 = vmatmul.mubr.msk.f32.gmra.mxu1 %vm784_vm1, %v645_v6  ;;  %v264_v6 = vld [vmem:[%s17239_s0 + $0x7d0] sm:$0xff] }
 0x1fe   :  { %v14022_v40 = vpop.f32.mrf.mxu0  ;;  %10654 = vmatprep.mubr.msk.f32.mxu1 %vm784_vm1, %v646_v27  ;;  %v265_v27 = vld [vmem:[%s17239_s0 + $0x7d8] sm:$0xff] }
 0x1ff   :  { %v14024_v42 = vpop.f32.mrf.mxu1  ;;  %10079 = vmatmul.mubr.msk.f32.gmra.mxu0 %vm784_vm1, %v263_v2  ;;  %v649_v2 = vld [vmem:[%s17239_s0 + $0x13d8] sm:$0xff] }
 0x200   :  { %v14036_v25 = vpop.f32.mrf.mxu0  ;;  %10081 = vmatprep.mubr.msk.f32.mxu0 %vm784_vm1, %v264_v6  ;;  %v650_v6 = vld [vmem:[%s17239_s0 + $0x13e0] sm:$0xff] }
 0x201   :  { %v14039_v33 = vpop.f32.mrf.mxu1  ;;  %10655 = vmatmul.mubr.msk.f32.gmra.mxu1 %vm784_vm1, %v647_v47  ;;  %v266_v47 = vld [vmem:[%s17239_s0 + $0x7e0] sm:$0xff] }
 0x202   :  { %v14046_v37 = vpop.f32.mrf.mxu0  ;;  %10657 = vmatprep.mubr.msk.f32.mxu1 %vm784_vm1, %v648_v50  ;;  %v267_v50 = vld [vmem:[%s17239_s0 + $0x7e8] sm:$0xff] }
 0x203   :  { %v14048_v26 = vpop.f32.mrf.mxu1  ;;  %10082 = vmatmul.mubr.msk.f32.gmra.mxu0 %vm784_vm1, %v265_v27  ;;  %v651_v27 = vld [vmem:[%s17239_s0 + $0x13e8] sm:$0xff] }
 0x204   :  { %v14060_v23 = vpop.f32.mrf.mxu0  ;;  %10084 = vmatprep.mubr.msk.f32.mxu0 %vm784_vm1, %v266_v47  ;;  %v652_v47 = vld [vmem:[%s17239_s0 + $0x13f0] sm:$0xff] }
 0x205   :  { %v14063_v0 = vpop.f32.mrf.mxu1  ;;  %10658 = vmatmul.mubr.msk.f32.gmra.mxu1 %vm784_vm1, %v649_v2  ;;  %v268_v2 = vld [vmem:[%s17239_s0 + $0x7f0] sm:$0xff] }
 0x206   :  { %v14070_v13 = vpop.f32.mrf.mxu0  ;;  %10660 = vmatprep.mubr.msk.f32.mxu1 %vm784_vm1, %v650_v6  ;;  %v269_v6 = vld [vmem:[%s17239_s0 + $0x7f8] sm:$0xff] }
 0x207   :  { %v14072_v4 = vpop.f32.mrf.mxu1  ;;  %10085 = vmatmul.mubr.msk.f32.gmra.mxu0 %vm784_vm1, %v267_v50  ;;  %v653_v50 = vld [vmem:[%s17239_s0 + $0x13f8] sm:$0xff] }
 0x208   :  { %v14084_v32 = vpop.f32.mrf.mxu0  ;;  %10087 = vmatprep.mubr.msk.f32.mxu0 %vm784_vm1, %v268_v2  ;;  %v654_v2 = vld [vmem:[%s17239_s0 + $0x1400] sm:$0xff] }
 0x209   :  { %v14087_v19 = vpop.f32.mrf.mxu1  ;;  %10661 = vmatmul.mubr.msk.f32.gmra.mxu1 %vm784_vm1, %v651_v27  ;;  %v270_v27 = vld [vmem:[%s17239_s0 + $0x800] sm:$0xff] }
 0x20a   :  { %17827 = vst [vmem:[#allocation62_spill] sm:$0xff] %v14087_v19  ;;  %v14094_v21 = vpop.f32.mrf.mxu0  ;;  %10663 = vmatprep.mubr.msk.f32.mxu1 %vm784_vm1, %v652_v47  ;;  %v271_v47 = vld [vmem:[%s17239_s0 + $0x808] sm:$0xff] }
 0x20b   :  { %17828 = vst [vmem:[#allocation28_spill] sm:$0xff] %v14094_v21  ;;  %v14096_v3 = vpop.f32.mrf.mxu1  ;;  %10088 = vmatmul.mubr.msk.f32.gmra.mxu0 %vm784_vm1, %v269_v6  ;;  %v655_v6 = vld [vmem:[%s17239_s0 + $0x1408] sm:$0xff] }
 0x20c   :  { %17829 = vst [vmem:[#allocation63_spill] sm:$0xff] %v14096_v3  ;;  %v14108_v20 = vpop.f32.mrf.mxu0  ;;  %10090 = vmatprep.mubr.msk.f32.mxu0 %vm784_vm1, %v270_v27  ;;  %v656_v27 = vld [vmem:[%s17239_s0 + $0x1410] sm:$0xff] }
 0x20d   :  { %17830 = vst [vmem:[#allocation29_spill] sm:$0xff] %v14108_v20  ;;  %v14111_v21 = vpop.f32.mrf.mxu1  ;;  %10664 = vmatmul.mubr.msk.f32.gmra.mxu1 %vm784_vm1, %v653_v50  ;;  %v272_v50 = vld [vmem:[%s17239_s0 + $0x810] sm:$0xff] }
 0x20e   :  { %17831 = vst [vmem:[#allocation64_spill] sm:$0xff] %v14111_v21  ;;  %v14118_v3 = vpop.f32.mrf.mxu0  ;;  %10666 = vmatprep.mubr.msk.f32.mxu1 %vm784_vm1, %v654_v2  ;;  %v273_v2 = vld [vmem:[%s17239_s0 + $0x818] sm:$0xff] }
 0x20f   :  { %17832 = vst [vmem:[#allocation30_spill] sm:$0xff] %v14118_v3  ;;  %v14120_v19 = vpop.f32.mrf.mxu1  ;;  %10091 = vmatmul.mubr.msk.f32.gmra.mxu0 %vm784_vm1, %v271_v47  ;;  %v657_v47 = vld [vmem:[%s17239_s0 + $0x1418] sm:$0xff] }
 0x210   :  { %17833 = vst [vmem:[#allocation65_spill] sm:$0xff] %v14120_v19  ;;  %v14132_v21 = vpop.f32.mrf.mxu0  ;;  %10093 = vmatprep.mubr.msk.f32.mxu0 %vm784_vm1, %v272_v50  ;;  %v658_v50 = vld [vmem:[%s17239_s0 + $0x1420] sm:$0xff] }
 0x211   :  { %17834 = vst [vmem:[#allocation91_spill] sm:$0xff] %v14132_v21  ;;  %v14135_v3 = vpop.f32.mrf.mxu1  ;;  %10667 = vmatmul.mubr.msk.f32.gmra.mxu1 %vm784_vm1, %v655_v6  ;;  %v274_v6 = vld [vmem:[%s17239_s0 + $0x820] sm:$0xff] }
 0x212   :  { %17835 = vst [vmem:[#allocation92_spill] sm:$0xff] %v14135_v3  ;;  %v14142_v19 = vpop.f32.mrf.mxu0  ;;  %10669 = vmatprep.mubr.msk.f32.mxu1 %vm784_vm1, %v656_v27  ;;  %v275_v27 = vld [vmem:[%s17239_s0 + $0x828] sm:$0xff] }
 0x213   :  { %17836 = vst [vmem:[#allocation31_spill] sm:$0xff] %v14142_v19  ;;  %v14144_v20 = vpop.f32.mrf.mxu1  ;;  %10094 = vmatmul.mubr.msk.f32.gmra.mxu0 %vm784_vm1, %v273_v2  ;;  %v659_v2 = vld [vmem:[%s17239_s0 + $0x1428] sm:$0xff] }
 0x214   :  { %17837 = vst [vmem:[#allocation66_spill] sm:$0xff] %v14144_v20  ;;  %v14156_v3 = vpop.f32.mrf.mxu0  ;;  %10096 = vmatprep.mubr.msk.f32.mxu0 %vm784_vm1, %v274_v6  ;;  %v660_v6 = vld [vmem:[%s17239_s0 + $0x1430] sm:$0xff] }
 0x215   :  { %17838 = vst [vmem:[#allocation32_spill] sm:$0xff] %v14156_v3  ;;  %v14159_v19 = vpop.f32.mrf.mxu1  ;;  %10670 = vmatmul.mubr.msk.f32.gmra.mxu1 %vm784_vm1, %v657_v47  ;;  %v276_v47 = vld [vmem:[%s17239_s0 + $0x830] sm:$0xff] }
 0x216   :  { %17839 = vst [vmem:[#allocation67_spill] sm:$0xff] %v14159_v19  ;;  %v14166_v20 = vpop.f32.mrf.mxu0  ;;  %10672 = vmatprep.mubr.msk.f32.mxu1 %vm784_vm1, %v658_v50  ;;  %v277_v50 = vld [vmem:[%s17239_s0 + $0x838] sm:$0xff] }
 0x217   :  { %17840 = vst [vmem:[#allocation93_spill] sm:$0xff] %v14166_v20  ;;  %v14168_v21 = vpop.f32.mrf.mxu1  ;;  %10097 = vmatmul.mubr.msk.f32.gmra.mxu0 %vm784_vm1, %v275_v27  ;;  %v661_v27 = vld [vmem:[%s17239_s0 + $0x1438] sm:$0xff] }
 0x218   :  { %17841 = vst [vmem:[#allocation94_spill] sm:$0xff] %v14168_v21  ;;  %v14180_v19 = vpop.f32.mrf.mxu0  ;;  %10099 = vmatprep.mubr.msk.f32.mxu0 %vm784_vm1, %v276_v47  ;;  %v662_v47 = vld [vmem:[%s17239_s0 + $0x1440] sm:$0xff] }
 0x219   :  { %17842 = vst [vmem:[#allocation33_spill] sm:$0xff] %v14180_v19  ;;  %v14183_v20 = vpop.f32.mrf.mxu1  ;;  %10673 = vmatmul.mubr.msk.f32.gmra.mxu1 %vm784_vm1, %v659_v2  ;;  %v278_v2 = vld [vmem:[%s17239_s0 + $0x840] sm:$0xff] }
 0x21a   :  { %17843 = vst [vmem:[#allocation68_spill] sm:$0xff] %v14183_v20  ;;  %v14190_v21 = vpop.f32.mrf.mxu0  ;;  %10675 = vmatprep.mubr.msk.f32.mxu1 %vm784_vm1, %v660_v6  ;;  %v279_v6 = vld [vmem:[%s17239_s0 + $0x848] sm:$0xff] }
 0x21b   :  { %17844 = vst [vmem:[#allocation34_spill] sm:$0xff] %v14190_v21  ;;  %v14192_v3 = vpop.f32.mrf.mxu1  ;;  %10100 = vmatmul.mubr.msk.f32.gmra.mxu0 %vm784_vm1, %v277_v50  ;;  %v663_v50 = vld [vmem:[%s17239_s0 + $0x1448] sm:$0xff] }
 0x21c   :  { %17845 = vst [vmem:[#allocation69_spill] sm:$0xff] %v14192_v3  ;;  %v14204_v20 = vpop.f32.mrf.mxu0  ;;  %10102 = vmatprep.mubr.msk.f32.mxu0 %vm784_vm1, %v278_v2  ;;  %v664_v2 = vld [vmem:[%s17239_s0 + $0x1450] sm:$0xff] }
 0x21d   :  { %17846 = vst [vmem:[#allocation95_spill] sm:$0xff] %v14204_v20  ;;  %v14207_v21 = vpop.f32.mrf.mxu1  ;;  %10676 = vmatmul.mubr.msk.f32.gmra.mxu1 %vm784_vm1, %v661_v27  ;;  %v280_v27 = vld [vmem:[%s17239_s0 + $0x850] sm:$0xff]  ;;  %v281_v20 = vld [vmem:[%s17239_s0 + $0x858] sm:$0xff] }
 0x21e   :  { %17847 = vst [vmem:[#allocation96_spill] sm:$0xff] %v14207_v21  ;;  %v14214_v3 = vpop.f32.mrf.mxu0  ;;  %10678 = vmatprep.mubr.msk.f32.mxu1 %vm784_vm1, %v662_v47 }
 0x21f   :  { %17848 = vst [vmem:[#allocation35_spill] sm:$0xff] %v14214_v3  ;;  %v14216_v19 = vpop.f32.mrf.mxu1  ;;  %10103 = vmatmul.mubr.msk.f32.gmra.mxu0 %vm784_vm1, %v279_v6  ;;  %v665_v6 = vld [vmem:[%s17239_s0 + $0x1458] sm:$0xff] }
 0x220   :  { %17849 = vst [vmem:[#allocation70_spill] sm:$0xff] %v14216_v19  ;;  %v9960_v21 = vpop.f32.mrf.mxu0  ;;  %10105 = vmatprep.mubr.msk.f32.mxu0 %vm784_vm1, %v280_v27 }
 0x221   :  { %v10536_v3 = vpop.f32.mrf.mxu1  ;;  %v7215_v19 = vmax.f32 %v13940_v39, %v9960_v21  ;;  %10679 = vmatmul.mubr.msk.f32.gmra.mxu1 %vm784_vm1, %v663_v50  ;;  %v17850_v21 = vmax.f32 %v13226_v15, %v13556_v36  ;;  %v17851_v39 = vmax.f32 %v13229_v49, %v13559_v57  ;;  %v14258_v49 = vld [vmem:[%s17240_s2] ss:$0 sm:$0xff]  ;;  %v17853_v57 = vmax.f32 %v13254_v12, %v13572_v5  ;;  %v284_v12 = vld [vmem:[%s17239_s0 + $0x870] sm:$0xff] }
 0x222   :  { %v7311_v47 = vmax.f32 %v13943_v22, %v10536_v3  ;;  %v3999_v10 = vpop.f32.mrf.mxu0  ;;  %10681 = vmatprep.mubr.msk.f32.mxu1 %vm784_vm1, %v664_v2  ;;  %v282_v2 = vld [vmem:[%s17239_s0 + $0x860] sm:$0xff] }
 0x223   :  { %v5919_v51 = vpop.f32.mrf.mxu1  ;;  %v7407_v3 = vmax.f32 %v17850_v21, %v7215_v19  ;;  %v7214_v50 = vmax.f32 %v13950_v52, %v3999_v10  ;;  %10106 = vmatmul.mubr.msk.f32.gmra.mxu0 %vm784_vm1, %v281_v20  ;;  %v17852_v19 = vmax.f32 %v13252_v43, %v13570_v30  ;;  %v283_v20 = vld [vmem:[%s17239_s0 + $0x868] sm:$0xff] }
 0x224   :  { %v7503_v22 = vmax.f32 %v17851_v39, %v7311_v47  ;;  %v7310_v27 = vmax.f32 %v13952_v24, %v5919_v51  ;;  %v9963_v9 = vpop.f32.mrf.mxu0  ;;  %10108 = vmatprep.mubr.msk.f32.mxu0 %vm784_vm1, %v282_v2  ;;  %v667_v43 = vld [vmem:[%s17239_s0 + $0x1468] sm:$0xff]  ;;  %v17855_v39 = vld [vmem:[#allocation2_spill] sm:$0xff] }
 0x225   :  { %v10539_v15 = vpop.f32.mrf.mxu1  ;;  %v7606_v10 = vadd.f32 %v14258_v49, %v7407_v3  ;;  %v7406_v36 = vmax.f32 %v17852_v19, %v7214_v50  ;;  %10682 = vmatmul.mubr.msk.f32.gmra.mxu1 %vm784_vm1, %v665_v6  ;;  %v7217_v52 = vmax.f32 %v13964_v35, %v9963_v9  ;;  %v668_v35 = vld [vmem:[%s17239_s0 + $0x1470] sm:$0xff] }
 0x226   :  { %v7702_v51 = vadd.f32 %v14258_v49, %v7503_v22  ;;  %v7502_v24 = vmax.f32 %v17853_v57, %v7310_v27  ;;  %v7313_v47 = vmax.f32 %v13967_v34, %v10539_v15  ;;  %v4009_v21 = vpop.f32.mrf.mxu0  ;;  %10684 = vmatprep.mubr.msk.f32.mxu1 %vm784_vm1, %v666_v1  ;;  %v17854_v1 = vmax.f32 %v13276_v17, %v13588_v31  ;;  %v17856_v22 = vld [vmem:[#allocation15_spill] sm:$0xff] }
 0x227   :  { %v5929_v3 = vpop.f32.mrf.mxu1  ;;  %v7798_v30 = vmax.f32 %v7606_v10, 0.0  ;;  %v7605_v9 = vadd.f32 %v14258_v49, %v7406_v36  ;;  %v17857_v50 = vmax.f32 %v17855_v39, %v17856_v22  ;;  %v7216_v2 = vmax.f32 %v13974_v63, %v4009_v21  ;;  %10109 = vmatmul.mubr.msk.f32.gmra.mxu0 %vm784_vm1, %v283_v20  ;;  %v17859_v20 = vld [vmem:[#allocation50_spill] sm:$0xff]  ;;  %v669_v21 = vld [vmem:[%s17239_s0 + $0x1478] sm:$0xff] }
 0x228   :  { %v7894_v5 = vmax.f32 %v7702_v51, 0.0  ;;  %v7701_v34 = vadd.f32 %v14258_v49, %v7502_v24  ;;  %v7409_v6 = vmax.f32 %v17854_v1, %v7217_v52  ;;  %v7312_v15 = vmax.f32 %v13976_v54, %v5929_v3  ;;  %v9966_v10 = vpop.f32.mrf.mxu0  ;;  %10111 = vmatprep.mubr.msk.f32.mxu0 %vm784_vm1, %v284_v12  ;;  %v285_v54 = vld [vmem:[%s17239_s0 + $0x878] sm:$0xff] }
 0x229   :  { %v7505_v27 = vmax.f32 %v17857_v50, %v7313_v47  ;;  %7991 = vst.msk [vmem:[%s17241_s3 + $0xc8] sm:$0xff] %vm7965_vm2, %v7798_v30  ;;  %v7797_v17 = vmax.f32 %v7605_v9, 0.0  ;;  %v7219_v51 = vmax.f32 %v13988_v48, %v9966_v10  ;;  %v10542_v63 = vpop.f32.mrf.mxu1  ;;  %10685 = vmatmul.mubr.msk.f32.gmra.mxu1 %vm784_vm1, %v667_v43  ;;  %v17858_v57 = vmax.f32 %v13294_v46, %v13602_v41  ;;  %v17861_v46 = vld [vmem:[#allocation16_spill] sm:$0xff]  ;;  %v286_v30 = vld [vmem:[%s17239_s0 + $0x880] sm:$0xff]  ;;  %v287_v10 = vld [vmem:[%s17239_s0 + $0x888] sm:$0xff] }
 0x22a   :  { %8087 = vst.msk [vmem:[%s17241_s3 + $0x3c8] sm:$0xff] %vm7965_vm2, %v7894_v5  ;;  %v7893_v31 = vmax.f32 %v7701_v34, 0.0  ;;  %v7608_v19 = vadd.f32 %v14258_v49, %v7409_v6  ;;  %v17860_v48 = vmax.f32 %v13296_v55, %v17859_v20  ;;  %v4019_v47 = vpop.f32.mrf.mxu0  ;;  %10687 = vmatprep.mubr.msk.f32.mxu1 %vm784_vm1, %v668_v35  ;;  %v17862_v55 = vmax.f32 %v13316_v56, %v17861_v46  ;;  %v670_v5 = vld [vmem:[%s17239_s0 + $0x1480] sm:$0xff]  ;;  %v17864_v6 = vld [vmem:[#allocation51_spill] sm:$0xff]  ;;  %v672_v20 = vld [vmem:[%s17239_s0 + $0x1490] sm:$0xff] }
 0x22b   :  { %v7704_v36 = vadd.f32 %v14258_v49, %v7505_v27  ;;  %v7408_v24 = vmax.f32 %v17858_v57, %v7216_v2  ;;  %7990 = vst.msk [vmem:[%s17241_s3 + $0xc0] sm:$0xff] %vm7965_vm2, %v7797_v17  ;;  %v7315_v3 = vmax.f32 %v13991_v53, %v10542_v63  ;;  %v7218_v43 = vmax.f32 %v13998_v14, %v4019_v47  ;;  %v5939_v12 = vpop.f32.mrf.mxu1  ;;  %v17863_v53 = vld [vmem:[#allocation37_spill] sm:$0xff]  ;;  %v288_v63 = vld [vmem:[%s17239_s0 + $0x890] sm:$0xff]  ;;  %v17871_v47 = vld [vmem:[#allocation3_spill] sm:$0xff] }
 0x22c   :  { %v7504_v52 = vmax.f32 %v17860_v48, %v7312_v15  ;;  %8086 = vst.msk [vmem:[%s17241_s3 + $0x3c0] sm:$0xff] %vm7965_vm2, %v7893_v31  ;;  %v7411_v41 = vmax.f32 %v17862_v55, %v7219_v51  ;;  %v7800_v9 = vmax.f32 %v7608_v19, 0.0  ;;  %v9969_v1 = vpop.f32.mrf.mxu0  ;;  %10112 = vmatmul.mubr.msk.f32.gmra.mxu0 %vm784_vm1, %v285_v54  ;;  %v17865_v39 = vmax.f32 %v17863_v53, %v17864_v6  ;;  %v671_v51 = vld [vmem:[%s17239_s0 + $0x1488] sm:$0xff]  ;;  %v17869_v48 = vld [vmem:[#allocation78_spill] sm:$0xff]  ;;  %v673_v6 = vld [vmem:[%s17239_s0 + $0x1498] sm:$0xff] }
 0x22d   :  { %v7896_v34 = vmax.f32 %v7704_v36, 0.0  ;;  %v7607_v35 = vadd.f32 %v14258_v49, %v7408_v24  ;;  %v17866_v50 = vmax.f32 %v13326_v60, %v13634_v58  ;;  %v7314_v2 = vmax.f32 %v14000_v38, %v5939_v12  ;;  %v10545_v15 = vpop.f32.mrf.mxu1  ;;  %10688 = vmatmul.mubr.msk.f32.gmra.mxu1 %vm784_vm1, %v669_v21  ;;  %10114 = vmatprep.mubr.msk.f32.mxu0 %vm784_vm1, %v286_v30  ;;  %v17872_v21 = vld [vmem:[#allocation17_spill] sm:$0xff] }
 0x22e   :  { %v7703_v56 = vadd.f32 %v14258_v49, %v7504_v52  ;;  %v7610_v14 = vadd.f32 %v14258_v49, %v7411_v41  ;;  %v7507_v22 = vmax.f32 %v17865_v39, %v7315_v3  ;;  %7993 = vst.msk [vmem:[%s17241_s3 + $0xd8] sm:$0xff] %vm7965_vm2, %v7800_v9  ;;  %v7221_v38 = vmax.f32 %v14012_v8, %v9969_v1  ;;  %v4029_v31 = vpop.f32.mrf.mxu0  ;;  %v17875_v1 = vld [vmem:[#allocation52_spill] sm:$0xff] }
 0x22f   :  { %v7410_v27 = vmax.f32 %v17866_v50, %v7218_v43  ;;  %8089 = vst.msk [vmem:[%s17241_s3 + $0x3d8] sm:$0xff] %vm7965_vm2, %v7896_v34  ;;  %v7799_v60 = vmax.f32 %v7607_v35, 0.0  ;;  %v7317_v17 = vmax.f32 %v14015_v44, %v10545_v15  ;;  %10690 = vmatprep.mubr.msk.f32.mxu1 %vm784_vm1, %v670_v5  ;;  %v17867_v44 = vld [vmem:[#allocation77_spill] sm:$0xff]  ;;  %v5949_v24 = vpop.f32.mrf.mxu1  ;;  %v17870_v52 = vmax.f32 %v13340_v28, %v17869_v48  ;;  %v674_v15 = vld [vmem:[%s17239_s0 + $0x14a0] sm:$0xff] }
 0x230   :  { %v7895_v58 = vmax.f32 %v7703_v56, 0.0  ;;  %v7802_v54 = vmax.f32 %v7610_v14, 0.0  ;;  %v7706_v19 = vadd.f32 %v14258_v49, %v7507_v22  ;;  %v17868_v36 = vmax.f32 %v13328_v59, %v17867_v44  ;;  %v9972_v43 = vpop.f32.mrf.mxu0  ;;  %10115 = vmatmul.mubr.msk.f32.gmra.mxu0 %vm784_vm1, %v287_v10  ;;  %v291_v44 = vld [vmem:[%s17239_s0 + $0x8a8] sm:$0xff] }
 0x231   :  { %v7609_v8 = vadd.f32 %v14258_v49, %v7410_v27  ;;  %7992 = vst.msk [vmem:[%s17241_s3 + $0xd0] sm:$0xff] %vm7965_vm2, %v7799_v60  ;;  %v7413_v59 = vmax.f32 %v17870_v52, %v7221_v38  ;;  %v17873_v46 = vmax.f32 %v17871_v47, %v17872_v21  ;;  %v7220_v41 = vmax.f32 %v14022_v40, %v4029_v31  ;;  %v10548_v9 = vpop.f32.mrf.mxu1  ;;  %v289_v40 = vld [vmem:[%s17239_s0 + $0x898] sm:$0xff] }
 0x232   :  { %v7506_v57 = vmax.f32 %v17868_v36, %v7314_v2  ;;  %8088 = vst.msk [vmem:[%s17241_s3 + $0x3d0] sm:$0xff] %vm7965_vm2, %v7895_v58  ;;  %v7316_v3 = vmax.f32 %v14024_v42, %v5949_v24  ;;  %7995 = vst.msk [vmem:[%s17241_s3 + $0xe8] sm:$0xff] %vm7965_vm2, %v7802_v54  ;;  %v7898_v12 = vmax.f32 %v7706_v19, 0.0  ;;  %v7223_v5 = vmax.f32 %v14036_v25, %v9972_v43  ;;  %v4039_v53 = vpop.f32.mrf.mxu0  ;;  %v290_v2 = vld [vmem:[%s17239_s0 + $0x8a0] sm:$0xff]  ;;  %v675_v24 = vld [vmem:[%s17239_s0 + $0x14a8] sm:$0xff] }
 0x233   :  { %v7509_v55 = vmax.f32 %v17873_v46, %v7317_v17  ;;  %v7801_v30 = vmax.f32 %v7609_v8, 0.0  ;;  %10691 = vmatmul.mubr.msk.f32.gmra.mxu1 %vm784_vm1, %v671_v51  ;;  %10117 = vmatprep.mubr.msk.f32.mxu0 %vm784_vm1, %v288_v63  ;;  %v7612_v42 = vadd.f32 %v14258_v49, %v7413_v59  ;;  %v17874_v35 = vmax.f32 %v13350_v18, %v13666_v16  ;;  %v5959_v27 = vpop.f32.mrf.mxu1  ;;  %v17880_v17 = vld [vmem:[#allocation53_spill] sm:$0xff]  ;;  %v676_v46 = vld [vmem:[%s17239_s0 + $0x14b0] sm:$0xff] }
 0x234   :  { %v7705_v28 = vadd.f32 %v14258_v49, %v7506_v57  ;;  %v17876_v25 = vmax.f32 %v13352_v29, %v17875_v1  ;;  %10693 = vmatprep.mubr.msk.f32.mxu1 %vm784_vm1, %v672_v20  ;;  %8091 = vst.msk [vmem:[%s17241_s3 + $0x3e8] sm:$0xff] %vm7965_vm2, %v7898_v12  ;;  %v17877_v29 = vld [vmem:[#allocation18_spill] sm:$0xff]  ;;  %v7319_v22 = vmax.f32 %v14039_v33, %v10548_v9  ;;  %v9975_v38 = vpop.f32.mrf.mxu0  ;;  %v292_v20 = vld [vmem:[%s17239_s0 + $0x8b0] sm:$0xff]  ;;  %v17888_v43 = vld [vmem:[#allocation81_spill] sm:$0xff] }
 0x235   :  { %v7708_v34 = vadd.f32 %v14258_v49, %v7509_v55  ;;  %v7412_v56 = vmax.f32 %v17874_v35, %v7220_v41  ;;  %7994 = vst.msk [vmem:[%s17241_s3 + $0xe0] sm:$0xff] %vm7965_vm2, %v7801_v30  ;;  %v17878_v16 = vmax.f32 %v13364_v62, %v17877_v29  ;;  %v7222_v50 = vmax.f32 %v14046_v37, %v4039_v53  ;;  %v17879_v33 = vld [vmem:[#allocation38_spill] sm:$0xff]  ;;  %v10551_v8 = vpop.f32.mrf.mxu1  ;;  %v17885_v55 = vld [vmem:[#allocation80_spill] sm:$0xff]  ;;  %v17890_v1 = vld [vmem:[#allocation39_spill] sm:$0xff] }
 0x236   :  { %v7508_v14 = vmax.f32 %v17876_v25, %v7316_v3  ;;  %v7897_v18 = vmax.f32 %v7705_v28, 0.0  ;;  %v7804_v10 = vmax.f32 %v7612_v42, 0.0  ;;  %10118 = vmatmul.mubr.msk.f32.gmra.mxu0 %vm784_vm1, %v289_v40  ;;  %v17881_v31 = vmax.f32 %v17879_v33, %v17880_v17  ;;  %v4049_v57 = vpop.f32.mrf.mxu0  ;;  %v17887_v3 = vld [vmem:[#allocation4_spill] sm:$0xff]  ;;  %v17891_v25 = vld [vmem:[#allocation82_spill] sm:$0xff] }
 0x237   :  { %v7415_v39 = vmax.f32 %v17878_v16, %v7223_v5  ;;  %v7900_v60 = vmax.f32 %v7708_v34, 0.0  ;;  %v7611_v58 = vadd.f32 %v14258_v49, %v7412_v56  ;;  %v17882_v63 = vmax.f32 %v13374_v7, %v13698_v61  ;;  %10694 = vmatmul.mubr.msk.f32.gmra.mxu1 %vm784_vm1, %v673_v6  ;;  %10120 = vmatprep.mubr.msk.f32.mxu0 %vm784_vm1, %v290_v2  ;;  %v5969_v21 = vpop.f32.mrf.mxu1  ;;  %v17893_v6 = vld [vmem:[#allocation5_spill] sm:$0xff]  ;;  %v678_v33 = vld [vmem:[%s17239_s0 + $0x14c0] sm:$0xff] }
 0x238   :  { %v7707_v62 = vadd.f32 %v14258_v49, %v7508_v14  ;;  %8090 = vst.msk [vmem:[%s17241_s3 + $0x3e0] sm:$0xff] %vm7965_vm2, %v7897_v18  ;;  %v7511_v51 = vmax.f32 %v17881_v31, %v7319_v22  ;;  %v7318_v19 = vmax.f32 %v14048_v26, %v5959_v27  ;;  %7997 = vst.msk [vmem:[%s17241_s3 + $0xf8] sm:$0xff] %vm7965_vm2, %v7804_v10  ;;  %10696 = vmatprep.mubr.msk.f32.mxu1 %vm784_vm1, %v674_v15  ;;  %v9978_v9 = vpop.f32.mrf.mxu0  ;;  %v17894_v18 = vld [vmem:[#allocation19_spill] sm:$0xff]  ;;  %v17897_v27 = vld [vmem:[#allocation54_spill] sm:$0xff] }
 0x239   :  { %v7614_v37 = vadd.f32 %v14258_v49, %v7415_v39  ;;  %v7414_v54 = vmax.f32 %v17882_v63, %v7222_v50  ;;  %8093 = vst.msk [vmem:[%s17241_s3 + $0x3f8] sm:$0xff] %vm7965_vm2, %v7900_v60  ;;  %v7803_v7 = vmax.f32 %v7611_v58, 0.0  ;;  %v7225_v26 = vmax.f32 %v14060_v23, %v9975_v38  ;;  %v10554_v35 = vpop.f32.mrf.mxu1  ;;  %v677_v39 = vld [vmem:[%s17239_s0 + $0x14b8] sm:$0xff]  ;;  %v17896_v50 = vld [vmem:[#allocation40_spill] sm:$0xff]  ;;  %v17899_v10 = vld [vmem:[#allocation62_spill] sm:$0xff] }
 0x23a   :  { %v7899_v61 = vmax.f32 %v7707_v62, 0.0  ;;  %v7321_v36 = vmax.f32 %v14063_v0, %v10551_v8  ;;  %v7710_v52 = vadd.f32 %v14258_v49, %v7511_v51  ;;  %v17883_v0 = vld [vmem:[#allocation79_spill] sm:$0xff]  ;;  %v17886_v41 = vmax.f32 %v13388_v11, %v17885_v55  ;;  %10121 = vmatmul.mubr.msk.f32.gmra.mxu0 %vm784_vm1, %v291_v44  ;;  %v4059_v16 = vpop.f32.mrf.mxu0  ;;  %v17900_v58 = vld [vmem:[#allocation28_spill] sm:$0xff]  ;;  %v17901_v8 = vld [vmem:[#allocation6_spill] sm:$0xff] }
 0x23b   :  { %v7806_v48 = vmax.f32 %v7614_v37, 0.0  ;;  %v7613_v23 = vadd.f32 %v14258_v49, %v7414_v54  ;;  %v17884_v59 = vmax.f32 %v13376_v45, %v17883_v0  ;;  %7996 = vst.msk [vmem:[%s17241_s3 + $0xf0] sm:$0xff] %vm7965_vm2, %v7803_v7  ;;  %v17889_v12 = vmax.f32 %v17887_v3, %v17888_v43  ;;  %10697 = vmatmul.mubr.msk.f32.gmra.mxu1 %vm784_vm1, %v675_v24  ;;  %v5979_v38 = vpop.f32.mrf.mxu1  ;;  %v294_v37 = vld [vmem:[%s17239_s0 + $0x8c0] sm:$0xff]  ;;  %v17902_v44 = vld [vmem:[#allocation20_spill] sm:$0xff] }
 0x23c   :  { %8092 = vst.msk [vmem:[%s17241_s3 + $0x3f0] sm:$0xff] %vm7965_vm2, %v7899_v61  ;;  %v7417_v45 = vmax.f32 %v17886_v41, %v7225_v26  ;;  %v7224_v28 = vmax.f32 %v14070_v13, %v4049_v57  ;;  %v7320_v5 = vmax.f32 %v14072_v4, %v5969_v21  ;;  %v7902_v40 = vmax.f32 %v7710_v52, 0.0  ;;  %10123 = vmatprep.mubr.msk.f32.mxu0 %vm784_vm1, %v292_v20  ;;  %v293_v13 = vld [vmem:[%s17239_s0 + $0x8b8] sm:$0xff]  ;;  %v9981_v54 = vpop.f32.mrf.mxu0  ;;  %v17907_v20 = vld [vmem:[#allocation63_spill] sm:$0xff]  ;;  %v296_v3 = vld [vmem:[%s17239_s0 + $0x8d0] sm:$0xff] }
 0x23d   :  { %v7510_v47 = vmax.f32 %v17884_v59, %v7318_v19  ;;  %v7513_v30 = vmax.f32 %v17889_v12, %v7321_v36  ;;  %7999 = vst.msk [vmem:[%s17241_s3 + $0x108] sm:$0xff] %vm7965_vm2, %v7806_v48  ;;  %v7805_v42 = vmax.f32 %v7613_v23, 0.0  ;;  %v7227_v34 = vmax.f32 %v14084_v32, %v9978_v9  ;;  %10699 = vmatprep.mubr.msk.f32.mxu1 %vm784_vm1, %v676_v46  ;;  %v17904_v26 = vld [vmem:[#allocation41_spill] sm:$0xff]  ;;  %v17905_v36 = vld [vmem:[#allocation55_spill] sm:$0xff]  ;;  %v10557_v52 = vpop.f32.mrf.mxu1  ;;  %v17909_v46 = vld [vmem:[#allocation64_spill] sm:$0xff] }
 0x23e   :  { %v7616_v4 = vadd.f32 %v14258_v49, %v7417_v45  ;;  %v17892_v14 = vmax.f32 %v17890_v1, %v17891_v25  ;;  %v17895_v32 = vmax.f32 %v17893_v6, %v17894_v18  ;;  %8095 = vst.msk [vmem:[%s17241_s3 + $0x408] sm:$0xff] %vm7965_vm2, %v7902_v40  ;;  %v17898_v2 = vmax.f32 %v17896_v50, %v17897_v27  ;;  %v295_v23 = vld [vmem:[%s17239_s0 + $0x8c8] sm:$0xff]  ;;  %v4069_v41 = vpop.f32.mrf.mxu0  ;;  %v17917_v1 = vld [vmem:[#allocation22_spill] sm:$0xff]  ;;  %v17920_v18 = vld [vmem:[#allocation65_spill] sm:$0xff] }
 0x23f   :  { %v7709_v11 = vadd.f32 %v14258_v49, %v7510_v47  ;;  %v7712_v56 = vadd.f32 %v14258_v49, %v7513_v30  ;;  %7998 = vst.msk [vmem:[%s17241_s3 + $0x100] sm:$0xff] %vm7965_vm2, %v7805_v42  ;;  %v7323_v60 = vmax.f32 %v17899_v10, %v10554_v35  ;;  %v7226_v62 = vmax.f32 %v17900_v58, %v4059_v16  ;;  %v17908_v47 = vld [vmem:[#allocation29_spill] sm:$0xff]  ;;  %v679_v45 = vld [vmem:[%s17239_s0 + $0x14c8] sm:$0xff]  ;;  %v5989_v42 = vpop.f32.mrf.mxu1  ;;  %v17914_v35 = vld [vmem:[#allocation56_spill] sm:$0xff] }
 0x240   :  { %v7416_v53 = vmax.f32 %v17892_v14, %v7224_v28  ;;  %v7512_v29 = vmax.f32 %v17895_v32, %v7320_v5  ;;  %v7419_v15 = vmax.f32 %v17898_v2, %v7227_v34  ;;  %v7808_v17 = vmax.f32 %v7616_v4, 0.0  ;;  %10124 = vmatmul.mubr.msk.f32.gmra.mxu0 %vm784_vm1, %v293_v13  ;;  %10700 = vmatmul.mubr.msk.f32.gmra.mxu1 %vm784_vm1, %v677_v39  ;;  %v17910_v28 = vld [vmem:[#allocation7_spill] sm:$0xff]  ;;  %v17911_v5 = vld [vmem:[#allocation21_spill] sm:$0xff]  ;;  %v17913_v34 = vld [vmem:[#allocation42_spill] sm:$0xff] }
 0x241   :  { %v7901_v22 = vmax.f32 %v7709_v11, 0.0  ;;  %v7904_v31 = vmax.f32 %v7712_v56, 0.0  ;;  %v17903_v7 = vmax.f32 %v17901_v8, %v17902_v44  ;;  %v17906_v57 = vmax.f32 %v17904_v26, %v17905_v36  ;;  %10126 = vmatprep.mubr.msk.f32.mxu0 %vm784_vm1, %v294_v37  ;;  %10702 = vmatprep.mubr.msk.f32.mxu1 %vm784_vm1, %v678_v33  ;;  %v680_v11 = vld [vmem:[%s17239_s0 + $0x14d0] sm:$0xff]  ;;  %v17921_v50 = vld [vmem:[#allocation91_spill] sm:$0xff]  ;;  %v10560_v2 = vpop.f32.mrf.mxu1  ;;  %v17925_v33 = vld [vmem:[#allocation9_spill] sm:$0xff] }
 0x242   :  { %v7615_v51 = vadd.f32 %v14258_v49, %v7416_v53  ;;  %v7711_v63 = vadd.f32 %v14258_v49, %v7512_v29  ;;  %v7618_v19 = vadd.f32 %v14258_v49, %v7419_v15  ;;  %v7322_v48 = vmax.f32 %v17907_v20, %v5979_v38  ;;  %8001 = vst.msk [vmem:[%s17241_s3 + $0x118] sm:$0xff] %vm7965_vm2, %v7808_v17  ;;  %v17916_v56 = vld [vmem:[#allocation8_spill] sm:$0xff]  ;;  %v17919_v53 = vld [vmem:[#allocation30_spill] sm:$0xff]  ;;  %v9984_v29 = vpop.f32.mrf.mxu0  ;;  %v297_v15 = vld [vmem:[%s17239_s0 + $0x8d8] sm:$0xff] }
 0x243   :  { %8094 = vst.msk [vmem:[%s17241_s3 + $0x400] sm:$0xff] %vm7965_vm2, %v7901_v22  ;;  %v7515_v61 = vmax.f32 %v17903_v7, %v7323_v60  ;;  %v7418_v24 = vmax.f32 %v17906_v57, %v7226_v62  ;;  %8097 = vst.msk [vmem:[%s17241_s3 + $0x418] sm:$0xff] %vm7965_vm2, %v7904_v31  ;;  %v7229_v21 = vmax.f32 %v17908_v47, %v9981_v54  ;;  %v17922_v58 = vld [vmem:[#allocation43_spill] sm:$0xff]  ;;  %v17923_v62 = vld [vmem:[#allocation57_spill] sm:$0xff]  ;;  %v5999_v20 = vpop.f32.mrf.mxu1 }
 0x244   :  { %v7807_v0 = vmax.f32 %v7615_v51, 0.0  ;;  %v7903_v59 = vmax.f32 %v7711_v63, 0.0  ;;  %v7325_v55 = vmax.f32 %v17909_v46, %v10557_v52  ;;  %v7810_v43 = vmax.f32 %v7618_v19, 0.0  ;;  %10127 = vmatmul.mubr.msk.f32.gmra.mxu0 %vm784_vm1, %v295_v23  ;;  %10703 = vmatmul.mubr.msk.f32.gmra.mxu1 %vm784_vm1, %v679_v45  ;;  %v17926_v17 = vld [vmem:[#allocation83_spill] sm:$0xff]  ;;  %v4079_v63 = vpop.f32.mrf.mxu0  ;;  %v681_v54 = vld [vmem:[%s17239_s0 + $0x14d8] sm:$0xff]  ;;  %v17928_v8 = vld [vmem:[#allocation44_spill] sm:$0xff] }
 0x245   :  { %v7714_v12 = vadd.f32 %v14258_v49, %v7515_v61  ;;  %v7617_v30 = vadd.f32 %v14258_v49, %v7418_v24  ;;  %v17912_v9 = vmax.f32 %v17910_v28, %v17911_v5  ;;  %v17915_v13 = vmax.f32 %v17913_v34, %v17914_v35  ;;  %10129 = vmatprep.mubr.msk.f32.mxu0 %vm784_vm1, %v296_v3  ;;  %v17929_v44 = vld [vmem:[#allocation84_spill] sm:$0xff]  ;;  %v17932_v57 = vld [vmem:[#allocation31_spill] sm:$0xff]  ;;  %v682_v52 = vld [vmem:[%s17239_s0 + $0x14e0] sm:$0xff] }
 0x246   :  { %8000 = vst.msk [vmem:[%s17241_s3 + $0x110] sm:$0xff] %vm7965_vm2, %v7807_v0  ;;  %8096 = vst.msk [vmem:[%s17241_s3 + $0x410] sm:$0xff] %vm7965_vm2, %v7903_v59  ;;  %v17918_v25 = vmax.f32 %v17916_v56, %v17917_v1  ;;  %v7228_v6 = vmax.f32 %v17919_v53, %v4069_v41  ;;  %v7324_v32 = vmax.f32 %v17920_v18, %v5989_v42  ;;  %10705 = vmatprep.mubr.msk.f32.mxu1 %vm784_vm1, %v680_v11  ;;  %v17931_v26 = vld [vmem:[#allocation92_spill] sm:$0xff]  ;;  %v17934_v41 = vld [vmem:[#allocation23_spill] sm:$0xff] }
 0x247   :  { %v7514_v40 = vmax.f32 %v17912_v9, %v7322_v48  ;;  %v7421_v4 = vmax.f32 %v17915_v13, %v7229_v21  ;;  %8003 = vst.msk [vmem:[%s17241_s3 + $0x128] sm:$0xff] %vm7965_vm2, %v7810_v43  ;;  %v7906_v16 = vmax.f32 %v7714_v12, 0.0  ;;  %v7809_v39 = vmax.f32 %v7617_v30, 0.0  ;;  %v298_v48 = vld [vmem:[%s17239_s0 + $0x8e0] sm:$0xff]  ;;  %v9987_v21 = vpop.f32.mrf.mxu0  ;;  %v17936_v43 = vld [vmem:[#allocation45_spill] sm:$0xff]  ;;  %v299_v42 = vld [vmem:[%s17239_s0 + $0x8e8] sm:$0xff] }
 0x248   :  { %v7517_v14 = vmax.f32 %v17918_v25, %v7325_v55  ;;  %v7231_v27 = vmax.f32 %v17921_v50, %v9984_v29  ;;  %v17924_v38 = vmax.f32 %v17922_v58, %v17923_v62  ;;  %v17927_v31 = vmax.f32 %v17925_v33, %v17926_v17  ;;  %10130 = vmatmul.mubr.msk.f32.gmra.mxu0 %vm784_vm1, %v297_v15  ;;  %v17933_v55 = vld [vmem:[#allocation10_spill] sm:$0xff]  ;;  %v17940_v35 = vld [vmem:[#allocation32_spill] sm:$0xff]  ;;  %v683_v25 = vld [vmem:[%s17239_s0 + $0x14e8] sm:$0xff] }
 0x249   :  { %v7713_v22 = vadd.f32 %v14258_v49, %v7514_v40  ;;  %v7620_v10 = vadd.f32 %v14258_v49, %v7421_v4  ;;  %8099 = vst.msk [vmem:[%s17241_s3 + $0x428] sm:$0xff] %vm7965_vm2, %v7906_v16  ;;  %8002 = vst.msk [vmem:[%s17241_s3 + $0x120] sm:$0xff] %vm7965_vm2, %v7809_v39  ;;  %v17930_v7 = vmax.f32 %v17928_v8, %v17929_v44  ;;  %v17937_v12 = vld [vmem:[#allocation58_spill] sm:$0xff]  ;;  %v10563_v40 = vpop.f32.mrf.mxu1  ;;  %10706 = vmatmul.mubr.msk.f32.gmra.mxu1 %vm784_vm1, %v681_v54  ;;  %v17941_v4 = vld [vmem:[#allocation67_spill] sm:$0xff]  ;;  %v4089_v1 = vpop.f32.mrf.mxu0 }
 0x24a   :  { %v7716_v60 = vadd.f32 %v14258_v49, %v7517_v14  ;;  %v7420_v37 = vmax.f32 %v17924_v38, %v7228_v6  ;;  %v7516_v51 = vmax.f32 %v17927_v31, %v7324_v32  ;;  %v7327_v36 = vmax.f32 %v17931_v26, %v10560_v2  ;;  %v17939_v5 = vld [vmem:[#allocation66_spill] sm:$0xff]  ;;  %10132 = vmatprep.mubr.msk.f32.mxu0 %vm784_vm1, %v298_v48  ;;  %v300_v14 = vld [vmem:[%s17239_s0 + $0x8f0] sm:$0xff]  ;;  %v17946_v2 = vld [vmem:[#allocation59_spill] sm:$0xff] }
 0x24b   :  { %v7905_v19 = vmax.f32 %v7713_v22, 0.0  ;;  %v7423_v61 = vmax.f32 %v17930_v7, %v7231_v27  ;;  %v7230_v24 = vmax.f32 %v17932_v57, %v4079_v63  ;;  %v7812_v23 = vmax.f32 %v7620_v10, 0.0  ;;  %10708 = vmatprep.mubr.msk.f32.mxu1 %vm784_vm1, %v682_v52  ;;  %v17942_v32 = vld [vmem:[#allocation72_spill] sm:$0xff]  ;;  %v6009_v22 = vpop.f32.mrf.mxu1  ;;  %v17945_v27 = vld [vmem:[#allocation73_spill] sm:$0xff]  ;;  %v17952_v17 = vld [vmem:[#allocation94_spill] sm:$0xff] }
 0x24c   :  { %v7908_v0 = vmax.f32 %v7716_v60, 0.0  ;;  %v7619_v59 = vadd.f32 %v14258_v49, %v7420_v37  ;;  %v7715_v47 = vadd.f32 %v14258_v49, %v7516_v51  ;;  %v17935_v45 = vmax.f32 %v17933_v55, %v17934_v41  ;;  %v17943_v29 = vld [vmem:[#allocation24_spill] sm:$0xff]  ;;  %v17948_v60 = vld [vmem:[#allocation74_spill] sm:$0xff]  ;;  %v17949_v58 = vld [vmem:[#allocation85_spill] sm:$0xff]  ;;  %v9990_v51 = vpop.f32.mrf.mxu0  ;;  %10133 = vmatmul.mubr.msk.f32.gmra.mxu0 %vm784_vm1, %v299_v42 }
 0x24d   :  { %8098 = vst.msk [vmem:[%s17241_s3 + $0x420] sm:$0xff] %vm7965_vm2, %v7905_v19  ;;  %v7622_v46 = vadd.f32 %v14258_v49, %v7423_v61  ;;  %v17938_v30 = vmax.f32 %v17936_v43, %v17937_v12  ;;  %v7326_v9 = vmax.f32 %v17939_v5, %v5999_v20  ;;  %8005 = vst.msk [vmem:[%s17241_s3 + $0x138] sm:$0xff] %vm7965_vm2, %v7812_v23  ;;  %v684_v50 = vld [vmem:[%s17239_s0 + $0x14f0] sm:$0xff]  ;;  %v17951_v37 = vld [vmem:[#allocation93_spill] sm:$0xff]  ;;  %v10566_v7 = vpop.f32.mrf.mxu1  ;;  %10709 = vmatmul.mubr.msk.f32.gmra.mxu1 %vm784_vm1, %v683_v25 }
 0x24e   :  { %v7519_v3 = vmax.f32 %v17935_v45, %v7327_v36  ;;  %8101 = vst.msk [vmem:[%s17241_s3 + $0x438] sm:$0xff] %vm7965_vm2, %v7908_v0  ;;  %v7811_v11 = vmax.f32 %v7619_v59, 0.0  ;;  %v7907_v34 = vmax.f32 %v7715_v47, 0.0  ;;  %v7233_v13 = vmax.f32 %v17940_v35, %v9987_v21  ;;  %v17953_v8 = vld [vmem:[#allocation33_spill] sm:$0xff]  ;;  %10135 = vmatprep.mubr.msk.f32.mxu0 %vm784_vm1, %v300_v14  ;;  %v17954_v57 = vld [vmem:[#allocation11_spill] sm:$0xff]  ;;  %v17957_v52 = vld [vmem:[#allocation46_spill] sm:$0xff]  ;;  %v4099_v47 = vpop.f32.mrf.mxu0  ;;  %10711 = vmatprep.mubr.msk.f32.mxu1 %vm784_vm1, %v684_v50 }
 0x24f   :  { %v7422_v28 = vmax.f32 %v17938_v30, %v7230_v24  ;;  %v7329_v56 = vmax.f32 %v17941_v4, %v10563_v40  ;;  %v7814_v53 = vmax.f32 %v7622_v46, 0.0  ;;  %v17944_v16 = vmax.f32 %v17942_v32, %v17943_v29  ;;  %v301_v61 = vld [vmem:[%s17239_s0 + $0x8f8] sm:$0xff]  ;;  %v17955_v24 = vld [vmem:[#allocation86_spill] sm:$0xff]  ;;  %v17960_v55 = vld [vmem:[#allocation12_spill] sm:$0xff]  ;;  %v6019_v5 = vpop.f32.mrf.mxu1 }
 0x250   :  { %v7718_v6 = vadd.f32 %v14258_v49, %v7519_v3  ;;  %8004 = vst.msk [vmem:[%s17241_s3 + $0x130] sm:$0xff] %vm7965_vm2, %v7811_v11  ;;  %8100 = vst.msk [vmem:[%s17241_s3 + $0x430] sm:$0xff] %vm7965_vm2, %v7907_v34  ;;  %v17947_v15 = vmax.f32 %v17945_v27, %v17946_v2  ;;  %v17950_v62 = vmax.f32 %v17948_v60, %v17949_v58  ;;  %v17958_v23 = vld [vmem:[#allocation25_spill] sm:$0xff]  ;;  %v17961_v41 = vld [vmem:[#allocation60_spill] sm:$0xff]  ;;  %10136 = vmatmul.mubr.msk.f32.gmra.mxu0 %vm784_vm1, %v301_v61 }
 0x251   :  { %v7621_v18 = vadd.f32 %v14258_v49, %v7422_v28  ;;  %v7518_v39 = vmax.f32 %v17944_v16, %v7326_v9  ;;  %v7232_v33 = vmax.f32 %v17951_v37, %v4089_v1  ;;  %v7328_v31 = vmax.f32 %v17952_v17, %v6009_v22  ;;  %8007 = vst.msk [vmem:[%s17241_s3 + $0x148] sm:$0xff] %vm7965_vm2, %v7814_v53  ;;  %v685_v21 = vld [vmem:[%s17239_s0 + $0x14f8] sm:$0xff]  ;;  %v17963_v43 = vld [vmem:[#allocation68_spill] sm:$0xff]  ;;  %v17964_v30 = vld [vmem:[#allocation34_spill] sm:$0xff] }
 0x252   :  { %v7425_v10 = vmax.f32 %v17947_v15, %v7233_v13  ;;  %v7521_v38 = vmax.f32 %v17950_v62, %v7329_v56  ;;  %v7910_v63 = vmax.f32 %v7718_v6, 0.0  ;;  %v7235_v44 = vmax.f32 %v17953_v8, %v9990_v51  ;;  %v302_v9 = vld [vmem:[%s17239_s0 + $0x900] sm:$0xff]  ;;  %v9993_v13 = vpop.f32.mrf.mxu0  ;;  %v17965_v56 = vld [vmem:[#allocation47_spill] sm:$0xff]  ;;  %v17968_v53 = vld [vmem:[#allocation13_spill] sm:$0xff]  ;;  %10712 = vmatmul.mubr.msk.f32.gmra.mxu1 %vm784_vm1, %v685_v21 }
 0x253   :  { %v7813_v54 = vmax.f32 %v7621_v18, 0.0  ;;  %v7717_v19 = vadd.f32 %v14258_v49, %v7518_v39  ;;  %v17956_v20 = vmax.f32 %v17954_v57, %v17955_v24  ;;  %v17959_v0 = vmax.f32 %v17957_v52, %v17958_v23  ;;  %v686_v40 = vld [vmem:[%s17239_s0 + $0x1500] sm:$0xff]  ;;  %v17969_v6 = vld [vmem:[#allocation61_spill] sm:$0xff]  ;;  %v10569_v39 = vpop.f32.mrf.mxu1  ;;  %v303_v22 = vld [vmem:[%s17239_s0 + $0x908] sm:$0xff]  ;;  %10138 = vmatprep.mubr.msk.f32.mxu0 %vm784_vm1, %v302_v9 }
 0x254   :  { %v7624_v26 = vadd.f32 %v14258_v49, %v7425_v10  ;;  %v7720_v36 = vadd.f32 %v14258_v49, %v7521_v38  ;;  %8103 = vst.msk [vmem:[%s17241_s3 + $0x448] sm:$0xff] %vm7965_vm2, %v7910_v63  ;;  %v17962_v45 = vmax.f32 %v17960_v55, %v17961_v41  ;;  %v7331_v12 = vmax.f32 %v17963_v43, %v10566_v7  ;;  %v17966_v1 = vld [vmem:[#allocation26_spill] sm:$0xff]  ;;  %v17971_v29 = vld [vmem:[#allocation69_spill] sm:$0xff]  ;;  %v17972_v2 = vld [vmem:[#allocation95_spill] sm:$0xff]  ;;  %v4109_v58 = vpop.f32.mrf.mxu0 }
 0x255   :  { %v7424_v48 = vmax.f32 %v17956_v20, %v7232_v33  ;;  %v7520_v59 = vmax.f32 %v17959_v0, %v7328_v31  ;;  %8006 = vst.msk [vmem:[%s17241_s3 + $0x140] sm:$0xff] %vm7965_vm2, %v7813_v54  ;;  %v7909_v46 = vmax.f32 %v7717_v19, 0.0  ;;  %v7234_v28 = vmax.f32 %v17964_v30, %v4099_v47  ;;  %v17973_v10 = vld [vmem:[#allocation96_spill] sm:$0xff]  ;;  %10714 = vmatprep.mubr.msk.f32.mxu1 %vm784_vm1, %v686_v40  ;;  %v687_v62 = vld [vmem:[%s17239_s0 + $0x1508] sm:$0xff]  ;;  %v6029_v19 = vpop.f32.mrf.mxu1  ;;  %v17981_v57 = vld [vmem:[#allocation89_spill] sm:$0xff] }
 0x256   :  { %v7427_v3 = vmax.f32 %v17962_v45, %v7235_v44  ;;  %v7816_v42 = vmax.f32 %v7624_v26, 0.0  ;;  %v7912_v11 = vmax.f32 %v7720_v36, 0.0  ;;  %v17967_v25 = vmax.f32 %v17965_v56, %v17966_v1  ;;  %v304_v38 = vld [vmem:[%s17239_s0 + $0x910] sm:$0xff]  ;;  %v17975_v51 = vld [vmem:[#allocation87_spill] sm:$0xff]  ;;  %v17977_v44 = vld [vmem:[#allocation14_spill] sm:$0xff]  ;;  %10139 = vmatmul.mubr.msk.f32.gmra.mxu0 %vm784_vm1, %v303_v22  ;;  %10715 = vmatmul.mubr.msk.f32.gmra.mxu1 %vm784_vm1, %v687_v62 }
 0x257   :  { %v7623_v34 = vadd.f32 %v14258_v49, %v7424_v48  ;;  %v7719_v35 = vadd.f32 %v14258_v49, %v7520_v59  ;;  %8102 = vst.msk [vmem:[%s17241_s3 + $0x440] sm:$0xff] %vm7965_vm2, %v7909_v46  ;;  %v17970_v18 = vmax.f32 %v17968_v53, %v17969_v6  ;;  %v7330_v16 = vmax.f32 %v17971_v29, %v6019_v5  ;;  %v17974_v31 = vld [vmem:[#allocation48_spill] sm:$0xff]  ;;  %v17980_v36 = vld [vmem:[#allocation49_spill] sm:$0xff]  ;;  %v17983_v48 = vld [vmem:[#allocation35_spill] sm:$0xff]  ;;  %v14814_v59 = vpop.f32.mrf.mxu0  ;;  %v14822_v55 = vpop.f32.mrf.mxu1 }
 0x258   :  { %v7626_v4 = vadd.f32 %v14258_v49, %v7427_v3  ;;  %v7523_v14 = vmax.f32 %v17967_v25, %v7331_v12  ;;  %8009 = vst.msk [vmem:[%s17241_s3 + $0x158] sm:$0xff] %vm7965_vm2, %v7816_v42  ;;  %8105 = vst.msk [vmem:[%s17241_s3 + $0x458] sm:$0xff] %vm7965_vm2, %v7912_v11  ;;  %v7237_v15 = vmax.f32 %v17972_v2, %v9993_v13  ;;  %v688_v8 = vld [vmem:[%s17239_s0 + $0x1510] sm:$0xff]  ;;  %v17984_v23 = vld [vmem:[#allocation70_spill] sm:$0xff]  ;;  %10141 = vmatprep.mubr.msk.f32.mxu0 %vm784_vm1, %v304_v38 }
 0x259   :  { %v7426_v32 = vmax.f32 %v17970_v18, %v7234_v28  ;;  %v7815_v50 = vmax.f32 %v7623_v34, 0.0  ;;  %v7911_v27 = vmax.f32 %v7719_v35, 0.0  ;;  %v7333_v60 = vmax.f32 %v17973_v10, %v10569_v39  ;;  %v17978_v7 = vld [vmem:[#allocation88_spill] sm:$0xff]  ;;  %v305_v41 = vld [vmem:[%s17239_s0 + $0x918] sm:$0xff]  ;;  %v17985_v43 = vld [vmem:[#allocation75_spill] sm:$0xff]  ;;  %v14837_v11 = vpop.f32.mrf.mxu0  ;;  %10717 = vmatprep.mubr.msk.f32.mxu1 %vm784_vm1, %v688_v8 }
 0x25a   :  { %v7818_v37 = vmax.f32 %v7626_v4, 0.0  ;;  %v7722_v33 = vadd.f32 %v14258_v49, %v7523_v14  ;;  %v17976_v63 = vmax.f32 %v17974_v31, %v17975_v51  ;;  %v17979_v61 = vmax.f32 %v17977_v44, %v17978_v7  ;;  %v17986_v12 = vld [vmem:[#allocation90_spill] sm:$0xff]  ;;  %v17988_v5 = vld [vmem:[#allocation76_spill] sm:$0xff]  ;;  %v17989_v9 = vld [vmem:[#allocation27_spill] sm:$0xff]  ;;  %v14854_v4 = vpop.f32.mrf.mxu1  ;;  %10142 = vmatmul.mubr.msk.f32.gmra.mxu0 %vm784_vm1, %v305_v41 }
 0x25b   :  { %v7625_v17 = vadd.f32 %v14258_v49, %v7426_v32  ;;  %8008 = vst.msk [vmem:[%s17241_s3 + $0x150] sm:$0xff] %vm7965_vm2, %v7815_v50  ;;  %8104 = vst.msk [vmem:[%s17241_s3 + $0x450] sm:$0xff] %vm7965_vm2, %v7911_v27  ;;  %v17982_v24 = vmax.f32 %v17980_v36, %v17981_v57  ;;  %v7236_v52 = vmax.f32 %v17983_v48, %v4109_v58  ;;  %v689_v34 = vld [vmem:[%s17239_s0 + $0x1518] sm:$0xff]  ;;  %v306_v35 = vld [vmem:[%s17239_s0 + $0x920] sm:$0xff]  ;;  %v14861_v6 = vpop.f32.mrf.mxu0 }
 0x25c   :  { %v7522_v54 = vmax.f32 %v17976_v63, %v7330_v16  ;;  %v7429_v26 = vmax.f32 %v17979_v61, %v7237_v15  ;;  %v7332_v0 = vmax.f32 %v17984_v23, %v6029_v19  ;;  %8011 = vst.msk [vmem:[%s17241_s3 + $0x168] sm:$0xff] %vm7965_vm2, %v7818_v37  ;;  %v7914_v47 = vmax.f32 %v7722_v33, 0.0  ;;  %v690_v56 = vld [vmem:[%s17239_s0 + $0x1520] sm:$0xff]  ;;  %v14868_v18 = vpop.f32.mrf.mxu1  ;;  %10718 = vmatmul.mubr.msk.f32.gmra.mxu1 %vm784_vm1, %v689_v34  ;;  %v307_v32 = vld [vmem:[%s17239_s0 + $0x928] sm:$0xff]  ;;  %v308_v22 = vld [vmem:[%s17239_s0 + $0x930] sm:$0xff] }
 0x25d   :  { %v7525_v20 = vmax.f32 %v17982_v24, %v7333_v60  ;;  %v7817_v21 = vmax.f32 %v7625_v17, 0.0  ;;  %v17987_v30 = vmax.f32 %v17985_v43, %v17986_v12  ;;  %v17990_v40 = vmax.f32 %v17988_v5, %v17989_v9  ;;  %10144 = vmatprep.mubr.msk.f32.mxu0 %vm784_vm1, %v306_v35  ;;  %v14883_v16 = vpop.f32.mrf.mxu0  ;;  %10720 = vmatprep.mubr.msk.f32.mxu1 %vm784_vm1, %v690_v56  ;;  %v691_v39 = vld [vmem:[%s17239_s0 + $0x1528] sm:$0xff]  ;;  %v692_v27 = vld [vmem:[%s17239_s0 + $0x1530] sm:$0xff]  ;;  %v309_v10 = vld [vmem:[%s17239_s0 + $0x938] sm:$0xff] }
 0x25e   :  { %v7721_v46 = vadd.f32 %v14258_v49, %v7522_v54  ;;  %v7628_v45 = vadd.f32 %v14258_v49, %v7429_v26  ;;  %8107 = vst.msk [vmem:[%s17241_s3 + $0x468] sm:$0xff] %vm7965_vm2, %v7914_v47  ;;  %v14892_v50 = vpop.f32.mrf.mxu1  ;;  %10145 = vmatmul.mubr.msk.f32.gmra.mxu0 %vm784_vm1, %v307_v32  ;;  %v693_v58 = vld [vmem:[%s17239_s0 + $0x1538] sm:$0xff]  ;;  %v310_v62 = vld [vmem:[%s17239_s0 + $0x940] sm:$0xff]  ;;  %v311_v31 = vld [vmem:[%s17239_s0 + $0x948] sm:$0xff] }
 0x25f   :  { %v7724_v3 = vadd.f32 %v14258_v49, %v7525_v20  ;;  %v7428_v28 = vmax.f32 %v17987_v30, %v7236_v52  ;;  %v7524_v42 = vmax.f32 %v17990_v40, %v7332_v0  ;;  %8010 = vst.msk [vmem:[%s17241_s3 + $0x160] sm:$0xff] %vm7965_vm2, %v7817_v21  ;;  %v14905_v2 = vpop.f32.mrf.mxu0  ;;  %10147 = vmatprep.mubr.msk.f32.mxu0 %vm784_vm1, %v308_v22  ;;  %v694_v37 = vld [vmem:[%s17239_s0 + $0x1540] sm:$0xff]  ;;  %v695_v63 = vld [vmem:[%s17239_s0 + $0x1548] sm:$0xff]  ;;  %v312_v54 = vld [vmem:[%s17239_s0 + $0x950] sm:$0xff] }
 0x260   :  { %v7913_v13 = vmax.f32 %v7721_v46, 0.0  ;;  %v7820_v1 = vmax.f32 %v7628_v45, 0.0  ;;  %v14908_v15 = vpop.f32.mrf.mxu1  ;;  %10721 = vmatmul.mubr.msk.f32.gmra.mxu1 %vm784_vm1, %v691_v39  ;;  %v696_v8 = vld [vmem:[%s17239_s0 + $0x1550] sm:$0xff]  ;;  %v313_v61 = vld [vmem:[%s17239_s0 + $0x958] sm:$0xff]  ;;  %v314_v57 = vld [vmem:[%s17239_s0 + $0x960] sm:$0xff] }
 0x261   :  { %v7916_v25 = vmax.f32 %v7724_v3, 0.0  ;;  %v7627_v14 = vadd.f32 %v14258_v49, %v7428_v28  ;;  %v7723_v53 = vadd.f32 %v14258_v49, %v7524_v42  ;;  %17991 = vst [vmem:[#allocation36_spill] sm:$0xff] %v14908_v15  ;;  %v14915_v60 = vpop.f32.mrf.mxu0  ;;  %10723 = vmatprep.mubr.msk.f32.mxu1 %vm784_vm1, %v692_v27  ;;  %v697_v36 = vld [vmem:[%s17239_s0 + $0x1558] sm:$0xff]  ;;  %v698_v20 = vld [vmem:[%s17239_s0 + $0x1560] sm:$0xff]  ;;  %v315_v23 = vld [vmem:[%s17239_s0 + $0x968] sm:$0xff] }
 0x262   :  { %8106 = vst.msk [vmem:[%s17241_s3 + $0x460] sm:$0xff] %vm7965_vm2, %v7913_v13  ;;  %8013 = vst.msk [vmem:[%s17241_s3 + $0x178] sm:$0xff] %vm7965_vm2, %v7820_v1  ;;  %v14924_v38 = vpop.f32.mrf.mxu1  ;;  %10148 = vmatmul.mubr.msk.f32.gmra.mxu0 %vm784_vm1, %v309_v10  ;;  %v699_v47 = vld [vmem:[%s17239_s0 + $0x1568] sm:$0xff]  ;;  %v316_v21 = vld [vmem:[%s17239_s0 + $0x970] sm:$0xff] }
 0x263   :  { %8109 = vst.msk [vmem:[%s17241_s3 + $0x478] sm:$0xff] %vm7965_vm2, %v7916_v25  ;;  %v7819_v49 = vmax.f32 %v7627_v14, 0.0  ;;  %v7915_v29 = vmax.f32 %v7723_v53, 0.0  ;;  %v14929_v33 = vpop.f32.mrf.mxu0  ;;  %10150 = vmatprep.mubr.msk.f32.mxu0 %vm784_vm1, %v310_v62  ;;  %v700_v41 = vld [vmem:[%s17239_s0 + $0x1570] sm:$0xff]  ;;  %v317_v43 = vld [vmem:[%s17239_s0 + $0x978] sm:$0xff]  ;;  %v318_v28 = vld [vmem:[%s17239_s0 + $0x980] sm:$0xff] }
 0x264   :  { %v14932_v17 = vpop.f32.mrf.mxu1  ;;  %10724 = vmatmul.mubr.msk.f32.gmra.mxu1 %vm784_vm1, %v693_v58  ;;  %v701_v30 = vld [vmem:[%s17239_s0 + $0x1578] sm:$0xff]  ;;  %v702_v9 = vld [vmem:[%s17239_s0 + $0x1580] sm:$0xff]  ;;  %v319_v34 = vld [vmem:[%s17239_s0 + $0x988] sm:$0xff] }
 0x265   :  { %8012 = vst.msk [vmem:[%s17241_s3 + $0x170] sm:$0xff] %vm7965_vm2, %v7819_v49  ;;  %8108 = vst.msk [vmem:[%s17241_s3 + $0x470] sm:$0xff] %vm7965_vm2, %v7915_v29  ;;  %v14939_v51 = vpop.f32.mrf.mxu0  ;;  %10726 = vmatprep.mubr.msk.f32.mxu1 %vm784_vm1, %v694_v37  ;;  %v703_v13 = vld [vmem:[%s17239_s0 + $0x1588] sm:$0xff]  ;;  %v320_v56 = vld [vmem:[%s17239_s0 + $0x990] sm:$0xff] }
 0x266   :  { %17992 = vst [vmem:[#allocation71_spill] sm:$0xff] %v14932_v17  ;;  %v14948_v19 = vpop.f32.mrf.mxu1  ;;  %10151 = vmatmul.mubr.msk.f32.gmra.mxu0 %vm784_vm1, %v311_v31  ;;  %v704_v25 = vld [vmem:[%s17239_s0 + $0x1590] sm:$0xff]  ;;  %v321_v32 = vld [vmem:[%s17239_s0 + $0x998] sm:$0xff]  ;;  %v322_v39 = vld [vmem:[%s17239_s0 + $0x9a0] sm:$0xff] }
 0x267   :  { %v14953_v44 = vpop.f32.mrf.mxu0  ;;  %10153 = vmatprep.mubr.msk.f32.mxu0 %vm784_vm1, %v312_v54  ;;  %v705_v29 = vld [vmem:[%s17239_s0 + $0x1598] sm:$0xff]  ;;  %v706_v27 = vld [vmem:[%s17239_s0 + $0x15a0] sm:$0xff]  ;;  %v323_v62 = vld [vmem:[%s17239_s0 + $0x9a8] sm:$0xff] }
 0x268   :  { %v14956_v7 = vpop.f32.mrf.mxu1  ;;  %10727 = vmatmul.mubr.msk.f32.gmra.mxu1 %vm784_vm1, %v695_v63  ;;  %v707_v31 = vld [vmem:[%s17239_s0 + $0x15a8] sm:$0xff]  ;;  %v324_v63 = vld [vmem:[%s17239_s0 + $0x9b0] sm:$0xff] }
 0x269   :  { %17993 = vst [vmem:[#allocation2_spill] sm:$0xff] %v14956_v7  ;;  %v14963_v26 = vpop.f32.mrf.mxu0  ;;  %10729 = vmatprep.mubr.msk.f32.mxu1 %vm784_vm1, %v696_v8  ;;  %v708_v8 = vld [vmem:[%s17239_s0 + $0x15b0] sm:$0xff] }
 0x26a   :  { %v14972_v24 = vpop.f32.mrf.mxu1  ;;  %10154 = vmatmul.mubr.msk.f32.gmra.mxu0 %vm784_vm1, %v313_v61 }
 0x26b   :  { %v14977_v48 = vpop.f32.mrf.mxu0  ;;  %10156 = vmatprep.mubr.msk.f32.mxu0 %vm784_vm1, %v314_v57  ;;  %v325_v57 = vld [vmem:[%s17239_s0 + $0x9b8] sm:$0xff] }
 0x26c   :  { %v14980_v52 = vpop.f32.mrf.mxu1  ;;  %10730 = vmatmul.mubr.msk.f32.gmra.mxu1 %vm784_vm1, %v697_v36 }
 0x26d   :  { %17994 = vst [vmem:[#allocation15_spill] sm:$0xff] %v14980_v52  ;;  %v14987_v0 = vpop.f32.mrf.mxu0  ;;  %10732 = vmatprep.mubr.msk.f32.mxu1 %vm784_vm1, %v698_v20 }
 0x26e   :  { %17995 = vst [vmem:[#allocation50_spill] sm:$0xff] %v14987_v0  ;;  %v14996_v46 = vpop.f32.mrf.mxu1  ;;  %10157 = vmatmul.mubr.msk.f32.gmra.mxu0 %vm784_vm1, %v315_v23  ;;  %v709_v23 = vld [vmem:[%s17239_s0 + $0x15b8] sm:$0xff] }
 0x26f   :  { %17996 = vst [vmem:[#allocation16_spill] sm:$0xff] %v14996_v46  ;;  %v15001_v45 = vpop.f32.mrf.mxu0  ;;  %10159 = vmatprep.mubr.msk.f32.mxu0 %vm784_vm1, %v316_v21 }
 0x270   :  { %17997 = vst [vmem:[#allocation37_spill] sm:$0xff] %v15001_v45  ;;  %v15004_v3 = vpop.f32.mrf.mxu1  ;;  %10733 = vmatmul.mubr.msk.f32.gmra.mxu1 %vm784_vm1, %v699_v47  ;;  %v326_v47 = vld [vmem:[%s17239_s0 + $0x9c0] sm:$0xff] }
 0x271   :  { %17998 = vst [vmem:[#allocation51_spill] sm:$0xff] %v15004_v3  ;;  %v15011_v12 = vpop.f32.mrf.mxu0  ;;  %10735 = vmatprep.mubr.msk.f32.mxu1 %vm784_vm1, %v700_v41  ;;  %v710_v41 = vld [vmem:[%s17239_s0 + $0x15c0] sm:$0xff] }
 0x272   :  { %17999 = vst [vmem:[#allocation77_spill] sm:$0xff] %v15011_v12  ;;  %v15020_v5 = vpop.f32.mrf.mxu1  ;;  %10160 = vmatmul.mubr.msk.f32.gmra.mxu0 %vm784_vm1, %v317_v43  ;;  %v749_v12 = vld [vmem:[%s17239_s0 + $0x16f8] sm:$0xff] }
 0x273   :  { %18000 = vst [vmem:[#allocation78_spill] sm:$0xff] %v15020_v5  ;;  %v15025_v40 = vpop.f32.mrf.mxu0  ;;  %10162 = vmatprep.mubr.msk.f32.mxu0 %vm784_vm1, %v318_v28  ;;  %v327_v28 = vld [vmem:[%s17239_s0 + $0x9c8] sm:$0xff] }
 0x274   :  { %18001 = vst [vmem:[#allocation3_spill] sm:$0xff] %v15025_v40  ;;  %v15028_v42 = vpop.f32.mrf.mxu1  ;;  %10736 = vmatmul.mubr.msk.f32.gmra.mxu1 %vm784_vm1, %v701_v30 }
 0x275   :  { %18002 = vst [vmem:[#allocation17_spill] sm:$0xff] %v15028_v42  ;;  %v15035_v35 = vpop.f32.mrf.mxu0  ;;  %10738 = vmatprep.mubr.msk.f32.mxu1 %vm784_vm1, %v702_v9 }
 0x276   :  { %18003 = vst [vmem:[#allocation52_spill] sm:$0xff] %v15035_v35  ;;  %v15044_v1 = vpop.f32.mrf.mxu1  ;;  %10163 = vmatmul.mubr.msk.f32.gmra.mxu0 %vm784_vm1, %v319_v34  ;;  %v711_v34 = vld [vmem:[%s17239_s0 + $0x15c8] sm:$0xff] }
 0x277   :  { %18004 = vst [vmem:[#allocation18_spill] sm:$0xff] %v15044_v1  ;;  %v15049_v14 = vpop.f32.mrf.mxu0  ;;  %10165 = vmatprep.mubr.msk.f32.mxu0 %vm784_vm1, %v320_v56  ;;  %v747_v35 = vld [vmem:[%s17239_s0 + $0x16e8] sm:$0xff] }
 0x278   :  { %18005 = vst [vmem:[#allocation38_spill] sm:$0xff] %v15049_v14  ;;  %v15052_v53 = vpop.f32.mrf.mxu1  ;;  %10739 = vmatmul.mubr.msk.f32.gmra.mxu1 %vm784_vm1, %v703_v13  ;;  %v328_v13 = vld [vmem:[%s17239_s0 + $0x9d0] sm:$0xff] }
 0x279   :  { %18006 = vst [vmem:[#allocation53_spill] sm:$0xff] %v15052_v53  ;;  %v15059_v49 = vpop.f32.mrf.mxu0  ;;  %10741 = vmatprep.mubr.msk.f32.mxu1 %vm784_vm1, %v704_v25  ;;  %v712_v25 = vld [vmem:[%s17239_s0 + $0x15d0] sm:$0xff] }
 0x27a   :  { %18007 = vst [vmem:[#allocation79_spill] sm:$0xff] %v15059_v49  ;;  %v15068_v22 = vpop.f32.mrf.mxu1  ;;  %10166 = vmatmul.mubr.msk.f32.gmra.mxu0 %vm784_vm1, %v321_v32  ;;  %v745_v49 = vld [vmem:[%s17239_s0 + $0x16d8] sm:$0xff] }
 0x27b   :  { %18008 = vst [vmem:[#allocation80_spill] sm:$0xff] %v15068_v22  ;;  %v15073_v10 = vpop.f32.mrf.mxu0  ;;  %10168 = vmatprep.mubr.msk.f32.mxu0 %vm784_vm1, %v322_v39 }
 0x27c   :  { %18009 = vst [vmem:[#allocation4_spill] sm:$0xff] %v15073_v10  ;;  %v15076_v58 = vpop.f32.mrf.mxu1  ;;  %10742 = vmatmul.mubr.msk.f32.gmra.mxu1 %vm784_vm1, %v705_v29 }
 0x27d   :  { %18010 = vst [vmem:[#allocation81_spill] sm:$0xff] %v15076_v58  ;;  %v15083_v37 = vpop.f32.mrf.mxu0  ;;  %10744 = vmatprep.mubr.msk.f32.mxu1 %vm784_vm1, %v706_v27  ;;  %v329_v27 = vld [vmem:[%s17239_s0 + $0x9d8] sm:$0xff] }
 0x27e   :  { %18011 = vst [vmem:[#allocation39_spill] sm:$0xff] %v15083_v37  ;;  %v15092_v54 = vpop.f32.mrf.mxu1  ;;  %10169 = vmatmul.mubr.msk.f32.gmra.mxu0 %vm784_vm1, %v323_v62  ;;  %v743_v37 = vld [vmem:[%s17239_s0 + $0x16c8] sm:$0xff] }
 0x27f   :  { %18012 = vst [vmem:[#allocation82_spill] sm:$0xff] %v15092_v54  ;;  %v15097_v61 = vpop.f32.mrf.mxu0  ;;  %10171 = vmatprep.mubr.msk.f32.mxu0 %vm784_vm1, %v324_v63  ;;  %v713_v63 = vld [vmem:[%s17239_s0 + $0x15d8] sm:$0xff] }
 0x280   :  { %18013 = vst [vmem:[#allocation5_spill] sm:$0xff] %v15097_v61  ;;  %v15100_v36 = vpop.f32.mrf.mxu1  ;;  %10745 = vmatmul.mubr.msk.f32.gmra.mxu1 %vm784_vm1, %v707_v31 }
 0x281   :  { %18014 = vst [vmem:[#allocation19_spill] sm:$0xff] %v15100_v36  ;;  %v15107_v20 = vpop.f32.mrf.mxu0  ;;  %10747 = vmatprep.mubr.msk.f32.mxu1 %vm784_vm1, %v708_v8  ;;  %v330_v8 = vld [vmem:[%s17239_s0 + $0x9e0] sm:$0xff] }
 0x282   :  { %18015 = vst [vmem:[#allocation40_spill] sm:$0xff] %v15107_v20  ;;  %v15116_v21 = vpop.f32.mrf.mxu1  ;;  %10172 = vmatmul.mubr.msk.f32.gmra.mxu0 %vm784_vm1, %v325_v57  ;;  %v741_v20 = vld [vmem:[%s17239_s0 + $0x16b8] sm:$0xff] }
 0x283   :  { %18016 = vst [vmem:[#allocation54_spill] sm:$0xff] %v15116_v21  ;;  %v15121_v43 = vpop.f32.mrf.mxu0  ;;  %10174 = vmatprep.mubr.msk.f32.mxu0 %vm784_vm1, %v326_v47  ;;  %v714_v47 = vld [vmem:[%s17239_s0 + $0x15e0] sm:$0xff] }
 0x284   :  { %18017 = vst [vmem:[#allocation62_spill] sm:$0xff] %v15121_v43  ;;  %v15124_v30 = vpop.f32.mrf.mxu1  ;;  %10748 = vmatmul.mubr.msk.f32.gmra.mxu1 %vm784_vm1, %v709_v23 }
 0x285   :  { %18018 = vst [vmem:[#allocation28_spill] sm:$0xff] %v15124_v30  ;;  %v15131_v9 = vpop.f32.mrf.mxu0  ;;  %10750 = vmatprep.mubr.msk.f32.mxu1 %vm784_vm1, %v710_v41  ;;  %v716_v41 = vld [vmem:[%s17239_s0 + $0x15f0] sm:$0xff] }
 0x286   :  { %18019 = vst [vmem:[#allocation6_spill] sm:$0xff] %v15131_v9  ;;  %v15140_v56 = vpop.f32.mrf.mxu1  ;;  %10175 = vmatmul.mubr.msk.f32.gmra.mxu0 %vm784_vm1, %v327_v28 }
 0x287   :  { %18020 = vst [vmem:[#allocation20_spill] sm:$0xff] %v15140_v56  ;;  %v15145_v32 = vpop.f32.mrf.mxu0  ;;  %10177 = vmatprep.mubr.msk.f32.mxu0 %vm784_vm1, %v328_v13 }
 0x288   :  { %v15150_v39 = vpop.f32.mrf.mxu1  ;;  %10751 = vmatmul.mubr.msk.f32.gmra.mxu1 %vm784_vm1, %v711_v34 }
 0x289   :  { %v15159_v31 = vpop.f32.mrf.mxu0  ;;  %10753 = vmatprep.mubr.msk.f32.mxu1 %vm784_vm1, %v712_v25  ;;  %v331_v25 = vld [vmem:[%s17239_s0 + $0x9e8] sm:$0xff] }
 0x28a   :  { %v15170_v23 = vpop.f32.mrf.mxu1  ;;  %10178 = vmatmul.mubr.msk.f32.gmra.mxu0 %vm784_vm1, %v329_v27  ;;  %v715_v27 = vld [vmem:[%s17239_s0 + $0x15e8] sm:$0xff] }
 0x28b   :  { %v15177_v28 = vpop.f32.mrf.mxu0  ;;  %10180 = vmatprep.mubr.msk.f32.mxu0 %vm784_vm1, %v330_v8  ;;  %v333_v8 = vld [vmem:[%s17239_s0 + $0x9f8] sm:$0xff] }
 0x28c   :  { %v15182_v13 = vpop.f32.mrf.mxu1  ;;  %10754 = vmatmul.mubr.msk.f32.gmra.mxu1 %vm784_vm1, %v713_v63  ;;  %v332_v63 = vld [vmem:[%s17239_s0 + $0x9f0] sm:$0xff] }
 0x28d   :  { %18021 = vst [vmem:[#allocation41_spill] sm:$0xff] %v15182_v13  ;;  %v15191_v57 = vpop.f32.mrf.mxu0  ;;  %10756 = vmatprep.mubr.msk.f32.mxu1 %vm784_vm1, %v714_v47  ;;  %v718_v47 = vld [vmem:[%s17239_s0 + $0x1600] sm:$0xff] }
 0x28e   :  { %v15202_v34 = vpop.f32.mrf.mxu1  ;;  %10181 = vmatmul.mubr.msk.f32.gmra.mxu0 %vm784_vm1, %v331_v25  ;;  %v717_v25 = vld [vmem:[%s17239_s0 + $0x15f8] sm:$0xff] }
 0x28f   :  { %18022 = vst [vmem:[#allocation55_spill] sm:$0xff] %v15202_v34  ;;  %v15209_v62 = vpop.f32.mrf.mxu0  ;;  %10183 = vmatprep.mubr.msk.f32.mxu0 %vm784_vm1, %v332_v63  ;;  %v335_v63 = vld [vmem:[%s17239_s0 + $0xa08] sm:$0xff] }
 0x290   :  { %18023 = vst [vmem:[#allocation63_spill] sm:$0xff] %v15209_v62  ;;  %v15214_v13 = vpop.f32.mrf.mxu1  ;;  %10757 = vmatmul.mubr.msk.f32.gmra.mxu1 %vm784_vm1, %v715_v27  ;;  %v334_v27 = vld [vmem:[%s17239_s0 + $0xa00] sm:$0xff] }
 0x291   :  { %18024 = vst [vmem:[#allocation29_spill] sm:$0xff] %v15214_v13  ;;  %v15223_v34 = vpop.f32.mrf.mxu0  ;;  %10759 = vmatprep.mubr.msk.f32.mxu1 %vm784_vm1, %v716_v41  ;;  %v720_v41 = vld [vmem:[%s17239_s0 + $0x1610] sm:$0xff] }
 0x292   :  { %v15234_v29 = vpop.f32.mrf.mxu1  ;;  %10184 = vmatmul.mubr.msk.f32.gmra.mxu0 %vm784_vm1, %v333_v8  ;;  %v719_v8 = vld [vmem:[%s17239_s0 + $0x1608] sm:$0xff] }
 0x293   :  { %18025 = vst [vmem:[#allocation64_spill] sm:$0xff] %v15234_v29  ;;  %v15241_v13 = vpop.f32.mrf.mxu0  ;;  %10186 = vmatprep.mubr.msk.f32.mxu0 %vm784_vm1, %v334_v27  ;;  %v337_v27 = vld [vmem:[%s17239_s0 + $0xa18] sm:$0xff] }
 0x294   :  { %18026 = vst [vmem:[#allocation7_spill] sm:$0xff] %v15241_v13  ;;  %v15246_v62 = vpop.f32.mrf.mxu1  ;;  %10760 = vmatmul.mubr.msk.f32.gmra.mxu1 %vm784_vm1, %v717_v25  ;;  %v336_v25 = vld [vmem:[%s17239_s0 + $0xa10] sm:$0xff] }
 0x295   :  { %18027 = vst [vmem:[#allocation21_spill] sm:$0xff] %v15246_v62  ;;  %v15255_v29 = vpop.f32.mrf.mxu0  ;;  %10762 = vmatprep.mubr.msk.f32.mxu1 %vm784_vm1, %v718_v47  ;;  %v722_v47 = vld [vmem:[%s17239_s0 + $0x1620] sm:$0xff] }
 0x296   :  { %v15266_v15 = vpop.f32.mrf.mxu1  ;;  %10187 = vmatmul.mubr.msk.f32.gmra.mxu0 %vm784_vm1, %v335_v63  ;;  %v721_v63 = vld [vmem:[%s17239_s0 + $0x1618] sm:$0xff] }
 0x297   :  { %18028 = vst [vmem:[#allocation42_spill] sm:$0xff] %v15266_v15  ;;  %v15273_v62 = vpop.f32.mrf.mxu0  ;;  %10189 = vmatprep.mubr.msk.f32.mxu0 %vm784_vm1, %v336_v25  ;;  %v339_v25 = vld [vmem:[%s17239_s0 + $0xa28] sm:$0xff] }
 0x298   :  { %18029 = vst [vmem:[#allocation56_spill] sm:$0xff] %v15273_v62  ;;  %v15278_v13 = vpop.f32.mrf.mxu1  ;;  %10763 = vmatmul.mubr.msk.f32.gmra.mxu1 %vm784_vm1, %v719_v8  ;;  %v338_v8 = vld [vmem:[%s17239_s0 + $0xa20] sm:$0xff] }
 0x299   :  { %18030 = vst [vmem:[#allocation8_spill] sm:$0xff] %v15278_v13  ;;  %v15287_v15 = vpop.f32.mrf.mxu0  ;;  %10765 = vmatprep.mubr.msk.f32.mxu1 %vm784_vm1, %v720_v41  ;;  %v724_v41 = vld [vmem:[%s17239_s0 + $0x1630] sm:$0xff] }
 0x29a   :  { %v15298_v17 = vpop.f32.mrf.mxu1  ;;  %10190 = vmatmul.mubr.msk.f32.gmra.mxu0 %vm784_vm1, %v337_v27  ;;  %v723_v27 = vld [vmem:[%s17239_s0 + $0x1628] sm:$0xff] }
 0x29b   :  { %18031 = vst [vmem:[#allocation22_spill] sm:$0xff] %v15298_v17  ;;  %v15305_v13 = vpop.f32.mrf.mxu0  ;;  %10192 = vmatprep.mubr.msk.f32.mxu0 %vm784_vm1, %v338_v8  ;;  %v341_v8 = vld [vmem:[%s17239_s0 + $0xa38] sm:$0xff] }
 0x29c   :  { %18032 = vst [vmem:[#allocation30_spill] sm:$0xff] %v15305_v13  ;;  %v15310_v62 = vpop.f32.mrf.mxu1  ;;  %10766 = vmatmul.mubr.msk.f32.gmra.mxu1 %vm784_vm1, %v721_v63  ;;  %v340_v63 = vld [vmem:[%s17239_s0 + $0xa30] sm:$0xff] }
 0x29d   :  { %18033 = vst [vmem:[#allocation65_spill] sm:$0xff] %v15310_v62  ;;  %v15319_v17 = vpop.f32.mrf.mxu0  ;;  %10768 = vmatprep.mubr.msk.f32.mxu1 %vm784_vm1, %v722_v47  ;;  %v726_v47 = vld [vmem:[%s17239_s0 + $0x1640] sm:$0xff] }
 0x29e   :  { %18034 = vst [vmem:[#allocation91_spill] sm:$0xff] %v15319_v17  ;;  %v15330_v7 = vpop.f32.mrf.mxu1  ;;  %10193 = vmatmul.mubr.msk.f32.gmra.mxu0 %vm784_vm1, %v339_v25  ;;  %v725_v25 = vld [vmem:[%s17239_s0 + $0x1638] sm:$0xff] }
 0x29f   :  { %18035 = vst [vmem:[#allocation43_spill] sm:$0xff] %v15330_v7  ;;  %v15337_v62 = vpop.f32.mrf.mxu0  ;;  %10195 = vmatprep.mubr.msk.f32.mxu0 %vm784_vm1, %v340_v63  ;;  %v343_v63 = vld [vmem:[%s17239_s0 + $0xa48] sm:$0xff] }
 0x2a0   :  { %18036 = vst [vmem:[#allocation57_spill] sm:$0xff] %v15337_v62  ;;  %v15342_v13 = vpop.f32.mrf.mxu1  ;;  %10769 = vmatmul.mubr.msk.f32.gmra.mxu1 %vm784_vm1, %v723_v27  ;;  %v342_v27 = vld [vmem:[%s17239_s0 + $0xa40] sm:$0xff] }
 0x2a1   :  { %18037 = vst [vmem:[#allocation9_spill] sm:$0xff] %v15342_v13  ;;  %v15351_v7 = vpop.f32.mrf.mxu0  ;;  %10771 = vmatprep.mubr.msk.f32.mxu1 %vm784_vm1, %v724_v41  ;;  %v728_v41 = vld [vmem:[%s17239_s0 + $0x1650] sm:$0xff] }
 0x2a2   :  { %18038 = vst [vmem:[#allocation83_spill] sm:$0xff] %v15351_v7  ;;  %v15362_v52 = vpop.f32.mrf.mxu1  ;;  %10196 = vmatmul.mubr.msk.f32.gmra.mxu0 %vm784_vm1, %v341_v8  ;;  %v727_v8 = vld [vmem:[%s17239_s0 + $0x1648] sm:$0xff] }
 0x2a3   :  { %18039 = vst [vmem:[#allocation44_spill] sm:$0xff] %v15362_v52  ;;  %v15369_v13 = vpop.f32.mrf.mxu0  ;;  %10198 = vmatprep.mubr.msk.f32.mxu0 %vm784_vm1, %v342_v27  ;;  %v345_v27 = vld [vmem:[%s17239_s0 + $0xa58] sm:$0xff] }
 0x2a4   :  { %18040 = vst [vmem:[#allocation84_spill] sm:$0xff] %v15369_v13  ;;  %v15374_v62 = vpop.f32.mrf.mxu1  ;;  %10772 = vmatmul.mubr.msk.f32.gmra.mxu1 %vm784_vm1, %v725_v25  ;;  %v344_v25 = vld [vmem:[%s17239_s0 + $0xa50] sm:$0xff] }
 0x2a5   :  { %18041 = vst [vmem:[#allocation92_spill] sm:$0xff] %v15374_v62  ;;  %v15383_v52 = vpop.f32.mrf.mxu0  ;;  %10774 = vmatprep.mubr.msk.f32.mxu1 %vm784_vm1, %v726_v47  ;;  %v730_v47 = vld [vmem:[%s17239_s0 + $0x1660] sm:$0xff] }
 0x2a6   :  { %18042 = vst [vmem:[#allocation31_spill] sm:$0xff] %v15383_v52  ;;  %v15394_v3 = vpop.f32.mrf.mxu1  ;;  %10199 = vmatmul.mubr.msk.f32.gmra.mxu0 %vm784_vm1, %v343_v63  ;;  %v729_v63 = vld [vmem:[%s17239_s0 + $0x1658] sm:$0xff] }
 0x2a7   :  { %18043 = vst [vmem:[#allocation10_spill] sm:$0xff] %v15394_v3  ;;  %v15401_v62 = vpop.f32.mrf.mxu0  ;;  %10201 = vmatprep.mubr.msk.f32.mxu0 %vm784_vm1, %v344_v25  ;;  %v347_v25 = vld [vmem:[%s17239_s0 + $0xa68] sm:$0xff] }
 0x2a8   :  { %18044 = vst [vmem:[#allocation23_spill] sm:$0xff] %v15401_v62  ;;  %v15406_v13 = vpop.f32.mrf.mxu1  ;;  %10775 = vmatmul.mubr.msk.f32.gmra.mxu1 %vm784_vm1, %v727_v8  ;;  %v346_v8 = vld [vmem:[%s17239_s0 + $0xa60] sm:$0xff] }
 0x2a9   :  { %18045 = vst [vmem:[#allocation45_spill] sm:$0xff] %v15406_v13  ;;  %v15415_v3 = vpop.f32.mrf.mxu0  ;;  %10777 = vmatprep.mubr.msk.f32.mxu1 %vm784_vm1, %v728_v41  ;;  %v732_v41 = vld [vmem:[%s17239_s0 + $0x1670] sm:$0xff] }
 0x2aa   :  { %18046 = vst [vmem:[#allocation58_spill] sm:$0xff] %v15415_v3  ;;  %v15426_v42 = vpop.f32.mrf.mxu1  ;;  %10202 = vmatmul.mubr.msk.f32.gmra.mxu0 %vm784_vm1, %v345_v27  ;;  %v731_v27 = vld [vmem:[%s17239_s0 + $0x1668] sm:$0xff] }
 0x2ab   :  { %18047 = vst [vmem:[#allocation66_spill] sm:$0xff] %v15426_v42  ;;  %v15433_v13 = vpop.f32.mrf.mxu0  ;;  %10204 = vmatprep.mubr.msk.f32.mxu0 %vm784_vm1, %v346_v8  ;;  %v349_v8 = vld [vmem:[%s17239_s0 + $0xa78] sm:$0xff] }
 0x2ac   :  { %18048 = vst [vmem:[#allocation32_spill] sm:$0xff] %v15433_v13  ;;  %v15438_v62 = vpop.f32.mrf.mxu1  ;;  %10778 = vmatmul.mubr.msk.f32.gmra.mxu1 %vm784_vm1, %v729_v63  ;;  %v348_v63 = vld [vmem:[%s17239_s0 + $0xa70] sm:$0xff] }
 0x2ad   :  { %18049 = vst [vmem:[#allocation67_spill] sm:$0xff] %v15438_v62  ;;  %v15447_v42 = vpop.f32.mrf.mxu0  ;;  %10780 = vmatprep.mubr.msk.f32.mxu1 %vm784_vm1, %v730_v47  ;;  %v734_v47 = vld [vmem:[%s17239_s0 + $0x1680] sm:$0xff] }
 0x2ae   :  { %18050 = vst [vmem:[#allocation72_spill] sm:$0xff] %v15447_v42  ;;  %v15458_v53 = vpop.f32.mrf.mxu1  ;;  %10205 = vmatmul.mubr.msk.f32.gmra.mxu0 %vm784_vm1, %v347_v25  ;;  %v733_v25 = vld [vmem:[%s17239_s0 + $0x1678] sm:$0xff] }
 0x2af   :  { %18051 = vst [vmem:[#allocation24_spill] sm:$0xff] %v15458_v53  ;;  %v15465_v62 = vpop.f32.mrf.mxu0  ;;  %10207 = vmatprep.mubr.msk.f32.mxu0 %vm784_vm1, %v348_v63  ;;  %v351_v63 = vld [vmem:[%s17239_s0 + $0xa88] sm:$0xff] }
 0x2b0   :  { %18052 = vst [vmem:[#allocation73_spill] sm:$0xff] %v15465_v62  ;;  %v15470_v13 = vpop.f32.mrf.mxu1  ;;  %10781 = vmatmul.mubr.msk.f32.gmra.mxu1 %vm784_vm1, %v731_v27  ;;  %v350_v27 = vld [vmem:[%s17239_s0 + $0xa80] sm:$0xff] }
 0x2b1   :  { %18053 = vst [vmem:[#allocation59_spill] sm:$0xff] %v15470_v13  ;;  %v15479_v53 = vpop.f32.mrf.mxu0  ;;  %10783 = vmatprep.mubr.msk.f32.mxu1 %vm784_vm1, %v732_v41  ;;  %v736_v41 = vld [vmem:[%s17239_s0 + $0x1690] sm:$0xff] }
 0x2b2   :  { %18054 = vst [vmem:[#allocation74_spill] sm:$0xff] %v15479_v53  ;;  %v15490_v58 = vpop.f32.mrf.mxu1  ;;  %10208 = vmatmul.mubr.msk.f32.gmra.mxu0 %vm784_vm1, %v349_v8  ;;  %v735_v8 = vld [vmem:[%s17239_s0 + $0x1688] sm:$0xff] }
 0x2b3   :  { %18055 = vst [vmem:[#allocation85_spill] sm:$0xff] %v15490_v58  ;;  %v15497_v13 = vpop.f32.mrf.mxu0  ;;  %10210 = vmatprep.mubr.msk.f32.mxu0 %vm784_vm1, %v350_v27  ;;  %v353_v27 = vld [vmem:[%s17239_s0 + $0xa98] sm:$0xff] }
 0x2b4   :  { %18056 = vst [vmem:[#allocation93_spill] sm:$0xff] %v15497_v13  ;;  %v15502_v62 = vpop.f32.mrf.mxu1  ;;  %10784 = vmatmul.mubr.msk.f32.gmra.mxu1 %vm784_vm1, %v733_v25  ;;  %v352_v25 = vld [vmem:[%s17239_s0 + $0xa90] sm:$0xff]  ;;  %v739_v13 = vld [vmem:[%s17239_s0 + $0x16a8] sm:$0xff] }
 0x2b5   :  { %18057 = vst [vmem:[#allocation94_spill] sm:$0xff] %v15502_v62  ;;  %v15511_v58 = vpop.f32.mrf.mxu0  ;;  %10786 = vmatprep.mubr.msk.f32.mxu1 %vm784_vm1, %v734_v47  ;;  %v737_v47 = vld [vmem:[%s17239_s0 + $0x1698] sm:$0xff] }
 0x2b6   :  { %18058 = vst [vmem:[#allocation33_spill] sm:$0xff] %v15511_v58  ;;  %v15522_v36 = vpop.f32.mrf.mxu1  ;;  %10211 = vmatmul.mubr.msk.f32.gmra.mxu0 %vm784_vm1, %v351_v63  ;;  %v354_v63 = vld [vmem:[%s17239_s0 + $0xaa0] sm:$0xff] }
 0x2b7   :  { %18059 = vst [vmem:[#allocation11_spill] sm:$0xff] %v15522_v36  ;;  %v15529_v62 = vpop.f32.mrf.mxu0  ;;  %10213 = vmatprep.mubr.msk.f32.mxu0 %vm784_vm1, %v352_v25 }
 0x2b8   :  { %v15532_v30 = vpop.f32.mrf.mxu1  ;;  %10787 = vmatmul.mubr.msk.f32.gmra.mxu1 %vm784_vm1, %v735_v8  ;;  %v738_v8 = vld [vmem:[%s17239_s0 + $0x16a0] sm:$0xff] }
 0x2b9   :  { %v15539_v58 = vpop.f32.mrf.mxu0  ;;  %10789 = vmatprep.mubr.msk.f32.mxu1 %vm784_vm1, %v736_v41  ;;  %v355_v41 = vld [vmem:[%s17239_s0 + $0xaa8] sm:$0xff] }
 0x2ba   :  { %v15548_v36 = vpop.f32.mrf.mxu1  ;;  %10214 = vmatmul.mubr.msk.f32.gmra.mxu0 %vm784_vm1, %v353_v27  ;;  %v356_v27 = vld [vmem:[%s17239_s0 + $0xab0] sm:$0xff] }
 0x2bb   :  { %v15553_v25 = vpop.f32.mrf.mxu0  ;;  %10216 = vmatprep.mubr.msk.f32.mxu0 %vm784_vm1, %v354_v63 }
 0x2bc   :  { %v15556_v56 = vpop.f32.mrf.mxu1  ;;  %10790 = vmatmul.mubr.msk.f32.gmra.mxu1 %vm784_vm1, %v737_v47  ;;  %v740_v47 = vld [vmem:[%s17239_s0 + $0x16b0] sm:$0xff] }
 0x2bd   :  { %v15563_v9 = vpop.f32.mrf.mxu0  ;;  %10792 = vmatprep.mubr.msk.f32.mxu1 %vm784_vm1, %v738_v8  ;;  %v357_v8 = vld [vmem:[%s17239_s0 + $0xab8] sm:$0xff] }
 0x2be   :  { %v15572_v43 = vpop.f32.mrf.mxu1  ;;  %10217 = vmatmul.mubr.msk.f32.gmra.mxu0 %vm784_vm1, %v355_v41  ;;  %v358_v41 = vld [vmem:[%s17239_s0 + $0xac0] sm:$0xff] }
 0x2bf   :  { %v15577_v63 = vpop.f32.mrf.mxu0  ;;  %10219 = vmatprep.mubr.msk.f32.mxu0 %vm784_vm1, %v356_v27 }
 0x2c0   :  { %v15580_v21 = vpop.f32.mrf.mxu1  ;;  %10793 = vmatmul.mubr.msk.f32.gmra.mxu1 %vm784_vm1, %v739_v13  ;;  %v742_v13 = vld [vmem:[%s17239_s0 + $0x16c0] sm:$0xff] }
 0x2c1   :  { %v15587_v53 = vpop.f32.mrf.mxu0  ;;  %10795 = vmatprep.mubr.msk.f32.mxu1 %vm784_vm1, %v740_v47  ;;  %v359_v47 = vld [vmem:[%s17239_s0 + $0xac8] sm:$0xff] }
 0x2c2   :  { %v15596_v61 = vpop.f32.mrf.mxu1  ;;  %10220 = vmatmul.mubr.msk.f32.gmra.mxu0 %vm784_vm1, %v357_v8  ;;  %v360_v8 = vld [vmem:[%s17239_s0 + $0xad0] sm:$0xff] }
 0x2c3   :  { %v15601_v27 = vpop.f32.mrf.mxu0  ;;  %10222 = vmatprep.mubr.msk.f32.mxu0 %vm784_vm1, %v358_v41 }
 0x2c4   :  { %v15604_v54 = vpop.f32.mrf.mxu1  ;;  %10796 = vmatmul.mubr.msk.f32.gmra.mxu1 %vm784_vm1, %v741_v20  ;;  %v744_v20 = vld [vmem:[%s17239_s0 + $0x16d0] sm:$0xff] }
 0x2c5   :  { %v15611_v42 = vpop.f32.mrf.mxu0  ;;  %10798 = vmatprep.mubr.msk.f32.mxu1 %vm784_vm1, %v742_v13  ;;  %v361_v13 = vld [vmem:[%s17239_s0 + $0xad8] sm:$0xff] }
 0x2c6   :  { %v15620_v10 = vpop.f32.mrf.mxu1  ;;  %10223 = vmatmul.mubr.msk.f32.gmra.mxu0 %vm784_vm1, %v359_v47  ;;  %v362_v47 = vld [vmem:[%s17239_s0 + $0xae0] sm:$0xff] }
 0x2c7   :  { %v15625_v41 = vpop.f32.mrf.mxu0  ;;  %10225 = vmatprep.mubr.msk.f32.mxu0 %vm784_vm1, %v360_v8 }
 0x2c8   :  { %v15628_v22 = vpop.f32.mrf.mxu1  ;;  %10799 = vmatmul.mubr.msk.f32.gmra.mxu1 %vm784_vm1, %v743_v37  ;;  %v746_v37 = vld [vmem:[%s17239_s0 + $0x16e0] sm:$0xff] }
 0x2c9   :  { %v15635_v3 = vpop.f32.mrf.mxu0  ;;  %10801 = vmatprep.mubr.msk.f32.mxu1 %vm784_vm1, %v744_v20  ;;  %v363_v20 = vld [vmem:[%s17239_s0 + $0xae8] sm:$0xff] }
 0x2ca   :  { %v15644_v14 = vpop.f32.mrf.mxu1  ;;  %10226 = vmatmul.mubr.msk.f32.gmra.mxu0 %vm784_vm1, %v361_v13  ;;  %v364_v13 = vld [vmem:[%s17239_s0 + $0xaf0] sm:$0xff] }
 0x2cb   :  { %v15649_v8 = vpop.f32.mrf.mxu0  ;;  %10228 = vmatprep.mubr.msk.f32.mxu0 %vm784_vm1, %v362_v47 }
 0x2cc   :  { %v15652_v1 = vpop.f32.mrf.mxu1  ;;  %10802 = vmatmul.mubr.msk.f32.gmra.mxu1 %vm784_vm1, %v745_v49  ;;  %v748_v49 = vld [vmem:[%s17239_s0 + $0x16f0] sm:$0xff] }
 0x2cd   :  { %v15659_v52 = vpop.f32.mrf.mxu0  ;;  %10804 = vmatprep.mubr.msk.f32.mxu1 %vm784_vm1, %v746_v37  ;;  %v365_v37 = vld [vmem:[%s17239_s0 + $0xaf8] sm:$0xff] }
 0x2ce   :  { %v15668_v40 = vpop.f32.mrf.mxu1  ;;  %10229 = vmatmul.mubr.msk.f32.gmra.mxu0 %vm784_vm1, %v363_v20  ;;  %v366_v20 = vld [vmem:[%s17239_s0 + $0xb00] sm:$0xff] }
 0x2cf   :  { %v15673_v47 = vpop.f32.mrf.mxu0  ;;  %10231 = vmatprep.mubr.msk.f32.mxu0 %vm784_vm1, %v364_v13 }
 0x2d0   :  { %18060 = vst [vmem:[#allocation86_spill] sm:$0xff] %v15673_v47  ;;  %v15676_v5 = vpop.f32.mrf.mxu1  ;;  %10805 = vmatmul.mubr.msk.f32.gmra.mxu1 %vm784_vm1, %v747_v35  ;;  %v750_v35 = vld [vmem:[%s17239_s0 + $0x1700] sm:$0xff] }
 0x2d1   :  { %18061 = vst [vmem:[#allocation46_spill] sm:$0xff] %v15676_v5  ;;  %v15683_v7 = vpop.f32.mrf.mxu0  ;;  %10807 = vmatprep.mubr.msk.f32.mxu1 %vm784_vm1, %v748_v49  ;;  %v367_v49 = vld [vmem:[%s17239_s0 + $0xb08] sm:$0xff] }
 0x2d2   :  { %18062 = vst [vmem:[#allocation25_spill] sm:$0xff] %v15683_v7  ;;  %v15692_v45 = vpop.f32.mrf.mxu1  ;;  %10232 = vmatmul.mubr.msk.f32.gmra.mxu0 %vm784_vm1, %v365_v37  ;;  %v368_v37 = vld [vmem:[%s17239_s0 + $0xb10] sm:$0xff] }
 0x2d3   :  { %18063 = vst [vmem:[#allocation12_spill] sm:$0xff] %v15692_v45  ;;  %v15697_v13 = vpop.f32.mrf.mxu0  ;;  %10234 = vmatprep.mubr.msk.f32.mxu0 %vm784_vm1, %v366_v20 }
 0x2d4   :  { %18064 = vst [vmem:[#allocation60_spill] sm:$0xff] %v15697_v13  ;;  %v15700_v7 = vpop.f32.mrf.mxu1  ;;  %10808 = vmatmul.mubr.msk.f32.gmra.mxu1 %vm784_vm1, %v749_v12  ;;  %v751_v13 = vld [vmem:[%s17239_s0 + $0x1708] sm:$0xff]  ;;  %v752_v12 = vld [vmem:[%s17239_s0 + $0x1710] sm:$0xff] }
 0x2d5   :  { %18065 = vst [vmem:[#allocation68_spill] sm:$0xff] %v15700_v7  ;;  %v15707_v5 = vpop.f32.mrf.mxu0  ;;  %10810 = vmatprep.mubr.msk.f32.mxu1 %vm784_vm1, %v750_v35  ;;  %v369_v35 = vld [vmem:[%s17239_s0 + $0xb18] sm:$0xff] }
 0x2d6   :  { %18066 = vst [vmem:[#allocation34_spill] sm:$0xff] %v15707_v5  ;;  %v15716_v7 = vpop.f32.mrf.mxu1  ;;  %10235 = vmatmul.mubr.msk.f32.gmra.mxu0 %vm784_vm1, %v367_v49  ;;  %v370_v49 = vld [vmem:[%s17239_s0 + $0xb20] sm:$0xff] }
 0x2d7   :  { %18067 = vst [vmem:[#allocation47_spill] sm:$0xff] %v15716_v7  ;;  %v15721_v20 = vpop.f32.mrf.mxu0  ;;  %10237 = vmatprep.mubr.msk.f32.mxu0 %vm784_vm1, %v368_v37 }
 0x2d8   :  { %18068 = vst [vmem:[#allocation26_spill] sm:$0xff] %v15721_v20  ;;  %v15724_v5 = vpop.f32.mrf.mxu1  ;;  %10811 = vmatmul.mubr.msk.f32.gmra.mxu1 %vm784_vm1, %v751_v13  ;;  %v753_v20 = vld [vmem:[%s17239_s0 + $0x1718] sm:$0xff]  ;;  %v754_v13 = vld [vmem:[%s17239_s0 + $0x1720] sm:$0xff] }
 0x2d9   :  { %18069 = vst [vmem:[#allocation13_spill] sm:$0xff] %v15724_v5  ;;  %v15731_v45 = vpop.f32.mrf.mxu0  ;;  %10813 = vmatprep.mubr.msk.f32.mxu1 %vm784_vm1, %v752_v12  ;;  %v371_v12 = vld [vmem:[%s17239_s0 + $0xb28] sm:$0xff] }
 0x2da   :  { %18070 = vst [vmem:[#allocation61_spill] sm:$0xff] %v15731_v45  ;;  %v15740_v5 = vpop.f32.mrf.mxu1  ;;  %10238 = vmatmul.mubr.msk.f32.gmra.mxu0 %vm784_vm1, %v369_v35  ;;  %v372_v35 = vld [vmem:[%s17239_s0 + $0xb30] sm:$0xff] }
 0x2db   :  { %18071 = vst [vmem:[#allocation69_spill] sm:$0xff] %v15740_v5  ;;  %v15745_v37 = vpop.f32.mrf.mxu0  ;;  %10240 = vmatprep.mubr.msk.f32.mxu0 %vm784_vm1, %v370_v49 }
 0x2dc   :  { %18072 = vst [vmem:[#allocation95_spill] sm:$0xff] %v15745_v37  ;;  %v15748_v45 = vpop.f32.mrf.mxu1  ;;  %10814 = vmatmul.mubr.msk.f32.gmra.mxu1 %vm784_vm1, %v753_v20  ;;  %v755_v37 = vld [vmem:[%s17239_s0 + $0x1728] sm:$0xff]  ;;  %v756_v20 = vld [vmem:[%s17239_s0 + $0x1730] sm:$0xff] }
 0x2dd   :  { %18073 = vst [vmem:[#allocation96_spill] sm:$0xff] %v15748_v45  ;;  %v15755_v7 = vpop.f32.mrf.mxu0  ;;  %10816 = vmatprep.mubr.msk.f32.mxu1 %vm784_vm1, %v754_v13  ;;  %v373_v13 = vld [vmem:[%s17239_s0 + $0xb38] sm:$0xff] }
 0x2de   :  { %18074 = vst [vmem:[#allocation48_spill] sm:$0xff] %v15755_v7  ;;  %v15764_v45 = vpop.f32.mrf.mxu1  ;;  %10241 = vmatmul.mubr.msk.f32.gmra.mxu0 %vm784_vm1, %v371_v12  ;;  %v374_v12 = vld [vmem:[%s17239_s0 + $0xb40] sm:$0xff] }
 0x2df   :  { %18075 = vst [vmem:[#allocation87_spill] sm:$0xff] %v15764_v45  ;;  %v15769_v49 = vpop.f32.mrf.mxu0  ;;  %10243 = vmatprep.mubr.msk.f32.mxu0 %vm784_vm1, %v372_v35 }
 0x2e0   :  { %18076 = vst [vmem:[#allocation14_spill] sm:$0xff] %v15769_v49  ;;  %v15772_v7 = vpop.f32.mrf.mxu1  ;;  %10817 = vmatmul.mubr.msk.f32.gmra.mxu1 %vm784_vm1, %v755_v37  ;;  %v757_v49 = vld [vmem:[%s17239_s0 + $0x1738] sm:$0xff]  ;;  %v758_v37 = vld [vmem:[%s17239_s0 + $0x1740] sm:$0xff] }
 0x2e1   :  { %18077 = vst [vmem:[#allocation88_spill] sm:$0xff] %v15772_v7  ;;  %v15779_v5 = vpop.f32.mrf.mxu0  ;;  %10819 = vmatprep.mubr.msk.f32.mxu1 %vm784_vm1, %v756_v20  ;;  %v375_v20 = vld [vmem:[%s17239_s0 + $0xb48] sm:$0xff] }
 0x2e2   :  { %18078 = vst [vmem:[#allocation49_spill] sm:$0xff] %v15779_v5  ;;  %v15788_v7 = vpop.f32.mrf.mxu1  ;;  %10244 = vmatmul.mubr.msk.f32.gmra.mxu0 %vm784_vm1, %v373_v13  ;;  %v376_v13 = vld [vmem:[%s17239_s0 + $0xb50] sm:$0xff] }
 0x2e3   :  { %18079 = vst [vmem:[#allocation89_spill] sm:$0xff] %v15788_v7  ;;  %v15793_v35 = vpop.f32.mrf.mxu0  ;;  %10246 = vmatprep.mubr.msk.f32.mxu0 %vm784_vm1, %v374_v12  ;;  %v377_v7 = vld [vmem:[%s17239_s0 + $0xb58] sm:$0xff] }
 0x2e4   :  { %18080 = vst [vmem:[#allocation35_spill] sm:$0xff] %v15793_v35  ;;  %v15796_v5 = vpop.f32.mrf.mxu1  ;;  %10820 = vmatmul.mubr.msk.f32.gmra.mxu1 %vm784_vm1, %v757_v49  ;;  %v759_v35 = vld [vmem:[%s17239_s0 + $0x1748] sm:$0xff]  ;;  %v760_v49 = vld [vmem:[%s17239_s0 + $0x1750] sm:$0xff] }
 0x2e5   :  { %18081 = vst [vmem:[#allocation70_spill] sm:$0xff] %v15796_v5  ;;  %v15803_v45 = vpop.f32.mrf.mxu0  ;;  %10822 = vmatprep.mubr.msk.f32.mxu1 %vm784_vm1, %v758_v37 }
 0x2e6   :  { %18082 = vst [vmem:[#allocation75_spill] sm:$0xff] %v15803_v45  ;;  %v15812_v5 = vpop.f32.mrf.mxu1  ;;  %10247 = vmatmul.mubr.msk.f32.gmra.mxu0 %vm784_vm1, %v375_v20  ;;  %v761_v20 = vld [vmem:[%s17239_s0 + $0x1758] sm:$0xff] }
 0x2e7   :  { %18083 = vst [vmem:[#allocation90_spill] sm:$0xff] %v15812_v5  ;;  %v10104_v12 = vpop.f32.mrf.mxu0  ;;  %10249 = vmatprep.mubr.msk.f32.mxu0 %vm784_vm1, %v376_v13 }
 0x2e8   :  { %v7239_v45 = vmax.f32 %v15529_v62, %v10104_v12  ;;  %v10680_v37 = vpop.f32.mrf.mxu1  ;;  %10823 = vmatmul.mubr.msk.f32.gmra.mxu1 %vm784_vm1, %v759_v35  ;;  %v378_v62 = vld [vmem:[%s17239_s0 + $0xb60] sm:$0xff]  ;;  %v18084_v35 = vmax.f32 %v14814_v59, %v15145_v32 }
 0x2e9   :  { %v7335_v5 = vmax.f32 %v15532_v30, %v10680_v37  ;;  %v4479_v46 = vpop.f32.mrf.mxu0  ;;  %10825 = vmatprep.mubr.msk.f32.mxu1 %vm784_vm1, %v760_v49  ;;  %v762_v30 = vld [vmem:[%s17239_s0 + $0x1760] sm:$0xff]  ;;  %v18085_v49 = vmax.f32 %v14822_v55, %v15150_v39 }
 0x2ea   :  { %v7431_v13 = vmax.f32 %v18084_v35, %v7239_v45  ;;  %v7238_v12 = vmax.f32 %v15539_v58, %v4479_v46  ;;  %v6399_v47 = vpop.f32.mrf.mxu1  ;;  %10250 = vmatmul.mubr.msk.f32.gmra.mxu0 %vm784_vm1, %v377_v7  ;;  %v15847_v59 = vld [vmem:[%s17240_s2] ss:$0 sm:$0xff]  ;;  %v18086_v45 = vmax.f32 %v14837_v11, %v15159_v31  ;;  %v379_v7 = vld [vmem:[%s17239_s0 + $0xb68] sm:$0xff] }
 0x2eb   :  { %v7527_v37 = vmax.f32 %v18085_v49, %v7335_v5  ;;  %v7334_v17 = vmax.f32 %v15548_v36, %v6399_v47  ;;  %v10107_v0 = vpop.f32.mrf.mxu0  ;;  %10252 = vmatprep.mubr.msk.f32.mxu0 %vm784_vm1, %v378_v62  ;;  %v18087_v36 = vmax.f32 %v14854_v4, %v15170_v23  ;;  %v18088_v4 = vmax.f32 %v14861_v6, %v15177_v28  ;;  %v764_v62 = vld [vmem:[%s17239_s0 + $0x1770] sm:$0xff] }
 0x2ec   :  { %v7630_v46 = vadd.f32 %v15847_v59, %v7431_v13  ;;  %v7430_v58 = vmax.f32 %v18086_v45, %v7238_v12  ;;  %v7241_v32 = vmax.f32 %v15553_v25, %v10107_v0  ;;  %v10683_v55 = vpop.f32.mrf.mxu1  ;;  %10826 = vmatmul.mubr.msk.f32.gmra.mxu1 %vm784_vm1, %v761_v20  ;;  %v763_v0 = vld [vmem:[%s17239_s0 + $0x1768] sm:$0xff]  ;;  %v380_v25 = vld [vmem:[%s17239_s0 + $0xb70] sm:$0xff]  ;;  %v18089_v12 = vld [vmem:[#allocation41_spill] sm:$0xff]  ;;  %v18091_v28 = vmax.f32 %v14883_v16, %v15191_v57 }
 0x2ed   :  { %v7726_v5 = vadd.f32 %v15847_v59, %v7527_v37  ;;  %v7526_v39 = vmax.f32 %v18087_v36, %v7334_v17  ;;  %v7337_v11 = vmax.f32 %v15556_v56, %v10683_v55  ;;  %v4489_v31 = vpop.f32.mrf.mxu0  ;;  %10828 = vmatprep.mubr.msk.f32.mxu1 %vm784_vm1, %v762_v30  ;;  %v18090_v30 = vmax.f32 %v14868_v18, %v18089_v12  ;;  %v18092_v57 = vld [vmem:[#allocation55_spill] sm:$0xff]  ;;  %v765_v36 = vld [vmem:[%s17239_s0 + $0x1778] sm:$0xff] }
 0x2ee   :  { %v7822_v47 = vmax.f32 %v7630_v46, 0.0  ;;  %v7629_v20 = vadd.f32 %v15847_v59, %v7430_v58  ;;  %v7433_v17 = vmax.f32 %v18088_v4, %v7241_v32  ;;  %v7240_v56 = vmax.f32 %v15563_v9, %v4489_v31  ;;  %v6409_v23 = vpop.f32.mrf.mxu1  ;;  %10253 = vmatmul.mubr.msk.f32.gmra.mxu0 %vm784_vm1, %v379_v7 }
 0x2ef   :  { %v7918_v35 = vmax.f32 %v7726_v5, 0.0  ;;  %v7725_v13 = vadd.f32 %v15847_v59, %v7526_v39  ;;  %v7529_v49 = vmax.f32 %v18090_v30, %v7337_v11  ;;  %v7336_v37 = vmax.f32 %v15572_v43, %v6409_v23  ;;  %v10110_v46 = vpop.f32.mrf.mxu0  ;;  %10255 = vmatprep.mubr.msk.f32.mxu0 %vm784_vm1, %v380_v25  ;;  %v381_v43 = vld [vmem:[%s17239_s0 + $0xb78] sm:$0xff]  ;;  %v382_v39 = vld [vmem:[%s17239_s0 + $0xb80] sm:$0xff] }
 0x2f0   :  { %8015 = vst.msk [vmem:[%s17241_s3 + $0x188] sm:$0xff] %vm7965_vm2, %v7822_v47  ;;  %v7821_v6 = vmax.f32 %v7629_v20, 0.0  ;;  %v7632_v9 = vadd.f32 %v15847_v59, %v7433_v17  ;;  %v7432_v45 = vmax.f32 %v18091_v28, %v7240_v56  ;;  %v7243_v18 = vmax.f32 %v15577_v63, %v10110_v46  ;;  %v10686_v58 = vpop.f32.mrf.mxu1  ;;  %10829 = vmatmul.mubr.msk.f32.gmra.mxu1 %vm784_vm1, %v763_v0  ;;  %v766_v20 = vld [vmem:[%s17239_s0 + $0x1780] sm:$0xff]  ;;  %v18096_v56 = vld [vmem:[#allocation36_spill] sm:$0xff]  ;;  %v18097_v23 = vld [vmem:[#allocation29_spill] sm:$0xff] }
 0x2f1   :  { %8111 = vst.msk [vmem:[%s17241_s3 + $0x488] sm:$0xff] %vm7965_vm2, %v7918_v35  ;;  %v7917_v32 = vmax.f32 %v7725_v13, 0.0  ;;  %v7728_v16 = vadd.f32 %v15847_v59, %v7529_v49  ;;  %v18093_v63 = vmax.f32 %v14892_v50, %v18092_v57  ;;  %v7339_v7 = vmax.f32 %v15580_v21, %v10686_v58  ;;  %v4499_v5 = vpop.f32.mrf.mxu0  ;;  %10831 = vmatprep.mubr.msk.f32.mxu1 %vm784_vm1, %v764_v62  ;;  %v18094_v21 = vld [vmem:[#allocation63_spill] sm:$0xff]  ;;  %v384_v58 = vld [vmem:[%s17239_s0 + $0xb90] sm:$0xff] }
 0x2f2   :  { %8014 = vst.msk [vmem:[%s17241_s3 + $0x180] sm:$0xff] %vm7965_vm2, %v7821_v6  ;;  %v7824_v50 = vmax.f32 %v7632_v9, 0.0  ;;  %v7631_v11 = vadd.f32 %v15847_v59, %v7432_v45  ;;  %v18095_v31 = vmax.f32 %v14905_v2, %v18094_v21  ;;  %v7242_v25 = vmax.f32 %v15587_v53, %v4499_v5  ;;  %v6419_v47 = vpop.f32.mrf.mxu1  ;;  %10256 = vmatmul.mubr.msk.f32.gmra.mxu0 %vm784_vm1, %v381_v43 }
 0x2f3   :  { %v7528_v55 = vmax.f32 %v18093_v63, %v7336_v37  ;;  %8110 = vst.msk [vmem:[%s17241_s3 + $0x480] sm:$0xff] %vm7965_vm2, %v7917_v32  ;;  %v7920_v4 = vmax.f32 %v7728_v16, 0.0  ;;  %v18098_v62 = vmax.f32 %v18096_v56, %v18097_v23  ;;  %v7338_v35 = vmax.f32 %v15596_v61, %v6419_v47  ;;  %v10113_v53 = vpop.f32.mrf.mxu0  ;;  %10258 = vmatprep.mubr.msk.f32.mxu0 %vm784_vm1, %v382_v39  ;;  %v383_v61 = vld [vmem:[%s17239_s0 + $0xb88] sm:$0xff]  ;;  %v18105_v39 = vld [vmem:[#allocation21_spill] sm:$0xff] }
 0x2f4   :  { %v7435_v0 = vmax.f32 %v18095_v31, %v7243_v18  ;;  %8017 = vst.msk [vmem:[%s17241_s3 + $0x198] sm:$0xff] %vm7965_vm2, %v7824_v50  ;;  %v7823_v13 = vmax.f32 %v7631_v11, 0.0  ;;  %v18099_v30 = vmax.f32 %v14915_v60, %v15223_v34  ;;  %v7245_v37 = vmax.f32 %v15601_v27, %v10113_v53  ;;  %v10689_v46 = vpop.f32.mrf.mxu1  ;;  %10832 = vmatmul.mubr.msk.f32.gmra.mxu1 %vm784_vm1, %v765_v36  ;;  %v18100_v34 = vld [vmem:[#allocation64_spill] sm:$0xff]  ;;  %v767_v18 = vld [vmem:[%s17239_s0 + $0x1788] sm:$0xff] }
 0x2f5   :  { %v7727_v17 = vadd.f32 %v15847_v59, %v7528_v55  ;;  %v7531_v2 = vmax.f32 %v18098_v62, %v7339_v7  ;;  %8113 = vst.msk [vmem:[%s17241_s3 + $0x498] sm:$0xff] %vm7965_vm2, %v7920_v4  ;;  %v18101_v27 = vmax.f32 %v14924_v38, %v18100_v34  ;;  %v7341_v28 = vmax.f32 %v15604_v54, %v10689_v46  ;;  %v4509_v45 = vpop.f32.mrf.mxu0  ;;  %v18102_v54 = vld [vmem:[#allocation7_spill] sm:$0xff]  ;;  %v768_v55 = vld [vmem:[%s17239_s0 + $0x1790] sm:$0xff]  ;;  %v769_v62 = vld [vmem:[%s17239_s0 + $0x1798] sm:$0xff] }
 0x2f6   :  { %v7634_v12 = vadd.f32 %v15847_v59, %v7435_v0  ;;  %v7434_v49 = vmax.f32 %v18099_v30, %v7242_v25  ;;  %10834 = vmatprep.mubr.msk.f32.mxu1 %vm784_vm1, %v766_v20  ;;  %8016 = vst.msk [vmem:[%s17241_s3 + $0x190] sm:$0xff] %vm7965_vm2, %v7823_v13  ;;  %v18103_v32 = vmax.f32 %v14929_v33, %v18102_v54  ;;  %v6429_v63 = vpop.f32.mrf.mxu1  ;;  %v18104_v36 = vld [vmem:[#allocation71_spill] sm:$0xff] }
 0x2f7   :  { %v7919_v6 = vmax.f32 %v7727_v17, 0.0  ;;  %v7730_v60 = vadd.f32 %v15847_v59, %v7531_v2  ;;  %v7530_v9 = vmax.f32 %v18101_v27, %v7338_v35  ;;  %v7244_v57 = vmax.f32 %v15611_v42, %v4509_v45  ;;  %v10116_v42 = vpop.f32.mrf.mxu0  ;;  %10259 = vmatmul.mubr.msk.f32.gmra.mxu0 %vm784_vm1, %v383_v61  ;;  %v386_v2 = vld [vmem:[%s17239_s0 + $0xba0] sm:$0xff] }
 0x2f8   :  { %v7826_v38 = vmax.f32 %v7634_v12, 0.0  ;;  %v7633_v43 = vadd.f32 %v15847_v59, %v7434_v49  ;;  %v7437_v16 = vmax.f32 %v18103_v32, %v7245_v37  ;;  %v18106_v50 = vmax.f32 %v18104_v36, %v18105_v39  ;;  %v10692_v20 = vpop.f32.mrf.mxu1  ;;  %10835 = vmatmul.mubr.msk.f32.gmra.mxu1 %vm784_vm1, %v767_v18  ;;  %10261 = vmatprep.mubr.msk.f32.mxu0 %vm784_vm1, %v384_v58  ;;  %v770_v49 = vld [vmem:[%s17239_s0 + $0x17a0] sm:$0xff]  ;;  %v772_v39 = vld [vmem:[%s17239_s0 + $0x17b0] sm:$0xff] }
 0x2f9   :  { %8112 = vst.msk [vmem:[%s17241_s3 + $0x490] sm:$0xff] %vm7965_vm2, %v7919_v6  ;;  %v7922_v7 = vmax.f32 %v7730_v60, 0.0  ;;  %v7729_v5 = vadd.f32 %v15847_v59, %v7530_v9  ;;  %v7340_v11 = vmax.f32 %v15620_v10, %v6429_v63  ;;  %v18107_v0 = vmax.f32 %v14939_v51, %v15255_v29  ;;  %v385_v10 = vld [vmem:[%s17239_s0 + $0xb98] sm:$0xff]  ;;  %v18108_v29 = vld [vmem:[#allocation42_spill] sm:$0xff]  ;;  %v4519_v23 = vpop.f32.mrf.mxu0  ;;  %10837 = vmatprep.mubr.msk.f32.mxu1 %vm784_vm1, %v768_v55  ;;  %v18113_v6 = vld [vmem:[#allocation8_spill] sm:$0xff] }
 0x2fa   :  { %v7533_v33 = vmax.f32 %v18106_v50, %v7341_v28  ;;  %8019 = vst.msk [vmem:[%s17241_s3 + $0x1a8] sm:$0xff] %vm7965_vm2, %v7826_v38  ;;  %v7825_v21 = vmax.f32 %v7633_v43, 0.0  ;;  %v7636_v31 = vadd.f32 %v15847_v59, %v7437_v16  ;;  %v7247_v47 = vmax.f32 %v15625_v41, %v10116_v42  ;;  %v6439_v30 = vpop.f32.mrf.mxu1  ;;  %v18112_v61 = vld [vmem:[#allocation2_spill] sm:$0xff]  ;;  %v771_v16 = vld [vmem:[%s17239_s0 + $0x17a8] sm:$0xff]  ;;  %v18121_v42 = vld [vmem:[#allocation65_spill] sm:$0xff] }
 0x2fb   :  { %v7436_v25 = vmax.f32 %v18107_v0, %v7244_v57  ;;  %8115 = vst.msk [vmem:[%s17241_s3 + $0x4a8] sm:$0xff] %vm7965_vm2, %v7922_v7  ;;  %v7921_v4 = vmax.f32 %v7729_v5, 0.0  ;;  %v18109_v41 = vmax.f32 %v14948_v19, %v18108_v29  ;;  %v7343_v56 = vmax.f32 %v15628_v22, %v10692_v20  ;;  %v18110_v22 = vld [vmem:[#allocation56_spill] sm:$0xff]  ;;  %10262 = vmatmul.mubr.msk.f32.gmra.mxu0 %vm784_vm1, %v385_v10  ;;  %v18124_v20 = vld [vmem:[#allocation91_spill] sm:$0xff] }
 0x2fc   :  { %v7732_v51 = vadd.f32 %v15847_v59, %v7533_v33  ;;  %8018 = vst.msk [vmem:[%s17241_s3 + $0x1a0] sm:$0xff] %vm7965_vm2, %v7825_v21  ;;  %v7828_v19 = vmax.f32 %v7636_v31, 0.0  ;;  %v18111_v53 = vmax.f32 %v14953_v44, %v18110_v22  ;;  %v7246_v12 = vmax.f32 %v15635_v3, %v4519_v23  ;;  %v10119_v3 = vpop.f32.mrf.mxu0  ;;  %v10695_v58 = vpop.f32.mrf.mxu1  ;;  %10838 = vmatmul.mubr.msk.f32.gmra.mxu1 %vm784_vm1, %v769_v62  ;;  %v388_v57 = vld [vmem:[%s17239_s0 + $0xbb0] sm:$0xff]  ;;  %v18128_v62 = vld [vmem:[#allocation43_spill] sm:$0xff] }
 0x2fd   :  { %v7532_v17 = vmax.f32 %v18109_v41, %v7340_v11  ;;  %v7635_v35 = vadd.f32 %v15847_v59, %v7436_v25  ;;  %8114 = vst.msk [vmem:[%s17241_s3 + $0x4a0] sm:$0xff] %vm7965_vm2, %v7921_v4  ;;  %v18114_v60 = vmax.f32 %v18112_v61, %v18113_v6  ;;  %v7342_v34 = vmax.f32 %v15644_v14, %v6439_v30  ;;  %v387_v14 = vld [vmem:[%s17239_s0 + $0xba8] sm:$0xff]  ;;  %v18127_v23 = vld [vmem:[#allocation16_spill] sm:$0xff] }
 0x2fe   :  { %v7439_v13 = vmax.f32 %v18111_v53, %v7247_v47  ;;  %v7924_v37 = vmax.f32 %v7732_v51, 0.0  ;;  %8021 = vst.msk [vmem:[%s17241_s3 + $0x1b8] sm:$0xff] %vm7965_vm2, %v7828_v19  ;;  %v18115_v28 = vmax.f32 %v14963_v26, %v15287_v15  ;;  %v7249_v18 = vmax.f32 %v15649_v8, %v10119_v3  ;;  %10264 = vmatprep.mubr.msk.f32.mxu0 %vm784_vm1, %v386_v2  ;;  %v18116_v26 = vld [vmem:[#allocation22_spill] sm:$0xff]  ;;  %v4529_v32 = vpop.f32.mrf.mxu0  ;;  %v6449_v36 = vpop.f32.mrf.mxu1  ;;  %v18120_v11 = vld [vmem:[#allocation15_spill] sm:$0xff] }
 0x2ff   :  { %v7731_v46 = vadd.f32 %v15847_v59, %v7532_v17  ;;  %v7535_v44 = vmax.f32 %v18114_v60, %v7343_v56  ;;  %v7827_v27 = vmax.f32 %v7635_v35, 0.0  ;;  %v18117_v8 = vmax.f32 %v14972_v24, %v18116_v26  ;;  %10840 = vmatprep.mubr.msk.f32.mxu1 %vm784_vm1, %v770_v49  ;;  %10265 = vmatmul.mubr.msk.f32.gmra.mxu0 %vm784_vm1, %v387_v14  ;;  %v18123_v47 = vld [vmem:[#allocation50_spill] sm:$0xff]  ;;  %v18134_v60 = vld [vmem:[#allocation25_spill] sm:$0xff]  ;;  %v18138_v14 = vld [vmem:[#allocation12_spill] sm:$0xff] }
 0x300   :  { %v7638_v9 = vadd.f32 %v15847_v59, %v7439_v13  ;;  %v7438_v45 = vmax.f32 %v18115_v28, %v7246_v12  ;;  %8117 = vst.msk [vmem:[%s17241_s3 + $0x4b8] sm:$0xff] %vm7965_vm2, %v7924_v37  ;;  %v7345_v54 = vmax.f32 %v15652_v1, %v10695_v58  ;;  %v18118_v1 = vld [vmem:[#allocation30_spill] sm:$0xff]  ;;  %v7248_v5 = vmax.f32 %v15659_v52, %v4529_v32  ;;  %v10122_v52 = vpop.f32.mrf.mxu0  ;;  %v10698_v41 = vpop.f32.mrf.mxu1  ;;  %v773_v13 = vld [vmem:[%s17239_s0 + $0x17b8] sm:$0xff]  ;;  %v18135_v28 = vld [vmem:[#allocation51_spill] sm:$0xff] }
 0x301   :  { %v7923_v38 = vmax.f32 %v7731_v46, 0.0  ;;  %v7734_v15 = vadd.f32 %v15847_v59, %v7535_v44  ;;  %v7534_v43 = vmax.f32 %v18117_v8, %v7342_v34  ;;  %8020 = vst.msk [vmem:[%s17241_s3 + $0x1b0] sm:$0xff] %vm7965_vm2, %v7827_v27  ;;  %v18119_v55 = vmax.f32 %v14977_v48, %v18118_v1  ;;  %v18126_v51 = vld [vmem:[#allocation86_spill] sm:$0xff]  ;;  %10841 = vmatmul.mubr.msk.f32.gmra.mxu1 %vm784_vm1, %v771_v16  ;;  %v18131_v37 = vld [vmem:[#allocation37_spill] sm:$0xff]  ;;  %v391_v1 = vld [vmem:[%s17239_s0 + $0xbc8] sm:$0xff] }
 0x302   :  { %v7830_v24 = vmax.f32 %v7638_v9, 0.0  ;;  %v7637_v63 = vadd.f32 %v15847_v59, %v7438_v45  ;;  %v18122_v21 = vmax.f32 %v18120_v11, %v18121_v42  ;;  %v7344_v31 = vmax.f32 %v15668_v40, %v6449_v36  ;;  %10267 = vmatprep.mubr.msk.f32.mxu0 %vm784_vm1, %v388_v57  ;;  %v389_v40 = vld [vmem:[%s17239_s0 + $0xbb8] sm:$0xff]  ;;  %v18130_v35 = vld [vmem:[#allocation46_spill] sm:$0xff]  ;;  %v4539_v53 = vpop.f32.mrf.mxu0  ;;  %10843 = vmatprep.mubr.msk.f32.mxu1 %vm784_vm1, %v772_v39  ;;  %v6459_v34 = vpop.f32.mrf.mxu1  ;;  %v18142_v57 = vld [vmem:[#allocation60_spill] sm:$0xff] }
 0x303   :  { %v7441_v7 = vmax.f32 %v18119_v55, %v7249_v18  ;;  %8116 = vst.msk [vmem:[%s17241_s3 + $0x4b0] sm:$0xff] %vm7965_vm2, %v7923_v38  ;;  %v7926_v50 = vmax.f32 %v7734_v15, 0.0  ;;  %v7733_v33 = vadd.f32 %v15847_v59, %v7534_v43  ;;  %v18125_v10 = vmax.f32 %v18123_v47, %v18124_v20  ;;  %v390_v12 = vld [vmem:[%s17239_s0 + $0xbc0] sm:$0xff]  ;;  %v18132_v46 = vld [vmem:[#allocation57_spill] sm:$0xff]  ;;  %10268 = vmatmul.mubr.msk.f32.gmra.mxu0 %vm784_vm1, %v389_v40  ;;  %v18144_v36 = vld [vmem:[#allocation44_spill] sm:$0xff] }
 0x304   :  { %v7537_v48 = vmax.f32 %v18122_v21, %v7345_v54  ;;  %8023 = vst.msk [vmem:[%s17241_s3 + $0x1c8] sm:$0xff] %vm7965_vm2, %v7830_v24  ;;  %v7829_v0 = vmax.f32 %v7637_v63, 0.0  ;;  %v7251_v29 = vmax.f32 %v18126_v51, %v10122_v52  ;;  %v18129_v2 = vmax.f32 %v18127_v23, %v18128_v62  ;;  %v774_v3 = vld [vmem:[%s17239_s0 + $0x17c0] sm:$0xff]  ;;  %v18136_v45 = vld [vmem:[#allocation9_spill] sm:$0xff]  ;;  %v10125_v15 = vpop.f32.mrf.mxu0  ;;  %v18140_v54 = vld [vmem:[#allocation83_spill] sm:$0xff]  ;;  %v10701_v63 = vpop.f32.mrf.mxu1  ;;  %10270 = vmatprep.mubr.msk.f32.mxu0 %vm784_vm1, %v390_v12 }
 0x305   :  { %v7640_v25 = vadd.f32 %v15847_v59, %v7441_v7  ;;  %v7440_v4 = vmax.f32 %v18125_v10, %v7248_v5  ;;  %8119 = vst.msk [vmem:[%s17241_s3 + $0x4c8] sm:$0xff] %vm7965_vm2, %v7926_v50  ;;  %v7925_v17 = vmax.f32 %v7733_v33, 0.0  ;;  %v7347_v22 = vmax.f32 %v18130_v35, %v10698_v41  ;;  %v18139_v43 = vld [vmem:[#allocation77_spill] sm:$0xff]  ;;  %10844 = vmatmul.mubr.msk.f32.gmra.mxu1 %vm784_vm1, %v773_v13  ;;  %v18143_v5 = vld [vmem:[#allocation78_spill] sm:$0xff]  ;;  %v18146_v33 = vld [vmem:[#allocation68_spill] sm:$0xff] }
 0x306   :  { %v7736_v56 = vadd.f32 %v15847_v59, %v7537_v48  ;;  %v7536_v19 = vmax.f32 %v18129_v2, %v7344_v31  ;;  %8022 = vst.msk [vmem:[%s17241_s3 + $0x1c0] sm:$0xff] %vm7965_vm2, %v7829_v0  ;;  %v18133_v61 = vmax.f32 %v18131_v37, %v18132_v46  ;;  %v7250_v44 = vmax.f32 %v18134_v60, %v4539_v53  ;;  %v4549_v42 = vpop.f32.mrf.mxu0  ;;  %v775_v21 = vld [vmem:[%s17239_s0 + $0x17c8] sm:$0xff]  ;;  %v392_v48 = vld [vmem:[%s17239_s0 + $0xbd0] sm:$0xff]  ;;  %v18150_v10 = vld [vmem:[#allocation34_spill] sm:$0xff]  ;;  %v6469_v51 = vpop.f32.mrf.mxu1 }
 0x307   :  { %v7832_v30 = vmax.f32 %v7640_v25, 0.0  ;;  %v7639_v49 = vadd.f32 %v15847_v59, %v7440_v4  ;;  %8118 = vst.msk [vmem:[%s17241_s3 + $0x4c0] sm:$0xff] %vm7965_vm2, %v7925_v17  ;;  %v18137_v18 = vmax.f32 %v18135_v28, %v18136_v45  ;;  %v7346_v38 = vmax.f32 %v18138_v14, %v6459_v34  ;;  %10846 = vmatprep.mubr.msk.f32.mxu1 %vm784_vm1, %v774_v3  ;;  %v18147_v0 = vld [vmem:[#allocation3_spill] sm:$0xff]  ;;  %v18148_v25 = vld [vmem:[#allocation84_spill] sm:$0xff]  ;;  %v18151_v17 = vld [vmem:[#allocation17_spill] sm:$0xff] }
 0x308   :  { %v7443_v6 = vmax.f32 %v18133_v61, %v7251_v29  ;;  %v7928_v27 = vmax.f32 %v7736_v56, 0.0  ;;  %v7735_v9 = vadd.f32 %v15847_v59, %v7536_v19  ;;  %v18141_v32 = vmax.f32 %v18139_v43, %v18140_v54  ;;  %v776_v29 = vld [vmem:[%s17239_s0 + $0x17d0] sm:$0xff]  ;;  %v18154_v2 = vld [vmem:[#allocation47_spill] sm:$0xff]  ;;  %v10128_v35 = vpop.f32.mrf.mxu0  ;;  %10271 = vmatmul.mubr.msk.f32.gmra.mxu0 %vm784_vm1, %v391_v1  ;;  %v18158_v37 = vld [vmem:[#allocation26_spill] sm:$0xff]  ;;  %v10704_v61 = vpop.f32.mrf.mxu1 }
 0x309   :  { %v7539_v58 = vmax.f32 %v18137_v18, %v7347_v22  ;;  %8025 = vst.msk [vmem:[%s17241_s3 + $0x1d8] sm:$0xff] %vm7965_vm2, %v7832_v30  ;;  %v7831_v26 = vmax.f32 %v7639_v49, 0.0  ;;  %v7253_v24 = vmax.f32 %v18142_v57, %v10125_v15  ;;  %v18145_v39 = vmax.f32 %v18143_v5, %v18144_v36  ;;  %v18152_v56 = vld [vmem:[#allocation92_spill] sm:$0xff]  ;;  %v18156_v12 = vld [vmem:[#allocation31_spill] sm:$0xff]  ;;  %10847 = vmatmul.mubr.msk.f32.gmra.mxu1 %vm784_vm1, %v775_v21  ;;  %v18159_v34 = vld [vmem:[#allocation18_spill] sm:$0xff] }
 0x30a   :  { %v7642_v8 = vadd.f32 %v15847_v59, %v7443_v6  ;;  %v7442_v16 = vmax.f32 %v18141_v32, %v7250_v44  ;;  %8121 = vst.msk [vmem:[%s17241_s3 + $0x4d8] sm:$0xff] %vm7965_vm2, %v7928_v27  ;;  %v7927_v55 = vmax.f32 %v7735_v9, 0.0  ;;  %v7349_v11 = vmax.f32 %v18146_v33, %v10701_v63  ;;  %v18155_v13 = vld [vmem:[#allocation52_spill] sm:$0xff]  ;;  %10273 = vmatprep.mubr.msk.f32.mxu0 %vm784_vm1, %v392_v48  ;;  %v393_v6 = vld [vmem:[%s17239_s0 + $0xbd8] sm:$0xff]  ;;  %v18160_v3 = vld [vmem:[#allocation10_spill] sm:$0xff]  ;;  %v4559_v18 = vpop.f32.mrf.mxu0  ;;  %v6479_v57 = vpop.f32.mrf.mxu1 }
 0x30b   :  { %v7738_v7 = vadd.f32 %v15847_v59, %v7539_v58  ;;  %v7538_v50 = vmax.f32 %v18145_v39, %v7346_v38  ;;  %8024 = vst.msk [vmem:[%s17241_s3 + $0x1d0] sm:$0xff] %vm7965_vm2, %v7831_v26  ;;  %v18149_v47 = vmax.f32 %v18147_v0, %v18148_v25  ;;  %v7252_v4 = vmax.f32 %v18150_v10, %v4549_v42  ;;  %v18162_v28 = vld [vmem:[#allocation13_spill] sm:$0xff]  ;;  %v394_v14 = vld [vmem:[%s17239_s0 + $0xbe0] sm:$0xff]  ;;  %v18171_v21 = vld [vmem:[#allocation79_spill] sm:$0xff] }
 0x30c   :  { %v7834_v31 = vmax.f32 %v7642_v8, 0.0  ;;  %v7641_v52 = vadd.f32 %v15847_v59, %v7442_v16  ;;  %8120 = vst.msk [vmem:[%s17241_s3 + $0x4d0] sm:$0xff] %vm7965_vm2, %v7927_v55  ;;  %v18153_v23 = vmax.f32 %v18151_v17, %v18152_v56  ;;  %v7348_v19 = vmax.f32 %v18154_v2, %v6469_v51  ;;  %10849 = vmatprep.mubr.msk.f32.mxu1 %vm784_vm1, %v776_v29  ;;  %v777_v58 = vld [vmem:[%s17239_s0 + $0x17d8] sm:$0xff]  ;;  %v18163_v26 = vld [vmem:[#allocation38_spill] sm:$0xff]  ;;  %v18164_v8 = vld [vmem:[#allocation23_spill] sm:$0xff]  ;;  %v10131_v33 = vpop.f32.mrf.mxu0 }
 0x30d   :  { %v7445_v20 = vmax.f32 %v18149_v47, %v7253_v24  ;;  %v7930_v41 = vmax.f32 %v7738_v7, 0.0  ;;  %v7737_v40 = vadd.f32 %v15847_v59, %v7538_v50  ;;  %v18157_v30 = vmax.f32 %v18155_v13, %v18156_v12  ;;  %v18166_v32 = vld [vmem:[#allocation61_spill] sm:$0xff]  ;;  %v778_v24 = vld [vmem:[%s17239_s0 + $0x17e0] sm:$0xff]  ;;  %10274 = vmatmul.mubr.msk.f32.gmra.mxu0 %vm784_vm1, %v393_v6  ;;  %v18174_v0 = vld [vmem:[#allocation95_spill] sm:$0xff]  ;;  %v10707_v47 = vpop.f32.mrf.mxu1  ;;  %10850 = vmatmul.mubr.msk.f32.gmra.mxu1 %vm784_vm1, %v777_v58 }
 0x30e   :  { %v7541_v62 = vmax.f32 %v18153_v23, %v7349_v11  ;;  %8027 = vst.msk [vmem:[%s17241_s3 + $0x1e8] sm:$0xff] %vm7965_vm2, %v7834_v31  ;;  %v7833_v22 = vmax.f32 %v7641_v52, 0.0  ;;  %v7255_v46 = vmax.f32 %v18158_v37, %v10128_v35  ;;  %v18161_v27 = vmax.f32 %v18159_v34, %v18160_v3  ;;  %v18167_v55 = vld [vmem:[#allocation53_spill] sm:$0xff]  ;;  %v18172_v48 = vld [vmem:[#allocation58_spill] sm:$0xff]  ;;  %10276 = vmatprep.mubr.msk.f32.mxu0 %vm784_vm1, %v394_v14  ;;  %v18175_v51 = vld [vmem:[#allocation80_spill] sm:$0xff]  ;;  %v4569_v23 = vpop.f32.mrf.mxu0 }
 0x30f   :  { %v7644_v53 = vadd.f32 %v15847_v59, %v7445_v20  ;;  %v7444_v49 = vmax.f32 %v18157_v30, %v7252_v4  ;;  %8123 = vst.msk [vmem:[%s17241_s3 + $0x4e8] sm:$0xff] %vm7965_vm2, %v7930_v41  ;;  %v7929_v60 = vmax.f32 %v7737_v40, 0.0  ;;  %v7351_v45 = vmax.f32 %v18162_v28, %v10704_v61  ;;  %v18168_v7 = vld [vmem:[#allocation45_spill] sm:$0xff]  ;;  %v395_v20 = vld [vmem:[%s17239_s0 + $0xbe8] sm:$0xff]  ;;  %v18176_v29 = vld [vmem:[#allocation66_spill] sm:$0xff]  ;;  %10852 = vmatprep.mubr.msk.f32.mxu1 %vm784_vm1, %v778_v24  ;;  %v6489_v37 = vpop.f32.mrf.mxu1 }
 0x310   :  { %v7740_v44 = vadd.f32 %v15847_v59, %v7541_v62  ;;  %v7540_v9 = vmax.f32 %v18161_v27, %v7348_v19  ;;  %8026 = vst.msk [vmem:[%s17241_s3 + $0x1e0] sm:$0xff] %vm7965_vm2, %v7833_v22  ;;  %v18165_v43 = vmax.f32 %v18163_v26, %v18164_v8  ;;  %v7254_v16 = vmax.f32 %v18166_v32, %v4559_v18  ;;  %v18170_v39 = vld [vmem:[#allocation69_spill] sm:$0xff]  ;;  %v18178_v17 = vld [vmem:[#allocation96_spill] sm:$0xff]  ;;  %v779_v62 = vld [vmem:[%s17239_s0 + $0x17e8] sm:$0xff]  ;;  %v10134_v28 = vpop.f32.mrf.mxu0 }
 0x311   :  { %v7836_v38 = vmax.f32 %v7644_v53, 0.0  ;;  %v7643_v15 = vadd.f32 %v15847_v59, %v7444_v49  ;;  %8122 = vst.msk [vmem:[%s17241_s3 + $0x4e0] sm:$0xff] %vm7965_vm2, %v7929_v60  ;;  %v18169_v5 = vmax.f32 %v18167_v55, %v18168_v7  ;;  %v7350_v50 = vmax.f32 %v18170_v39, %v6479_v57  ;;  %v396_v2 = vld [vmem:[%s17239_s0 + $0xbf0] sm:$0xff]  ;;  %v18183_v60 = vld [vmem:[#allocation81_spill] sm:$0xff]  ;;  %v18186_v27 = vld [vmem:[#allocation87_spill] sm:$0xff]  ;;  %10277 = vmatmul.mubr.msk.f32.gmra.mxu0 %vm784_vm1, %v395_v20 }
 0x312   :  { %v7447_v54 = vmax.f32 %v18165_v43, %v7255_v46  ;;  %v7932_v63 = vmax.f32 %v7740_v44, 0.0  ;;  %v7739_v1 = vadd.f32 %v15847_v59, %v7540_v9  ;;  %v18173_v31 = vmax.f32 %v18171_v21, %v18172_v48  ;;  %v18179_v22 = vld [vmem:[#allocation4_spill] sm:$0xff]  ;;  %v18184_v44 = vld [vmem:[#allocation67_spill] sm:$0xff]  ;;  %v18190_v26 = vld [vmem:[#allocation14_spill] sm:$0xff]  ;;  %v10710_v43 = vpop.f32.mrf.mxu1  ;;  %10853 = vmatmul.mubr.msk.f32.gmra.mxu1 %vm784_vm1, %v779_v62  ;;  %10279 = vmatprep.mubr.msk.f32.mxu0 %vm784_vm1, %v396_v2 }
 0x313   :  { %v7543_v36 = vmax.f32 %v18169_v5, %v7351_v45  ;;  %8029 = vst.msk [vmem:[%s17241_s3 + $0x1f8] sm:$0xff] %vm7965_vm2, %v7836_v38  ;;  %v7835_v11 = vmax.f32 %v7643_v15, 0.0  ;;  %v7257_v25 = vmax.f32 %v18174_v0, %v10131_v33  ;;  %v18177_v41 = vmax.f32 %v18175_v51, %v18176_v29  ;;  %v18180_v53 = vld [vmem:[#allocation32_spill] sm:$0xff]  ;;  %v18187_v58 = vld [vmem:[#allocation39_spill] sm:$0xff]  ;;  %v18191_v57 = vld [vmem:[#allocation82_spill] sm:$0xff]  ;;  %v4579_v5 = vpop.f32.mrf.mxu0 }
 0x314   :  { %v7646_v42 = vadd.f32 %v15847_v59, %v7447_v54  ;;  %v7446_v52 = vmax.f32 %v18173_v31, %v7254_v16  ;;  %8125 = vst.msk [vmem:[%s17241_s3 + $0x4f8] sm:$0xff] %vm7965_vm2, %v7932_v63  ;;  %v7931_v10 = vmax.f32 %v7739_v1, 0.0  ;;  %v7353_v56 = vmax.f32 %v18178_v17, %v10707_v47  ;;  %v18182_v30 = vld [vmem:[#allocation48_spill] sm:$0xff]  ;;  %v397_v54 = vld [vmem:[%s17239_s0 + $0xbf8] sm:$0xff]  ;;  %v18199_v47 = vld [vmem:[#allocation19_spill] sm:$0xff] }
 0x315   :  { %v7742_v4 = vadd.f32 %v15847_v59, %v7543_v36  ;;  %v7542_v40 = vmax.f32 %v18177_v41, %v7350_v50  ;;  %8028 = vst.msk [vmem:[%s17241_s3 + $0x1f0] sm:$0xff] %vm7965_vm2, %v7835_v11  ;;  %v18181_v13 = vmax.f32 %v18179_v22, %v18180_v53  ;;  %v7256_v49 = vmax.f32 %v18182_v30, %v4569_v23  ;;  %v780_v46 = vld [vmem:[%s17239_s0 + $0x17f0] sm:$0xff]  ;;  %v781_v36 = vld [vmem:[%s17239_s0 + $0x17f8] sm:$0xff]  ;;  %v18200_v20 = vld [vmem:[#allocation59_spill] sm:$0xff]  ;;  %v10137_v41 = vpop.f32.mrf.mxu0 }
 0x316   :  { %v7838_v19 = vmax.f32 %v7646_v42, 0.0  ;;  %v7645_v35 = vadd.f32 %v15847_v59, %v7446_v52  ;;  %8124 = vst.msk [vmem:[%s17241_s3 + $0x4f0] sm:$0xff] %vm7965_vm2, %v7931_v10  ;;  %v18185_v34 = vmax.f32 %v18183_v60, %v18184_v44  ;;  %v7352_v9 = vmax.f32 %v18186_v27, %v6489_v37  ;;  %v18188_v14 = vld [vmem:[#allocation72_spill] sm:$0xff]  ;;  %10855 = vmatprep.mubr.msk.f32.mxu1 %vm784_vm1, %v780_v46  ;;  %v18195_v33 = vld [vmem:[#allocation5_spill] sm:$0xff]  ;;  %v6499_v52 = vpop.f32.mrf.mxu1  ;;  %v18204_v23 = vld [vmem:[#allocation74_spill] sm:$0xff] }
 0x317   :  { %v7449_v12 = vmax.f32 %v18181_v13, %v7257_v25  ;;  %v7934_v61 = vmax.f32 %v7742_v4, 0.0  ;;  %v7741_v6 = vadd.f32 %v15847_v59, %v7542_v40  ;;  %v18189_v38 = vmax.f32 %v18187_v58, %v18188_v14  ;;  %v18192_v24 = vld [vmem:[#allocation24_spill] sm:$0xff]  ;;  %v18196_v11 = vld [vmem:[#allocation73_spill] sm:$0xff]  ;;  %10280 = vmatmul.mubr.msk.f32.gmra.mxu0 %vm784_vm1, %v397_v54  ;;  %10856 = vmatmul.mubr.msk.f32.gmra.mxu1 %vm784_vm1, %v781_v36  ;;  %v18210_v46 = vld [vmem:[#allocation70_spill] sm:$0xff] }
 0x318   :  { %v7545_v3 = vmax.f32 %v18185_v34, %v7353_v56  ;;  %8031 = vst.msk [vmem:[%s17241_s3 + $0x208] sm:$0xff] %vm7965_vm2, %v7838_v19  ;;  %v7837_v45 = vmax.f32 %v7645_v35, 0.0  ;;  %v7259_v8 = vmax.f32 %v18190_v26, %v10134_v28  ;;  %v18193_v63 = vmax.f32 %v18191_v57, %v18192_v24  ;;  %v18194_v55 = vld [vmem:[#allocation88_spill] sm:$0xff]  ;;  %v18198_v48 = vld [vmem:[#allocation49_spill] sm:$0xff]  ;;  %v18206_v19 = vld [vmem:[#allocation35_spill] sm:$0xff]  ;;  %v10713_v22 = vpop.f32.mrf.mxu1 }
 0x319   :  { %v7648_v18 = vadd.f32 %v15847_v59, %v7449_v12  ;;  %v7448_v15 = vmax.f32 %v18189_v38, %v7256_v49  ;;  %8127 = vst.msk [vmem:[%s17241_s3 + $0x508] sm:$0xff] %vm7965_vm2, %v7934_v61  ;;  %v7933_v32 = vmax.f32 %v7741_v6, 0.0  ;;  %v7355_v7 = vmax.f32 %v18194_v55, %v10710_v43  ;;  %v18202_v51 = vld [vmem:[#allocation89_spill] sm:$0xff]  ;;  %v18203_v56 = vld [vmem:[#allocation40_spill] sm:$0xff]  ;;  %v18207_v12 = vld [vmem:[#allocation54_spill] sm:$0xff]  ;;  %v4589_v6 = vpop.f32.mrf.mxu0 }
 0x31a   :  { %v7744_v16 = vadd.f32 %v15847_v59, %v7545_v3  ;;  %v7544_v1 = vmax.f32 %v18193_v63, %v7352_v9  ;;  %8030 = vst.msk [vmem:[%s17241_s3 + $0x200] sm:$0xff] %vm7965_vm2, %v7837_v45  ;;  %v18197_v42 = vmax.f32 %v18195_v33, %v18196_v11  ;;  %v7258_v31 = vmax.f32 %v18198_v48, %v4579_v5  ;;  %v18208_v30 = vld [vmem:[#allocation85_spill] sm:$0xff]  ;;  %v18211_v34 = vld [vmem:[#allocation62_spill] sm:$0xff]  ;;  %v18214_v28 = vld [vmem:[#allocation75_spill] sm:$0xff] }
 0x31b   :  { %v7840_v39 = vmax.f32 %v7648_v18, 0.0  ;;  %v7647_v50 = vadd.f32 %v15847_v59, %v7448_v15  ;;  %8126 = vst.msk [vmem:[%s17241_s3 + $0x500] sm:$0xff] %vm7965_vm2, %v7933_v32  ;;  %v18201_v10 = vmax.f32 %v18199_v47, %v18200_v20  ;;  %v7354_v29 = vmax.f32 %v18202_v51, %v6499_v52  ;;  %v18212_v3 = vld [vmem:[#allocation93_spill] sm:$0xff]  ;;  %v6509_v18 = vpop.f32.mrf.mxu1  ;;  %v18215_v38 = vld [vmem:[#allocation28_spill] sm:$0xff]  ;;  %v18216_v15 = vld [vmem:[#allocation94_spill] sm:$0xff]  ;;  %v16384_v32 = vpop.f32.mrf.mxu0 }
 0x31c   :  { %v7451_v21 = vmax.f32 %v18197_v42, %v7259_v8  ;;  %v7936_v0 = vmax.f32 %v7744_v16, 0.0  ;;  %v7743_v25 = vadd.f32 %v15847_v59, %v7544_v1  ;;  %v18205_v62 = vmax.f32 %v18203_v56, %v18204_v23  ;;  %v18218_v43 = vld [vmem:[#allocation90_spill] sm:$0xff]  ;;  %v18220_v63 = vld [vmem:[#allocation33_spill] sm:$0xff] }
 0x31d   :  { %v7547_v4 = vmax.f32 %v18201_v10, %v7355_v7  ;;  %8033 = vst.msk [vmem:[%s17241_s3 + $0x218] sm:$0xff] %vm7965_vm2, %v7840_v39  ;;  %v7839_v40 = vmax.f32 %v7647_v50, 0.0  ;;  %v7261_v35 = vmax.f32 %v18206_v19, %v10137_v41  ;;  %v18209_v49 = vmax.f32 %v18207_v12, %v18208_v30  ;;  %v18219_v24 = vld [vmem:[#allocation6_spill] sm:$0xff]  ;;  %v16394_v7 = vpop.f32.mrf.mxu1  ;;  %v18222_v39 = vld [vmem:[#allocation20_spill] sm:$0xff]  ;;  %v18223_v50 = vld [vmem:[#allocation11_spill] sm:$0xff]  ;;  %v16404_v42 = vpop.f32.mrf.mxu0 }
 0x31e   :  { %v7650_v17 = vadd.f32 %v15847_v59, %v7451_v21  ;;  %v7450_v2 = vmax.f32 %v18205_v62, %v7258_v31  ;;  %8129 = vst.msk [vmem:[%s17241_s3 + $0x518] sm:$0xff] %vm7965_vm2, %v7936_v0  ;;  %v7935_v53 = vmax.f32 %v7743_v25, 0.0  ;;  %v7357_v61 = vmax.f32 %v18210_v46, %v10713_v22 }
 0x31f   :  { %v7746_v13 = vadd.f32 %v15847_v59, %v7547_v4  ;;  %v7546_v37 = vmax.f32 %v18209_v49, %v7354_v29  ;;  %8032 = vst.msk [vmem:[%s17241_s3 + $0x210] sm:$0xff] %vm7965_vm2, %v7839_v40  ;;  %v18213_v27 = vmax.f32 %v18211_v34, %v18212_v3  ;;  %v7260_v45 = vmax.f32 %v18214_v28, %v4589_v6  ;;  %v16411_v31 = vpop.f32.mrf.mxu1  ;;  %v16418_v25 = vpop.f32.mrf.mxu0 }
 0x320   :  { %v7842_v60 = vmax.f32 %v7650_v17, 0.0  ;;  %v7649_v44 = vadd.f32 %v15847_v59, %v7450_v2  ;;  %8128 = vst.msk [vmem:[%s17241_s3 + $0x510] sm:$0xff] %vm7965_vm2, %v7935_v53  ;;  %v18217_v26 = vmax.f32 %v18215_v38, %v18216_v15  ;;  %v7356_v54 = vmax.f32 %v18218_v43, %v6509_v18 }
 0x321   :  { %v7453_v9 = vmax.f32 %v18213_v27, %v7261_v35  ;;  %v7938_v58 = vmax.f32 %v7746_v13, 0.0  ;;  %v7745_v14 = vadd.f32 %v15847_v59, %v7546_v37  ;;  %v18221_v1 = vmax.f32 %v18219_v24, %v18220_v63  ;;  %v16424_v20 = vpop.f32.mrf.mxu1  ;;  %v16430_v4 = vpop.f32.mrf.mxu0 }
 0x322   :  { %v7549_v8 = vmax.f32 %v18217_v26, %v7357_v61  ;;  %8035 = vst.msk [vmem:[%s17241_s3 + $0x228] sm:$0xff] %vm7965_vm2, %v7842_v60  ;;  %v7841_v16 = vmax.f32 %v7649_v44, 0.0  ;;  %v18224_v33 = vmax.f32 %v18222_v39, %v18223_v50 }
 0x323   :  { %v7652_v57 = vadd.f32 %v15847_v59, %v7453_v9  ;;  %v7452_v55 = vmax.f32 %v18221_v1, %v7260_v45  ;;  %8131 = vst.msk [vmem:[%s17241_s3 + $0x528] sm:$0xff] %vm7965_vm2, %v7938_v58  ;;  %v7937_v5 = vmax.f32 %v7745_v14, 0.0  ;;  %v16442_v51 = vpop.f32.mrf.mxu0 }
 0x324   :  { %v7748_v36 = vadd.f32 %v15847_v59, %v7549_v8  ;;  %v7548_v11 = vmax.f32 %v18224_v33, %v7356_v54  ;;  %8034 = vst.msk [vmem:[%s17241_s3 + $0x220] sm:$0xff] %vm7965_vm2, %v7841_v16 }
 0x325   :  { %v7844_v21 = vmax.f32 %v7652_v57, 0.0  ;;  %v7651_v48 = vadd.f32 %v15847_v59, %v7452_v55  ;;  %8130 = vst.msk [vmem:[%s17241_s3 + $0x520] sm:$0xff] %vm7965_vm2, %v7937_v5  ;;  %v16446_v41 = vpop.f32.mrf.mxu0 }
 0x326   :  { %v7940_v52 = vmax.f32 %v7748_v36, 0.0  ;;  %v7747_v0 = vadd.f32 %v15847_v59, %v7548_v11  ;;  %v16436_v59 = vpop.f32.mrf.mxu1 }
 0x327   :  { %8037 = vst.msk [vmem:[%s17241_s3 + $0x238] sm:$0xff] %vm7965_vm2, %v7844_v21  ;;  %v7843_v47 = vmax.f32 %v7651_v48, 0.0  ;;  %v16450_v17 = vpop.f32.mrf.mxu0 }
 0x328   :  { %8133 = vst.msk [vmem:[%s17241_s3 + $0x538] sm:$0xff] %vm7965_vm2, %v7940_v52  ;;  %v7939_v10 = vmax.f32 %v7747_v0, 0.0  ;;  %v16444_v29 = vpop.f32.mrf.mxu1 }
 0x329   :  { %8036 = vst.msk [vmem:[%s17241_s3 + $0x230] sm:$0xff] %vm7965_vm2, %v7843_v47  ;;  %v16454_v23 = vpop.f32.mrf.mxu0 }
 0x32a   :  { %8132 = vst.msk [vmem:[%s17241_s3 + $0x530] sm:$0xff] %vm7965_vm2, %v7939_v10  ;;  %v16448_v40 = vpop.f32.mrf.mxu1 }
 0x32b   :  { %v16458_v2 = vpop.f32.mrf.mxu0 }
 0x32c   :  { %v16452_v56 = vpop.f32.mrf.mxu1 }
 0x32d   :  { %v16462_v35 = vpop.f32.mrf.mxu0 }
 0x32e   :  { %v16456_v62 = vpop.f32.mrf.mxu1 }
 0x32f   :  { %v16466_v53 = vpop.f32.mrf.mxu0 }
 0x330   :  { %v16460_v19 = vpop.f32.mrf.mxu1 }
 0x331   :  { %v16470_v12 = vpop.f32.mrf.mxu0 }
 0x332   :  { %v16464_v22 = vpop.f32.mrf.mxu1  ;;  %18226 = vst [vmem:[#allocation27_spill] sm:$0xff] %v16470_v12 }
 0x333   :  { %v16474_v49 = vpop.f32.mrf.mxu0 }
 0x334   :  { %v16468_v13 = vpop.f32.mrf.mxu1  ;;  %18228 = vst [vmem:[#allocation55_spill] sm:$0xff] %v16474_v49 }
 0x335   :  { %18225 = vst [vmem:[#allocation76_spill] sm:$0xff] %v16468_v13  ;;  %v16478_v46 = vpop.f32.mrf.mxu0 }
 0x336   :  { %v16472_v30 = vpop.f32.mrf.mxu1  ;;  %18230 = vst [vmem:[#allocation36_spill] sm:$0xff] %v16478_v46 }
 0x337   :  { %18227 = vst [vmem:[#allocation41_spill] sm:$0xff] %v16472_v30  ;;  %v16482_v6 = vpop.f32.mrf.mxu0 }
 0x338   :  { %v16476_v37 = vpop.f32.mrf.mxu1  ;;  %18232 = vst [vmem:[#allocation64_spill] sm:$0xff] %v16482_v6 }
 0x339   :  { %18229 = vst [vmem:[#allocation63_spill] sm:$0xff] %v16476_v37  ;;  %v16486_v44 = vpop.f32.mrf.mxu0 }
 0x33a   :  { %v16480_v61 = vpop.f32.mrf.mxu1  ;;  %18234 = vst [vmem:[#allocation71_spill] sm:$0xff] %v16486_v44 }
 0x33b   :  { %18231 = vst [vmem:[#allocation29_spill] sm:$0xff] %v16480_v61  ;;  %v16490_v3 = vpop.f32.mrf.mxu0 }
 0x33c   :  { %v16484_v60 = vpop.f32.mrf.mxu1  ;;  %18236 = vst [vmem:[#allocation42_spill] sm:$0xff] %v16490_v3 }
 0x33d   :  { %18233 = vst [vmem:[#allocation7_spill] sm:$0xff] %v16484_v60  ;;  %v16494_v9 = vpop.f32.mrf.mxu0 }
 0x33e   :  { %v16488_v34 = vpop.f32.mrf.mxu1  ;;  %18238 = vst [vmem:[#allocation2_spill] sm:$0xff] %v16494_v9 }
 0x33f   :  { %18235 = vst [vmem:[#allocation21_spill] sm:$0xff] %v16488_v34  ;;  %v16498_v45 = vpop.f32.mrf.mxu0 }
 0x340   :  { %v16492_v27 = vpop.f32.mrf.mxu1  ;;  %18240 = vst [vmem:[#allocation22_spill] sm:$0xff] %v16498_v45 }
 0x341   :  { %18237 = vst [vmem:[#allocation56_spill] sm:$0xff] %v16492_v27  ;;  %v16502_v58 = vpop.f32.mrf.mxu0 }
 0x342   :  { %v16496_v28 = vpop.f32.mrf.mxu1  ;;  %18242 = vst [vmem:[#allocation15_spill] sm:$0xff] %v16502_v58 }
 0x343   :  { %18239 = vst [vmem:[#allocation8_spill] sm:$0xff] %v16496_v28  ;;  %v16506_v38 = vpop.f32.mrf.mxu0 }
 0x344   :  { %v16500_v18 = vpop.f32.mrf.mxu1  ;;  %18244 = vst [vmem:[#allocation50_spill] sm:$0xff] %v16506_v38 }
 0x345   :  { %18241 = vst [vmem:[#allocation30_spill] sm:$0xff] %v16500_v18  ;;  %v16510_v26 = vpop.f32.mrf.mxu0 }
 0x346   :  { %v16504_v14 = vpop.f32.mrf.mxu1  ;;  %18246 = vst [vmem:[#allocation86_spill] sm:$0xff] %v16510_v26 }
 0x347   :  { %18243 = vst [vmem:[#allocation65_spill] sm:$0xff] %v16504_v14  ;;  %v16514_v43 = vpop.f32.mrf.mxu0 }
 0x348   :  { %v16508_v15 = vpop.f32.mrf.mxu1  ;;  %18248 = vst [vmem:[#allocation43_spill] sm:$0xff] %v16514_v43 }
 0x349   :  { %18245 = vst [vmem:[#allocation91_spill] sm:$0xff] %v16508_v15  ;;  %v16518_v16 = vpop.f32.mrf.mxu0 }
 0x34a   :  { %v16512_v8 = vpop.f32.mrf.mxu1  ;;  %18250 = vst [vmem:[#allocation37_spill] sm:$0xff] %v16518_v16 }
 0x34b   :  { %18247 = vst [vmem:[#allocation16_spill] sm:$0xff] %v16512_v8  ;;  %v16522_v24 = vpop.f32.mrf.mxu0 }
 0x34c   :  { %v16516_v54 = vpop.f32.mrf.mxu1 }
 0x34d   :  { %18249 = vst [vmem:[#allocation46_spill] sm:$0xff] %v16516_v54  ;;  %v16530_v5 = vpop.f32.mrf.mxu0 }
 0x34e   :  { %v16520_v57 = vpop.f32.mrf.mxu1 }
 0x34f   :  { %18251 = vst [vmem:[#allocation57_spill] sm:$0xff] %v16520_v57  ;;  %v16538_v33 = vpop.f32.mrf.mxu0 }
 0x350   :  { %v16526_v1 = vpop.f32.mrf.mxu1 }
 0x351   :  { %v16546_v52 = vpop.f32.mrf.mxu0 }
 0x352   :  { %v16534_v39 = vpop.f32.mrf.mxu1 }
 0x353   :  { %v16554_v50 = vpop.f32.mrf.mxu0 }
 0x354   :  { %v16542_v21 = vpop.f32.mrf.mxu1  ;;  %18253 = vst [vmem:[#allocation51_spill] sm:$0xff] %v16554_v50 }
 0x355   :  { %v16562_v55 = vpop.f32.mrf.mxu0 }
 0x356   :  { %v16550_v47 = vpop.f32.mrf.mxu1  ;;  %18255 = vst [vmem:[#allocation12_spill] sm:$0xff] %v16562_v55 }
 0x357   :  { %18252 = vst [vmem:[#allocation25_spill] sm:$0xff] %v16550_v47  ;;  %v16570_v47 = vpop.f32.mrf.mxu0 }
 0x358   :  { %v16558_v36 = vpop.f32.mrf.mxu1  ;;  %18257 = vst [vmem:[#allocation83_spill] sm:$0xff] %v16570_v47 }
 0x359   :  { %18254 = vst [vmem:[#allocation9_spill] sm:$0xff] %v16558_v36  ;;  %v16578_v36 = vpop.f32.mrf.mxu0 }
 0x35a   :  { %v16566_v63 = vpop.f32.mrf.mxu1  ;;  %18259 = vst [vmem:[#allocation78_spill] sm:$0xff] %v16578_v36 }
 0x35b   :  { %18256 = vst [vmem:[#allocation77_spill] sm:$0xff] %v16566_v63  ;;  %v16586_v63 = vpop.f32.mrf.mxu0 }
 0x35c   :  { %v16574_v50 = vpop.f32.mrf.mxu1  ;;  %18261 = vst [vmem:[#allocation68_spill] sm:$0xff] %v16586_v63 }
 0x35d   :  { %18258 = vst [vmem:[#allocation60_spill] sm:$0xff] %v16574_v50  ;;  %v16594_v50 = vpop.f32.mrf.mxu0 }
 0x35e   :  { %v16582_v55 = vpop.f32.mrf.mxu1  ;;  %18263 = vst [vmem:[#allocation84_spill] sm:$0xff] %v16594_v50 }
 0x35f   :  { %18260 = vst [vmem:[#allocation44_spill] sm:$0xff] %v16582_v55  ;;  %v16602_v55 = vpop.f32.mrf.mxu0 }
 0x360   :  { %v16590_v47 = vpop.f32.mrf.mxu1  ;;  %18265 = vst [vmem:[#allocation17_spill] sm:$0xff] %v16602_v55 }
 0x361   :  { %18262 = vst [vmem:[#allocation3_spill] sm:$0xff] %v16590_v47  ;;  %v16610_v47 = vpop.f32.mrf.mxu0 }
 0x362   :  { %v16598_v36 = vpop.f32.mrf.mxu1  ;;  %18267 = vst [vmem:[#allocation47_spill] sm:$0xff] %v16610_v47 }
 0x363   :  { %18264 = vst [vmem:[#allocation34_spill] sm:$0xff] %v16598_v36  ;;  %v16618_v36 = vpop.f32.mrf.mxu0 }
 0x364   :  { %v16606_v63 = vpop.f32.mrf.mxu1  ;;  %18269 = vst [vmem:[#allocation31_spill] sm:$0xff] %v16618_v36 }
 0x365   :  { %18266 = vst [vmem:[#allocation92_spill] sm:$0xff] %v16606_v63  ;;  %v16626_v63 = vpop.f32.mrf.mxu0 }
 0x366   :  { %v16614_v50 = vpop.f32.mrf.mxu1  ;;  %18271 = vst [vmem:[#allocation18_spill] sm:$0xff] %v16626_v63 }
 0x367   :  { %18268 = vst [vmem:[#allocation52_spill] sm:$0xff] %v16614_v50  ;;  %v16634_v50 = vpop.f32.mrf.mxu0 }
 0x368   :  { %v16622_v55 = vpop.f32.mrf.mxu1  ;;  %18273 = vst [vmem:[#allocation13_spill] sm:$0xff] %v16634_v50 }
 0x369   :  { %18270 = vst [vmem:[#allocation26_spill] sm:$0xff] %v16622_v55  ;;  %v16642_v55 = vpop.f32.mrf.mxu0 }
 0x36a   :  { %v16630_v47 = vpop.f32.mrf.mxu1  ;;  %18275 = vst [vmem:[#allocation23_spill] sm:$0xff] %v16642_v55 }
 0x36b   :  { %18272 = vst [vmem:[#allocation10_spill] sm:$0xff] %v16630_v47  ;;  %v16650_v47 = vpop.f32.mrf.mxu0 }
 0x36c   :  { %v16638_v36 = vpop.f32.mrf.mxu1  ;;  %18277 = vst [vmem:[#allocation53_spill] sm:$0xff] %v16650_v47 }
 0x36d   :  { %18274 = vst [vmem:[#allocation38_spill] sm:$0xff] %v16638_v36  ;;  %v16658_v36 = vpop.f32.mrf.mxu0 }
 0x36e   :  { %v16646_v63 = vpop.f32.mrf.mxu1  ;;  %18279 = vst [vmem:[#allocation69_spill] sm:$0xff] %v16658_v36 }
 0x36f   :  { %18276 = vst [vmem:[#allocation61_spill] sm:$0xff] %v16646_v63  ;;  %v16666_v63 = vpop.f32.mrf.mxu0 }
 0x370   :  { %v16654_v50 = vpop.f32.mrf.mxu1  ;;  %18281 = vst [vmem:[#allocation58_spill] sm:$0xff] %v16666_v63 }
 0x371   :  { %18278 = vst [vmem:[#allocation45_spill] sm:$0xff] %v16654_v50  ;;  %v16674_v50 = vpop.f32.mrf.mxu0 }
 0x372   :  { %v16662_v55 = vpop.f32.mrf.mxu1  ;;  %18283 = vst [vmem:[#allocation80_spill] sm:$0xff] %v16674_v50 }
 0x373   :  { %18280 = vst [vmem:[#allocation79_spill] sm:$0xff] %v16662_v55  ;;  %v16682_v55 = vpop.f32.mrf.mxu0 }
 0x374   :  { %v16670_v47 = vpop.f32.mrf.mxu1  ;;  %18285 = vst [vmem:[#allocation96_spill] sm:$0xff] %v16682_v55 }
 0x375   :  { %18282 = vst [vmem:[#allocation95_spill] sm:$0xff] %v16670_v47  ;;  %v16690_v47 = vpop.f32.mrf.mxu0 }
 0x376   :  { %v16678_v36 = vpop.f32.mrf.mxu1  ;;  %18287 = vst [vmem:[#allocation32_spill] sm:$0xff] %v16690_v47 }
 0x377   :  { %18284 = vst [vmem:[#allocation66_spill] sm:$0xff] %v16678_v36  ;;  %v16698_v36 = vpop.f32.mrf.mxu0 }
 0x378   :  { %v16686_v63 = vpop.f32.mrf.mxu1  ;;  %18289 = vst [vmem:[#allocation81_spill] sm:$0xff] %v16698_v36 }
 0x379   :  { %18286 = vst [vmem:[#allocation4_spill] sm:$0xff] %v16686_v63  ;;  %v16706_v63 = vpop.f32.mrf.mxu0 }
 0x37a   :  { %v16694_v50 = vpop.f32.mrf.mxu1  ;;  %18291 = vst [vmem:[#allocation87_spill] sm:$0xff] %v16706_v63 }
 0x37b   :  { %18288 = vst [vmem:[#allocation48_spill] sm:$0xff] %v16694_v50  ;;  %v10212_v50 = vpop.f32.mrf.mxu0 }
 0x37c   :  { %v16702_v55 = vpop.f32.mrf.mxu1 }
 0x37d   :  { %18290 = vst [vmem:[#allocation67_spill] sm:$0xff] %v16702_v55  ;;  %v4839_v26 = vpop.f32.mrf.mxu0 }
 0x37e   :  { %v16710_v47 = vpop.f32.mrf.mxu1 }
 0x37f   :  { %18292 = vst [vmem:[#allocation39_spill] sm:$0xff] %v16710_v47  ;;  %v16716_v11 = vpop.f32.mrf.mxu0 }
 0x380   :  { %v10788_v8 = vpop.f32.mrf.mxu1 }
 0x381   :  { %v16720_v48 = vpop.f32.mrf.mxu0 }
 0x382   :  { %v16714_v15 = vpop.f32.mrf.mxu1 }
 0x383   :  { %v16724_v54 = vpop.f32.mrf.mxu0 }
 0x384   :  { %v16718_v36 = vpop.f32.mrf.mxu1 }
 0x385   :  { %v16728_v63 = vpop.f32.mrf.mxu0 }
 0x386   :  { %v16722_v55 = vpop.f32.mrf.mxu1 }
 0x387   :  { %v16732_v47 = vpop.f32.mrf.mxu0 }
 0x388   :  { %v16726_v0 = vpop.f32.mrf.mxu1 }
 0x389   :  { %v16736_v16 = vpop.f32.mrf.mxu0 }
 0x38a   :  { %v16730_v10 = vpop.f32.mrf.mxu1 }
 0x38b   :  { %v16740_v38 = vpop.f32.mrf.mxu0 }
 0x38c   :  { %v16734_v57 = vpop.f32.mrf.mxu1 }
 0x38d   :  { %v16744_v58 = vpop.f32.mrf.mxu0 }
 0x38e   :  { %v16738_v43 = vpop.f32.mrf.mxu1 }
 0x38f   :  { %v16748_v45 = vpop.f32.mrf.mxu0 }
 0x390   :  { %v16742_v14 = vpop.f32.mrf.mxu1 }
 0x391   :  { %v16752_v9 = vpop.f32.mrf.mxu0 }
 0x392   :  { %v16746_v18 = vpop.f32.mrf.mxu1  ;;  %18293 = vst [vmem:[#allocation72_spill] sm:$0xff] %v16752_v9 }
 0x393   :  { %v16756_v3 = vpop.f32.mrf.mxu0 }
 0x394   :  { %v16750_v28 = vpop.f32.mrf.mxu1  ;;  %18295 = vst [vmem:[#allocation82_spill] sm:$0xff] %v16756_v3 }
 0x395   :  { %v16760_v44 = vpop.f32.mrf.mxu0 }
 0x396   :  { %v16754_v27 = vpop.f32.mrf.mxu1  ;;  %18297 = vst [vmem:[#allocation88_spill] sm:$0xff] %v16760_v44 }
 0x397   :  { %18294 = vst [vmem:[#allocation14_spill] sm:$0xff] %v16754_v27  ;;  %v16764_v6 = vpop.f32.mrf.mxu0 }
 0x398   :  { %v16758_v34 = vpop.f32.mrf.mxu1  ;;  %18299 = vst [vmem:[#allocation73_spill] sm:$0xff] %v16764_v6 }
 0x399   :  { %18296 = vst [vmem:[#allocation24_spill] sm:$0xff] %v16758_v34  ;;  %v16768_v46 = vpop.f32.mrf.mxu0 }
 0x39a   :  { %v16762_v60 = vpop.f32.mrf.mxu1  ;;  %18301 = vst [vmem:[#allocation19_spill] sm:$0xff] %v16768_v46 }
 0x39b   :  { %18298 = vst [vmem:[#allocation5_spill] sm:$0xff] %v16762_v60  ;;  %v16772_v49 = vpop.f32.mrf.mxu0 }
 0x39c   :  { %v16766_v61 = vpop.f32.mrf.mxu1  ;;  %18303 = vst [vmem:[#allocation89_spill] sm:$0xff] %v16772_v49 }
 0x39d   :  { %18300 = vst [vmem:[#allocation49_spill] sm:$0xff] %v16766_v61  ;;  %v16776_v12 = vpop.f32.mrf.mxu0 }
 0x39e   :  { %v16770_v37 = vpop.f32.mrf.mxu1  ;;  %18305 = vst [vmem:[#allocation74_spill] sm:$0xff] %v16776_v12 }
 0x39f   :  { %18302 = vst [vmem:[#allocation59_spill] sm:$0xff] %v16770_v37  ;;  %v16780_v34 = vpop.f32.mrf.mxu0 }
 0x3a0   :  { %v16774_v30 = vpop.f32.mrf.mxu1  ;;  %18307 = vst [vmem:[#allocation54_spill] sm:$0xff] %v16780_v34 }
 0x3a1   :  { %18304 = vst [vmem:[#allocation40_spill] sm:$0xff] %v16774_v30  ;;  %v16784_v60 = vpop.f32.mrf.mxu0 }
 0x3a2   :  { %v16778_v3 = vpop.f32.mrf.mxu1  ;;  %18309 = vst [vmem:[#allocation70_spill] sm:$0xff] %v16784_v60 }
 0x3a3   :  { %18306 = vst [vmem:[#allocation35_spill] sm:$0xff] %v16778_v3  ;;  %v16788_v61 = vpop.f32.mrf.mxu0 }
 0x3a4   :  { %v16782_v44 = vpop.f32.mrf.mxu1  ;;  %18311 = vst [vmem:[#allocation93_spill] sm:$0xff] %v16788_v61 }
 0x3a5   :  { %18308 = vst [vmem:[#allocation85_spill] sm:$0xff] %v16782_v44  ;;  %v16792_v37 = vpop.f32.mrf.mxu0 }
 0x3a6   :  { %v16786_v6 = vpop.f32.mrf.mxu1  ;;  %18313 = vst [vmem:[#allocation28_spill] sm:$0xff] %v16792_v37 }
 0x3a7   :  { %18310 = vst [vmem:[#allocation62_spill] sm:$0xff] %v16786_v6  ;;  %v16796_v30 = vpop.f32.mrf.mxu0 }
 0x3a8   :  { %v16790_v46 = vpop.f32.mrf.mxu1  ;;  %18315 = vst [vmem:[#allocation90_spill] sm:$0xff] %v16796_v30  ;;  %v18319_v30 = vmax.f32 %v16394_v7, %v16526_v1 }
 0x3a9   :  { %18312 = vst [vmem:[#allocation75_spill] sm:$0xff] %v16790_v46  ;;  %v16800_v3 = vpop.f32.mrf.mxu0  ;;  %v18318_v46 = vmax.f32 %v16384_v32, %v16522_v24  ;;  %v18320_v32 = vmax.f32 %v16404_v42, %v16530_v5 }
 0x3aa   :  { %v16794_v49 = vpop.f32.mrf.mxu1  ;;  %18317 = vst [vmem:[#allocation33_spill] sm:$0xff] %v16800_v3 }
 0x3ab   :  { %18314 = vst [vmem:[#allocation94_spill] sm:$0xff] %v16794_v49  ;;  %v10248_v44 = vpop.f32.mrf.mxu0 }
 0x3ac   :  { %v16798_v12 = vpop.f32.mrf.mxu1  ;;  %v7263_v60 = vmax.f32 %v10212_v50, %v10248_v44  ;;  %v16814_v44 = vld [vmem:[%s17240_s2] ss:$0 sm:$0xff] }
 0x3ad   :  { %18316 = vst [vmem:[#allocation6_spill] sm:$0xff] %v16798_v12  ;;  %v4959_v13 = vpop.f32.mrf.mxu0 }
 0x3ae   :  { %v16802_v34 = vpop.f32.mrf.mxu1  ;;  %v7455_v61 = vmax.f32 %v18318_v46, %v7263_v60  ;;  %v7262_v37 = vmax.f32 %v4839_v26, %v4959_v13 }
 0x3af   :  { %v10251_v3 = vpop.f32.mrf.mxu0 }
 0x3b0   :  { %v10824_v27 = vpop.f32.mrf.mxu1  ;;  %v7454_v46 = vmax.f32 %v18320_v32, %v7262_v37  ;;  %v7265_v13 = vmax.f32 %v16716_v11, %v10251_v3 }
 0x3b1   :  { %v7359_v6 = vmax.f32 %v10788_v8, %v10824_v27  ;;  %v7654_v27 = vadd.f32 %v16814_v44, %v7455_v61  ;;  %v18322_v61 = vmax.f32 %v16418_v25, %v16538_v33 }
 0x3b2   :  { %v6879_v9 = vpop.f32.mrf.mxu1  ;;  %v7653_v8 = vadd.f32 %v16814_v44, %v7454_v46 }
 0x3b3   :  { %v7551_v49 = vmax.f32 %v18319_v30, %v7359_v6  ;;  %v7358_v12 = vmax.f32 %v16714_v15, %v6879_v9  ;;  %v18321_v30 = vmax.f32 %v16411_v31, %v16534_v39  ;;  %v4969_v15 = vpop.f32.mrf.mxu0  ;;  %v7846_v26 = vmax.f32 %v7654_v27, 0.0 }
 0x3b4   :  { %v10827_v60 = vpop.f32.mrf.mxu1  ;;  %v7457_v42 = vmax.f32 %v18322_v61, %v7265_v13  ;;  %v7264_v37 = vmax.f32 %v16720_v48, %v4969_v15  ;;  %v18323_v31 = vmax.f32 %v16424_v20, %v16542_v21  ;;  %v7845_v25 = vmax.f32 %v7653_v8, 0.0  ;;  %v18325_v21 = vld [vmem:[#allocation25_spill] sm:$0xff]  ;;  %v18331_v61 = vld [vmem:[#allocation12_spill] sm:$0xff] }
 0x3b5   :  { %v7750_v7 = vadd.f32 %v16814_v44, %v7551_v49  ;;  %v7550_v6 = vmax.f32 %v18321_v30, %v7358_v12  ;;  %v7361_v9 = vmax.f32 %v16718_v36, %v10827_v60  ;;  %v10254_v5 = vpop.f32.mrf.mxu0  ;;  %8039 = vst.msk [vmem:[%s17241_s3 + $0x248] sm:$0xff] %vm7965_vm2, %v7846_v26  ;;  %v18324_v39 = vmax.f32 %v16430_v4, %v16546_v52  ;;  %v18327_v52 = vld [vmem:[#allocation51_spill] sm:$0xff] }
 0x3b6   :  { %v6889_v3 = vpop.f32.mrf.mxu1  ;;  %v7656_v36 = vadd.f32 %v16814_v44, %v7457_v42  ;;  %v7267_v33 = vmax.f32 %v16724_v54, %v10254_v5  ;;  %v18326_v48 = vmax.f32 %v16436_v59, %v18325_v21  ;;  %8038 = vst.msk [vmem:[%s17241_s3 + $0x240] sm:$0xff] %vm7965_vm2, %v7845_v25  ;;  %v18328_v13 = vmax.f32 %v16442_v51, %v18327_v52  ;;  %v18335_v25 = vld [vmem:[#allocation83_spill] sm:$0xff]  ;;  %v18341_v52 = vld [vmem:[#allocation44_spill] sm:$0xff] }
 0x3b7   :  { %v7942_v24 = vmax.f32 %v7750_v7, 0.0  ;;  %v7749_v49 = vadd.f32 %v16814_v44, %v7550_v6  ;;  %v7553_v12 = vmax.f32 %v18323_v31, %v7361_v9  ;;  %v7360_v1 = vmax.f32 %v16722_v55, %v6889_v3  ;;  %v4979_v46 = vpop.f32.mrf.mxu0  ;;  %v18329_v6 = vld [vmem:[#allocation9_spill] sm:$0xff] }
 0x3b8   :  { %v7456_v50 = vmax.f32 %v18324_v39, %v7264_v37  ;;  %v10830_v11 = vpop.f32.mrf.mxu1  ;;  %v7848_v4 = vmax.f32 %v7656_v36, 0.0  ;;  %v7459_v60 = vmax.f32 %v18328_v13, %v7267_v33  ;;  %v7266_v7 = vmax.f32 %v16728_v63, %v4979_v46 }
 0x3b9   :  { %8135 = vst.msk [vmem:[%s17241_s3 + $0x548] sm:$0xff] %vm7965_vm2, %v7942_v24  ;;  %v7941_v20 = vmax.f32 %v7749_v49, 0.0  ;;  %v7752_v55 = vadd.f32 %v16814_v44, %v7553_v12  ;;  %v7552_v27 = vmax.f32 %v18326_v48, %v7360_v1  ;;  %v7363_v32 = vmax.f32 %v16726_v0, %v10830_v11  ;;  %v10257_v8 = vpop.f32.mrf.mxu0  ;;  %v18333_v49 = vld [vmem:[#allocation77_spill] sm:$0xff]  ;;  %v18337_v11 = vld [vmem:[#allocation60_spill] sm:$0xff] }
 0x3ba   :  { %v7655_v54 = vadd.f32 %v16814_v44, %v7456_v50  ;;  %v6899_v30 = vpop.f32.mrf.mxu1  ;;  %v18330_v9 = vmax.f32 %v16444_v29, %v18329_v6  ;;  %8041 = vst.msk [vmem:[%s17241_s3 + $0x258] sm:$0xff] %vm7965_vm2, %v7848_v4  ;;  %v7658_v63 = vadd.f32 %v16814_v44, %v7459_v60  ;;  %v18332_v42 = vmax.f32 %v16446_v41, %v18331_v61 }
 0x3bb   :  { %8134 = vst.msk [vmem:[%s17241_s3 + $0x540] sm:$0xff] %vm7965_vm2, %v7941_v20  ;;  %v7944_v59 = vmax.f32 %v7752_v55, 0.0  ;;  %v7751_v0 = vadd.f32 %v16814_v44, %v7552_v27  ;;  %v7362_v26 = vmax.f32 %v16730_v10, %v6899_v30  ;;  %v7269_v3 = vmax.f32 %v16732_v47, %v10257_v8  ;;  %v4989_v5 = vpop.f32.mrf.mxu0  ;;  %v18339_v27 = vld [vmem:[#allocation78_spill] sm:$0xff] }
 0x3bc   :  { %v7555_v15 = vmax.f32 %v18330_v9, %v7363_v32  ;;  %v7847_v51 = vmax.f32 %v7655_v54, 0.0  ;;  %v7458_v37 = vmax.f32 %v18332_v42, %v7266_v7  ;;  %v10833_v24 = vpop.f32.mrf.mxu1  ;;  %v18334_v31 = vmax.f32 %v16448_v40, %v18333_v49  ;;  %v18347_v42 = vld [vmem:[#allocation84_spill] sm:$0xff] }
 0x3bd   :  { %8137 = vst.msk [vmem:[%s17241_s3 + $0x558] sm:$0xff] %vm7965_vm2, %v7944_v59  ;;  %v7943_v29 = vmax.f32 %v7751_v0, 0.0  ;;  %v7365_v1 = vmax.f32 %v16734_v57, %v10833_v24  ;;  %v7850_v41 = vmax.f32 %v7658_v63, 0.0  ;;  %v18336_v36 = vmax.f32 %v16450_v17, %v18335_v25  ;;  %v10260_v48 = vpop.f32.mrf.mxu0  ;;  %v18343_v59 = vld [vmem:[#allocation68_spill] sm:$0xff] }
 0x3be   :  { %v7754_v10 = vadd.f32 %v16814_v44, %v7555_v15  ;;  %v7554_v12 = vmax.f32 %v18334_v31, %v7362_v26  ;;  %8040 = vst.msk [vmem:[%s17241_s3 + $0x250] sm:$0xff] %vm7965_vm2, %v7847_v51  ;;  %v7657_v47 = vadd.f32 %v16814_v44, %v7458_v37  ;;  %v7268_v50 = vmax.f32 %v16736_v16, %v4989_v5  ;;  %v6909_v33 = vpop.f32.mrf.mxu1  ;;  %v18345_v26 = vld [vmem:[#allocation3_spill] sm:$0xff]  ;;  %v18351_v5 = vld [vmem:[#allocation17_spill] sm:$0xff]  ;;  %v18353_v25 = vld [vmem:[#allocation72_spill] sm:$0xff] }
 0x3bf   :  { %v7461_v39 = vmax.f32 %v18336_v36, %v7269_v3  ;;  %8136 = vst.msk [vmem:[%s17241_s3 + $0x550] sm:$0xff] %vm7965_vm2, %v7943_v29  ;;  %v18338_v20 = vmax.f32 %v16452_v56, %v18337_v11  ;;  %v7364_v21 = vmax.f32 %v16738_v43, %v6909_v33  ;;  %8043 = vst.msk [vmem:[%s17241_s3 + $0x268] sm:$0xff] %vm7965_vm2, %v7850_v41  ;;  %v4999_v30 = vpop.f32.mrf.mxu0  ;;  %v18355_v33 = vld [vmem:[#allocation92_spill] sm:$0xff]  ;;  %v18357_v11 = vld [vmem:[#allocation14_spill] sm:$0xff] }
 0x3c0   :  { %v7946_v40 = vmax.f32 %v7754_v10, 0.0  ;;  %v7753_v57 = vadd.f32 %v16814_v44, %v7554_v12  ;;  %v7849_v17 = vmax.f32 %v7657_v47, 0.0  ;;  %v18340_v32 = vmax.f32 %v16454_v23, %v18339_v27  ;;  %v10836_v54 = vpop.f32.mrf.mxu1  ;;  %v18349_v10 = vld [vmem:[#allocation34_spill] sm:$0xff] }
 0x3c1   :  { %v7557_v55 = vmax.f32 %v18338_v20, %v7365_v1  ;;  %v7660_v16 = vadd.f32 %v16814_v44, %v7461_v39  ;;  %v7271_v4 = vmax.f32 %v16740_v38, %v10260_v48  ;;  %v18342_v13 = vmax.f32 %v16456_v62, %v18341_v52  ;;  %v10263_v61 = vpop.f32.mrf.mxu0  ;;  %v18358_v48 = vld [vmem:[#allocation27_spill] sm:$0xff]  ;;  %v18363_v52 = vld [vmem:[#allocation52_spill] sm:$0xff] }
 0x3c2   :  { %v7460_v46 = vmax.f32 %v18340_v32, %v7268_v50  ;;  %8139 = vst.msk [vmem:[%s17241_s3 + $0x568] sm:$0xff] %vm7965_vm2, %v7946_v40  ;;  %v7945_v56 = vmax.f32 %v7753_v57, 0.0  ;;  %v7367_v7 = vmax.f32 %v16742_v14, %v10836_v54  ;;  %8042 = vst.msk [vmem:[%s17241_s3 + $0x260] sm:$0xff] %vm7965_vm2, %v7849_v17  ;;  %v18344_v0 = vmax.f32 %v16458_v2, %v18343_v59  ;;  %v6919_v15 = vpop.f32.mrf.mxu1  ;;  %v18354_v50 = vld [vmem:[#allocation76_spill] sm:$0xff]  ;;  %v18359_v17 = vld [vmem:[#allocation47_spill] sm:$0xff] }
 0x3c3   :  { %v7756_v43 = vadd.f32 %v16814_v44, %v7557_v55  ;;  %v7556_v60 = vmax.f32 %v18342_v13, %v7364_v21  ;;  %v7852_v23 = vmax.f32 %v7660_v16, 0.0  ;;  %v7270_v9 = vmax.f32 %v16744_v58, %v4999_v30  ;;  %v5009_v1 = vpop.f32.mrf.mxu0  ;;  %v18361_v32 = vld [vmem:[#allocation82_spill] sm:$0xff] }
 0x3c4   :  { %v7659_v38 = vadd.f32 %v16814_v44, %v7460_v46  ;;  %v7463_v6 = vmax.f32 %v18344_v0, %v7271_v4  ;;  %8138 = vst.msk [vmem:[%s17241_s3 + $0x560] sm:$0xff] %vm7965_vm2, %v7945_v56  ;;  %v18346_v8 = vmax.f32 %v16460_v19, %v18345_v26  ;;  %v7366_v63 = vmax.f32 %v16746_v18, %v6919_v15  ;;  %v10839_v29 = vpop.f32.mrf.mxu1  ;;  %v18366_v0 = vld [vmem:[#allocation55_spill] sm:$0xff] }
 0x3c5   :  { %v7948_v62 = vmax.f32 %v7756_v43, 0.0  ;;  %v7755_v14 = vadd.f32 %v16814_v44, %v7556_v60  ;;  %8045 = vst.msk [vmem:[%s17241_s3 + $0x278] sm:$0xff] %vm7965_vm2, %v7852_v23  ;;  %v18348_v37 = vmax.f32 %v16462_v35, %v18347_v42  ;;  %v7273_v24 = vmax.f32 %v16748_v45, %v10263_v61  ;;  %v10266_v55 = vpop.f32.mrf.mxu0  ;;  %v18362_v43 = vld [vmem:[#allocation41_spill] sm:$0xff]  ;;  %v18371_v61 = vld [vmem:[#allocation26_spill] sm:$0xff] }
 0x3c6   :  { %v7559_v51 = vmax.f32 %v18346_v8, %v7367_v7  ;;  %v7851_v2 = vmax.f32 %v7659_v38, 0.0  ;;  %v7662_v58 = vadd.f32 %v16814_v44, %v7463_v6  ;;  %v18350_v49 = vmax.f32 %v16464_v22, %v18349_v10  ;;  %v6929_v39 = vpop.f32.mrf.mxu1  ;;  %v18365_v7 = vld [vmem:[#allocation24_spill] sm:$0xff]  ;;  %v18367_v6 = vld [vmem:[#allocation31_spill] sm:$0xff]  ;;  %v18373_v42 = vld [vmem:[#allocation5_spill] sm:$0xff] }
 0x3c7   :  { %v7462_v3 = vmax.f32 %v18348_v37, %v7270_v9  ;;  %8141 = vst.msk [vmem:[%s17241_s3 + $0x578] sm:$0xff] %vm7965_vm2, %v7948_v62  ;;  %v7947_v19 = vmax.f32 %v7755_v14, 0.0  ;;  %v7369_v12 = vmax.f32 %v16750_v28, %v10839_v29  ;;  %v18352_v41 = vmax.f32 %v16466_v53, %v18351_v5  ;;  %v5019_v23 = vpop.f32.mrf.mxu0  ;;  %v18369_v62 = vld [vmem:[#allocation88_spill] sm:$0xff]  ;;  %v18378_v5 = vld [vmem:[#allocation29_spill] sm:$0xff] }
 0x3c8   :  { %v7758_v18 = vadd.f32 %v16814_v44, %v7559_v51  ;;  %v7558_v31 = vmax.f32 %v18350_v49, %v7366_v63  ;;  %8044 = vst.msk [vmem:[%s17241_s3 + $0x270] sm:$0xff] %vm7965_vm2, %v7851_v2  ;;  %v7854_v35 = vmax.f32 %v7662_v58, 0.0  ;;  %v7272_v36 = vmax.f32 %v18353_v25, %v5009_v1  ;;  %v10842_v4 = vpop.f32.mrf.mxu1  ;;  %v18370_v63 = vld [vmem:[#allocation63_spill] sm:$0xff] }
 0x3c9   :  { %v7661_v45 = vadd.f32 %v16814_v44, %v7462_v3  ;;  %v7465_v47 = vmax.f32 %v18352_v41, %v7273_v24  ;;  %8140 = vst.msk [vmem:[%s17241_s3 + $0x570] sm:$0xff] %vm7965_vm2, %v7947_v19  ;;  %v18356_v40 = vmax.f32 %v18354_v50, %v18355_v33  ;;  %v7368_v20 = vmax.f32 %v18357_v11, %v6929_v39  ;;  %v10269_v3 = vpop.f32.mrf.mxu0  ;;  %v18374_v19 = vld [vmem:[#allocation36_spill] sm:$0xff]  ;;  %v18379_v41 = vld [vmem:[#allocation10_spill] sm:$0xff] }
 0x3ca   :  { %v7950_v22 = vmax.f32 %v7758_v18, 0.0  ;;  %v7757_v28 = vadd.f32 %v16814_v44, %v7558_v31  ;;  %8047 = vst.msk [vmem:[%s17241_s3 + $0x288] sm:$0xff] %vm7965_vm2, %v7854_v35  ;;  %v18360_v16 = vmax.f32 %v18358_v48, %v18359_v17  ;;  %v7275_v46 = vmax.f32 %v18361_v32, %v10266_v55  ;;  %v6939_v26 = vpop.f32.mrf.mxu1  ;;  %v18375_v18 = vld [vmem:[#allocation18_spill] sm:$0xff]  ;;  %v18377_v31 = vld [vmem:[#allocation73_spill] sm:$0xff]  ;;  %v18382_v33 = vld [vmem:[#allocation64_spill] sm:$0xff] }
 0x3cb   :  { %v7561_v57 = vmax.f32 %v18356_v40, %v7369_v12  ;;  %v7853_v53 = vmax.f32 %v7661_v45, 0.0  ;;  %v7664_v21 = vadd.f32 %v16814_v44, %v7465_v47  ;;  %v18364_v13 = vmax.f32 %v18362_v43, %v18363_v52  ;;  %v18383_v40 = vld [vmem:[#allocation13_spill] sm:$0xff]  ;;  %v18386_v17 = vld [vmem:[#allocation7_spill] sm:$0xff] }
 0x3cc   :  { %v7464_v27 = vmax.f32 %v18360_v16, %v7272_v36  ;;  %8143 = vst.msk [vmem:[%s17241_s3 + $0x588] sm:$0xff] %vm7965_vm2, %v7950_v22  ;;  %v7949_v54 = vmax.f32 %v7757_v28, 0.0  ;;  %v7371_v30 = vmax.f32 %v18365_v7, %v10842_v4  ;;  %v18368_v9 = vmax.f32 %v18366_v0, %v18367_v6  ;;  %v10845_v1 = vpop.f32.mrf.mxu1  ;;  %v18381_v36 = vld [vmem:[#allocation49_spill] sm:$0xff]  ;;  %v5029_v22 = vpop.f32.mrf.mxu0  ;;  %v18387_v16 = vld [vmem:[#allocation38_spill] sm:$0xff]  ;;  %v18390_v52 = vld [vmem:[#allocation71_spill] sm:$0xff] }
 0x3cd   :  { %v7760_v56 = vadd.f32 %v16814_v44, %v7561_v57  ;;  %v7560_v60 = vmax.f32 %v18364_v13, %v7368_v20  ;;  %8046 = vst.msk [vmem:[%s17241_s3 + $0x280] sm:$0xff] %vm7965_vm2, %v7853_v53  ;;  %v7856_v38 = vmax.f32 %v7664_v21, 0.0  ;;  %v7274_v14 = vmax.f32 %v18369_v62, %v5019_v23  ;;  %v18385_v20 = vld [vmem:[#allocation19_spill] sm:$0xff]  ;;  %v18394_v6 = vld [vmem:[#allocation21_spill] sm:$0xff] }
 0x3ce   :  { %v7663_v59 = vadd.f32 %v16814_v44, %v7464_v27  ;;  %v7467_v15 = vmax.f32 %v18368_v9, %v7275_v46  ;;  %8142 = vst.msk [vmem:[%s17241_s3 + $0x580] sm:$0xff] %vm7965_vm2, %v7949_v54  ;;  %v18372_v2 = vmax.f32 %v18370_v63, %v18371_v61  ;;  %v7370_v37 = vmax.f32 %v18373_v42, %v6939_v26  ;;  %v6949_v53 = vpop.f32.mrf.mxu1  ;;  %v18389_v46 = vld [vmem:[#allocation59_spill] sm:$0xff]  ;;  %v10272_v54 = vpop.f32.mrf.mxu0  ;;  %v18395_v9 = vld [vmem:[#allocation61_spill] sm:$0xff]  ;;  %v18398_v61 = vld [vmem:[#allocation42_spill] sm:$0xff] }
 0x3cf   :  { %v7952_v8 = vmax.f32 %v7760_v56, 0.0  ;;  %v7759_v51 = vadd.f32 %v16814_v44, %v7560_v60  ;;  %8049 = vst.msk [vmem:[%s17241_s3 + $0x298] sm:$0xff] %vm7965_vm2, %v7856_v38  ;;  %v18376_v10 = vmax.f32 %v18374_v19, %v18375_v18  ;;  %v7277_v12 = vmax.f32 %v18377_v31, %v10269_v3  ;;  %v18391_v13 = vld [vmem:[#allocation23_spill] sm:$0xff]  ;;  %v18402_v18 = vld [vmem:[#allocation56_spill] sm:$0xff] }
 0x3d0   :  { %v7563_v58 = vmax.f32 %v18372_v2, %v7371_v30  ;;  %v7855_v24 = vmax.f32 %v7663_v59, 0.0  ;;  %v7666_v29 = vadd.f32 %v16814_v44, %v7467_v15  ;;  %v18380_v47 = vmax.f32 %v18378_v5, %v18379_v41  ;;  %v18393_v30 = vld [vmem:[#allocation89_spill] sm:$0xff]  ;;  %v10848_v38 = vpop.f32.mrf.mxu1  ;;  %v18406_v41 = vld [vmem:[#allocation2_spill] sm:$0xff] }
 0x3d1   :  { %v7466_v49 = vmax.f32 %v18376_v10, %v7274_v14  ;;  %8145 = vst.msk [vmem:[%s17241_s3 + $0x598] sm:$0xff] %vm7965_vm2, %v7952_v8  ;;  %v7951_v35 = vmax.f32 %v7759_v51, 0.0  ;;  %v7373_v39 = vmax.f32 %v18381_v36, %v10845_v1  ;;  %v18384_v57 = vmax.f32 %v18382_v33, %v18383_v40  ;;  %v18397_v14 = vld [vmem:[#allocation40_spill] sm:$0xff]  ;;  %v5039_v8 = vpop.f32.mrf.mxu0  ;;  %v18399_v2 = vld [vmem:[#allocation53_spill] sm:$0xff] }
 0x3d2   :  { %v7762_v45 = vadd.f32 %v16814_v44, %v7563_v58  ;;  %v7562_v25 = vmax.f32 %v18380_v47, %v7370_v37  ;;  %8048 = vst.msk [vmem:[%s17241_s3 + $0x290] sm:$0xff] %vm7965_vm2, %v7855_v24  ;;  %v7858_v28 = vmax.f32 %v7666_v29, 0.0  ;;  %v7276_v55 = vmax.f32 %v18385_v20, %v5029_v22  ;;  %v18401_v37 = vld [vmem:[#allocation74_spill] sm:$0xff]  ;;  %v6959_v24 = vpop.f32.mrf.mxu1  ;;  %v18403_v10 = vld [vmem:[#allocation45_spill] sm:$0xff]  ;;  %v18410_v40 = vld [vmem:[#allocation8_spill] sm:$0xff] }
 0x3d3   :  { %v7665_v50 = vadd.f32 %v16814_v44, %v7466_v49  ;;  %v7469_v11 = vmax.f32 %v18384_v57, %v7277_v12  ;;  %8144 = vst.msk [vmem:[%s17241_s3 + $0x590] sm:$0xff] %vm7965_vm2, %v7951_v35  ;;  %v18388_v27 = vmax.f32 %v18386_v17, %v18387_v16  ;;  %v7372_v4 = vmax.f32 %v18389_v46, %v6949_v53  ;;  %v18405_v12 = vld [vmem:[#allocation35_spill] sm:$0xff]  ;;  %v10275_v35 = vpop.f32.mrf.mxu0  ;;  %v18407_v47 = vld [vmem:[#allocation69_spill] sm:$0xff]  ;;  %v18414_v16 = vld [vmem:[#allocation22_spill] sm:$0xff] }
 0x3d4   :  { %v7954_v21 = vmax.f32 %v7762_v45, 0.0  ;;  %v7761_v48 = vadd.f32 %v16814_v44, %v7562_v25  ;;  %8051 = vst.msk [vmem:[%s17241_s3 + $0x2a8] sm:$0xff] %vm7965_vm2, %v7858_v28  ;;  %v18392_v60 = vmax.f32 %v18390_v52, %v18391_v13  ;;  %v7279_v23 = vmax.f32 %v18393_v30, %v10272_v54  ;;  %v10851_v28 = vpop.f32.mrf.mxu1  ;;  %v18411_v57 = vld [vmem:[#allocation79_spill] sm:$0xff]  ;;  %v18418_v13 = vld [vmem:[#allocation30_spill] sm:$0xff] }
 0x3d5   :  { %v7565_v32 = vmax.f32 %v18388_v27, %v7373_v39  ;;  %v7857_v56 = vmax.f32 %v7665_v50, 0.0  ;;  %v7668_v43 = vadd.f32 %v16814_v44, %v7469_v11  ;;  %v18396_v15 = vmax.f32 %v18394_v6, %v18395_v9  ;;  %v18409_v39 = vld [vmem:[#allocation54_spill] sm:$0xff]  ;;  %v18422_v9 = vld [vmem:[#allocation15_spill] sm:$0xff] }
 0x3d6   :  { %v7468_v7 = vmax.f32 %v18392_v60, %v7276_v55  ;;  %8147 = vst.msk [vmem:[%s17241_s3 + $0x5a8] sm:$0xff] %vm7965_vm2, %v7954_v21  ;;  %v7953_v59 = vmax.f32 %v7761_v48, 0.0  ;;  %v7375_v26 = vmax.f32 %v18397_v14, %v10848_v38  ;;  %v18400_v58 = vmax.f32 %v18398_v61, %v18399_v2  ;;  %v18413_v55 = vld [vmem:[#allocation85_spill] sm:$0xff]  ;;  %v5049_v21 = vpop.f32.mrf.mxu0  ;;  %v18415_v27 = vld [vmem:[#allocation58_spill] sm:$0xff]  ;;  %v18419_v60 = vld [vmem:[#allocation95_spill] sm:$0xff] }
 0x3d7   :  { %v7764_v0 = vadd.f32 %v16814_v44, %v7565_v32  ;;  %v7564_v62 = vmax.f32 %v18396_v15, %v7372_v4  ;;  %8050 = vst.msk [vmem:[%s17241_s3 + $0x2a0] sm:$0xff] %vm7965_vm2, %v7857_v56  ;;  %v7860_v51 = vmax.f32 %v7668_v43, 0.0  ;;  %v7278_v3 = vmax.f32 %v18401_v37, %v5039_v8  ;;  %v18417_v4 = vld [vmem:[#allocation70_spill] sm:$0xff]  ;;  %v6969_v56 = vpop.f32.mrf.mxu1  ;;  %v18423_v15 = vld [vmem:[#allocation80_spill] sm:$0xff]  ;;  %v18426_v2 = vld [vmem:[#allocation65_spill] sm:$0xff] }
 0x3d8   :  { %v7667_v63 = vadd.f32 %v16814_v44, %v7468_v7  ;;  %v7471_v42 = vmax.f32 %v18400_v58, %v7279_v23  ;;  %8146 = vst.msk [vmem:[%s17241_s3 + $0x5a0] sm:$0xff] %vm7965_vm2, %v7953_v59  ;;  %v18404_v49 = vmax.f32 %v18402_v18, %v18403_v10  ;;  %v7374_v1 = vmax.f32 %v18405_v12, %v6959_v24  ;;  %v18421_v23 = vld [vmem:[#allocation62_spill] sm:$0xff]  ;;  %v10278_v59 = vpop.f32.mrf.mxu0 }
 0x3d9   :  { %v7956_v29 = vmax.f32 %v7764_v0, 0.0  ;;  %v7763_v19 = vadd.f32 %v16814_v44, %v7564_v62  ;;  %8053 = vst.msk [vmem:[%s17241_s3 + $0x2b8] sm:$0xff] %vm7965_vm2, %v7860_v51  ;;  %v18408_v25 = vmax.f32 %v18406_v41, %v18407_v47  ;;  %v7281_v22 = vmax.f32 %v18409_v39, %v10275_v35  ;;  %v10854_v51 = vpop.f32.mrf.mxu1  ;;  %v18427_v58 = vld [vmem:[#allocation66_spill] sm:$0xff]  ;;  %v18434_v47 = vld [vmem:[#allocation91_spill] sm:$0xff] }
 0x3da   :  { %v7567_v31 = vmax.f32 %v18404_v49, %v7375_v26  ;;  %v7859_v45 = vmax.f32 %v7667_v63, 0.0  ;;  %v7670_v5 = vadd.f32 %v16814_v44, %v7471_v42  ;;  %v18412_v11 = vmax.f32 %v18410_v40, %v18411_v57  ;;  %v18425_v26 = vld [vmem:[#allocation93_spill] sm:$0xff]  ;;  %v18430_v10 = vld [vmem:[#allocation50_spill] sm:$0xff]  ;;  %v18431_v49 = vld [vmem:[#allocation96_spill] sm:$0xff] }
 0x3db   :  { %v7470_v36 = vmax.f32 %v18408_v25, %v7278_v3  ;;  %8149 = vst.msk [vmem:[%s17241_s3 + $0x5b8] sm:$0xff] %vm7965_vm2, %v7956_v29  ;;  %v7955_v50 = vmax.f32 %v7763_v19, 0.0  ;;  %v7377_v53 = vmax.f32 %v18413_v55, %v10851_v28  ;;  %v18416_v32 = vmax.f32 %v18414_v16, %v18415_v27  ;;  %v18429_v3 = vld [vmem:[#allocation75_spill] sm:$0xff]  ;;  %v5059_v29 = vpop.f32.mrf.mxu0  ;;  %v18435_v25 = vld [vmem:[#allocation4_spill] sm:$0xff]  ;;  %v18438_v57 = vld [vmem:[#allocation86_spill] sm:$0xff] }
 0x3dc   :  { %v7766_v33 = vadd.f32 %v16814_v44, %v7567_v31  ;;  %v7566_v20 = vmax.f32 %v18412_v11, %v7374_v1  ;;  %8052 = vst.msk [vmem:[%s17241_s3 + $0x2b0] sm:$0xff] %vm7965_vm2, %v7859_v45  ;;  %v7862_v48 = vmax.f32 %v7670_v5, 0.0  ;;  %v7280_v54 = vmax.f32 %v18417_v4, %v5049_v21  ;;  %v18433_v1 = vld [vmem:[#allocation28_spill] sm:$0xff]  ;;  %v6979_v45 = vpop.f32.mrf.mxu1 }
 0x3dd   :  { %v7669_v17 = vadd.f32 %v16814_v44, %v7470_v36  ;;  %v7473_v46 = vmax.f32 %v18416_v32, %v7281_v22  ;;  %8148 = vst.msk [vmem:[%s17241_s3 + $0x5b0] sm:$0xff] %vm7965_vm2, %v7955_v50  ;;  %v18420_v7 = vmax.f32 %v18418_v13, %v18419_v60  ;;  %v7376_v38 = vmax.f32 %v18421_v23, %v6969_v56  ;;  %v18437_v22 = vld [vmem:[#allocation94_spill] sm:$0xff]  ;;  %v10281_v50 = vpop.f32.mrf.mxu0  ;;  %v18439_v11 = vld [vmem:[#allocation32_spill] sm:$0xff]  ;;  %v18446_v60 = vld [vmem:[#allocation43_spill] sm:$0xff] }
 0x3de   :  { %v7958_v43 = vmax.f32 %v7766_v33, 0.0  ;;  %v7765_v52 = vadd.f32 %v16814_v44, %v7566_v20  ;;  %8055 = vst.msk [vmem:[%s17241_s3 + $0x2c8] sm:$0xff] %vm7965_vm2, %v7862_v48  ;;  %v18424_v62 = vmax.f32 %v18422_v9, %v18423_v15  ;;  %v7283_v8 = vmax.f32 %v18425_v26, %v10278_v59  ;;  %v10857_v48 = vpop.f32.mrf.mxu1  ;;  %v18442_v27 = vld [vmem:[#allocation16_spill] sm:$0xff]  ;;  %v18450_v15 = vld [vmem:[#allocation46_spill] sm:$0xff] }
 0x3df   :  { %v7569_v30 = vmax.f32 %v18420_v7, %v7377_v53  ;;  %v7861_v0 = vmax.f32 %v7669_v17, 0.0  ;;  %v7672_v6 = vadd.f32 %v16814_v44, %v7473_v46  ;;  %v18428_v42 = vmax.f32 %v18426_v2, %v18427_v58  ;;  %v18441_v53 = vld [vmem:[#allocation90_spill] sm:$0xff]  ;;  %v18443_v32 = vld [vmem:[#allocation48_spill] sm:$0xff]  ;;  %v18447_v7 = vld [vmem:[#allocation81_spill] sm:$0xff] }
 0x3e0   :  { %v7472_v14 = vmax.f32 %v18424_v62, %v7280_v54  ;;  %8151 = vst.msk [vmem:[%s17241_s3 + $0x5c8] sm:$0xff] %vm7965_vm2, %v7958_v43  ;;  %v7957_v63 = vmax.f32 %v7765_v52, 0.0  ;;  %v7379_v24 = vmax.f32 %v18429_v3, %v10854_v51  ;;  %v18432_v31 = vmax.f32 %v18430_v10, %v18431_v49  ;;  %v18445_v54 = vld [vmem:[#allocation6_spill] sm:$0xff]  ;;  %v5069_v43 = vpop.f32.mrf.mxu0  ;;  %v18451_v62 = vld [vmem:[#allocation67_spill] sm:$0xff]  ;;  %v18456_v3 = vld [vmem:[#allocation57_spill] sm:$0xff] }
 0x3e1   :  { %v7768_v61 = vadd.f32 %v16814_v44, %v7569_v30  ;;  %v7568_v37 = vmax.f32 %v18428_v42, %v7376_v38  ;;  %8054 = vst.msk [vmem:[%s17241_s3 + $0x2c0] sm:$0xff] %vm7965_vm2, %v7861_v0  ;;  %v7864_v19 = vmax.f32 %v7672_v6, 0.0  ;;  %v7282_v35 = vmax.f32 %v18433_v1, %v5059_v29  ;;  %v18449_v38 = vld [vmem:[#allocation33_spill] sm:$0xff]  ;;  %v6989_v0 = vpop.f32.mrf.mxu1  ;;  %v18454_v2 = vld [vmem:[#allocation87_spill] sm:$0xff] }
 0x3e2   :  { %v7671_v18 = vadd.f32 %v16814_v44, %v7472_v14  ;;  %v7475_v12 = vmax.f32 %v18432_v31, %v7283_v8  ;;  %8150 = vst.msk [vmem:[%s17241_s3 + $0x5c0] sm:$0xff] %vm7965_vm2, %v7957_v63  ;;  %v18436_v36 = vmax.f32 %v18434_v47, %v18435_v25  ;;  %v7378_v28 = vmax.f32 %v18437_v22, %v6979_v45 }
 0x3e3   :  { %v7960_v5 = vmax.f32 %v7768_v61, 0.0  ;;  %v7767_v41 = vadd.f32 %v16814_v44, %v7568_v37  ;;  %8057 = vst.msk [vmem:[%s17241_s3 + $0x2d8] sm:$0xff] %vm7965_vm2, %v7864_v19  ;;  %v18440_v20 = vmax.f32 %v18438_v57, %v18439_v11  ;;  %v7285_v21 = vmax.f32 %v18441_v53, %v10281_v50  ;;  %v18453_v61 = vld [vmem:[#allocation37_spill] sm:$0xff] }
 0x3e4   :  { %v7571_v39 = vmax.f32 %v18436_v36, %v7379_v24  ;;  %v7863_v33 = vmax.f32 %v7671_v18, 0.0  ;;  %v7674_v40 = vadd.f32 %v16814_v44, %v7475_v12  ;;  %v18444_v46 = vmax.f32 %v18442_v27, %v18443_v32  ;;  %v18457_v24 = vld [vmem:[#allocation39_spill] sm:$0xff] }
 0x3e5   :  { %v7474_v55 = vmax.f32 %v18440_v20, %v7282_v35  ;;  %8153 = vst.msk [vmem:[%s17241_s3 + $0x5d8] sm:$0xff] %vm7965_vm2, %v7960_v5  ;;  %v7959_v17 = vmax.f32 %v7767_v41, 0.0  ;;  %v7381_v56 = vmax.f32 %v18445_v54, %v10857_v48  ;;  %v18448_v30 = vmax.f32 %v18446_v60, %v18447_v7 }
 0x3e6   :  { %v7770_v16 = vadd.f32 %v16814_v44, %v7571_v39  ;;  %v7570_v4 = vmax.f32 %v18444_v46, %v7378_v28  ;;  %8056 = vst.msk [vmem:[%s17241_s3 + $0x2d0] sm:$0xff] %vm7965_vm2, %v7863_v33  ;;  %v7866_v52 = vmax.f32 %v7674_v40, 0.0  ;;  %v7284_v59 = vmax.f32 %v18449_v38, %v5069_v43 }
 0x3e7   :  { %v7673_v13 = vadd.f32 %v16814_v44, %v7474_v55  ;;  %v7477_v23 = vmax.f32 %v18448_v30, %v7285_v21  ;;  %8152 = vst.msk [vmem:[%s17241_s3 + $0x5d0] sm:$0xff] %vm7965_vm2, %v7959_v17  ;;  %v18452_v14 = vmax.f32 %v18450_v15, %v18451_v62  ;;  %v7380_v8 = vmax.f32 %v16802_v34, %v6989_v0 }
 0x3e8   :  { %v7962_v6 = vmax.f32 %v7770_v16, 0.0  ;;  %v7769_v9 = vadd.f32 %v16814_v44, %v7570_v4  ;;  %8059 = vst.msk [vmem:[%s17241_s3 + $0x2e8] sm:$0xff] %vm7965_vm2, %v7866_v52  ;;  %v18455_v58 = vmax.f32 %v18453_v61, %v18454_v2  ;;  %v18458_v29 = vmax.f32 %v18456_v3, %v18457_v24 }
 0x3e9   :  { %v7573_v26 = vmax.f32 %v18452_v14, %v7381_v56  ;;  %v7865_v51 = vmax.f32 %v7673_v13, 0.0  ;;  %v7676_v63 = vadd.f32 %v16814_v44, %v7477_v23 }
 0x3ea   :  { %v7476_v42 = vmax.f32 %v18455_v58, %v7284_v59  ;;  %8155 = vst.msk [vmem:[%s17241_s3 + $0x5e8] sm:$0xff] %vm7965_vm2, %v7962_v6  ;;  %v7961_v37 = vmax.f32 %v7769_v9, 0.0  ;;  %v7572_v19 = vmax.f32 %v18458_v29, %v7380_v8 }
 0x3eb   :  { %v7772_v34 = vadd.f32 %v16814_v44, %v7573_v26  ;;  %8058 = vst.msk [vmem:[%s17241_s3 + $0x2e0] sm:$0xff] %vm7965_vm2, %v7865_v51  ;;  %v7868_v18 = vmax.f32 %v7676_v63, 0.0 }
 0x3ec   :  { %v7675_v10 = vadd.f32 %v16814_v44, %v7476_v42  ;;  %8154 = vst.msk [vmem:[%s17241_s3 + $0x5e0] sm:$0xff] %vm7965_vm2, %v7961_v37  ;;  %v7771_v31 = vadd.f32 %v16814_v44, %v7572_v19 }
 0x3ed   :  { %v7964_v49 = vmax.f32 %v7772_v34, 0.0  ;;  %8061 = vst.msk [vmem:[%s17241_s3 + $0x2f8] sm:$0xff] %vm7965_vm2, %v7868_v18 }
 0x3ee   :  { %v7867_v12 = vmax.f32 %v7675_v10, 0.0  ;;  %v7963_v1 = vmax.f32 %v7771_v31, 0.0 }
 0x3ef   :  { %8157 = vst.msk [vmem:[%s17241_s3 + $0x5f8] sm:$0xff] %vm7965_vm2, %v7964_v49 }
 0x3f0   :  { %8060 = vst.msk [vmem:[%s17241_s3 + $0x2f0] sm:$0xff] %vm7965_vm2, %v7867_v12  ;;  %8156 = vst.msk [vmem:[%s17241_s3 + $0x5f0] sm:$0xff] %vm7965_vm2, %v7963_v1 }

</bundles_post_ra>
